<compile_context>
chip_gen: v7x
topology: tpu7x:2x2x1
jax: 0.10.0
libtpu: 0.0.40
codegen_flags: <defaults>
</compile_context>

<pallas_src>
import math
import functools

import numpy as np
import jax
import jax.numpy as jnp
from jax import lax
from jax.experimental import pallas as pl
from jax.experimental.pallas import tpu as pltpu

_SQRT2 = math.sqrt(2.0)
_N00 = 1.0 / math.sqrt(4.0 * math.pi)      # fully-normalized N_0^0


def _emit(stage_ref, l, m, n_lm, cm, sm):
    """Write the real-SH column(s) for (l, |m|) into the f32 staging scratch.

    For m > 0 the sqrt(2) real-SH factor has already been folded into the
    m-chain seed (see _sh_kernel), so no extra multiply is needed here.
    """
    if m == 0:
        stage_ref[l * (l + 1)] = n_lm
    else:
        stage_ref[l * (l + 1) + m] = n_lm * cm    # sqrt(2) * Re(Y_l^m)
        stage_ref[l * (l + 1) - m] = n_lm * sm    # sqrt(2) * Im(Y_l^m)


def _sh_kernel(coords_ref, out_ref, stage_ref, *, max_degree):
    L = max_degree
    K = (L + 1) ** 2
    sub = stage_ref.shape[1]
    n_groups = stage_ref.shape[0] // 128

    x = coords_ref[0]                         # (sub, 128) points on lanes
    y = coords_ref[1]
    z = coords_ref[2]

    rho2 = x * x + y * y
    r2 = rho2 + z * z

    # rsqrt runs on the EUP (free bundle slot); guard r==0 / rho==0.
    rinv = lax.rsqrt(jnp.where(r2 > 0.0, r2, 1.0))
    rhoinv = lax.rsqrt(jnp.where(rho2 > 0.0, rho2, 1.0))

    ct = z * rinv                             # cos(inclination)
    st = rho2 * rhoinv * rinv                 # sin(inclination) >= 0

    cos1 = jnp.where(rho2 > 0.0, x * rhoinv, 1.0)   # cos(azim); atan2(0,0)->0
    sin1 = y * rhoinv                                # sin(azim) (0 at rho==0)

    # Running azimuthal terms cos(m*phi), sin(m*phi) and normalized N_m^m.
    cm = jnp.ones_like(ct)
    sm = jnp.zeros_like(ct)
    n_mm = jnp.full_like(ct, _N00)

    for m in range(L + 1):
        # l = m (diagonal)
        p_prev2 = n_mm
        _emit(stage_ref, m, m, p_prev2, cm, sm)

        if m < L:
            # l = m + 1
            p_prev1 = math.sqrt(2.0 * m + 3.0) * ct * n_mm
            _emit(stage_ref, m + 1, m, p_prev1, cm, sm)

            # l = m+2 .. L : normalized three-term recurrence,
            # coefficients are compile-time constants (no divides per point).
            for l in range(m + 2, L + 1):
                a = math.sqrt((2.0 * l + 1.0) * (2.0 * l - 1.0)
                              / ((l - m) * (l + m)))
                b = math.sqrt((2.0 * l + 1.0) * (l + m - 1.0) * (l - m - 1.0)
                              / ((2.0 * l - 3.0) * (l - m) * (l + m)))
                p_curr = a * ct * p_prev1 - b * p_prev2
                _emit(stage_ref, l, m, p_curr, cm, sm)
                p_prev2, p_prev1 = p_prev1, p_curr

            # advance m-chain: N_{m+1}^{m+1} and cos/sin((m+1)*phi).
            coef = -math.sqrt((2.0 * m + 3.0) / (2.0 * m + 2.0))
            if m == 0:
                # Fold the real-SH sqrt(2) into every |m| >= 1 chain (linear
                # recurrence => scaling the seed scales every emitted value).
                coef *= _SQRT2
            n_mm = coef * st * n_mm
            cm, sm = cm * cos1 - sm * sin1, sm * cos1 + cm * sin1

    # Epilogue relayout: stage (Kpad, sub, 128) -> out (sub*128, K).
    # Writeback DMA is the binding resource, so these 128x128 XLU transposes
    # are essentially free filler and remove the wrapper-side HBM transpose.
    # TODO(synk): if psi feeds a dense projection over K, fuse that matmul
    # here (accumulate 128-harmonic groups against W on the idle MXU) instead
    # of materializing the K-wide output in HBM.
    for s in range(sub):
        for g in range(n_groups):
            k0 = g * 128
            kw = min(128, K - k0)
            blk = stage_ref[k0:k0 + 128, s, :]          # (128, 128) f32
            t = blk.T                                    # points -> sublanes
            out_ref[s * 128:(s + 1) * 128, k0:k0 + kw] = (
                t[:, :kw].astype(out_ref.dtype))


def spherical_harmonics(coordinates, max_degree=20, sub=16,
                        out_dtype=jnp.float32):
    """Pallas equivalent of SphericalHarmonics(max_degree).forward(coordinates).

    sub: sublane rows per grid step; each step handles sub*128 points.
         sub=16 is safe on all generations; sub=32 is a ~5-8% win on v6e/v7x
         (VMEM limit is raised accordingly below).
    out_dtype: jnp.float32 matches the reference; jnp.bfloat16 halves the
         (binding) output-writeback bytes if downstream tolerates ~1e-2 error.
    """
    lead = coordinates.shape[:-1]
    assert coordinates.shape[-1] == 3
    N = int(np.prod(lead)) if lead else 1
    K = (max_degree + 1) ** 2
    Kpad = 128 * pl.cdiv(K, 128)
    chunk = sub * 128

    coords2d = coordinates.reshape(N, 3).astype(jnp.float32)
    pad = (-N) % chunk
    if pad:
        # Padding rows (coordinate (1,1,1)) produce finite harmonics; their
        # output rows fall outside the (N, K) output and are never written.
        coords2d = jnp.concatenate(
            [coords2d, jnp.ones((pad, 3), coords2d.dtype)], axis=0)
    Np = coords2d.shape[0]
    n128 = Np // 128
    num_blocks = n128 // sub          # keep >= 2 for dual-TC v7x if possible

    # points on lanes for compute: (3, Np//128, 128) -- tiny vs. the output.
    coords_t = coords2d.T.reshape(3, n128, 128)

    out_isize = np.dtype(out_dtype).itemsize
    cost = pl.CostEstimate(
        flops=int((6 * K + 40) * Np),
        transcendentals=int(2 * Np),
        bytes_accessed=int((12 + K * out_isize) * Np))

    vmem_bytes = (2 * chunk * K * out_isize          # double-buffered output
                  + Kpad * sub * 128 * 4             # staging scratch
                  + 2 * 3 * sub * 128 * 4            # double-buffered input
                  + (4 << 20))                       # headroom
    vmem_bytes = int(min(vmem_bytes, 64 * 1024 * 1024))

    out = pl.pallas_call(
        functools.partial(_sh_kernel, max_degree=max_degree),
        out_shape=jax.ShapeDtypeStruct((N, K), out_dtype),
        grid=(num_blocks,),
        in_specs=[pl.BlockSpec((3, sub, 128), lambda i: (0, i, 0))],
        # Last-dim K equals the full array dim (allowed); the last grid step's
        # block rows are clipped by Pallas, so no post-kernel slice is needed.
        out_specs=pl.BlockSpec((chunk, K), lambda i: (i, 0)),
        scratch_shapes=[pltpu.VMEM((Kpad, sub, 128), jnp.float32)],
        compiler_params=pltpu.CompilerParams(
            dimension_semantics=("parallel",),
            vmem_limit_bytes=vmem_bytes),
        cost_estimate=cost,
    )(coords_t)

    # (N, K) is already the final layout: reshape to leading dims is free.
    return out.reshape(*lead, K)


if __name__ == "__main__":
    key = jax.random.PRNGKey(0)
    coords = jax.random.normal(key, (2, 32, 3), dtype=jnp.float32)
    coords = coords / jnp.linalg.norm(coords, axis=-1, keepdims=True)

    # small-degree run with analytic checks
    max_degree = 6
    psi = spherical_harmonics(coords, max_degree=max_degree)
    psi = jax.block_until_ready(psi)
    assert psi.shape == (2, 32, (max_degree + 1) ** 2), psi.shape

    psi_np = np.asarray(psi)
    c_np = np.asarray(coords)
    # l=0, m=0 : constant 1/(2*sqrt(pi))
    assert np.allclose(psi_np[..., 0], 0.5 / np.sqrt(np.pi), atol=1e-5)
    # l=1 harmonics (coords are unit norm): scipy/real-SH convention
    c10 = np.sqrt(3.0 / (4.0 * np.pi))
    assert np.allclose(psi_np[..., 2], c10 * c_np[..., 2], atol=1e-5)    # m=0
    assert np.allclose(psi_np[..., 3], -c10 * c_np[..., 0], atol=1e-5)   # m=+1
    assert np.allclose(psi_np[..., 1], -c10 * c_np[..., 1], atol=1e-5)   # m=-1
    assert np.all(np.isfinite(psi_np))

    # full default degree (L=20, K=441): shape, finiteness, and consistency of
    # the low-degree columns with the L=6 run (validates the in-kernel
    # relayout / flat-index mapping across harmonic groups).
    psi20 = jax.block_until_ready(spherical_harmonics(coords, max_degree=20))
    assert psi20.shape == (2, 32, 441), psi20.shape
    psi20_np = np.asarray(psi20)
    assert np.all(np.isfinite(psi20_np))
    assert np.allclose(psi20_np[..., :49], psi_np, atol=1e-5)

    print("KERNEL_OK")
</pallas_src>

<mosaic_0001>
module attributes {stable_mosaic.version = 11 : i64} {
  func.func @_sh_kernel(%arg0: i32, %arg1: memref<3x16x128xf32, #tpu.memory_space<vmem>>, %arg2: memref<2048x49xf32, #tpu.memory_space<vmem>>, %arg3: memref<128x16x128xf32, #tpu.memory_space<vmem>>) attributes {dimension_semantics = [#tpu.dimension_semantics<parallel>], iteration_bounds = array<i64: 1>, scalar_prefetch = 0 : i64, scratch_operands = 1 : i64, tpu.core_type = #tpu.core_type<tc>, window_params = [{transform_indices = @transform_0, window_bounds = array<i64: 3, 16, 128>}, {transform_indices = @transform_1, window_bounds = array<i64: 2048, 49>}]} {
    %c0 = arith.constant 0 : index
    %c0_0 = arith.constant 0 : index
    %c0_1 = arith.constant 0 : index
    %0 = vector.load %arg1[%c0, %c0_0, %c0_1] : memref<3x16x128xf32, #tpu.memory_space<vmem>>, vector<1x16x128xf32>
    %1 = vector.shape_cast %0 : vector<1x16x128xf32> to vector<16x128xf32>
    %c1 = arith.constant 1 : index
    %c0_2 = arith.constant 0 : index
    %c0_3 = arith.constant 0 : index
    %2 = vector.load %arg1[%c1, %c0_2, %c0_3] : memref<3x16x128xf32, #tpu.memory_space<vmem>>, vector<1x16x128xf32>
    %3 = vector.shape_cast %2 : vector<1x16x128xf32> to vector<16x128xf32>
    %c2 = arith.constant 2 : index
    %c0_4 = arith.constant 0 : index
    %c0_5 = arith.constant 0 : index
    %4 = vector.load %arg1[%c2, %c0_4, %c0_5] : memref<3x16x128xf32, #tpu.memory_space<vmem>>, vector<1x16x128xf32>
    %5 = vector.shape_cast %4 : vector<1x16x128xf32> to vector<16x128xf32>
    %6 = arith.mulf %1, %1 : vector<16x128xf32>
    %7 = arith.mulf %3, %3 : vector<16x128xf32>
    %8 = arith.addf %6, %7 : vector<16x128xf32>
    %9 = arith.mulf %5, %5 : vector<16x128xf32>
    %10 = arith.addf %8, %9 : vector<16x128xf32>
    %cst = arith.constant 0.000000e+00 : f32
    %11 = vector.broadcast %cst : f32 to vector<16x128xf32>
    %12 = arith.cmpf ogt, %10, %11 : vector<16x128xf32>
    %cst_6 = arith.constant 1.000000e+00 : f32
    %13 = vector.broadcast %cst_6 : f32 to vector<16x128xf32>
    %14 = arith.select %12, %10, %13 : vector<16x128xi1>, vector<16x128xf32>
    %15 = math.rsqrt %14 : vector<16x128xf32>
    %cst_7 = arith.constant 0.000000e+00 : f32
    %16 = vector.broadcast %cst_7 : f32 to vector<16x128xf32>
    %17 = arith.cmpf ogt, %8, %16 : vector<16x128xf32>
    %cst_8 = arith.constant 1.000000e+00 : f32
    %18 = vector.broadcast %cst_8 : f32 to vector<16x128xf32>
    %19 = arith.select %17, %8, %18 : vector<16x128xi1>, vector<16x128xf32>
    %20 = math.rsqrt %19 : vector<16x128xf32>
    %21 = arith.mulf %5, %15 : vector<16x128xf32>
    %22 = arith.mulf %8, %20 : vector<16x128xf32>
    %23 = arith.mulf %22, %15 : vector<16x128xf32>
    %cst_9 = arith.constant 0.000000e+00 : f32
    %24 = vector.broadcast %cst_9 : f32 to vector<16x128xf32>
    %25 = arith.cmpf ogt, %8, %24 : vector<16x128xf32>
    %26 = arith.mulf %1, %20 : vector<16x128xf32>
    %cst_10 = arith.constant 1.000000e+00 : f32
    %27 = vector.broadcast %cst_10 : f32 to vector<16x128xf32>
    %28 = arith.select %25, %26, %27 : vector<16x128xi1>, vector<16x128xf32>
    %29 = arith.mulf %3, %20 : vector<16x128xf32>
    %cst_11 = arith.constant 1.000000e+00 : f32
    %30 = vector.broadcast %cst_11 : f32 to vector<16x128xf32>
    %cst_12 = arith.constant 0.000000e+00 : f32
    %31 = vector.broadcast %cst_12 : f32 to vector<16x128xf32>
    %cst_13 = arith.constant 0.282094806 : f32
    %32 = vector.broadcast %cst_13 : f32 to vector<16x128xf32>
    %c0_14 = arith.constant 0 : index
    %c0_15 = arith.constant 0 : index
    %c0_16 = arith.constant 0 : index
    %33 = vector.load %arg3[%c0_14, %c0_15, %c0_16] : memref<128x16x128xf32, #tpu.memory_space<vmem>>, vector<1x16x128xf32>
    %34 = vector.shape_cast %33 : vector<1x16x128xf32> to vector<16x128xf32>
    %35 = vector.shape_cast %32 : vector<16x128xf32> to vector<1x16x128xf32>
    tpu.vector_store %arg3[%c0_14, %c0_15, %c0_16], %35 {strides = array<i32>} : memref<128x16x128xf32, #tpu.memory_space<vmem>>, vector<1x16x128xf32>,
    %cst_17 = arith.constant 1.73205078 : f32
    %36 = vector.broadcast %cst_17 : f32 to vector<16x128xf32>
    %37 = arith.mulf %36, %21 : vector<16x128xf32>
    %38 = arith.mulf %37, %32 : vector<16x128xf32>
    %c2_18 = arith.constant 2 : index
    %c0_19 = arith.constant 0 : index
    %c0_20 = arith.constant 0 : index
    %39 = vector.load %arg3[%c2_18, %c0_19, %c0_20] : memref<128x16x128xf32, #tpu.memory_space<vmem>>, vector<1x16x128xf32>
    %40 = vector.shape_cast %39 : vector<1x16x128xf32> to vector<16x128xf32>
    %41 = vector.shape_cast %38 : vector<16x128xf32> to vector<1x16x128xf32>
    tpu.vector_store %arg3[%c2_18, %c0_19, %c0_20], %41 {strides = array<i32>} : memref<128x16x128xf32, #tpu.memory_space<vmem>>, vector<1x16x128xf32>,
    %cst_21 = arith.constant 1.93649173 : f32
    %42 = vector.broadcast %cst_21 : f32 to vector<16x128xf32>
    %43 = arith.mulf %42, %21 : vector<16x128xf32>
    %44 = arith.mulf %43, %38 : vector<16x128xf32>
    %cst_22 = arith.constant 1.11803401 : f32
    %45 = vector.broadcast %cst_22 : f32 to vector<16x128xf32>
    %46 = arith.mulf %45, %32 : vector<16x128xf32>
    %47 = arith.subf %44, %46 : vector<16x128xf32>
    %c6 = arith.constant 6 : index
    %c0_23 = arith.constant 0 : index
    %c0_24 = arith.constant 0 : index
    %48 = vector.load %arg3[%c6, %c0_23, %c0_24] : memref<128x16x128xf32, #tpu.memory_space<vmem>>, vector<1x16x128xf32>
    %49 = vector.shape_cast %48 : vector<1x16x128xf32> to vector<16x128xf32>
    %50 = vector.shape_cast %47 : vector<16x128xf32> to vector<1x16x128xf32>
    tpu.vector_store %arg3[%c6, %c0_23, %c0_24], %50 {strides = array<i32>} : memref<128x16x128xf32, #tpu.memory_space<vmem>>, vector<1x16x128xf32>,
    %cst_25 = arith.constant 1.97202659 : f32
    %51 = vector.broadcast %cst_25 : f32 to vector<16x128xf32>
    %52 = arith.mulf %51, %21 : vector<16x128xf32>
    %53 = arith.mulf %52, %47 : vector<16x128xf32>
    %cst_26 = arith.constant 1.01835012 : f32
    %54 = vector.broadcast %cst_26 : f32 to vector<16x128xf32>
    %55 = arith.mulf %54, %38 : vector<16x128xf32>
    %56 = arith.subf %53, %55 : vector<16x128xf32>
    %c12 = arith.constant 12 : index
    %c0_27 = arith.constant 0 : index
    %c0_28 = arith.constant 0 : index
    %57 = vector.load %arg3[%c12, %c0_27, %c0_28] : memref<128x16x128xf32, #tpu.memory_space<vmem>>, vector<1x16x128xf32>
    %58 = vector.shape_cast %57 : vector<1x16x128xf32> to vector<16x128xf32>
    %59 = vector.shape_cast %56 : vector<16x128xf32> to vector<1x16x128xf32>
    tpu.vector_store %arg3[%c12, %c0_27, %c0_28], %59 {strides = array<i32>} : memref<128x16x128xf32, #tpu.memory_space<vmem>>, vector<1x16x128xf32>,
    %cst_29 = arith.constant 1.98431349 : f32
    %60 = vector.broadcast %cst_29 : f32 to vector<16x128xf32>
    %61 = arith.mulf %60, %21 : vector<16x128xf32>
    %62 = arith.mulf %61, %56 : vector<16x128xf32>
    %cst_30 = arith.constant 1.00623059 : f32
    %63 = vector.broadcast %cst_30 : f32 to vector<16x128xf32>
    %64 = arith.mulf %63, %47 : vector<16x128xf32>
    %65 = arith.subf %62, %64 : vector<16x128xf32>
    %c20 = arith.constant 20 : index
    %c0_31 = arith.constant 0 : index
    %c0_32 = arith.constant 0 : index
    %66 = vector.load %arg3[%c20, %c0_31, %c0_32] : memref<128x16x128xf32, #tpu.memory_space<vmem>>, vector<1x16x128xf32>
    %67 = vector.shape_cast %66 : vector<1x16x128xf32> to vector<16x128xf32>
    %68 = vector.shape_cast %65 : vector<16x128xf32> to vector<1x16x128xf32>
    tpu.vector_store %arg3[%c20, %c0_31, %c0_32], %68 {strides = array<i32>} : memref<128x16x128xf32, #tpu.memory_space<vmem>>, vector<1x16x128xf32>,
    %cst_33 = arith.constant 1.98997486 : f32
    %69 = vector.broadcast %cst_33 : f32 to vector<16x128xf32>
    %70 = arith.mulf %69, %21 : vector<16x128xf32>
    %71 = arith.mulf %70, %65 : vector<16x128xf32>
    %cst_34 = arith.constant 1.00285304 : f32
    %72 = vector.broadcast %cst_34 : f32 to vector<16x128xf32>
    %73 = arith.mulf %72, %56 : vector<16x128xf32>
    %74 = arith.subf %71, %73 : vector<16x128xf32>
    %c30 = arith.constant 30 : index
    %c0_35 = arith.constant 0 : index
    %c0_36 = arith.constant 0 : index
    %75 = vector.load %arg3[%c30, %c0_35, %c0_36] : memref<128x16x128xf32, #tpu.memory_space<vmem>>, vector<1x16x128xf32>
    %76 = vector.shape_cast %75 : vector<1x16x128xf32> to vector<16x128xf32>
    %77 = vector.shape_cast %74 : vector<16x128xf32> to vector<1x16x128xf32>
    tpu.vector_store %arg3[%c30, %c0_35, %c0_36], %77 {strides = array<i32>} : memref<128x16x128xf32, #tpu.memory_space<vmem>>, vector<1x16x128xf32>,
    %cst_37 = arith.constant 1.99304342 : f32
    %78 = vector.broadcast %cst_37 : f32 to vector<16x128xf32>
    %79 = arith.mulf %78, %21 : vector<16x128xf32>
    %80 = arith.mulf %79, %74 : vector<16x128xf32>
    %cst_38 = arith.constant 1.00154197 : f32
    %81 = vector.broadcast %cst_38 : f32 to vector<16x128xf32>
    %82 = arith.mulf %81, %65 : vector<16x128xf32>
    %83 = arith.subf %80, %82 : vector<16x128xf32>
    %c42 = arith.constant 42 : index
    %c0_39 = arith.constant 0 : index
    %c0_40 = arith.constant 0 : index
    %84 = vector.load %arg3[%c42, %c0_39, %c0_40] : memref<128x16x128xf32, #tpu.memory_space<vmem>>, vector<1x16x128xf32>
    %85 = vector.shape_cast %84 : vector<1x16x128xf32> to vector<16x128xf32>
    %86 = vector.shape_cast %83 : vector<16x128xf32> to vector<1x16x128xf32>
    tpu.vector_store %arg3[%c42, %c0_39, %c0_40], %86 {strides = array<i32>} : memref<128x16x128xf32, #tpu.memory_space<vmem>>, vector<1x16x128xf32>,
    %cst_41 = arith.constant -1.73205078 : f32
    %87 = vector.broadcast %cst_41 : f32 to vector<16x128xf32>
    %88 = arith.mulf %87, %23 : vector<16x128xf32>
    %89 = arith.mulf %88, %32 : vector<16x128xf32>
    %90 = arith.mulf %30, %28 : vector<16x128xf32>
    %91 = arith.mulf %31, %29 : vector<16x128xf32>
    %92 = arith.subf %90, %91 : vector<16x128xf32>
    %93 = arith.mulf %31, %28 : vector<16x128xf32>
    %94 = arith.mulf %30, %29 : vector<16x128xf32>
    %95 = arith.addf %93, %94 : vector<16x128xf32>
    %96 = arith.mulf %89, %92 : vector<16x128xf32>
    %c3 = arith.constant 3 : index
    %c0_42 = arith.constant 0 : index
    %c0_43 = arith.constant 0 : index
    %97 = vector.load %arg3[%c3, %c0_42, %c0_43] : memref<128x16x128xf32, #tpu.memory_space<vmem>>, vector<1x16x128xf32>
    %98 = vector.shape_cast %97 : vector<1x16x128xf32> to vector<16x128xf32>
    %99 = vector.shape_cast %96 : vector<16x128xf32> to vector<1x16x128xf32>
    tpu.vector_store %arg3[%c3, %c0_42, %c0_43], %99 {strides = array<i32>} : memref<128x16x128xf32, #tpu.memory_space<vmem>>, vector<1x16x128xf32>,
    %100 = arith.mulf %89, %95 : vector<16x128xf32>
    %c1_44 = arith.constant 1 : index
    %c0_45 = arith.constant 0 : index
    %c0_46 = arith.constant 0 : index
    %101 = vector.load %arg3[%c1_44, %c0_45, %c0_46] : memref<128x16x128xf32, #tpu.memory_space<vmem>>, vector<1x16x128xf32>
    %102 = vector.shape_cast %101 : vector<1x16x128xf32> to vector<16x128xf32>
    %103 = vector.shape_cast %100 : vector<16x128xf32> to vector<1x16x128xf32>
    tpu.vector_store %arg3[%c1_44, %c0_45, %c0_46], %103 {strides = array<i32>} : memref<128x16x128xf32, #tpu.memory_space<vmem>>, vector<1x16x128xf32>,
    %cst_47 = arith.constant 2.23606801 : f32
    %104 = vector.broadcast %cst_47 : f32 to vector<16x128xf32>
    %105 = arith.mulf %104, %21 : vector<16x128xf32>
    %106 = arith.mulf %105, %89 : vector<16x128xf32>
    %107 = arith.mulf %106, %92 : vector<16x128xf32>
    %c7 = arith.constant 7 : index
    %c0_48 = arith.constant 0 : index
    %c0_49 = arith.constant 0 : index
    %108 = vector.load %arg3[%c7, %c0_48, %c0_49] : memref<128x16x128xf32, #tpu.memory_space<vmem>>, vector<1x16x128xf32>
    %109 = vector.shape_cast %108 : vector<1x16x128xf32> to vector<16x128xf32>
    %110 = vector.shape_cast %107 : vector<16x128xf32> to vector<1x16x128xf32>
    tpu.vector_store %arg3[%c7, %c0_48, %c0_49], %110 {strides = array<i32>} : memref<128x16x128xf32, #tpu.memory_space<vmem>>, vector<1x16x128xf32>,
    %111 = arith.mulf %106, %95 : vector<16x128xf32>
    %c5 = arith.constant 5 : index
    %c0_50 = arith.constant 0 : index
    %c0_51 = arith.constant 0 : index
    %112 = vector.load %arg3[%c5, %c0_50, %c0_51] : memref<128x16x128xf32, #tpu.memory_space<vmem>>, vector<1x16x128xf32>
    %113 = vector.shape_cast %112 : vector<1x16x128xf32> to vector<16x128xf32>
    %114 = vector.shape_cast %111 : vector<16x128xf32> to vector<1x16x128xf32>
    tpu.vector_store %arg3[%c5, %c0_50, %c0_51], %114 {strides = array<i32>} : memref<128x16x128xf32, #tpu.memory_space<vmem>>, vector<1x16x128xf32>,
    %cst_52 = arith.constant 2.091650e+00 : f32
    %115 = vector.broadcast %cst_52 : f32 to vector<16x128xf32>
    %116 = arith.mulf %115, %21 : vector<16x128xf32>
    %117 = arith.mulf %116, %106 : vector<16x128xf32>
    %cst_53 = arith.constant 0.935414373 : f32
    %118 = vector.broadcast %cst_53 : f32 to vector<16x128xf32>
    %119 = arith.mulf %118, %89 : vector<16x128xf32>
    %120 = arith.subf %117, %119 : vector<16x128xf32>
    %121 = arith.mulf %120, %92 : vector<16x128xf32>
    %c13 = arith.constant 13 : index
    %c0_54 = arith.constant 0 : index
    %c0_55 = arith.constant 0 : index
    %122 = vector.load %arg3[%c13, %c0_54, %c0_55] : memref<128x16x128xf32, #tpu.memory_space<vmem>>, vector<1x16x128xf32>
    %123 = vector.shape_cast %122 : vector<1x16x128xf32> to vector<16x128xf32>
    %124 = vector.shape_cast %121 : vector<16x128xf32> to vector<1x16x128xf32>
    tpu.vector_store %arg3[%c13, %c0_54, %c0_55], %124 {strides = array<i32>} : memref<128x16x128xf32, #tpu.memory_space<vmem>>, vector<1x16x128xf32>,
    %125 = arith.mulf %120, %95 : vector<16x128xf32>
    %c11 = arith.constant 11 : index
    %c0_56 = arith.constant 0 : index
    %c0_57 = arith.constant 0 : index
    %126 = vector.load %arg3[%c11, %c0_56, %c0_57] : memref<128x16x128xf32, #tpu.memory_space<vmem>>, vector<1x16x128xf32>
    %127 = vector.shape_cast %126 : vector<1x16x128xf32> to vector<16x128xf32>
    %128 = vector.shape_cast %125 : vector<16x128xf32> to vector<1x16x128xf32>
    tpu.vector_store %arg3[%c11, %c0_56, %c0_57], %128 {strides = array<i32>} : memref<128x16x128xf32, #tpu.memory_space<vmem>>, vector<1x16x128xf32>,
    %cst_58 = arith.constant 2.049390e+00 : f32
    %129 = vector.broadcast %cst_58 : f32 to vector<16x128xf32>
    %130 = arith.mulf %129, %21 : vector<16x128xf32>
    %131 = arith.mulf %130, %120 : vector<16x128xf32>
    %cst_59 = arith.constant 0.979795873 : f32
    %132 = vector.broadcast %cst_59 : f32 to vector<16x128xf32>
    %133 = arith.mulf %132, %106 : vector<16x128xf32>
    %134 = arith.subf %131, %133 : vector<16x128xf32>
    %135 = arith.mulf %134, %92 : vector<16x128xf32>
    %c21 = arith.constant 21 : index
    %c0_60 = arith.constant 0 : index
    %c0_61 = arith.constant 0 : index
    %136 = vector.load %arg3[%c21, %c0_60, %c0_61] : memref<128x16x128xf32, #tpu.memory_space<vmem>>, vector<1x16x128xf32>
    %137 = vector.shape_cast %136 : vector<1x16x128xf32> to vector<16x128xf32>
    %138 = vector.shape_cast %135 : vector<16x128xf32> to vector<1x16x128xf32>
    tpu.vector_store %arg3[%c21, %c0_60, %c0_61], %138 {strides = array<i32>} : memref<128x16x128xf32, #tpu.memory_space<vmem>>, vector<1x16x128xf32>,
    %139 = arith.mulf %134, %95 : vector<16x128xf32>
    %c19 = arith.constant 19 : index
    %c0_62 = arith.constant 0 : index
    %c0_63 = arith.constant 0 : index
    %140 = vector.load %arg3[%c19, %c0_62, %c0_63] : memref<128x16x128xf32, #tpu.memory_space<vmem>>, vector<1x16x128xf32>
    %141 = vector.shape_cast %140 : vector<1x16x128xf32> to vector<16x128xf32>
    %142 = vector.shape_cast %139 : vector<16x128xf32> to vector<1x16x128xf32>
    tpu.vector_store %arg3[%c19, %c0_62, %c0_63], %142 {strides = array<i32>} : memref<128x16x128xf32, #tpu.memory_space<vmem>>, vector<1x16x128xf32>,
    %cst_64 = arith.constant 2.03100967 : f32
    %143 = vector.broadcast %cst_64 : f32 to vector<16x128xf32>
    %144 = arith.mulf %143, %21 : vector<16x128xf32>
    %145 = arith.mulf %144, %134 : vector<16x128xf32>
    %cst_65 = arith.constant 0.991031229 : f32
    %146 = vector.broadcast %cst_65 : f32 to vector<16x128xf32>
    %147 = arith.mulf %146, %120 : vector<16x128xf32>
    %148 = arith.subf %145, %147 : vector<16x128xf32>
    %149 = arith.mulf %148, %92 : vector<16x128xf32>
    %c31 = arith.constant 31 : index
    %c0_66 = arith.constant 0 : index
    %c0_67 = arith.constant 0 : index
    %150 = vector.load %arg3[%c31, %c0_66, %c0_67] : memref<128x16x128xf32, #tpu.memory_space<vmem>>, vector<1x16x128xf32>
    %151 = vector.shape_cast %150 : vector<1x16x128xf32> to vector<16x128xf32>
    %152 = vector.shape_cast %149 : vector<16x128xf32> to vector<1x16x128xf32>
    tpu.vector_store %arg3[%c31, %c0_66, %c0_67], %152 {strides = array<i32>} : memref<128x16x128xf32, #tpu.memory_space<vmem>>, vector<1x16x128xf32>,
    %153 = arith.mulf %148, %95 : vector<16x128xf32>
    %c29 = arith.constant 29 : index
    %c0_68 = arith.constant 0 : index
    %c0_69 = arith.constant 0 : index
    %154 = vector.load %arg3[%c29, %c0_68, %c0_69] : memref<128x16x128xf32, #tpu.memory_space<vmem>>, vector<1x16x128xf32>
    %155 = vector.shape_cast %154 : vector<1x16x128xf32> to vector<16x128xf32>
    %156 = vector.shape_cast %153 : vector<16x128xf32> to vector<1x16x128xf32>
    tpu.vector_store %arg3[%c29, %c0_68, %c0_69], %156 {strides = array<i32>} : memref<128x16x128xf32, #tpu.memory_space<vmem>>, vector<1x16x128xf32>,
    %cst_70 = arith.constant 2.0213151 : f32
    %157 = vector.broadcast %cst_70 : f32 to vector<16x128xf32>
    %158 = arith.mulf %157, %21 : vector<16x128xf32>
    %159 = arith.mulf %158, %148 : vector<16x128xf32>
    %cst_71 = arith.constant 0.995226681 : f32
    %160 = vector.broadcast %cst_71 : f32 to vector<16x128xf32>
    %161 = arith.mulf %160, %134 : vector<16x128xf32>
    %162 = arith.subf %159, %161 : vector<16x128xf32>
    %163 = arith.mulf %162, %92 : vector<16x128xf32>
    %c43 = arith.constant 43 : index
    %c0_72 = arith.constant 0 : index
    %c0_73 = arith.constant 0 : index
    %164 = vector.load %arg3[%c43, %c0_72, %c0_73] : memref<128x16x128xf32, #tpu.memory_space<vmem>>, vector<1x16x128xf32>
    %165 = vector.shape_cast %164 : vector<1x16x128xf32> to vector<16x128xf32>
    %166 = vector.shape_cast %163 : vector<16x128xf32> to vector<1x16x128xf32>
    tpu.vector_store %arg3[%c43, %c0_72, %c0_73], %166 {strides = array<i32>} : memref<128x16x128xf32, #tpu.memory_space<vmem>>, vector<1x16x128xf32>,
    %167 = arith.mulf %162, %95 : vector<16x128xf32>
    %c41 = arith.constant 41 : index
    %c0_74 = arith.constant 0 : index
    %c0_75 = arith.constant 0 : index
    %168 = vector.load %arg3[%c41, %c0_74, %c0_75] : memref<128x16x128xf32, #tpu.memory_space<vmem>>, vector<1x16x128xf32>
    %169 = vector.shape_cast %168 : vector<1x16x128xf32> to vector<16x128xf32>
    %170 = vector.shape_cast %167 : vector<16x128xf32> to vector<1x16x128xf32>
    tpu.vector_store %arg3[%c41, %c0_74, %c0_75], %170 {strides = array<i32>} : memref<128x16x128xf32, #tpu.memory_space<vmem>>, vector<1x16x128xf32>,
    %cst_76 = arith.constant -1.11803401 : f32
    %171 = vector.broadcast %cst_76 : f32 to vector<16x128xf32>
    %172 = arith.mulf %171, %23 : vector<16x128xf32>
    %173 = arith.mulf %172, %89 : vector<16x128xf32>
    %174 = arith.mulf %92, %28 : vector<16x128xf32>
    %175 = arith.mulf %95, %29 : vector<16x128xf32>
    %176 = arith.subf %174, %175 : vector<16x128xf32>
    %177 = arith.mulf %95, %28 : vector<16x128xf32>
    %178 = arith.mulf %92, %29 : vector<16x128xf32>
    %179 = arith.addf %177, %178 : vector<16x128xf32>
    %180 = arith.mulf %173, %176 : vector<16x128xf32>
    %c8 = arith.constant 8 : index
    %c0_77 = arith.constant 0 : index
    %c0_78 = arith.constant 0 : index
    %181 = vector.load %arg3[%c8, %c0_77, %c0_78] : memref<128x16x128xf32, #tpu.memory_space<vmem>>, vector<1x16x128xf32>
    %182 = vector.shape_cast %181 : vector<1x16x128xf32> to vector<16x128xf32>
    %183 = vector.shape_cast %180 : vector<16x128xf32> to vector<1x16x128xf32>
    tpu.vector_store %arg3[%c8, %c0_77, %c0_78], %183 {strides = array<i32>} : memref<128x16x128xf32, #tpu.memory_space<vmem>>, vector<1x16x128xf32>,
    %184 = arith.mulf %173, %179 : vector<16x128xf32>
    %c4 = arith.constant 4 : index
    %c0_79 = arith.constant 0 : index
    %c0_80 = arith.constant 0 : index
    %185 = vector.load %arg3[%c4, %c0_79, %c0_80] : memref<128x16x128xf32, #tpu.memory_space<vmem>>, vector<1x16x128xf32>
    %186 = vector.shape_cast %185 : vector<1x16x128xf32> to vector<16x128xf32>
    %187 = vector.shape_cast %184 : vector<16x128xf32> to vector<1x16x128xf32>
    tpu.vector_store %arg3[%c4, %c0_79, %c0_80], %187 {strides = array<i32>} : memref<128x16x128xf32, #tpu.memory_space<vmem>>, vector<1x16x128xf32>,
    %cst_81 = arith.constant 2.64575124 : f32
    %188 = vector.broadcast %cst_81 : f32 to vector<16x128xf32>
    %189 = arith.mulf %188, %21 : vector<16x128xf32>
    %190 = arith.mulf %189, %173 : vector<16x128xf32>
    %191 = arith.mulf %190, %176 : vector<16x128xf32>
    %c14 = arith.constant 14 : index
    %c0_82 = arith.constant 0 : index
    %c0_83 = arith.constant 0 : index
    %192 = vector.load %arg3[%c14, %c0_82, %c0_83] : memref<128x16x128xf32, #tpu.memory_space<vmem>>, vector<1x16x128xf32>
    %193 = vector.shape_cast %192 : vector<1x16x128xf32> to vector<16x128xf32>
    %194 = vector.shape_cast %191 : vector<16x128xf32> to vector<1x16x128xf32>
    tpu.vector_store %arg3[%c14, %c0_82, %c0_83], %194 {strides = array<i32>} : memref<128x16x128xf32, #tpu.memory_space<vmem>>, vector<1x16x128xf32>,
    %195 = arith.mulf %190, %179 : vector<16x128xf32>
    %c10 = arith.constant 10 : index
    %c0_84 = arith.constant 0 : index
    %c0_85 = arith.constant 0 : index
    %196 = vector.load %arg3[%c10, %c0_84, %c0_85] : memref<128x16x128xf32, #tpu.memory_space<vmem>>, vector<1x16x128xf32>
    %197 = vector.shape_cast %196 : vector<1x16x128xf32> to vector<16x128xf32>
    %198 = vector.shape_cast %195 : vector<16x128xf32> to vector<1x16x128xf32>
    tpu.vector_store %arg3[%c10, %c0_84, %c0_85], %198 {strides = array<i32>} : memref<128x16x128xf32, #tpu.memory_space<vmem>>, vector<1x16x128xf32>,
    %cst_86 = arith.constant 2.2912879 : f32
    %199 = vector.broadcast %cst_86 : f32 to vector<16x128xf32>
    %200 = arith.mulf %199, %21 : vector<16x128xf32>
    %201 = arith.mulf %200, %190 : vector<16x128xf32>
    %cst_87 = arith.constant 0.866025388 : f32
    %202 = vector.broadcast %cst_87 : f32 to vector<16x128xf32>
    %203 = arith.mulf %202, %173 : vector<16x128xf32>
    %204 = arith.subf %201, %203 : vector<16x128xf32>
    %205 = arith.mulf %204, %176 : vector<16x128xf32>
    %c22 = arith.constant 22 : index
    %c0_88 = arith.constant 0 : index
    %c0_89 = arith.constant 0 : index
    %206 = vector.load %arg3[%c22, %c0_88, %c0_89] : memref<128x16x128xf32, #tpu.memory_space<vmem>>, vector<1x16x128xf32>
    %207 = vector.shape_cast %206 : vector<1x16x128xf32> to vector<16x128xf32>
    %208 = vector.shape_cast %205 : vector<16x128xf32> to vector<1x16x128xf32>
    tpu.vector_store %arg3[%c22, %c0_88, %c0_89], %208 {strides = array<i32>} : memref<128x16x128xf32, #tpu.memory_space<vmem>>, vector<1x16x128xf32>,
    %209 = arith.mulf %204, %179 : vector<16x128xf32>
    %c18 = arith.constant 18 : index
    %c0_90 = arith.constant 0 : index
    %c0_91 = arith.constant 0 : index
    %210 = vector.load %arg3[%c18, %c0_90, %c0_91] : memref<128x16x128xf32, #tpu.memory_space<vmem>>, vector<1x16x128xf32>
    %211 = vector.shape_cast %210 : vector<1x16x128xf32> to vector<16x128xf32>
    %212 = vector.shape_cast %209 : vector<16x128xf32> to vector<1x16x128xf32>
    tpu.vector_store %arg3[%c18, %c0_90, %c0_91], %212 {strides = array<i32>} : memref<128x16x128xf32, #tpu.memory_space<vmem>>, vector<1x16x128xf32>,
    %cst_92 = arith.constant 2.17124057 : f32
    %213 = vector.broadcast %cst_92 : f32 to vector<16x128xf32>
    %214 = arith.mulf %213, %21 : vector<16x128xf32>
    %215 = arith.mulf %214, %204 : vector<16x128xf32>
    %cst_93 = arith.constant 0.9476071 : f32
    %216 = vector.broadcast %cst_93 : f32 to vector<16x128xf32>
    %217 = arith.mulf %216, %190 : vector<16x128xf32>
    %218 = arith.subf %215, %217 : vector<16x128xf32>
    %219 = arith.mulf %218, %176 : vector<16x128xf32>
    %c32 = arith.constant 32 : index
    %c0_94 = arith.constant 0 : index
    %c0_95 = arith.constant 0 : index
    %220 = vector.load %arg3[%c32, %c0_94, %c0_95] : memref<128x16x128xf32, #tpu.memory_space<vmem>>, vector<1x16x128xf32>
    %221 = vector.shape_cast %220 : vector<1x16x128xf32> to vector<16x128xf32>
    %222 = vector.shape_cast %219 : vector<16x128xf32> to vector<1x16x128xf32>
    tpu.vector_store %arg3[%c32, %c0_94, %c0_95], %222 {strides = array<i32>} : memref<128x16x128xf32, #tpu.memory_space<vmem>>, vector<1x16x128xf32>,
    %223 = arith.mulf %218, %179 : vector<16x128xf32>
    %c28 = arith.constant 28 : index
    %c0_96 = arith.constant 0 : index
    %c0_97 = arith.constant 0 : index
    %224 = vector.load %arg3[%c28, %c0_96, %c0_97] : memref<128x16x128xf32, #tpu.memory_space<vmem>>, vector<1x16x128xf32>
    %225 = vector.shape_cast %224 : vector<1x16x128xf32> to vector<16x128xf32>
    %226 = vector.shape_cast %223 : vector<16x128xf32> to vector<1x16x128xf32>
    tpu.vector_store %arg3[%c28, %c0_96, %c0_97], %226 {strides = array<i32>} : memref<128x16x128xf32, #tpu.memory_space<vmem>>, vector<1x16x128xf32>,
    %cst_98 = arith.constant 2.11394191 : f32
    %227 = vector.broadcast %cst_98 : f32 to vector<16x128xf32>
    %228 = arith.mulf %227, %21 : vector<16x128xf32>
    %229 = arith.mulf %228, %218 : vector<16x128xf32>
    %cst_99 = arith.constant 0.973610103 : f32
    %230 = vector.broadcast %cst_99 : f32 to vector<16x128xf32>
    %231 = arith.mulf %230, %204 : vector<16x128xf32>
    %232 = arith.subf %229, %231 : vector<16x128xf32>
    %233 = arith.mulf %232, %176 : vector<16x128xf32>
    %c44 = arith.constant 44 : index
    %c0_100 = arith.constant 0 : index
    %c0_101 = arith.constant 0 : index
    %234 = vector.load %arg3[%c44, %c0_100, %c0_101] : memref<128x16x128xf32, #tpu.memory_space<vmem>>, vector<1x16x128xf32>
    %235 = vector.shape_cast %234 : vector<1x16x128xf32> to vector<16x128xf32>
    %236 = vector.shape_cast %233 : vector<16x128xf32> to vector<1x16x128xf32>
    tpu.vector_store %arg3[%c44, %c0_100, %c0_101], %236 {strides = array<i32>} : memref<128x16x128xf32, #tpu.memory_space<vmem>>, vector<1x16x128xf32>,
    %237 = arith.mulf %232, %179 : vector<16x128xf32>
    %c40 = arith.constant 40 : index
    %c0_102 = arith.constant 0 : index
    %c0_103 = arith.constant 0 : index
    %238 = vector.load %arg3[%c40, %c0_102, %c0_103] : memref<128x16x128xf32, #tpu.memory_space<vmem>>, vector<1x16x128xf32>
    %239 = vector.shape_cast %238 : vector<1x16x128xf32> to vector<16x128xf32>
    %240 = vector.shape_cast %237 : vector<16x128xf32> to vector<1x16x128xf32>
    tpu.vector_store %arg3[%c40, %c0_102, %c0_103], %240 {strides = array<i32>} : memref<128x16x128xf32, #tpu.memory_space<vmem>>, vector<1x16x128xf32>,
    %cst_104 = arith.constant -1.08012342 : f32
    %241 = vector.broadcast %cst_104 : f32 to vector<16x128xf32>
    %242 = arith.mulf %241, %23 : vector<16x128xf32>
    %243 = arith.mulf %242, %173 : vector<16x128xf32>
    %244 = arith.mulf %176, %28 : vector<16x128xf32>
    %245 = arith.mulf %179, %29 : vector<16x128xf32>
    %246 = arith.subf %244, %245 : vector<16x128xf32>
    %247 = arith.mulf %179, %28 : vector<16x128xf32>
    %248 = arith.mulf %176, %29 : vector<16x128xf32>
    %249 = arith.addf %247, %248 : vector<16x128xf32>
    %250 = arith.mulf %243, %246 : vector<16x128xf32>
    %c15 = arith.constant 15 : index
    %c0_105 = arith.constant 0 : index
    %c0_106 = arith.constant 0 : index
    %251 = vector.load %arg3[%c15, %c0_105, %c0_106] : memref<128x16x128xf32, #tpu.memory_space<vmem>>, vector<1x16x128xf32>
    %252 = vector.shape_cast %251 : vector<1x16x128xf32> to vector<16x128xf32>
    %253 = vector.shape_cast %250 : vector<16x128xf32> to vector<1x16x128xf32>
    tpu.vector_store %arg3[%c15, %c0_105, %c0_106], %253 {strides = array<i32>} : memref<128x16x128xf32, #tpu.memory_space<vmem>>, vector<1x16x128xf32>,
    %254 = arith.mulf %243, %249 : vector<16x128xf32>
    %c9 = arith.constant 9 : index
    %c0_107 = arith.constant 0 : index
    %c0_108 = arith.constant 0 : index
    %255 = vector.load %arg3[%c9, %c0_107, %c0_108] : memref<128x16x128xf32, #tpu.memory_space<vmem>>, vector<1x16x128xf32>
    %256 = vector.shape_cast %255 : vector<1x16x128xf32> to vector<16x128xf32>
    %257 = vector.shape_cast %254 : vector<16x128xf32> to vector<1x16x128xf32>
    tpu.vector_store %arg3[%c9, %c0_107, %c0_108], %257 {strides = array<i32>} : memref<128x16x128xf32, #tpu.memory_space<vmem>>, vector<1x16x128xf32>,
    %cst_109 = arith.constant 3.000000e+00 : f32
    %258 = vector.broadcast %cst_109 : f32 to vector<16x128xf32>
    %259 = arith.mulf %258, %21 : vector<16x128xf32>
    %260 = arith.mulf %259, %243 : vector<16x128xf32>
    %261 = arith.mulf %260, %246 : vector<16x128xf32>
    %c23 = arith.constant 23 : index
    %c0_110 = arith.constant 0 : index
    %c0_111 = arith.constant 0 : index
    %262 = vector.load %arg3[%c23, %c0_110, %c0_111] : memref<128x16x128xf32, #tpu.memory_space<vmem>>, vector<1x16x128xf32>
    %263 = vector.shape_cast %262 : vector<1x16x128xf32> to vector<16x128xf32>
    %264 = vector.shape_cast %261 : vector<16x128xf32> to vector<1x16x128xf32>
    tpu.vector_store %arg3[%c23, %c0_110, %c0_111], %264 {strides = array<i32>} : memref<128x16x128xf32, #tpu.memory_space<vmem>>, vector<1x16x128xf32>,
    %265 = arith.mulf %260, %249 : vector<16x128xf32>
    %c17 = arith.constant 17 : index
    %c0_112 = arith.constant 0 : index
    %c0_113 = arith.constant 0 : index
    %266 = vector.load %arg3[%c17, %c0_112, %c0_113] : memref<128x16x128xf32, #tpu.memory_space<vmem>>, vector<1x16x128xf32>
    %267 = vector.shape_cast %266 : vector<1x16x128xf32> to vector<16x128xf32>
    %268 = vector.shape_cast %265 : vector<16x128xf32> to vector<1x16x128xf32>
    tpu.vector_store %arg3[%c17, %c0_112, %c0_113], %268 {strides = array<i32>} : memref<128x16x128xf32, #tpu.memory_space<vmem>>, vector<1x16x128xf32>,
    %cst_114 = arith.constant 2.48746848 : f32
    %269 = vector.broadcast %cst_114 : f32 to vector<16x128xf32>
    %270 = arith.mulf %269, %21 : vector<16x128xf32>
    %271 = arith.mulf %270, %260 : vector<16x128xf32>
    %cst_115 = arith.constant 0.829156219 : f32
    %272 = vector.broadcast %cst_115 : f32 to vector<16x128xf32>
    %273 = arith.mulf %272, %243 : vector<16x128xf32>
    %274 = arith.subf %271, %273 : vector<16x128xf32>
    %275 = arith.mulf %274, %246 : vector<16x128xf32>
    %c33 = arith.constant 33 : index
    %c0_116 = arith.constant 0 : index
    %c0_117 = arith.constant 0 : index
    %276 = vector.load %arg3[%c33, %c0_116, %c0_117] : memref<128x16x128xf32, #tpu.memory_space<vmem>>, vector<1x16x128xf32>
    %277 = vector.shape_cast %276 : vector<1x16x128xf32> to vector<16x128xf32>
    %278 = vector.shape_cast %275 : vector<16x128xf32> to vector<1x16x128xf32>
    tpu.vector_store %arg3[%c33, %c0_116, %c0_117], %278 {strides = array<i32>} : memref<128x16x128xf32, #tpu.memory_space<vmem>>, vector<1x16x128xf32>,
    %279 = arith.mulf %274, %249 : vector<16x128xf32>
    %c27 = arith.constant 27 : index
    %c0_118 = arith.constant 0 : index
    %c0_119 = arith.constant 0 : index
    %280 = vector.load %arg3[%c27, %c0_118, %c0_119] : memref<128x16x128xf32, #tpu.memory_space<vmem>>, vector<1x16x128xf32>
    %281 = vector.shape_cast %280 : vector<1x16x128xf32> to vector<16x128xf32>
    %282 = vector.shape_cast %279 : vector<16x128xf32> to vector<1x16x128xf32>
    tpu.vector_store %arg3[%c27, %c0_118, %c0_119], %282 {strides = array<i32>} : memref<128x16x128xf32, #tpu.memory_space<vmem>>, vector<1x16x128xf32>,
    %cst_120 = arith.constant 2.30136824 : f32
    %283 = vector.broadcast %cst_120 : f32 to vector<16x128xf32>
    %284 = arith.mulf %283, %21 : vector<16x128xf32>
    %285 = arith.mulf %284, %274 : vector<16x128xf32>
    %cst_121 = arith.constant 0.925184905 : f32
    %286 = vector.broadcast %cst_121 : f32 to vector<16x128xf32>
    %287 = arith.mulf %286, %260 : vector<16x128xf32>
    %288 = arith.subf %285, %287 : vector<16x128xf32>
    %289 = arith.mulf %288, %246 : vector<16x128xf32>
    %c45 = arith.constant 45 : index
    %c0_122 = arith.constant 0 : index
    %c0_123 = arith.constant 0 : index
    %290 = vector.load %arg3[%c45, %c0_122, %c0_123] : memref<128x16x128xf32, #tpu.memory_space<vmem>>, vector<1x16x128xf32>
    %291 = vector.shape_cast %290 : vector<1x16x128xf32> to vector<16x128xf32>
    %292 = vector.shape_cast %289 : vector<16x128xf32> to vector<1x16x128xf32>
    tpu.vector_store %arg3[%c45, %c0_122, %c0_123], %292 {strides = array<i32>} : memref<128x16x128xf32, #tpu.memory_space<vmem>>, vector<1x16x128xf32>,
    %293 = arith.mulf %288, %249 : vector<16x128xf32>
    %c39 = arith.constant 39 : index
    %c0_124 = arith.constant 0 : index
    %c0_125 = arith.constant 0 : index
    %294 = vector.load %arg3[%c39, %c0_124, %c0_125] : memref<128x16x128xf32, #tpu.memory_space<vmem>>, vector<1x16x128xf32>
    %295 = vector.shape_cast %294 : vector<1x16x128xf32> to vector<16x128xf32>
    %296 = vector.shape_cast %293 : vector<16x128xf32> to vector<1x16x128xf32>
    tpu.vector_store %arg3[%c39, %c0_124, %c0_125], %296 {strides = array<i32>} : memref<128x16x128xf32, #tpu.memory_space<vmem>>, vector<1x16x128xf32>,
    %cst_126 = arith.constant -1.06066012 : f32
    %297 = vector.broadcast %cst_126 : f32 to vector<16x128xf32>
    %298 = arith.mulf %297, %23 : vector<16x128xf32>
    %299 = arith.mulf %298, %243 : vector<16x128xf32>
    %300 = arith.mulf %246, %28 : vector<16x128xf32>
    %301 = arith.mulf %249, %29 : vector<16x128xf32>
    %302 = arith.subf %300, %301 : vector<16x128xf32>
    %303 = arith.mulf %249, %28 : vector<16x128xf32>
    %304 = arith.mulf %246, %29 : vector<16x128xf32>
    %305 = arith.addf %303, %304 : vector<16x128xf32>
    %306 = arith.mulf %299, %302 : vector<16x128xf32>
    %c24 = arith.constant 24 : index
    %c0_127 = arith.constant 0 : index
    %c0_128 = arith.constant 0 : index
    %307 = vector.load %arg3[%c24, %c0_127, %c0_128] : memref<128x16x128xf32, #tpu.memory_space<vmem>>, vector<1x16x128xf32>
    %308 = vector.shape_cast %307 : vector<1x16x128xf32> to vector<16x128xf32>
    %309 = vector.shape_cast %306 : vector<16x128xf32> to vector<1x16x128xf32>
    tpu.vector_store %arg3[%c24, %c0_127, %c0_128], %309 {strides = array<i32>} : memref<128x16x128xf32, #tpu.memory_space<vmem>>, vector<1x16x128xf32>,
    %310 = arith.mulf %299, %305 : vector<16x128xf32>
    %c16 = arith.constant 16 : index
    %c0_129 = arith.constant 0 : index
    %c0_130 = arith.constant 0 : index
    %311 = vector.load %arg3[%c16, %c0_129, %c0_130] : memref<128x16x128xf32, #tpu.memory_space<vmem>>, vector<1x16x128xf32>
    %312 = vector.shape_cast %311 : vector<1x16x128xf32> to vector<16x128xf32>
    %313 = vector.shape_cast %310 : vector<16x128xf32> to vector<1x16x128xf32>
    tpu.vector_store %arg3[%c16, %c0_129, %c0_130], %313 {strides = array<i32>} : memref<128x16x128xf32, #tpu.memory_space<vmem>>, vector<1x16x128xf32>,
    %cst_131 = arith.constant 3.31662488 : f32
    %314 = vector.broadcast %cst_131 : f32 to vector<16x128xf32>
    %315 = arith.mulf %314, %21 : vector<16x128xf32>
    %316 = arith.mulf %315, %299 : vector<16x128xf32>
    %317 = arith.mulf %316, %302 : vector<16x128xf32>
    %c34 = arith.constant 34 : index
    %c0_132 = arith.constant 0 : index
    %c0_133 = arith.constant 0 : index
    %318 = vector.load %arg3[%c34, %c0_132, %c0_133] : memref<128x16x128xf32, #tpu.memory_space<vmem>>, vector<1x16x128xf32>
    %319 = vector.shape_cast %318 : vector<1x16x128xf32> to vector<16x128xf32>
    %320 = vector.shape_cast %317 : vector<16x128xf32> to vector<1x16x128xf32>
    tpu.vector_store %arg3[%c34, %c0_132, %c0_133], %320 {strides = array<i32>} : memref<128x16x128xf32, #tpu.memory_space<vmem>>, vector<1x16x128xf32>,
    %321 = arith.mulf %316, %305 : vector<16x128xf32>
    %c26 = arith.constant 26 : index
    %c0_134 = arith.constant 0 : index
    %c0_135 = arith.constant 0 : index
    %322 = vector.load %arg3[%c26, %c0_134, %c0_135] : memref<128x16x128xf32, #tpu.memory_space<vmem>>, vector<1x16x128xf32>
    %323 = vector.shape_cast %322 : vector<1x16x128xf32> to vector<16x128xf32>
    %324 = vector.shape_cast %321 : vector<16x128xf32> to vector<1x16x128xf32>
    tpu.vector_store %arg3[%c26, %c0_134, %c0_135], %324 {strides = array<i32>} : memref<128x16x128xf32, #tpu.memory_space<vmem>>, vector<1x16x128xf32>,
    %cst_136 = arith.constant 2.67394829 : f32
    %325 = vector.broadcast %cst_136 : f32 to vector<16x128xf32>
    %326 = arith.mulf %325, %21 : vector<16x128xf32>
    %327 = arith.mulf %326, %316 : vector<16x128xf32>
    %cst_137 = arith.constant 0.806225776 : f32
    %328 = vector.broadcast %cst_137 : f32 to vector<16x128xf32>
    %329 = arith.mulf %328, %299 : vector<16x128xf32>
    %330 = arith.subf %327, %329 : vector<16x128xf32>
    %331 = arith.mulf %330, %302 : vector<16x128xf32>
    %c46 = arith.constant 46 : index
    %c0_138 = arith.constant 0 : index
    %c0_139 = arith.constant 0 : index
    %332 = vector.load %arg3[%c46, %c0_138, %c0_139] : memref<128x16x128xf32, #tpu.memory_space<vmem>>, vector<1x16x128xf32>
    %333 = vector.shape_cast %332 : vector<1x16x128xf32> to vector<16x128xf32>
    %334 = vector.shape_cast %331 : vector<16x128xf32> to vector<1x16x128xf32>
    tpu.vector_store %arg3[%c46, %c0_138, %c0_139], %334 {strides = array<i32>} : memref<128x16x128xf32, #tpu.memory_space<vmem>>, vector<1x16x128xf32>,
    %335 = arith.mulf %330, %305 : vector<16x128xf32>
    %c38 = arith.constant 38 : index
    %c0_140 = arith.constant 0 : index
    %c0_141 = arith.constant 0 : index
    %336 = vector.load %arg3[%c38, %c0_140, %c0_141] : memref<128x16x128xf32, #tpu.memory_space<vmem>>, vector<1x16x128xf32>
    %337 = vector.shape_cast %336 : vector<1x16x128xf32> to vector<16x128xf32>
    %338 = vector.shape_cast %335 : vector<16x128xf32> to vector<1x16x128xf32>
    tpu.vector_store %arg3[%c38, %c0_140, %c0_141], %338 {strides = array<i32>} : memref<128x16x128xf32, #tpu.memory_space<vmem>>, vector<1x16x128xf32>,
    %cst_142 = arith.constant -1.04880881 : f32
    %339 = vector.broadcast %cst_142 : f32 to vector<16x128xf32>
    %340 = arith.mulf %339, %23 : vector<16x128xf32>
    %341 = arith.mulf %340, %299 : vector<16x128xf32>
    %342 = arith.mulf %302, %28 : vector<16x128xf32>
    %343 = arith.mulf %305, %29 : vector<16x128xf32>
    %344 = arith.subf %342, %343 : vector<16x128xf32>
    %345 = arith.mulf %305, %28 : vector<16x128xf32>
    %346 = arith.mulf %302, %29 : vector<16x128xf32>
    %347 = arith.addf %345, %346 : vector<16x128xf32>
    %348 = arith.mulf %341, %344 : vector<16x128xf32>
    %c35 = arith.constant 35 : index
    %c0_143 = arith.constant 0 : index
    %c0_144 = arith.constant 0 : index
    %349 = vector.load %arg3[%c35, %c0_143, %c0_144] : memref<128x16x128xf32, #tpu.memory_space<vmem>>, vector<1x16x128xf32>
    %350 = vector.shape_cast %349 : vector<1x16x128xf32> to vector<16x128xf32>
    %351 = vector.shape_cast %348 : vector<16x128xf32> to vector<1x16x128xf32>
    tpu.vector_store %arg3[%c35, %c0_143, %c0_144], %351 {strides = array<i32>} : memref<128x16x128xf32, #tpu.memory_space<vmem>>, vector<1x16x128xf32>,
    %352 = arith.mulf %341, %347 : vector<16x128xf32>
    %c25 = arith.constant 25 : index
    %c0_145 = arith.constant 0 : index
    %c0_146 = arith.constant 0 : index
    %353 = vector.load %arg3[%c25, %c0_145, %c0_146] : memref<128x16x128xf32, #tpu.memory_space<vmem>>, vector<1x16x128xf32>
    %354 = vector.shape_cast %353 : vector<1x16x128xf32> to vector<16x128xf32>
    %355 = vector.shape_cast %352 : vector<16x128xf32> to vector<1x16x128xf32>
    tpu.vector_store %arg3[%c25, %c0_145, %c0_146], %355 {strides = array<i32>} : memref<128x16x128xf32, #tpu.memory_space<vmem>>, vector<1x16x128xf32>,
    %cst_147 = arith.constant 3.60555124 : f32
    %356 = vector.broadcast %cst_147 : f32 to vector<16x128xf32>
    %357 = arith.mulf %356, %21 : vector<16x128xf32>
    %358 = arith.mulf %357, %341 : vector<16x128xf32>
    %359 = arith.mulf %358, %344 : vector<16x128xf32>
    %c47 = arith.constant 47 : index
    %c0_148 = arith.constant 0 : index
    %c0_149 = arith.constant 0 : index
    %360 = vector.load %arg3[%c47, %c0_148, %c0_149] : memref<128x16x128xf32, #tpu.memory_space<vmem>>, vector<1x16x128xf32>
    %361 = vector.shape_cast %360 : vector<1x16x128xf32> to vector<16x128xf32>
    %362 = vector.shape_cast %359 : vector<16x128xf32> to vector<1x16x128xf32>
    tpu.vector_store %arg3[%c47, %c0_148, %c0_149], %362 {strides = array<i32>} : memref<128x16x128xf32, #tpu.memory_space<vmem>>, vector<1x16x128xf32>,
    %363 = arith.mulf %358, %347 : vector<16x128xf32>
    %c37 = arith.constant 37 : index
    %c0_150 = arith.constant 0 : index
    %c0_151 = arith.constant 0 : index
    %364 = vector.load %arg3[%c37, %c0_150, %c0_151] : memref<128x16x128xf32, #tpu.memory_space<vmem>>, vector<1x16x128xf32>
    %365 = vector.shape_cast %364 : vector<1x16x128xf32> to vector<16x128xf32>
    %366 = vector.shape_cast %363 : vector<16x128xf32> to vector<1x16x128xf32>
    tpu.vector_store %arg3[%c37, %c0_150, %c0_151], %366 {strides = array<i32>} : memref<128x16x128xf32, #tpu.memory_space<vmem>>, vector<1x16x128xf32>,
    %cst_152 = arith.constant -1.040833 : f32
    %367 = vector.broadcast %cst_152 : f32 to vector<16x128xf32>
    %368 = arith.mulf %367, %23 : vector<16x128xf32>
    %369 = arith.mulf %368, %341 : vector<16x128xf32>
    %370 = arith.mulf %344, %28 : vector<16x128xf32>
    %371 = arith.mulf %347, %29 : vector<16x128xf32>
    %372 = arith.subf %370, %371 : vector<16x128xf32>
    %373 = arith.mulf %347, %28 : vector<16x128xf32>
    %374 = arith.mulf %344, %29 : vector<16x128xf32>
    %375 = arith.addf %373, %374 : vector<16x128xf32>
    %376 = arith.mulf %369, %372 : vector<16x128xf32>
    %c48 = arith.constant 48 : index
    %c0_153 = arith.constant 0 : index
    %c0_154 = arith.constant 0 : index
    %377 = vector.load %arg3[%c48, %c0_153, %c0_154] : memref<128x16x128xf32, #tpu.memory_space<vmem>>, vector<1x16x128xf32>
    %378 = vector.shape_cast %377 : vector<1x16x128xf32> to vector<16x128xf32>
    %379 = vector.shape_cast %376 : vector<16x128xf32> to vector<1x16x128xf32>
    tpu.vector_store %arg3[%c48, %c0_153, %c0_154], %379 {strides = array<i32>} : memref<128x16x128xf32, #tpu.memory_space<vmem>>, vector<1x16x128xf32>,
    %380 = arith.mulf %369, %375 : vector<16x128xf32>
    %c36 = arith.constant 36 : index
    %c0_155 = arith.constant 0 : index
    %c0_156 = arith.constant 0 : index
    %381 = vector.load %arg3[%c36, %c0_155, %c0_156] : memref<128x16x128xf32, #tpu.memory_space<vmem>>, vector<1x16x128xf32>
    %382 = vector.shape_cast %381 : vector<1x16x128xf32> to vector<16x128xf32>
    %383 = vector.shape_cast %380 : vector<16x128xf32> to vector<1x16x128xf32>
    tpu.vector_store %arg3[%c36, %c0_155, %c0_156], %383 {strides = array<i32>} : memref<128x16x128xf32, #tpu.memory_space<vmem>>, vector<1x16x128xf32>,
    %c0_157 = arith.constant 0 : index
    %c0_158 = arith.constant 0 : index
    %c0_159 = arith.constant 0 : index
    %384 = vector.load %arg3[%c0_157, %c0_158, %c0_159] : memref<128x16x128xf32, #tpu.memory_space<vmem>>, vector<128x1x128xf32>
    %385 = vector.shape_cast %384 : vector<128x1x128xf32> to vector<128x128xf32>
    %386 = tpu.transpose %385, [1, 0] : vector<128x128xf32> -> vector<128x128xf32>
    %387 = vector.extract_strided_slice %386 {offsets = [0, 0], sizes = [128, 49], strides = [1, 1]} : vector<128x128xf32> to vector<128x49xf32>
    %c0_160 = arith.constant 0 : index
    %c0_161 = arith.constant 0 : index
    %388 = vector.load %arg2[%c0_160, %c0_161] : memref<2048x49xf32, #tpu.memory_space<vmem>>, vector<128x49xf32>
    tpu.vector_store %arg2[%c0_160, %c0_161], %387 {strides = array<i32>} : memref<2048x49xf32, #tpu.memory_space<vmem>>, vector<128x49xf32>,
    %c0_162 = arith.constant 0 : index
    %c1_163 = arith.constant 1 : index
    %c0_164 = arith.constant 0 : index
    %389 = vector.load %arg3[%c0_162, %c1_163, %c0_164] : memref<128x16x128xf32, #tpu.memory_space<vmem>>, vector<128x1x128xf32>
    %390 = vector.shape_cast %389 : vector<128x1x128xf32> to vector<128x128xf32>
    %391 = tpu.transpose %390, [1, 0] : vector<128x128xf32> -> vector<128x128xf32>
    %392 = vector.extract_strided_slice %391 {offsets = [0, 0], sizes = [128, 49], strides = [1, 1]} : vector<128x128xf32> to vector<128x49xf32>
    %c128 = arith.constant 128 : index
    %c0_165 = arith.constant 0 : index
    %393 = vector.load %arg2[%c128, %c0_165] : memref<2048x49xf32, #tpu.memory_space<vmem>>, vector<128x49xf32>
    tpu.vector_store %arg2[%c128, %c0_165], %392 {strides = array<i32>} : memref<2048x49xf32, #tpu.memory_space<vmem>>, vector<128x49xf32>,
    %c0_166 = arith.constant 0 : index
    %c2_167 = arith.constant 2 : index
    %c0_168 = arith.constant 0 : index
    %394 = vector.load %arg3[%c0_166, %c2_167, %c0_168] : memref<128x16x128xf32, #tpu.memory_space<vmem>>, vector<128x1x128xf32>
    %395 = vector.shape_cast %394 : vector<128x1x128xf32> to vector<128x128xf32>
    %396 = tpu.transpose %395, [1, 0] : vector<128x128xf32> -> vector<128x128xf32>
    %397 = vector.extract_strided_slice %396 {offsets = [0, 0], sizes = [128, 49], strides = [1, 1]} : vector<128x128xf32> to vector<128x49xf32>
    %c256 = arith.constant 256 : index
    %c0_169 = arith.constant 0 : index
    %398 = vector.load %arg2[%c256, %c0_169] : memref<2048x49xf32, #tpu.memory_space<vmem>>, vector<128x49xf32>
    tpu.vector_store %arg2[%c256, %c0_169], %397 {strides = array<i32>} : memref<2048x49xf32, #tpu.memory_space<vmem>>, vector<128x49xf32>,
    %c0_170 = arith.constant 0 : index
    %c3_171 = arith.constant 3 : index
    %c0_172 = arith.constant 0 : index
    %399 = vector.load %arg3[%c0_170, %c3_171, %c0_172] : memref<128x16x128xf32, #tpu.memory_space<vmem>>, vector<128x1x128xf32>
    %400 = vector.shape_cast %399 : vector<128x1x128xf32> to vector<128x128xf32>
    %401 = tpu.transpose %400, [1, 0] : vector<128x128xf32> -> vector<128x128xf32>
    %402 = vector.extract_strided_slice %401 {offsets = [0, 0], sizes = [128, 49], strides = [1, 1]} : vector<128x128xf32> to vector<128x49xf32>
    %c384 = arith.constant 384 : index
    %c0_173 = arith.constant 0 : index
    %403 = vector.load %arg2[%c384, %c0_173] : memref<2048x49xf32, #tpu.memory_space<vmem>>, vector<128x49xf32>
    tpu.vector_store %arg2[%c384, %c0_173], %402 {strides = array<i32>} : memref<2048x49xf32, #tpu.memory_space<vmem>>, vector<128x49xf32>,
    %c0_174 = arith.constant 0 : index
    %c4_175 = arith.constant 4 : index
    %c0_176 = arith.constant 0 : index
    %404 = vector.load %arg3[%c0_174, %c4_175, %c0_176] : memref<128x16x128xf32, #tpu.memory_space<vmem>>, vector<128x1x128xf32>
    %405 = vector.shape_cast %404 : vector<128x1x128xf32> to vector<128x128xf32>
    %406 = tpu.transpose %405, [1, 0] : vector<128x128xf32> -> vector<128x128xf32>
    %407 = vector.extract_strided_slice %406 {offsets = [0, 0], sizes = [128, 49], strides = [1, 1]} : vector<128x128xf32> to vector<128x49xf32>
    %c512 = arith.constant 512 : index
    %c0_177 = arith.constant 0 : index
    %408 = vector.load %arg2[%c512, %c0_177] : memref<2048x49xf32, #tpu.memory_space<vmem>>, vector<128x49xf32>
    tpu.vector_store %arg2[%c512, %c0_177], %407 {strides = array<i32>} : memref<2048x49xf32, #tpu.memory_space<vmem>>, vector<128x49xf32>,
    %c0_178 = arith.constant 0 : index
    %c5_179 = arith.constant 5 : index
    %c0_180 = arith.constant 0 : index
    %409 = vector.load %arg3[%c0_178, %c5_179, %c0_180] : memref<128x16x128xf32, #tpu.memory_space<vmem>>, vector<128x1x128xf32>
    %410 = vector.shape_cast %409 : vector<128x1x128xf32> to vector<128x128xf32>
    %411 = tpu.transpose %410, [1, 0] : vector<128x128xf32> -> vector<128x128xf32>
    %412 = vector.extract_strided_slice %411 {offsets = [0, 0], sizes = [128, 49], strides = [1, 1]} : vector<128x128xf32> to vector<128x49xf32>
    %c640 = arith.constant 640 : index
    %c0_181 = arith.constant 0 : index
    %413 = vector.load %arg2[%c640, %c0_181] : memref<2048x49xf32, #tpu.memory_space<vmem>>, vector<128x49xf32>
    tpu.vector_store %arg2[%c640, %c0_181], %412 {strides = array<i32>} : memref<2048x49xf32, #tpu.memory_space<vmem>>, vector<128x49xf32>,
    %c0_182 = arith.constant 0 : index
    %c6_183 = arith.constant 6 : index
    %c0_184 = arith.constant 0 : index
    %414 = vector.load %arg3[%c0_182, %c6_183, %c0_184] : memref<128x16x128xf32, #tpu.memory_space<vmem>>, vector<128x1x128xf32>
    %415 = vector.shape_cast %414 : vector<128x1x128xf32> to vector<128x128xf32>
    %416 = tpu.transpose %415, [1, 0] : vector<128x128xf32> -> vector<128x128xf32>
    %417 = vector.extract_strided_slice %416 {offsets = [0, 0], sizes = [128, 49], strides = [1, 1]} : vector<128x128xf32> to vector<128x49xf32>
    %c768 = arith.constant 768 : index
    %c0_185 = arith.constant 0 : index
    %418 = vector.load %arg2[%c768, %c0_185] : memref<2048x49xf32, #tpu.memory_space<vmem>>, vector<128x49xf32>
    tpu.vector_store %arg2[%c768, %c0_185], %417 {strides = array<i32>} : memref<2048x49xf32, #tpu.memory_space<vmem>>, vector<128x49xf32>,
    %c0_186 = arith.constant 0 : index
    %c7_187 = arith.constant 7 : index
    %c0_188 = arith.constant 0 : index
    %419 = vector.load %arg3[%c0_186, %c7_187, %c0_188] : memref<128x16x128xf32, #tpu.memory_space<vmem>>, vector<128x1x128xf32>
    %420 = vector.shape_cast %419 : vector<128x1x128xf32> to vector<128x128xf32>
    %421 = tpu.transpose %420, [1, 0] : vector<128x128xf32> -> vector<128x128xf32>
    %422 = vector.extract_strided_slice %421 {offsets = [0, 0], sizes = [128, 49], strides = [1, 1]} : vector<128x128xf32> to vector<128x49xf32>
    %c896 = arith.constant 896 : index
    %c0_189 = arith.constant 0 : index
    %423 = vector.load %arg2[%c896, %c0_189] : memref<2048x49xf32, #tpu.memory_space<vmem>>, vector<128x49xf32>
    tpu.vector_store %arg2[%c896, %c0_189], %422 {strides = array<i32>} : memref<2048x49xf32, #tpu.memory_space<vmem>>, vector<128x49xf32>,
    %c0_190 = arith.constant 0 : index
    %c8_191 = arith.constant 8 : index
    %c0_192 = arith.constant 0 : index
    %424 = vector.load %arg3[%c0_190, %c8_191, %c0_192] : memref<128x16x128xf32, #tpu.memory_space<vmem>>, vector<128x1x128xf32>
    %425 = vector.shape_cast %424 : vector<128x1x128xf32> to vector<128x128xf32>
    %426 = tpu.transpose %425, [1, 0] : vector<128x128xf32> -> vector<128x128xf32>
    %427 = vector.extract_strided_slice %426 {offsets = [0, 0], sizes = [128, 49], strides = [1, 1]} : vector<128x128xf32> to vector<128x49xf32>
    %c1024 = arith.constant 1024 : index
    %c0_193 = arith.constant 0 : index
    %428 = vector.load %arg2[%c1024, %c0_193] : memref<2048x49xf32, #tpu.memory_space<vmem>>, vector<128x49xf32>
    tpu.vector_store %arg2[%c1024, %c0_193], %427 {strides = array<i32>} : memref<2048x49xf32, #tpu.memory_space<vmem>>, vector<128x49xf32>,
    %c0_194 = arith.constant 0 : index
    %c9_195 = arith.constant 9 : index
    %c0_196 = arith.constant 0 : index
    %429 = vector.load %arg3[%c0_194, %c9_195, %c0_196] : memref<128x16x128xf32, #tpu.memory_space<vmem>>, vector<128x1x128xf32>
    %430 = vector.shape_cast %429 : vector<128x1x128xf32> to vector<128x128xf32>
    %431 = tpu.transpose %430, [1, 0] : vector<128x128xf32> -> vector<128x128xf32>
    %432 = vector.extract_strided_slice %431 {offsets = [0, 0], sizes = [128, 49], strides = [1, 1]} : vector<128x128xf32> to vector<128x49xf32>
    %c1152 = arith.constant 1152 : index
    %c0_197 = arith.constant 0 : index
    %433 = vector.load %arg2[%c1152, %c0_197] : memref<2048x49xf32, #tpu.memory_space<vmem>>, vector<128x49xf32>
    tpu.vector_store %arg2[%c1152, %c0_197], %432 {strides = array<i32>} : memref<2048x49xf32, #tpu.memory_space<vmem>>, vector<128x49xf32>,
    %c0_198 = arith.constant 0 : index
    %c10_199 = arith.constant 10 : index
    %c0_200 = arith.constant 0 : index
    %434 = vector.load %arg3[%c0_198, %c10_199, %c0_200] : memref<128x16x128xf32, #tpu.memory_space<vmem>>, vector<128x1x128xf32>
    %435 = vector.shape_cast %434 : vector<128x1x128xf32> to vector<128x128xf32>
    %436 = tpu.transpose %435, [1, 0] : vector<128x128xf32> -> vector<128x128xf32>
    %437 = vector.extract_strided_slice %436 {offsets = [0, 0], sizes = [128, 49], strides = [1, 1]} : vector<128x128xf32> to vector<128x49xf32>
    %c1280 = arith.constant 1280 : index
    %c0_201 = arith.constant 0 : index
    %438 = vector.load %arg2[%c1280, %c0_201] : memref<2048x49xf32, #tpu.memory_space<vmem>>, vector<128x49xf32>
    tpu.vector_store %arg2[%c1280, %c0_201], %437 {strides = array<i32>} : memref<2048x49xf32, #tpu.memory_space<vmem>>, vector<128x49xf32>,
    %c0_202 = arith.constant 0 : index
    %c11_203 = arith.constant 11 : index
    %c0_204 = arith.constant 0 : index
    %439 = vector.load %arg3[%c0_202, %c11_203, %c0_204] : memref<128x16x128xf32, #tpu.memory_space<vmem>>, vector<128x1x128xf32>
    %440 = vector.shape_cast %439 : vector<128x1x128xf32> to vector<128x128xf32>
    %441 = tpu.transpose %440, [1, 0] : vector<128x128xf32> -> vector<128x128xf32>
    %442 = vector.extract_strided_slice %441 {offsets = [0, 0], sizes = [128, 49], strides = [1, 1]} : vector<128x128xf32> to vector<128x49xf32>
    %c1408 = arith.constant 1408 : index
    %c0_205 = arith.constant 0 : index
    %443 = vector.load %arg2[%c1408, %c0_205] : memref<2048x49xf32, #tpu.memory_space<vmem>>, vector<128x49xf32>
    tpu.vector_store %arg2[%c1408, %c0_205], %442 {strides = array<i32>} : memref<2048x49xf32, #tpu.memory_space<vmem>>, vector<128x49xf32>,
    %c0_206 = arith.constant 0 : index
    %c12_207 = arith.constant 12 : index
    %c0_208 = arith.constant 0 : index
    %444 = vector.load %arg3[%c0_206, %c12_207, %c0_208] : memref<128x16x128xf32, #tpu.memory_space<vmem>>, vector<128x1x128xf32>
    %445 = vector.shape_cast %444 : vector<128x1x128xf32> to vector<128x128xf32>
    %446 = tpu.transpose %445, [1, 0] : vector<128x128xf32> -> vector<128x128xf32>
    %447 = vector.extract_strided_slice %446 {offsets = [0, 0], sizes = [128, 49], strides = [1, 1]} : vector<128x128xf32> to vector<128x49xf32>
    %c1536 = arith.constant 1536 : index
    %c0_209 = arith.constant 0 : index
    %448 = vector.load %arg2[%c1536, %c0_209] : memref<2048x49xf32, #tpu.memory_space<vmem>>, vector<128x49xf32>
    tpu.vector_store %arg2[%c1536, %c0_209], %447 {strides = array<i32>} : memref<2048x49xf32, #tpu.memory_space<vmem>>, vector<128x49xf32>,
    %c0_210 = arith.constant 0 : index
    %c13_211 = arith.constant 13 : index
    %c0_212 = arith.constant 0 : index
    %449 = vector.load %arg3[%c0_210, %c13_211, %c0_212] : memref<128x16x128xf32, #tpu.memory_space<vmem>>, vector<128x1x128xf32>
    %450 = vector.shape_cast %449 : vector<128x1x128xf32> to vector<128x128xf32>
    %451 = tpu.transpose %450, [1, 0] : vector<128x128xf32> -> vector<128x128xf32>
    %452 = vector.extract_strided_slice %451 {offsets = [0, 0], sizes = [128, 49], strides = [1, 1]} : vector<128x128xf32> to vector<128x49xf32>
    %c1664 = arith.constant 1664 : index
    %c0_213 = arith.constant 0 : index
    %453 = vector.load %arg2[%c1664, %c0_213] : memref<2048x49xf32, #tpu.memory_space<vmem>>, vector<128x49xf32>
    tpu.vector_store %arg2[%c1664, %c0_213], %452 {strides = array<i32>} : memref<2048x49xf32, #tpu.memory_space<vmem>>, vector<128x49xf32>,
    %c0_214 = arith.constant 0 : index
    %c14_215 = arith.constant 14 : index
    %c0_216 = arith.constant 0 : index
    %454 = vector.load %arg3[%c0_214, %c14_215, %c0_216] : memref<128x16x128xf32, #tpu.memory_space<vmem>>, vector<128x1x128xf32>
    %455 = vector.shape_cast %454 : vector<128x1x128xf32> to vector<128x128xf32>
    %456 = tpu.transpose %455, [1, 0] : vector<128x128xf32> -> vector<128x128xf32>
    %457 = vector.extract_strided_slice %456 {offsets = [0, 0], sizes = [128, 49], strides = [1, 1]} : vector<128x128xf32> to vector<128x49xf32>
    %c1792 = arith.constant 1792 : index
    %c0_217 = arith.constant 0 : index
    %458 = vector.load %arg2[%c1792, %c0_217] : memref<2048x49xf32, #tpu.memory_space<vmem>>, vector<128x49xf32>
    tpu.vector_store %arg2[%c1792, %c0_217], %457 {strides = array<i32>} : memref<2048x49xf32, #tpu.memory_space<vmem>>, vector<128x49xf32>,
    %c0_218 = arith.constant 0 : index
    %c15_219 = arith.constant 15 : index
    %c0_220 = arith.constant 0 : index
    %459 = vector.load %arg3[%c0_218, %c15_219, %c0_220] : memref<128x16x128xf32, #tpu.memory_space<vmem>>, vector<128x1x128xf32>
    %460 = vector.shape_cast %459 : vector<128x1x128xf32> to vector<128x128xf32>
    %461 = tpu.transpose %460, [1, 0] : vector<128x128xf32> -> vector<128x128xf32>
    %462 = vector.extract_strided_slice %461 {offsets = [0, 0], sizes = [128, 49], strides = [1, 1]} : vector<128x128xf32> to vector<128x49xf32>
    %c1920 = arith.constant 1920 : index
    %c0_221 = arith.constant 0 : index
    %463 = vector.load %arg2[%c1920, %c0_221] : memref<2048x49xf32, #tpu.memory_space<vmem>>, vector<128x49xf32>
    tpu.vector_store %arg2[%c1920, %c0_221], %462 {strides = array<i32>} : memref<2048x49xf32, #tpu.memory_space<vmem>>, vector<128x49xf32>,
    return
  }
  func.func @transform_0(%arg0: i32) -> (i32, i32, i32) {
    %c0_i32 = arith.constant 0 : i32
    %c0_i32_0 = arith.constant 0 : i32
    %c0_i32_1 = arith.constant 0 : i32
    return %c0_i32, %arg0, %c0_i32_0 : i32, i32, i32
  }
  func.func @transform_1(%arg0: i32) -> (i32, i32) {
    %c0_i32 = arith.constant 0 : i32
    %c0_i32_0 = arith.constant 0 : i32
    return %arg0, %c0_i32 : i32, i32
  }
}

</mosaic_0001>

<bundles_post_ra>
// kernel: tpu_custom_call.1
= control target key start
LH: loop header
LB: loop body
LE: loop exit
PB: predicated region body
PF: predicated region fallthrough
CT: control target
= control target key end

     0   :  { %6 = vsyncpa [#allocation4], 0  ;;  %s9347_s6 = smov [#allocation3]   ;;  %s12379_s0 = inlined_call_operand.hbm [shape: f32[3,16,128], index: 0, kind: input, shape index: {}]   ;;  %s12380_s1 = inlined_call_operand.vmem [shape: f32[64,49], index: 1, kind: output, shape index: {}]  }
   0x1   :  { %s12_s7 = sshll.u32 %s9347_s6, 4  ;;  %s9323_s10 = scalar_lea.hbm %s12379_s0, 768  ;;  %s13_s7 = int_to_ptr.vmem [resolvable:$true] %s12_s7 }
   0x2   :  { %p9324_p0 = scmp.ne.s32.totalorder %s12379_s0, %s9323_s10  ;;  %p9327_p1 = scmp.lt.u32.totalorder %s9323_s10, %s12379_s0 }
   0x4   :  { %p9329_p2 = pnand %p9327_p1, %p9324_p0 }
   0x6   :  { %9332 = shalt.err (!%p9329_p2)
}
   0x7   :  { %s9333_s15 = scalar_lea.vmem %s13_s7, 768  ;;  %p9338_p4 = scmp.lt.s32.totalorder %s13_s7, %s13_s7 }
   0x8   :  { %p9334_p3 = scmp.ne.s32.totalorder %s13_s7, %s9333_s15  ;;  %p9339_p5 = scmp.lt.s32.totalorder %s9333_s15, %s9333_s15 }
   0xa   :  { %p9340_p6 = por %p9339_p5, %p9338_p4 }
   0xc   :  { %p9341_p7 = pnand %p9340_p6, %p9334_p3 }
   0xe   :  { %9344 = shalt.err (!%p9341_p7)
}
   0xf   :  { %s9348_s16 = smov 128   ;;  %s9349_s17 = smov 8  }
  0x10   :  { %18 = dma.hbm_to_vmem [thread:$0]  %s12379_s0, 768, %s13_s7, [#allocation4], %s9348_s16, %s9348_s16, %s9349_s17  }
  0x11   :  { %9345 = dma.done.wait [#allocation4], 768  }
  0x12   :  { %9346 = vsyncadd [#allocation4], 4294966528  ;;  %v9350_v0 = vmov 0.2820948   ;;  %v9373_v1 = vld [vmem:[#allocation3] sm:$0xff]  ;;  %v9375_v2 = vld [vmem:[#allocation3 + $0x10] sm:$0xff] }
  0x13   :  { %64 = vst [vmem:[#allocation2] sm:$0xff] %v9350_v0  ;;  %65 = vst [vmem:[#allocation2 + $0x8] sm:$0xff] %v9350_v0  ;;  %v9377_v3 = vld [vmem:[#allocation3 + $0x20] sm:$0xff]  ;;  %v30_v4 = vmul.f32 %v9373_v1, %v9373_v1  ;;  %v32_v5 = vmul.f32 %v9375_v2, %v9375_v2  ;;  %v9387_v8 = vld [vmem:[#allocation2 + $0x311] sm:$0x1]  ;;  %vm785_vm1 = vcmask 1041409  }
  0x14   :  { %v36_v6 = vmul.f32 %v9377_v3, %v9377_v3  ;;  %v9389_v9 = vld [vmem:[#allocation2 + $0x321] sm:$0x1]  ;;  %v9391_v10 = vld [vmem:[#allocation2 + $0x331] sm:$0x1]  ;;  %vm788_vm2 = vcmask 1042434   ;;  %vm791_vm4 = vcmask 1043459  }
  0x15   :  { %v9385_v7 = vadd.f32 %v32_v5, %v30_v4  ;;  %12405 = vst [vmem:[#allocation7_spill] sm:$0xff] %v9391_v10  ;;  %v9393_v11 = vld [vmem:[#allocation2 + $0x341] sm:$0x1]  ;;  %v9397_v13 = vld [vmem:[#allocation2 + $0x351] sm:$0x1]  ;;  %vm794_vm5 = vcmask 1044484  }
  0x16   :  { %12406 = vst [vmem:[#allocation8_spill] sm:$0xff] %v9393_v11  ;;  %12407 = vst [vmem:[#allocation9_spill] sm:$0xff] %v9397_v13  ;;  %v9399_v14 = vld [vmem:[#allocation2 + $0x361] sm:$0x1]  ;;  %v9404_v16 = vld [vmem:[#allocation2 + $0x371] sm:$0x1] }
  0x17   :  { %v38_v12 = vadd.f32 %v36_v6, %v9385_v7  ;;  %vm46_vm0 = vcmp.gt.f32.partialorder %v9385_v7, 0.0  ;;  %12408 = vst [vmem:[#allocation10_spill] sm:$0xff] %v9399_v14  ;;  %12409 = vst [vmem:[#allocation11_spill] sm:$0xff] %v9404_v16  ;;  %v9411_v23 = vld [vmem:[#allocation2 + $0x310] sm:$0x1]  ;;  %vm797_vm6 = vcmask 1045509  }
  0x18   :  { %v48_v15 = vsel %vm46_vm0, %v9385_v7, 1.0  ;;  %12410 = vst [vmem:[#allocation12_spill] sm:$0xff] %v9411_v23  ;;  %v9413_v24 = vld [vmem:[#allocation2 + $0x320] sm:$0x1]  ;;  %v9417_v27 = vld [vmem:[#allocation2 + $0x330] sm:$0x1] }
  0x19   :  { %vm40_vm3 = vcmp.gt.f32.partialorder %v38_v12, 0.0  ;;  %9315 = vrsqrt.f32 %v48_v15  ;;  %12411 = vst [vmem:[#allocation13_spill] sm:$0xff] %v9413_v24  ;;  %12412 = vst [vmem:[#allocation14_spill] sm:$0xff] %v9417_v27  ;;  %v9419_v28 = vld [vmem:[#allocation2 + $0x340] sm:$0x1]  ;;  %vm800_vm7 = vcmask 1046534  }
  0x1a   :  { %v42_v21 = vsel %vm40_vm3, %v38_v12, 1.0  ;;  %12413 = vst [vmem:[#allocation15_spill] sm:$0xff] %v9419_v28  ;;  %v9421_v29 = vld [vmem:[#allocation2 + $0x350] sm:$0x1]  ;;  %v1137_v30 = vld [vmem:[#allocation2 + $0x391] sm:$0x1] }
  0x1b   :  { %9317 = vrsqrt.f32 %v42_v21  ;;  %12414 = vst [vmem:[#allocation16_spill] sm:$0xff] %v9421_v29  ;;  %v1138_v31 = vld [vmem:[#allocation2 + $0x3a1] sm:$0x1]  ;;  %v1139_v32 = vld [vmem:[#allocation2 + $0x3b1] sm:$0x1]  ;;  %v1434_v38 = vrot.slane %v1137_v30, 7 }
  0x1c   :  { %v9423_v33 = vld [vmem:[#allocation2 + $0x360] sm:$0x1]  ;;  %v1136_v34 = vld [vmem:[#allocation2 + $0x381] sm:$0x1]  ;;  %v9425_v36 = vld [vmem:[#allocation2 + $0x370] sm:$0x1] }
  0x1d   :  { %12415 = vst [vmem:[#allocation17_spill] sm:$0xff] %v9423_v33  ;;  %v1140_v35 = vld [vmem:[#allocation2 + $0x3c1] sm:$0x1]  ;;  %12416 = vst [vmem:[#allocation18_spill] sm:$0xff] %v9425_v36  ;;  %v1436_v39 = vrot.slane %v1138_v31, 6  ;;  %v1438_v40 = vrot.slane %v1139_v32, 5  ;;  %v1435_v47 = vsel %vm785_vm1, %v1434_v38, %v1136_v34 }
  0x1e   :  { %v1141_v43 = vld [vmem:[#allocation2 + $0x3d1] sm:$0x1]  ;;  %v9430_v44 = vld [vmem:[#allocation2 + $0x3e1] sm:$0x1]  ;;  %v1440_v48 = vrot.slane %v1140_v35, 4  ;;  %vm803_vm8 = vcmask 1047559  }
  0x1f   :  { %v9433_v46 = vld [vmem:[#allocation2 + $0x3f1] sm:$0x1]  ;;  %v9436_v49 = vld [vmem:[#allocation2 + $0x390] sm:$0x1]  ;;  %v1437_v53 = vsel %vm788_vm2, %v1436_v39, %v1435_v47  ;;  %v9442_v54 = vld [vmem:[#allocation2 + $0x3a0] sm:$0x1] }
  0x20   :  { %v1439_v55 = vsel %vm791_vm4, %v1438_v40, %v1437_v53  ;;  %v9445_v56 = vld [vmem:[#allocation2 + $0x3b0] sm:$0x1]  ;;  %v9447_v57 = vld [vmem:[#allocation2 + $0x3c0] sm:$0x1]  ;;  %v1442_v60 = vrot.slane %v1141_v43, 3  ;;  %v1444_v61 = vrot.slane %v9430_v44, 2 }
  0x21   :  { %v9449_v58 = vld [vmem:[#allocation2 + $0x3d0] sm:$0x1]  ;;  %v1441_v6 = vsel %vm794_vm5, %v1440_v48, %v1439_v55  ;;  %v9460_v12 = vld [vmem:[#allocation2 + $0x3e0] sm:$0x1]  ;;  %vm1063_vm9 = vcmask 400384  }
  0x22   :  { %12417 = vst [vmem:[#allocation19_spill] sm:$0xff] %v9460_v12  ;;  %v9462_v15 = vld [vmem:[#allocation2 + $0x3f0] sm:$0x1]  ;;  %v9480_v40 = vsel %vm797_vm6, %v1442_v60, %v1441_v6  ;;  %v528_v18 = vld [vmem:[#allocation2] sm:$0x1] }
  0x23   :  { %v9316_v59 = vpop.eup %9315  ;;  %12418 = vst [vmem:[#allocation20_spill] sm:$0xff] %v9462_v15  ;;  %v584_v28 = vld [vmem:[#allocation2 + $0x380] sm:$0x1] }
  0x24   :  { %v54_v0 = vmul.f32 %v9316_v59, %v9385_v7  ;;  %v58_v4 = vmul.f32 %v9316_v59, %v9373_v1  ;;  %v9457_v5 = vmul.f32 %v9316_v59, %v9375_v2 }
  0x25   :  { %v9318_v21 = vpop.eup %9317 }
  0x26   :  { %v9469_v1 = vmul.f32 %v9318_v21, %v9377_v3  ;;  %v9471_v2 = vmul.f32 %v9318_v21, %v54_v0  ;;  %v9475_v35 = vsel %vm46_vm0, %v58_v4, 1.0  ;;  %v130_v38 = vmul.f32 0.0, %v9457_v5 }
  0x27   :  { %v134_v39 = vmul.f32 0.0, %v9475_v35 }
  0x28   :  { %v66_v3 = vmul.f32 1.7320508, %v9469_v1  ;;  %v73_v48 = vmul.f32 1.9364917, %v9469_v1  ;;  %v82_v53 = vmul.f32 1.9720266, %v9469_v1  ;;  %v9488_v7 = vsub.f32 %v9475_v35, %v130_v38 }
  0x29   :  { %v126_v55 = vmul.f32 -1.7320508, %v9471_v2  ;;  %v9492_v59 = vadd.f32 %v134_v39, %v9457_v5  ;;  %v148_v60 = vmul.f32 2.236068, %v9469_v1  ;;  %v234_v0 = vmul.f32 -1.118034, %v9471_v2 }
  0x2a   :  { %v68_v4 = vmul.f32 0.2820948, %v66_v3  ;;  %v246_v6 = vmul.f32 %v9488_v7, %v9457_v5  ;;  %v162_v21 = vmul.f32 2.09165, %v9469_v1  ;;  %v238_v47 = vmul.f32 %v9488_v7, %v9475_v35 }
  0x2b   :  { %v128_v38 = vmul.f32 0.2820948, %v126_v55  ;;  %v244_v52 = vmul.f32 %v9492_v59, %v9475_v35  ;;  %v240_v39 = vmul.f32 %v9492_v59, %v9457_v5  ;;  %v260_v26 = vmul.f32 2.6457512, %v9469_v1 }
  0x2c   :  { %71 = vst [vmem:[#allocation2 + $0x20] sm:$0xff] %v68_v4  ;;  %v75_v51 = vmul.f32 %v73_v48, %v68_v4  ;;  %v86_v3 = vmul.f32 1.0183501, %v68_v4  ;;  %v328_v43 = vmul.f32 -1.0801234, %v9471_v2 }
  0x2d   :  { %v93_v50 = vmul.f32 1.9843135, %v9469_v1  ;;  %v138_v25 = vmul.f32 %v9488_v7, %v128_v38  ;;  %v143_v45 = vmul.f32 %v9492_v59, %v128_v38  ;;  %v150_v55 = vmul.f32 %v148_v60, %v128_v38 }
  0x2e   :  { %v9510_v42 = vmul.f32 %v234_v0, %v128_v38  ;;  %v9309_v22 = vadd.f32 -0.3153916, %v75_v51  ;;  %v9512_v41 = vadd.f32 %v246_v6, %v244_v52  ;;  %v166_v20 = vmul.f32 0.9354144, %v128_v38 }
  0x2f   :  { %v9514_v37 = vsub.f32 %v238_v47, %v240_v39  ;;  %141 = vst [vmem:[#allocation2 + $0x30] sm:$0xff] %v138_v25  ;;  %146 = vst [vmem:[#allocation2 + $0x10] sm:$0xff] %v143_v45  ;;  %v152_v48 = vmul.f32 %v150_v55, %v9488_v7  ;;  %v157_v4 = vmul.f32 %v150_v55, %v9492_v59  ;;  %v184_v17 = vmul.f32 0.9797959, %v150_v55 }
  0x30   :  { %12419 = vst [vmem:[#allocation21_spill] sm:$0xff] %v9512_v41  ;;  %v164_v19 = vmul.f32 %v162_v21, %v150_v55  ;;  %v9519_v34 = vmul.f32 %v260_v26, %v9510_v42  ;;  %80 = vst [vmem:[#allocation2 + $0x60] sm:$0xff] %v9309_v22  ;;  %v84_v60 = vmul.f32 %v9309_v22, %v82_v53  ;;  %v97_v0 = vmul.f32 1.0062306, %v9309_v22 }
  0x31   :  { %v255_v51 = vmul.f32 %v9512_v41, %v9510_v42  ;;  %v250_v52 = vmul.f32 %v9514_v37, %v9510_v42  ;;  %155 = vst [vmem:[#allocation2 + $0x70] sm:$0xff] %v152_v48  ;;  %160 = vst [vmem:[#allocation2 + $0x50] sm:$0xff] %v157_v4  ;;  %v9532_v47 = vmul.f32 %v328_v43, %v9510_v42  ;;  %v1080_v48 = vld [vmem:[#allocation2 + $0x1] sm:$0x1]  ;;  %v9557_v32 = vmul.f32 2.291288, %v9469_v1 }
  0x32   :  { %v9525_v25 = vsub.f32 %v164_v19, %v166_v20  ;;  %v264_v45 = vmul.f32 %v9519_v34, %v9514_v37  ;;  %v269_v26 = vmul.f32 %v9519_v34, %v9512_v41  ;;  %v9534_v22 = vsub.f32 %v84_v60, %v86_v3 }
  0x33   :  { %258 = vst [vmem:[#allocation2 + $0x40] sm:$0xff] %v255_v51  ;;  %253 = vst [vmem:[#allocation2 + $0x80] sm:$0xff] %v250_v52  ;;  %v332_v53 = vmul.f32 %v9514_v37, %v9475_v35  ;;  %v334_v19 = vmul.f32 %v9512_v41, %v9457_v5  ;;  %v338_v20 = vmul.f32 %v9512_v41, %v9475_v35  ;;  %v1082_v6 = vld [vmem:[#allocation2 + $0x21] sm:$0x1]  ;;  %v530_v21 = vld [vmem:[#allocation2 + $0x20] sm:$0x1] }
  0x34   :  { %v170_v38 = vmul.f32 %v9525_v25, %v9488_v7  ;;  %v175_v43 = vmul.f32 %v9525_v25, %v9492_v59  ;;  %267 = vst [vmem:[#allocation2 + $0xe0] sm:$0xff] %v264_v45  ;;  %272 = vst [vmem:[#allocation2 + $0xa0] sm:$0xff] %v269_v26  ;;  %v340_v39 = vmul.f32 %v9514_v37, %v9457_v5  ;;  %v180_v3 = vmul.f32 2.04939, %v9469_v1 }
  0x35   :  { %v1338_v4 = vrot.slane %v1082_v6, 6  ;;  %v787_v60 = vrot.slane %v530_v21, 6  ;;  %91 = vst [vmem:[#allocation2 + $0xc0] sm:$0xff] %v9534_v22  ;;  %v9550_v51 = vsub.f32 %v332_v53, %v334_v19  ;;  %v95_v52 = vmul.f32 %v93_v50, %v9534_v22 }
  0x36   :  { %173 = vst [vmem:[#allocation2 + $0xd0] sm:$0xff] %v170_v38  ;;  %178 = vst [vmem:[#allocation2 + $0xb0] sm:$0xff] %v175_v43  ;;  %v9553_v45 = vadd.f32 %v340_v39, %v338_v20  ;;  %v182_v26 = vmul.f32 %v180_v3, %v9525_v25  ;;  %v1081_v31 = vld [vmem:[#allocation2 + $0x11] sm:$0x1]  ;;  %v529_v21 = vld [vmem:[#allocation2 + $0x10] sm:$0x1]  ;;  %v9569_v20 = vsel %vm800_vm7, %v1444_v61, %v9480_v40 }
  0x37   :  { %v1083_v6 = vld [vmem:[#allocation2 + $0x31] sm:$0x1]  ;;  %v344_v53 = vmul.f32 %v9550_v51, %v9532_v47  ;;  %v9561_v19 = vsub.f32 %v95_v52, %v97_v0  ;;  %v416_v50 = vmul.f32 %v9550_v51, %v9457_v5  ;;  %v1086_v55 = vld [vmem:[#allocation2 + $0x61] sm:$0x1]  ;;  %v1336_v38 = vrot.slane %v1081_v31, 7 }
  0x38   :  { %v1340_v43 = vrot.slane %v1083_v6, 5  ;;  %v531_v39 = vld [vmem:[#allocation2 + $0x30] sm:$0x1]  ;;  %v349_v3 = vmul.f32 %v9553_v45, %v9532_v47  ;;  %v9573_v62 = vsub.f32 %v182_v26, %v184_v17  ;;  %v1085_v0 = vld [vmem:[#allocation2 + $0x51] sm:$0x1]  ;;  %v1346_v30 = vrot.slane %v1086_v55, 2 }
  0x39   :  { %v1087_v52 = vld [vmem:[#allocation2 + $0x71] sm:$0x1]  ;;  %v784_v63 = vrot.slane %v529_v21, 7  ;;  %347 = vst [vmem:[#allocation2 + $0xf0] sm:$0xff] %v344_v53  ;;  %102 = vst [vmem:[#allocation2 + $0x140] sm:$0xff] %v9561_v19  ;;  %v414_v44 = vmul.f32 %v9553_v45, %v9475_v35  ;;  %v9580_v61 = vmul.f32 %v9550_v51, %v9475_v35  ;;  %v1337_v40 = vsel %vm785_vm1, %v1336_v38, %v1080_v48 }
  0x3a   :  { %v1084_v31 = vld [vmem:[#allocation2 + $0x41] sm:$0x1]  ;;  %v1344_v6 = vrot.slane %v1085_v0, 3  ;;  %v1348_v17 = vrot.slane %v1087_v52, 1  ;;  %v532_v26 = vld [vmem:[#allocation2 + $0x40] sm:$0x1]  ;;  %v188_v21 = vmul.f32 %v9573_v62, %v9488_v7  ;;  %v1339_v53 = vsel %vm788_vm2, %v1338_v4, %v1337_v40 }
  0x3b   :  { %352 = vst [vmem:[#allocation2 + $0x90] sm:$0xff] %v349_v3  ;;  %v1342_v55 = vrot.slane %v1084_v31, 4  ;;  %v533_v15 = vld [vmem:[#allocation2 + $0x50] sm:$0x1]  ;;  %v534_v36 = vld [vmem:[#allocation2 + $0x60] sm:$0x1]  ;;  %v786_v16 = vsel %vm785_vm1, %v784_v63, %v528_v18  ;;  %v1341_v12 = vsel %vm791_vm4, %v1340_v43, %v1339_v53 }
  0x3c   :  { %v790_v33 = vrot.slane %v531_v39, 5  ;;  %v535_v29 = vld [vmem:[#allocation2 + $0x70] sm:$0x1]  ;;  %v789_v48 = vsel %vm788_vm2, %v787_v60, %v786_v16  ;;  %v793_v38 = vrot.slane %v532_v26, 4  ;;  %v796_v0 = vrot.slane %v533_v15, 3  ;;  %191 = vst [vmem:[#allocation2 + $0x150] sm:$0xff] %v188_v21 }
  0x3d   :  { %v1343_v3 = vsel %vm794_vm5, %v1342_v55, %v1341_v12  ;;  %v799_v14 = vrot.slane %v534_v36, 2  ;;  %v802_v4 = vrot.slane %v535_v29, 1  ;;  %v1090_v31 = vld [vmem:[#allocation2 + $0xa1] sm:$0x1]  ;;  %v1091_v40 = vld [vmem:[#allocation2 + $0xb1] sm:$0x1]  ;;  %v193_v16 = vmul.f32 %v9573_v62, %v9492_v59 }
  0x3e   :  { %v792_v52 = vsel %vm791_vm4, %v790_v33, %v789_v48  ;;  %v1345_v18 = vsel %vm797_vm6, %v1344_v6, %v1343_v3  ;;  %v1092_v43 = vld [vmem:[#allocation2 + $0xc1] sm:$0x1]  ;;  %v1093_v39 = vld [vmem:[#allocation2 + $0xd1] sm:$0x1]  ;;  %v9597_v15 = vadd.f32 %v416_v50, %v414_v44  ;;  %v1352_v12 = vrot.slane %v1090_v31, 6 }
  0x3f   :  { %v795_v63 = vsel %vm794_vm5, %v793_v38, %v792_v52  ;;  %v9593_v53 = vld [vmem:[#allocation2 + $0xe1] sm:$0x1]  ;;  %v1347_v33 = vsel %vm800_vm7, %v1346_v30, %v1345_v18  ;;  %v1354_v60 = vrot.slane %v1091_v40, 5  ;;  %v536_v26 = vld [vmem:[#allocation2 + $0x80] sm:$0x1]  ;;  %v1356_v38 = vrot.slane %v1092_v43, 4 }
  0x40   :  { %v798_v29 = vsel %vm797_vm6, %v796_v0, %v795_v63  ;;  %v1088_v36 = vld [vmem:[#allocation2 + $0x81] sm:$0x1]  ;;  %v538_v6 = vld [vmem:[#allocation2 + $0xa0] sm:$0x1]  ;;  %v1349_v21 = vsel %vm803_vm8, %v1348_v17, %v1347_v33  ;;  %v1095_v48 = vld [vmem:[#allocation2 + $0xf1] sm:$0x1]  ;;  %v410_v40 = vmul.f32 %v9553_v45, %v9457_v5  ;;  %v276_v43 = vmul.f32 %v9557_v32, %v9519_v34 }
  0x41   :  { %v801_v55 = vsel %vm800_vm7, %v799_v14, %v798_v29  ;;  %v1358_v3 = vrot.slane %v1093_v39, 3  ;;  %v539_v52 = vld [vmem:[#allocation2 + $0xb0] sm:$0x1]  ;;  %196 = vst [vmem:[#allocation2 + $0x130] sm:$0xff] %v193_v16  ;;  %1576 = vxpose.xlu1.b32.start [1/16] %v1349_v21, 128  ;;  %v1360_v44 = vrot.slane %v9593_v53, 2  ;;  %v1362_v0 = vrot.slane %v1095_v48, 1 }
  0x42   :  { %v804_v50 = vsel %vm803_vm8, %v802_v4, %v801_v55  ;;  %v1089_v30 = vld [vmem:[#allocation2 + $0x91] sm:$0x1]  ;;  %v537_v31 = vld [vmem:[#allocation2 + $0x90] sm:$0x1]  ;;  %v540_v18 = vld [vmem:[#allocation2 + $0xc0] sm:$0x1]  ;;  %v9615_v21 = vsub.f32 %v9580_v61, %v410_v40  ;;  %v9619_v55 = vmul.f32 %v9597_v15, %v9475_v35 }
  0x43   :  { %1031 = vxpose.xlu0.b32.start [1/16] %v804_v50, 128  ;;  %v1350_v17 = vrot.slane %v1089_v30, 7  ;;  %v541_v14 = vld [vmem:[#allocation2 + $0xd0] sm:$0x1]  ;;  %v805_v63 = vrot.slane %v537_v31, 7  ;;  %v12420_v39 = vrot.slane %v9436_v49, 7  ;;  %v807_v33 = vrot.slane %v538_v6, 6 }
  0x44   :  { %v542_v16 = vld [vmem:[#allocation2 + $0xe0] sm:$0x1]  ;;  %v543_v53 = vld [vmem:[#allocation2 + $0xf0] sm:$0x1]  ;;  %v809_v29 = vrot.slane %v539_v52, 5  ;;  %v811_v50 = vrot.slane %v540_v18, 4 }
  0x45   :  { %v9612_v4 = vsel %vm785_vm1, %v12420_v39, %v584_v28  ;;  %v1351_v48 = vsel %vm785_vm1, %v1350_v17, %v1088_v36  ;;  %v806_v32 = vsel %vm785_vm1, %v805_v63, %v536_v26  ;;  %v813_v49 = vrot.slane %v541_v14, 3  ;;  %v9623_v30 = vld [vmem:[#allocation2 + $0x141] sm:$0x1] }
  0x46   :  { %v1353_v28 = vsel %vm788_vm2, %v1352_v12, %v1351_v48  ;;  %v808_v6 = vsel %vm788_vm2, %v807_v33, %v806_v32  ;;  %v815_v52 = vrot.slane %v542_v16, 2  ;;  %v817_v31 = vrot.slane %v543_v53, 1  ;;  %v9644_v53 = vld [vmem:[#allocation2 + $0x151] sm:$0x1] }
  0x47   :  { %v1355_v61 = vsel %vm791_vm4, %v1354_v60, %v1353_v28  ;;  %v810_v40 = vsel %vm791_vm4, %v809_v29, %v808_v6  ;;  %v278_v39 = vmul.f32 0.8660254, %v9510_v42  ;;  %v354_v36 = vmul.f32 3.0, %v9469_v1 }
  0x48   :  { %v1357_v26 = vsel %vm794_vm5, %v1356_v38, %v1355_v61  ;;  %v812_v17 = vsel %vm794_vm5, %v811_v50, %v810_v40  ;;  %v404_v18 = vmul.f32 -1.0606601, %v9471_v2  ;;  %v9634_v14 = vld [vmem:[#allocation2 + $0x131] sm:$0x1]  ;;  %v9646_v38 = vld [vmem:[#allocation2 + $0x140] sm:$0x1] }
  0x49   :  { %v1359_v63 = vsel %vm797_vm6, %v1358_v3, %v1357_v26  ;;  %v814_v60 = vsel %vm797_vm6, %v813_v49, %v812_v17  ;;  %v9639_v16 = vsub.f32 %v276_v43, %v278_v39  ;;  %v9642_v42 = vmul.f32 %v354_v36, %v9532_v47  ;;  %v9654_v32 = vld [vmem:[#allocation2 + $0x130] sm:$0x1] }
  0x4a   :  { %v1361_v33 = vsel %vm800_vm7, %v1360_v44, %v1359_v63  ;;  %v816_v29 = vsel %vm800_vm7, %v815_v52, %v814_v60  ;;  %v9651_v48 = vmul.f32 %v404_v18, %v9532_v47  ;;  %v9656_v43 = vld [vmem:[#allocation2 + $0x150] sm:$0x1]  ;;  %v104_v36 = vmul.f32 1.9899749, %v9469_v1 }
  0x4b   :  { %v1363_v50 = vsel %vm803_vm8, %v1362_v0, %v1361_v33  ;;  %v818_v49 = vsel %vm803_vm8, %v817_v31, %v816_v29  ;;  %v282_v28 = vmul.f32 %v9639_v16, %v9514_v37  ;;  %v287_v44 = vmul.f32 %v9639_v16, %v9512_v41 }
  0x4c   :  { %1577 = vxpose.xlu1.b32.cont [2/16] %v1363_v50, 128  ;;  %1032 = vxpose.xlu0.b32.cont [2/16] %v818_v49, 128  ;;  %v358_v6 = vmul.f32 %v9642_v42, %v9550_v51  ;;  %v363_v52 = vmul.f32 %v9642_v42, %v9553_v45  ;;  %v425_v61 = vmul.f32 %v9597_v15, %v9651_v48  ;;  %v108_v26 = vmul.f32 1.002853, %v9534_v22 }
  0x4d   :  { %285 = vst [vmem:[#allocation2 + $0x160] sm:$0xff] %v282_v28  ;;  %290 = vst [vmem:[#allocation2 + $0x120] sm:$0xff] %v287_v44  ;;  %v115_v17 = vmul.f32 1.9930434, %v9469_v1  ;;  %v119_v18 = vmul.f32 1.001542, %v9561_v19  ;;  %v420_v63 = vmul.f32 %v9615_v21, %v9651_v48  ;;  %v106_v60 = vmul.f32 %v104_v36, %v9561_v19 }
  0x4e   :  { %361 = vst [vmem:[#allocation2 + $0x170] sm:$0xff] %v358_v6  ;;  %366 = vst [vmem:[#allocation2 + $0x110] sm:$0xff] %v363_v52  ;;  %v198_v33 = vmul.f32 2.0310097, %v9469_v1  ;;  %v202_v29 = vmul.f32 0.9910312, %v9525_v25  ;;  %v474_v44 = vmul.f32 %v9615_v21, %v9457_v5 }
  0x4f   :  { %428 = vst [vmem:[#allocation2 + $0x100] sm:$0xff] %v425_v61  ;;  %v9684_v50 = vmul.f32 2.021315, %v9469_v1  ;;  %v292_v49 = vmul.f32 2.1712406, %v9469_v1  ;;  %423 = vst [vmem:[#allocation2 + $0x180] sm:$0xff] %v420_v63  ;;  %v110_v6 = vsub.f32 %v106_v60, %v108_v26 }
  0x50   :  { %v296_v22 = vmul.f32 0.9476071, %v9519_v34  ;;  %v368_v28 = vmul.f32 2.4874685, %v9469_v1  ;;  %v200_v19 = vmul.f32 %v198_v33, %v9573_v62  ;;  %v372_v52 = vmul.f32 0.8291562, %v9532_v47 }
  0x51   :  { %v430_v25 = vmul.f32 3.3166249, %v9469_v1  ;;  %v294_v61 = vmul.f32 %v292_v49, %v9639_v16  ;;  %v462_v39 = vmul.f32 -1.0488088, %v9471_v2  ;;  %v9698_v34 = vadd.f32 %v474_v44, %v9619_v55  ;;  %113 = vst [vmem:[#allocation2 + $0x1e0] sm:$0xff] %v110_v6 }
  0x52   :  { %v370_v36 = vmul.f32 %v368_v28, %v9642_v42  ;;  %v117_v63 = vmul.f32 %v115_v17, %v110_v6  ;;  %v9700_v40 = vsub.f32 %v200_v19, %v202_v29  ;;  %v386_v47 = vmul.f32 2.3013682, %v9469_v1 }
  0x53   :  { %v9703_v26 = vmul.f32 %v430_v25, %v9651_v48  ;;  %v9706_v49 = vsub.f32 %v294_v61, %v296_v22  ;;  %v9709_v0 = vmul.f32 %v462_v39, %v9651_v48  ;;  %v9713_v55 = vmul.f32 %v9597_v15, %v9457_v5 }
  0x54   :  { %v1098_v60 = vld [vmem:[#allocation2 + $0x121] sm:$0x1]  ;;  %v546_v31 = vld [vmem:[#allocation2 + $0x120] sm:$0x1]  ;;  %v374_v28 = vsub.f32 %v370_v36, %v372_v52  ;;  %v121_v6 = vsub.f32 %v117_v63, %v119_v18  ;;  %v206_v19 = vmul.f32 %v9700_v40, %v9488_v7  ;;  %v211_v25 = vmul.f32 %v9700_v40, %v9492_v59 }
  0x55   :  { %v1102_v33 = vld [vmem:[#allocation2 + $0x161] sm:$0x1]  ;;  %v1097_v29 = vld [vmem:[#allocation2 + $0x111] sm:$0x1]  ;;  %v9721_v22 = vmul.f32 %v9615_v21, %v9475_v35  ;;  %v1366_v52 = vrot.slane %v1098_v60, 6  ;;  %v305_v18 = vmul.f32 %v9706_v49, %v9512_v41  ;;  %v439_v24 = vmul.f32 %v9703_v26, %v9597_v15 }
  0x56   :  { %v1096_v17 = vld [vmem:[#allocation2 + $0x101] sm:$0x1]  ;;  %v1103_v44 = vld [vmem:[#allocation2 + $0x171] sm:$0x1]  ;;  %v1364_v39 = vrot.slane %v1097_v29, 7  ;;  %v1374_v61 = vrot.slane %v1102_v33, 2  ;;  %v381_v63 = vmul.f32 %v374_v28, %v9553_v45  ;;  %v483_v60 = vmul.f32 %v9698_v34, %v9709_v0 }
  0x57   :  { %v1376_v36 = vrot.slane %v1103_v44, 1  ;;  %v544_v12 = vld [vmem:[#allocation2 + $0x100] sm:$0x1]  ;;  %v545_v3 = vld [vmem:[#allocation2 + $0x110] sm:$0x1]  ;;  %124 = vst [vmem:[#allocation2 + $0x2a0] sm:$0xff] %v121_v6  ;;  %v376_v23 = vmul.f32 %v374_v28, %v9550_v51 }
  0x58   :  { %v550_v27 = vld [vmem:[#allocation2 + $0x160] sm:$0x1]  ;;  %v551_v13 = vld [vmem:[#allocation2 + $0x170] sm:$0x1]  ;;  %209 = vst [vmem:[#allocation2 + $0x1f0] sm:$0xff] %v206_v19  ;;  %214 = vst [vmem:[#allocation2 + $0x1d0] sm:$0xff] %v211_v25  ;;  %v1365_v33 = vsel %vm785_vm1, %v1364_v39, %v1096_v17  ;;  %v300_v25 = vmul.f32 %v9706_v49, %v9514_v37 }
  0x59   :  { %v819_v29 = vrot.slane %v545_v3, 7  ;;  %v821_v44 = vrot.slane %v546_v31, 6  ;;  %v829_v11 = vrot.slane %v550_v27, 2  ;;  %v1367_v6 = vsel %vm788_vm2, %v1366_v52, %v1365_v33  ;;  %308 = vst [vmem:[#allocation2 + $0x1c0] sm:$0xff] %v305_v18  ;;  %384 = vst [vmem:[#allocation2 + $0x1b0] sm:$0xff] %v381_v63 }
  0x5a   :  { %v831_v19 = vrot.slane %v551_v13, 1  ;;  %442 = vst [vmem:[#allocation2 + $0x1a0] sm:$0xff] %v439_v24  ;;  %486 = vst [vmem:[#allocation2 + $0x190] sm:$0xff] %v483_v60  ;;  %v12421_v10 = vrot.slane %v9634_v14, 5  ;;  %v9739_v31 = vld [vmem:[#allocation2 + $0x1e1] sm:$0x1]  ;;  %v388_v13 = vmul.f32 %v386_v47, %v374_v28 }
  0x5b   :  { %v820_v3 = vsel %vm785_vm1, %v819_v29, %v544_v12  ;;  %v9741_v27 = vld [vmem:[#allocation2 + $0x1e0] sm:$0x1]  ;;  %v390_v17 = vmul.f32 0.9251849, %v9642_v42  ;;  %v12422_v24 = vrot.slane %v9623_v30, 4  ;;  %v1388_v18 = vrot.slane %v9739_v31, 2 }
  0x5c   :  { %v1369_v41 = vsel %vm791_vm4, %v12421_v10, %v1367_v6  ;;  %v822_v52 = vsel %vm788_vm2, %v821_v44, %v820_v3  ;;  %v843_v14 = vrot.slane %v9741_v27, 2  ;;  %303 = vst [vmem:[#allocation2 + $0x200] sm:$0xff] %v300_v25  ;;  %379 = vst [vmem:[#allocation2 + $0x210] sm:$0xff] %v376_v23  ;;  %v12423_v10 = vrot.slane %v9644_v53, 3  ;;  %v1104_v44 = vld [vmem:[#allocation2 + $0x181] sm:$0x1] }
  0x5d   :  { %v1371_v39 = vsel %vm794_vm5, %v12422_v24, %v1369_v41  ;;  %v12424_v47 = vrot.slane %v9654_v32, 5  ;;  %v392_v28 = vsub.f32 %v388_v13, %v390_v17  ;;  %v434_v41 = vmul.f32 %v9703_v26, %v9615_v21 }
  0x5e   :  { %v1373_v12 = vsel %vm797_vm6, %v12423_v10, %v1371_v39  ;;  %v12425_v63 = vrot.slane %v9646_v38, 4  ;;  %v444_v23 = vmul.f32 2.6739483, %v9469_v1  ;;  %v448_v53 = vmul.f32 0.8062258, %v9651_v48 }
  0x5f   :  { %v824_v42 = vsel %vm791_vm4, %v12424_v47, %v822_v52  ;;  %v1375_v30 = vsel %vm800_vm7, %v1374_v61, %v1373_v12  ;;  %v12426_v32 = vrot.slane %v9656_v43, 3  ;;  %v1109_v6 = vld [vmem:[#allocation2 + $0x1d1] sm:$0x1]  ;;  %v9770_v3 = vld [vmem:[#allocation2 + $0x1d0] sm:$0x1]  ;;  %v394_v38 = vmul.f32 %v392_v28, %v9550_v51  ;;  %437 = vst [vmem:[#allocation2 + $0x220] sm:$0xff] %v434_v41 }
  0x60   :  { %v826_v60 = vsel %vm794_vm5, %v12425_v63, %v824_v42  ;;  %v1377_v33 = vsel %vm803_vm8, %v1376_v36, %v1375_v30  ;;  %v9768_v25 = vld [vmem:[#allocation2 + $0x1f1] sm:$0x1]  ;;  %v399_v61 = vmul.f32 %v392_v28, %v9553_v45  ;;  %v1386_v13 = vrot.slane %v1109_v6, 3  ;;  %v9776_v43 = vld [vmem:[#allocation2 + $0x1f0] sm:$0x1] }
  0x61   :  { %v828_v29 = vsel %vm797_vm6, %v12426_v32, %v826_v60  ;;  %1578 = vxpose.xlu1.b32.cont [3/16] %v1377_v33, 128  ;;  %v1390_v36 = vrot.slane %v9768_v25, 1  ;;  %v841_v17 = vrot.slane %v9770_v3, 3  ;;  %v1105_v39 = vld [vmem:[#allocation2 + $0x191] sm:$0x1]  ;;  %v1106_v52 = vld [vmem:[#allocation2 + $0x1a1] sm:$0x1]  ;;  %v446_v51 = vmul.f32 %v444_v23, %v9703_v26 }
  0x62   :  { %v830_v48 = vsel %vm800_vm7, %v829_v11, %v828_v29  ;;  %v1107_v10 = vld [vmem:[#allocation2 + $0x1b1] sm:$0x1]  ;;  %v552_v12 = vld [vmem:[#allocation2 + $0x180] sm:$0x1]  ;;  %402 = vst [vmem:[#allocation2 + $0x270] sm:$0xff] %v399_v61  ;;  %v9783_v45 = vsub.f32 %v9721_v22, %v9713_v55  ;;  %v508_v11 = vmul.f32 %v9698_v34, %v9457_v5  ;;  %397 = vst [vmem:[#allocation2 + $0x2d0] sm:$0xff] %v394_v38 }
  0x63   :  { %v832_v24 = vsel %vm803_vm8, %v831_v19, %v830_v48  ;;  %v1108_v47 = vld [vmem:[#allocation2 + $0x1c1] sm:$0x1]  ;;  %v1378_v42 = vrot.slane %v1105_v39, 7  ;;  %v1380_v28 = vrot.slane %v1106_v52, 6  ;;  %v1382_v19 = vrot.slane %v1107_v10, 5 }
  0x64   :  { %1033 = vxpose.xlu0.b32.cont [3/16] %v832_v24, 128  ;;  %v845_v41 = vrot.slane %v9776_v43, 1  ;;  %v1384_v30 = vrot.slane %v1108_v47, 4  ;;  %v553_v63 = vld [vmem:[#allocation2 + $0x190] sm:$0x1]  ;;  %v554_v60 = vld [vmem:[#allocation2 + $0x1a0] sm:$0x1]  ;;  %v450_v33 = vsub.f32 %v446_v51, %v448_v53  ;;  %v478_v26 = vmul.f32 %v9783_v45, %v9709_v0 }
  0x65   :  { %v506_v55 = vmul.f32 %v9783_v45, %v9475_v35  ;;  %v1379_v22 = vsel %vm785_vm1, %v1378_v42, %v1104_v44  ;;  %v555_v23 = vld [vmem:[#allocation2 + $0x1b0] sm:$0x1]  ;;  %v556_v32 = vld [vmem:[#allocation2 + $0x1c0] sm:$0x1]  ;;  %v833_v29 = vrot.slane %v553_v63, 7  ;;  %v835_v6 = vrot.slane %v554_v60, 6 }
  0x66   :  { %v512_v25 = vmul.f32 %v9698_v34, %v9475_v35  ;;  %v1381_v3 = vsel %vm788_vm2, %v1380_v28, %v1379_v22  ;;  %v837_v38 = vrot.slane %v555_v23, 5  ;;  %v839_v61 = vrot.slane %v556_v32, 4  ;;  %481 = vst [vmem:[#allocation2 + $0x230] sm:$0xff] %v478_v26  ;;  %v1113_v39 = vld [vmem:[#allocation2 + $0x211] sm:$0x1] }
  0x67   :  { %v457_v53 = vmul.f32 %v450_v33, %v9597_v15  ;;  %v1383_v48 = vsel %vm791_vm4, %v1382_v19, %v1381_v3  ;;  %v834_v43 = vsel %vm785_vm1, %v833_v29, %v552_v12  ;;  %v488_v44 = vmul.f32 3.6055512, %v9469_v1  ;;  %v1114_v28 = vld [vmem:[#allocation2 + $0x221] sm:$0x1]  ;;  %v561_v60 = vld [vmem:[#allocation2 + $0x210] sm:$0x1] }
  0x68   :  { %v502_v24 = vmul.f32 -1.040833, %v9471_v2  ;;  %v1385_v52 = vsel %vm794_vm5, %v1384_v30, %v1383_v48  ;;  %v836_v35 = vsel %vm788_vm2, %v835_v6, %v834_v43  ;;  %v510_v10 = vsub.f32 %v506_v55, %v508_v11  ;;  %v1112_v11 = vld [vmem:[#allocation2 + $0x201] sm:$0x1]  ;;  %v562_v22 = vld [vmem:[#allocation2 + $0x220] sm:$0x1] }
  0x69   :  { %460 = vst [vmem:[#allocation2 + $0x260] sm:$0xff] %v457_v53  ;;  %v514_v51 = vmul.f32 %v9783_v45, %v9457_v5  ;;  %v1387_v15 = vsel %vm797_vm6, %v1386_v13, %v1385_v52  ;;  %v838_v47 = vsel %vm791_vm4, %v837_v38, %v836_v35  ;;  %v490_v12 = vmul.f32 %v488_v44, %v9709_v0  ;;  %v9819_v23 = vld [vmem:[#allocation2 + $0x271] sm:$0x1]  ;;  %v560_v29 = vld [vmem:[#allocation2 + $0x200] sm:$0x1] }
  0x6a   :  { %v504_v42 = vmul.f32 %v502_v24, %v9709_v0  ;;  %v1389_v2 = vsel %vm800_vm7, %v1388_v18, %v1387_v15  ;;  %v840_v19 = vsel %vm794_vm5, %v839_v61, %v838_v47  ;;  %v1392_v63 = vrot.slane %v1113_v39, 7  ;;  %v1145_v0 = vld [vmem:[#allocation2 + $0x411] sm:$0x1]  ;;  %v9828_v38 = vld [vmem:[#allocation2 + $0x270] sm:$0x1] }
  0x6b   :  { %v516_v30 = vadd.f32 %v514_v51, %v512_v25  ;;  %v1391_v5 = vsel %vm803_vm8, %v1390_v36, %v1389_v2  ;;  %v842_v13 = vsel %vm797_vm6, %v841_v17, %v840_v19  ;;  %v497_v26 = vmul.f32 %v490_v12, %v9698_v34  ;;  %v9830_v53 = vld [vmem:[#allocation2 + $0x2a1] sm:$0x1]  ;;  %v9846_v24 = vld [vmem:[#allocation2 + $0x2d1] sm:$0x1] }
  0x6c   :  { %v518_v55 = vmul.f32 %v510_v10, %v504_v42  ;;  %1579 = vxpose.xlu1.b32.cont [4/16] %v1391_v5, 128  ;;  %v844_v31 = vsel %vm800_vm7, %v843_v14, %v842_v13  ;;  %v1394_v32 = vrot.slane %v1114_v28, 6  ;;  %v12427_v36 = vrot.slane %v9442_v54, 6  ;;  %v1144_v39 = vld [vmem:[#allocation2 + $0x401] sm:$0x1]  ;;  %v9853_v10 = vld [vmem:[#allocation2 + $0x2a0] sm:$0x1] }
  0x6d   :  { %v523_v18 = vmul.f32 %v516_v30, %v504_v42  ;;  %v846_v34 = vsel %vm803_vm8, %v845_v41, %v844_v31  ;;  %500 = vst [vmem:[#allocation2 + $0x250] sm:$0xff] %v497_v26  ;;  %v1115_v6 = vld [vmem:[#allocation2 + $0x231] sm:$0x1]  ;;  %v1393_v25 = vsel %vm785_vm1, %v1392_v63, %v1112_v11  ;;  %v563_v27 = vld [vmem:[#allocation2 + $0x230] sm:$0x1]  ;;  %v847_v3 = vrot.slane %v561_v60, 7 }
  0x6e   :  { %v892_v17 = vsel %vm788_vm2, %v12427_v36, %v9612_v4  ;;  %521 = vst [vmem:[#allocation2 + $0x300] sm:$0xff] %v518_v55  ;;  %v452_v14 = vmul.f32 %v450_v33, %v9615_v21  ;;  %1034 = vxpose.xlu0.b32.cont [4/16] %v846_v34, 128  ;;  %v849_v61 = vrot.slane %v562_v22, 6  ;;  %v12428_v54 = vrot.slane %v9433_v46, 1  ;;  %v9865_v11 = vld [vmem:[#allocation2 + $0x2d0] sm:$0x1] }
  0x6f   :  { %526 = vst [vmem:[#allocation2 + $0x240] sm:$0xff] %v523_v18  ;;  %v1448_v41 = vrot.slane %v1145_v0, 7  ;;  %v218_v48 = vmul.f32 %v9684_v50, %v9700_v40  ;;  %v848_v33 = vsel %vm785_vm1, %v847_v3, %v560_v29  ;;  %v492_v44 = vmul.f32 %v490_v12, %v9783_v45  ;;  %v1146_v63 = vld [vmem:[#allocation2 + $0x421] sm:$0x1] }
  0x70   :  { %v9836_v4 = vsel %vm803_vm8, %v12428_v54, %v9569_v20  ;;  %v9840_v43 = vld [vmem:[#allocation2 + $0x261] sm:$0x1]  ;;  %v9842_v21 = vld [vmem:[#allocation2 + $0x260] sm:$0x1]  ;;  %455 = vst [vmem:[#allocation2 + $0x2e0] sm:$0xff] %v452_v14  ;;  %v12429_v46 = vrot.slane %v9445_v56, 5  ;;  %v1395_v52 = vsel %vm788_vm2, %v1394_v32, %v1393_v25  ;;  %v850_v51 = vsel %vm788_vm2, %v849_v61, %v848_v33 }
  0x71   :  { %v1396_v35 = vrot.slane %v1115_v6, 5  ;;  %v1404_v40 = vrot.slane %v9819_v23, 1  ;;  %v851_v50 = vrot.slane %v563_v27, 5  ;;  %v859_v15 = vrot.slane %v9828_v38, 1  ;;  %495 = vst [vmem:[#allocation2 + $0x2f0] sm:$0xff] %v492_v44 }
  0x72   :  { %v894_v20 = vsel %vm791_vm4, %v12429_v46, %v892_v17  ;;  %v220_v45 = vmul.f32 0.9952267, %v9573_v62  ;;  %v310_v47 = vmul.f32 2.113942, %v9469_v1  ;;  %v1402_v56 = vrot.slane %v9840_v43, 2  ;;  %v12434_v43 = vld [vmem:[#allocation21_spill] sm:$0xff] }
  0x73   :  { %v857_v12 = vrot.slane %v9842_v21, 2  ;;  %v314_v42 = vmul.f32 0.9736101, %v9639_v16  ;;  %v1408_v28 = vrot.slane %v9830_v53, 6  ;;  %v1414_v30 = vrot.slane %v9846_v24, 3 }
  0x74   :  { %v222_v2 = vsub.f32 %v218_v48, %v220_v45  ;;  %v312_v19 = vmul.f32 %v310_v47, %v9706_v49  ;;  %v863_v62 = vrot.slane %v9853_v10, 6  ;;  %v1117_v1 = vld [vmem:[#allocation2 + $0x251] sm:$0x1]  ;;  %v1397_v60 = vsel %vm791_vm4, %v1396_v35, %v1395_v52  ;;  %v565_v5 = vld [vmem:[#allocation2 + $0x250] sm:$0x1] }
  0x75   :  { %v852_v13 = vsel %vm791_vm4, %v851_v50, %v850_v51  ;;  %v1128_v26 = vld [vmem:[#allocation2 + $0x301] sm:$0x1]  ;;  %v12430_v16 = vrot.slane %v9447_v57, 4  ;;  %v1449_v49 = vsel %vm785_vm1, %v1448_v41, %v1144_v39  ;;  %v1400_v0 = vrot.slane %v1117_v1, 3  ;;  %v12437_v51 = vld [vmem:[#allocation12_spill] sm:$0xff] }
  0x76   :  { %v1116_v22 = vld [vmem:[#allocation2 + $0x241] sm:$0x1]  ;;  %v564_v31 = vld [vmem:[#allocation2 + $0x240] sm:$0x1]  ;;  %v855_v18 = vrot.slane %v565_v5, 3  ;;  %v224_v32 = vmul.f32 %v222_v2, %v9488_v7  ;;  %v229_v29 = vmul.f32 %v222_v2, %v9492_v59  ;;  %v316_v34 = vsub.f32 %v312_v19, %v314_v42  ;;  %v12439_v19 = vld [vmem:[#allocation8_spill] sm:$0xff] }
  0x77   :  { %v896_v55 = vsel %vm794_vm5, %v12430_v16, %v894_v20  ;;  %v1398_v36 = vrot.slane %v1116_v22, 4  ;;  %v853_v17 = vrot.slane %v564_v31, 4  ;;  %v9876_v6 = vld [vmem:[#allocation2 + $0x2e1] sm:$0x1]  ;;  %v9878_v25 = vld [vmem:[#allocation2 + $0x2e0] sm:$0x1] }
  0x78   :  { %v12431_v57 = vrot.slane %v9387_v8, 7  ;;  %227 = vst [vmem:[#allocation2 + $0x2b0] sm:$0xff] %v224_v32  ;;  %232 = vst [vmem:[#allocation2 + $0x290] sm:$0xff] %v229_v29  ;;  %v869_v3 = vrot.slane %v9865_v11, 3  ;;  %v12432_v14 = vrot.slane %v9389_v9, 6  ;;  %v12433_v38 = vrot.slane %v9449_v58, 3 }
  0x79   :  { %v576_v59 = vld [vmem:[#allocation2 + $0x300] sm:$0x1]  ;;  %v1450_v54 = vrot.slane %v1146_v63, 6  ;;  %v1399_v41 = vsel %vm794_vm5, %v1398_v36, %v1397_v60  ;;  %v854_v8 = vsel %vm794_vm5, %v853_v17, %v852_v13  ;;  %v318_v48 = vmul.f32 %v316_v34, %v9514_v37  ;;  %v1147_v58 = vld [vmem:[#allocation2 + $0x431] sm:$0x1]  ;;  %v12445_v22 = vld [vmem:[#allocation14_spill] sm:$0xff] }
  0x7a   :  { %v1421_v27 = vsel %vm785_vm1, %v12431_v57, %v1128_v26  ;;  %v898_v61 = vsel %vm797_vm6, %v12433_v38, %v896_v55  ;;  %v323_v21 = vmul.f32 %v316_v34, %v12434_v43  ;;  %v1401_v33 = vsel %vm797_vm6, %v1400_v0, %v1399_v41  ;;  %v9900_v52 = vld [vmem:[#allocation2 + $0x2f1] sm:$0x1]  ;;  %v1148_v42 = vld [vmem:[#allocation2 + $0x441] sm:$0x1]  ;;  %v9918_v26 = vld [vmem:[#allocation2 + $0x2f0] sm:$0x1] }
  0x7b   :  { %v1423_v7 = vsel %vm788_vm2, %v12432_v14, %v1421_v27  ;;  %v856_v9 = vsel %vm797_vm6, %v855_v18, %v854_v8  ;;  %v1416_v44 = vrot.slane %v9876_v6, 2  ;;  %v871_v46 = vrot.slane %v9878_v25, 2  ;;  %321 = vst [vmem:[#allocation2 + $0x2c0] sm:$0xff] %v318_v48  ;;  %v12435_v37 = vld [vmem:[#allocation7_spill] sm:$0xff]  ;;  %v12441_v60 = vld [vmem:[#allocation13_spill] sm:$0xff]  ;;  %v12451_v8 = vld [vmem:[#allocation16_spill] sm:$0xff] }
  0x7c   :  { %v1403_v20 = vsel %vm800_vm7, %v1402_v56, %v1401_v33  ;;  %v858_v39 = vsel %vm800_vm7, %v857_v12, %v856_v9  ;;  %326 = vst [vmem:[#allocation2 + $0x280] sm:$0xff] %v323_v21  ;;  %v12436_v35 = vrot.slane %v12435_v37, 5  ;;  %v12438_v45 = vrot.slane %v12437_v51, 7  ;;  %v1149_v2 = vld [vmem:[#allocation2 + $0x451] sm:$0x1]  ;;  %v12443_v16 = vld [vmem:[#allocation9_spill] sm:$0xff] }
  0x7d   :  { %v1405_v56 = vsel %vm803_vm8, %v1404_v40, %v1403_v20  ;;  %v860_v12 = vsel %vm803_vm8, %v859_v15, %v858_v39  ;;  %v12440_v63 = vrot.slane %v12439_v19, 4  ;;  %v12442_v5 = vrot.slane %v12441_v60, 6  ;;  %v12447_v32 = vld [vmem:[#allocation15_spill] sm:$0xff]  ;;  %v1150_v17 = vld [vmem:[#allocation2 + $0x461] sm:$0x1] }
  0x7e   :  { %v1425_v50 = vsel %vm791_vm4, %v12436_v35, %v1423_v7  ;;  %v876_v47 = vsel %vm785_vm1, %v12438_v45, %v576_v59  ;;  %1580 = vxpose.xlu1.b32.cont [5/16] %v1405_v56, 128  ;;  %1035 = vxpose.xlu0.b32.cont [5/16] %v860_v12, 128  ;;  %v12444_v55 = vrot.slane %v12443_v16, 3  ;;  %v12446_v40 = vrot.slane %v12445_v22, 5  ;;  %v12449_v59 = vld [vmem:[#allocation10_spill] sm:$0xff]  ;;  %v1151_v33 = vld [vmem:[#allocation2 + $0x471] sm:$0x1]  ;;  %v12455_v35 = vld [vmem:[#allocation17_spill] sm:$0xff] }
  0x7f   :  { %v1427_v1 = vsel %vm794_vm5, %v12440_v63, %v1425_v50  ;;  %v878_v13 = vsel %vm788_vm2, %v12442_v5, %v876_v47  ;;  %v1451_v0 = vsel %vm788_vm2, %v1450_v54, %v1449_v49  ;;  %v1452_v31 = vrot.slane %v1147_v58, 5  ;;  %v1121_v27 = vld [vmem:[#allocation2 + $0x291] sm:$0x1]  ;;  %v569_v7 = vld [vmem:[#allocation2 + $0x290] sm:$0x1] }
  0x80   :  { %v1429_v23 = vsel %vm797_vm6, %v12444_v55, %v1427_v1  ;;  %v880_v15 = vsel %vm791_vm4, %v12446_v40, %v878_v13  ;;  %v1418_v18 = vrot.slane %v9900_v52, 1  ;;  %v12448_v29 = vrot.slane %v12447_v32, 4  ;;  %v1123_v14 = vld [vmem:[#allocation2 + $0x2b1] sm:$0x1]  ;;  %v571_v20 = vld [vmem:[#allocation2 + $0x2b0] sm:$0x1] }
  0x81   :  { %v1454_v34 = vrot.slane %v1148_v42, 4  ;;  %v1456_v57 = vrot.slane %v1149_v2, 3  ;;  %v12450_v38 = vrot.slane %v12449_v59, 2  ;;  %v12452_v48 = vrot.slane %v12451_v8, 3  ;;  %v12453_v54 = vld [vmem:[#allocation19_spill] sm:$0xff] }
  0x82   :  { %v882_v36 = vsel %vm794_vm5, %v12448_v29, %v880_v15  ;;  %v12454_v43 = vrot.slane %v12453_v54, 2  ;;  %v1453_v9 = vsel %vm791_vm4, %v1452_v31, %v1451_v0  ;;  %v1406_v58 = vrot.slane %v1121_v27, 7  ;;  %v593_v45 = vld [vmem:[#allocation2 + $0x410] sm:$0x1]  ;;  %v594_v47 = vld [vmem:[#allocation2 + $0x420] sm:$0x1] }
  0x83   :  { %v1431_v41 = vsel %vm800_vm7, %v12450_v38, %v1429_v23  ;;  %v884_v49 = vsel %vm797_vm6, %v12452_v48, %v882_v36  ;;  %v861_v39 = vrot.slane %v569_v7, 7  ;;  %v873_v37 = vrot.slane %v9918_v26, 1  ;;  %v1120_v19 = vld [vmem:[#allocation2 + $0x281] sm:$0x1]  ;;  %v568_v1 = vld [vmem:[#allocation2 + $0x280] sm:$0x1] }
  0x84   :  { %v900_v21 = vsel %vm800_vm7, %v12454_v43, %v898_v61  ;;  %v12456_v50 = vrot.slane %v12455_v35, 2  ;;  %v1410_v42 = vrot.slane %v1123_v14, 5  ;;  %v865_v2 = vrot.slane %v571_v20, 5  ;;  %v595_v61 = vld [vmem:[#allocation2 + $0x430] sm:$0x1]  ;;  %v12459_v26 = vld [vmem:[#allocation18_spill] sm:$0xff] }
  0x85   :  { %v1455_v56 = vsel %vm794_vm5, %v1454_v34, %v1453_v9  ;;  %v1458_v12 = vrot.slane %v1150_v17, 2  ;;  %v1124_v63 = vld [vmem:[#allocation2 + $0x2c1] sm:$0x1]  ;;  %v12457_v60 = vld [vmem:[#allocation11_spill] sm:$0xff]  ;;  %v12460_v16 = vrot.slane %v12459_v26, 1  ;;  %v12461_v23 = vld [vmem:[#allocation20_spill] sm:$0xff]  ;;  %v1407_v31 = vsel %vm785_vm1, %v1406_v58, %v1120_v19 }
  0x86   :  { %v886_v51 = vsel %vm800_vm7, %v12456_v50, %v884_v49  ;;  %v12458_v5 = vrot.slane %v12457_v60, 1  ;;  %v12462_v22 = vrot.slane %v12461_v23, 1  ;;  %v1457_v15 = vsel %vm797_vm6, %v1456_v57, %v1455_v56  ;;  %v592_v0 = vld [vmem:[#allocation2 + $0x400] sm:$0x1]  ;;  %v597_v59 = vld [vmem:[#allocation2 + $0x450] sm:$0x1] }
  0x87   :  { %v9954_v55 = vsel %vm803_vm8, %v12460_v16, %v886_v51  ;;  %v1412_v32 = vrot.slane %v1124_v63, 4  ;;  %v572_v29 = vld [vmem:[#allocation2 + $0x2c0] sm:$0x1]  ;;  %v862_v36 = vsel %vm785_vm1, %v861_v39, %v568_v1  ;;  %v1459_v17 = vsel %vm800_vm7, %v1458_v12, %v1457_v15  ;;  %v599_v48 = vld [vmem:[#allocation2 + $0x470] sm:$0x1] }
  0x88   :  { %v9949_v13 = vsel %vm803_vm8, %v12458_v5, %v1431_v41  ;;  %v9959_v40 = vsel %vm803_vm8, %v12462_v22, %v900_v21  ;;  %v596_v34 = vld [vmem:[#allocation2 + $0x440] sm:$0x1]  ;;  %v1409_v27 = vsel %vm788_vm2, %v1408_v28, %v1407_v31  ;;  %v864_v14 = vsel %vm788_vm2, %v863_v62, %v862_v36  ;;  %v1153_v43 = vld [vmem:[#allocation2 + $0x491] sm:$0x1]  ;;  %v1154_v21 = vld [vmem:[#allocation2 + $0x4a1] sm:$0x1] }
  0x89   :  { %v867_v7 = vrot.slane %v572_v29, 4  ;;  %v1460_v57 = vrot.slane %v1151_v33, 1  ;;  %v598_v38 = vld [vmem:[#allocation2 + $0x460] sm:$0x1]  ;;  %v1411_v41 = vsel %vm791_vm4, %v1410_v42, %v1409_v27  ;;  %v866_v8 = vsel %vm791_vm4, %v865_v2, %v864_v14  ;;  %v1155_v33 = vld [vmem:[#allocation2 + $0x4b1] sm:$0x1] }
  0x8a   :  { %v903_v49 = vrot.slane %v593_v45, 7  ;;  %v905_v54 = vrot.slane %v594_v47, 6  ;;  %v1413_v53 = vsel %vm794_vm5, %v1412_v32, %v1411_v41  ;;  %v907_v62 = vrot.slane %v595_v61, 5  ;;  %v1156_v9 = vld [vmem:[#allocation2 + $0x4c1] sm:$0x1] }
  0x8b   :  { %v868_v28 = vsel %vm794_vm5, %v867_v7, %v866_v8  ;;  %v9976_v10 = vsel %vm803_vm8, %v1460_v57, %v1459_v17  ;;  %v9978_v58 = vld [vmem:[#allocation2 + $0x4d1] sm:$0x1]  ;;  %v1415_v20 = vsel %vm797_vm6, %v1414_v30, %v1413_v53  ;;  %v909_v50 = vrot.slane %v596_v34, 4  ;;  %v1152_v51 = vld [vmem:[#allocation2 + $0x481] sm:$0x1] }
  0x8c   :  { %v870_v39 = vsel %vm797_vm6, %v869_v3, %v868_v28  ;;  %v904_v35 = vsel %vm785_vm1, %v903_v49, %v592_v0  ;;  %v9987_v45 = vld [vmem:[#allocation2 + $0x4e1] sm:$0x1]  ;;  %v9989_v47 = vld [vmem:[#allocation2 + $0x4f1] sm:$0x1]  ;;  %v1417_v42 = vsel %vm800_vm7, %v1416_v44, %v1415_v20  ;;  %v911_v11 = vrot.slane %v597_v59, 3 }
  0x8d   :  { %v872_v24 = vsel %vm800_vm7, %v871_v46, %v870_v39  ;;  %v906_v30 = vsel %vm788_vm2, %v905_v54, %v904_v35  ;;  %v601_v3 = vld [vmem:[#allocation2 + $0x490] sm:$0x1]  ;;  %v602_v2 = vld [vmem:[#allocation2 + $0x4a0] sm:$0x1]  ;;  %v1419_v56 = vsel %vm803_vm8, %v1418_v18, %v1417_v42  ;;  %v913_v6 = vrot.slane %v598_v38, 2 }
  0x8e   :  { %v874_v12 = vsel %vm803_vm8, %v873_v37, %v872_v24  ;;  %v908_v61 = vsel %vm791_vm4, %v907_v62, %v906_v30  ;;  %v603_v19 = vld [vmem:[#allocation2 + $0x4b0] sm:$0x1]  ;;  %v604_v44 = vld [vmem:[#allocation2 + $0x4c0] sm:$0x1]  ;;  %1581 = vxpose.xlu1.b32.cont [6/16] %v1419_v56, 128  ;;  %v915_v46 = vrot.slane %v599_v48, 1  ;;  %v1462_v1 = vrot.slane %v1153_v43, 7 }
  0x8f   :  { %v10003_v63 = vld [vmem:[#allocation2 + $0x4d0] sm:$0x1]  ;;  %1036 = vxpose.xlu0.b32.cont [6/16] %v874_v12, 128  ;;  %v910_v25 = vsel %vm794_vm5, %v909_v50, %v908_v61  ;;  %v1464_v60 = vrot.slane %v1154_v21, 6  ;;  %v600_v5 = vld [vmem:[#allocation2 + $0x480] sm:$0x1]  ;;  %v1466_v37 = vrot.slane %v1155_v33, 5 }
  0x90   :  { %v606_v52 = vld [vmem:[#allocation2 + $0x4e0] sm:$0x1]  ;;  %v10006_v26 = vld [vmem:[#allocation2 + $0x4f0] sm:$0x1]  ;;  %v912_v18 = vsel %vm797_vm6, %v911_v11, %v910_v25  ;;  %v1468_v16 = vrot.slane %v1156_v9, 4  ;;  %v1470_v23 = vrot.slane %v9978_v58, 3  ;;  %v1463_v0 = vsel %vm785_vm1, %v1462_v1, %v1152_v51 }
  0x91   :  { %v1161_v22 = vld [vmem:[#allocation2 + $0x511] sm:$0x1]  ;;  %v914_v15 = vsel %vm800_vm7, %v913_v6, %v912_v18  ;;  %v1472_v31 = vrot.slane %v9987_v45, 2  ;;  %v1474_v32 = vrot.slane %v9989_v47, 1  ;;  %v1162_v29 = vld [vmem:[#allocation2 + $0x521] sm:$0x1]  ;;  %v1465_v34 = vsel %vm788_vm2, %v1464_v60, %v1463_v0 }
  0x92   :  { %v1163_v36 = vld [vmem:[#allocation2 + $0x531] sm:$0x1]  ;;  %v916_v17 = vsel %vm803_vm8, %v915_v46, %v914_v15  ;;  %v917_v27 = vrot.slane %v601_v3, 7  ;;  %v919_v14 = vrot.slane %v602_v2, 6  ;;  %v1160_v7 = vld [vmem:[#allocation2 + $0x501] sm:$0x1]  ;;  %1582 = vxpose.xlu1.b32.cont [7/16] %v9949_v13, 128  ;;  %v1467_v38 = vsel %vm791_vm4, %v1466_v37, %v1465_v34 }
  0x93   :  { %v1164_v57 = vld [vmem:[#allocation2 + $0x541] sm:$0x1]  ;;  %v1165_v59 = vld [vmem:[#allocation2 + $0x551] sm:$0x1]  ;;  %1037 = vxpose.xlu0.b32.cont [7/16] %v9954_v55, 128  ;;  %v921_v41 = vrot.slane %v603_v19, 5  ;;  %v923_v8 = vrot.slane %v604_v44, 4  ;;  %v1469_v54 = vsel %vm794_vm5, %v1468_v16, %v1467_v38 }
  0x94   :  { %v925_v48 = vrot.slane %v10003_v63, 3  ;;  %v1166_v49 = vld [vmem:[#allocation2 + $0x561] sm:$0x1]  ;;  %v918_v43 = vsel %vm785_vm1, %v917_v27, %v600_v5  ;;  %v927_v21 = vrot.slane %v606_v52, 2  ;;  %v929_v53 = vrot.slane %v10006_v26, 1 }
  0x95   :  { %v1167_v28 = vld [vmem:[#allocation2 + $0x571] sm:$0x1]  ;;  %v609_v62 = vld [vmem:[#allocation2 + $0x510] sm:$0x1]  ;;  %v1471_v13 = vsel %vm797_vm6, %v1470_v23, %v1469_v54  ;;  %v920_v55 = vsel %vm788_vm2, %v919_v14, %v918_v43  ;;  %v1476_v33 = vrot.slane %v1161_v22, 7  ;;  %v1478_v9 = vrot.slane %v1162_v29, 6 }
  0x96   :  { %v610_v58 = vld [vmem:[#allocation2 + $0x520] sm:$0x1]  ;;  %v611_v20 = vld [vmem:[#allocation2 + $0x530] sm:$0x1]  ;;  %v1473_v39 = vsel %vm800_vm7, %v1472_v31, %v1471_v13  ;;  %v922_v35 = vsel %vm791_vm4, %v921_v41, %v920_v55  ;;  %v1480_v50 = vrot.slane %v1163_v36, 5  ;;  %v1482_v51 = vrot.slane %v1164_v57, 4  ;;  %1583 = vxpose.xlu1.b32.cont [8/16] %v9836_v4, 128 }
  0x97   :  { %v608_v45 = vld [vmem:[#allocation2 + $0x500] sm:$0x1]  ;;  %v613_v42 = vld [vmem:[#allocation2 + $0x550] sm:$0x1]  ;;  %1038 = vxpose.xlu0.b32.cont [8/16] %v9959_v40, 128  ;;  %v1475_v24 = vsel %vm803_vm8, %v1474_v32, %v1473_v39  ;;  %v924_v30 = vsel %vm794_vm5, %v923_v8, %v922_v35  ;;  %v1477_v11 = vsel %vm785_vm1, %v1476_v33, %v1160_v7  ;;  %v1484_v3 = vrot.slane %v1165_v59, 3 }
  0x98   :  { %v612_v47 = vld [vmem:[#allocation2 + $0x540] sm:$0x1]  ;;  %v10032_v56 = vld [vmem:[#allocation2 + $0x570] sm:$0x1]  ;;  %v926_v12 = vsel %vm797_vm6, %v925_v48, %v924_v30  ;;  %v1479_v61 = vsel %vm788_vm2, %v1478_v9, %v1477_v11  ;;  %v1486_v6 = vrot.slane %v1166_v49, 2  ;;  %v1488_v19 = vrot.slane %v1167_v28, 1 }
  0x99   :  { %v614_v2 = vld [vmem:[#allocation2 + $0x560] sm:$0x1]  ;;  %v1169_v44 = vld [vmem:[#allocation2 + $0x591] sm:$0x1]  ;;  %v1170_v4 = vld [vmem:[#allocation2 + $0x5a1] sm:$0x1]  ;;  %v928_v40 = vsel %vm800_vm7, %v927_v21, %v926_v12  ;;  %v1481_v63 = vsel %vm791_vm4, %v1480_v50, %v1479_v61 }
  0x9a   :  { %v931_v25 = vrot.slane %v609_v62, 7  ;;  %v933_v46 = vrot.slane %v610_v58, 6  ;;  %v1168_v1 = vld [vmem:[#allocation2 + $0x581] sm:$0x1]  ;;  %v1171_v60 = vld [vmem:[#allocation2 + $0x5b1] sm:$0x1]  ;;  %v930_v52 = vsel %vm803_vm8, %v929_v53, %v928_v40  ;;  %v1483_v26 = vsel %vm794_vm5, %v1482_v51, %v1481_v63  ;;  %1584 = vxpose.xlu1.b32.cont [9/16] %v9976_v10, 128 }
  0x9b   :  { %v1172_v5 = vld [vmem:[#allocation2 + $0x5c1] sm:$0x1]  ;;  %v935_v18 = vrot.slane %v611_v20, 5  ;;  %v937_v37 = vrot.slane %v612_v47, 4  ;;  %v1173_v16 = vld [vmem:[#allocation2 + $0x5d1] sm:$0x1]  ;;  %1039 = vxpose.xlu0.b32.cont [9/16] %v916_v17, 128  ;;  %v1485_v22 = vsel %vm797_vm6, %v1484_v3, %v1483_v26 }
  0x9c   :  { %v1174_v23 = vld [vmem:[#allocation2 + $0x5e1] sm:$0x1]  ;;  %v932_v15 = vsel %vm785_vm1, %v931_v25, %v608_v45  ;;  %v939_v0 = vrot.slane %v613_v42, 3  ;;  %v941_v31 = vrot.slane %v614_v2, 2  ;;  %v1175_v32 = vld [vmem:[#allocation2 + $0x5f1] sm:$0x1]  ;;  %v1487_v36 = vsel %vm800_vm7, %v1486_v6, %v1485_v22 }
  0x9d   :  { %v617_v29 = vld [vmem:[#allocation2 + $0x590] sm:$0x1]  ;;  %v934_v34 = vsel %vm788_vm2, %v933_v46, %v932_v15  ;;  %v943_v27 = vrot.slane %v10032_v56, 1  ;;  %v1490_v14 = vrot.slane %v1169_v44, 7  ;;  %v618_v7 = vld [vmem:[#allocation2 + $0x5a0] sm:$0x1]  ;;  %v1489_v10 = vsel %vm803_vm8, %v1488_v19, %v1487_v36 }
  0x9e   :  { %v619_v57 = vld [vmem:[#allocation2 + $0x5b0] sm:$0x1]  ;;  %v936_v17 = vsel %vm791_vm4, %v935_v18, %v934_v34  ;;  %v1492_v59 = vrot.slane %v1170_v4, 6  ;;  %v1494_v38 = vrot.slane %v1171_v60, 5  ;;  %v616_v41 = vld [vmem:[#allocation2 + $0x580] sm:$0x1]  ;;  %1585 = vxpose.xlu1.b32.cont [10/16] %v1475_v24, 128 }
  0x9f   :  { %v620_v8 = vld [vmem:[#allocation2 + $0x5c0] sm:$0x1]  ;;  %v621_v48 = vld [vmem:[#allocation2 + $0x5d0] sm:$0x1]  ;;  %v938_v49 = vsel %vm794_vm5, %v937_v37, %v936_v17  ;;  %v1491_v54 = vsel %vm785_vm1, %v1490_v14, %v1168_v1  ;;  %v1496_v43 = vrot.slane %v1172_v5, 4  ;;  %v1498_v21 = vrot.slane %v1173_v16, 3  ;;  %1040 = vxpose.xlu0.b32.cont [10/16] %v930_v52, 128 }
  0xa0   :  { %v622_v53 = vld [vmem:[#allocation2 + $0x5e0] sm:$0x1]  ;;  %v10050_v28 = vld [vmem:[#allocation2 + $0x5f0] sm:$0x1]  ;;  %v940_v62 = vsel %vm797_vm6, %v939_v0, %v938_v49  ;;  %v1493_v13 = vsel %vm788_vm2, %v1492_v59, %v1491_v54  ;;  %v1500_v55 = vrot.slane %v1174_v23, 2  ;;  %v1502_v33 = vrot.slane %v1175_v32, 1 }
  0xa1   :  { %v1177_v9 = vld [vmem:[#allocation2 + $0x611] sm:$0x1]  ;;  %v1178_v58 = vld [vmem:[#allocation2 + $0x621] sm:$0x1]  ;;  %v942_v20 = vsel %vm800_vm7, %v941_v31, %v940_v62  ;;  %v1495_v39 = vsel %vm791_vm4, %v1494_v38, %v1493_v13  ;;  %v945_v35 = vrot.slane %v617_v29, 7  ;;  %v947_v50 = vrot.slane %v618_v7, 6 }
  0xa2   :  { %v1176_v51 = vld [vmem:[#allocation2 + $0x601] sm:$0x1]  ;;  %v1179_v45 = vld [vmem:[#allocation2 + $0x631] sm:$0x1]  ;;  %v944_v42 = vsel %vm803_vm8, %v943_v27, %v942_v20  ;;  %v1497_v24 = vsel %vm794_vm5, %v1496_v43, %v1495_v39  ;;  %v949_v30 = vrot.slane %v619_v57, 5  ;;  %v951_v11 = vrot.slane %v620_v8, 4  ;;  %1586 = vxpose.xlu1.b32.cont [11/16] %v1489_v10, 128 }
  0xa3   :  { %v1180_v47 = vld [vmem:[#allocation2 + $0x641] sm:$0x1]  ;;  %v1181_v3 = vld [vmem:[#allocation2 + $0x651] sm:$0x1]  ;;  %v1499_v56 = vsel %vm797_vm6, %v1498_v21, %v1497_v24  ;;  %v946_v12 = vsel %vm785_vm1, %v945_v35, %v616_v41  ;;  %v953_v61 = vrot.slane %v621_v48, 3  ;;  %v955_v6 = vrot.slane %v622_v53, 2  ;;  %1041 = vxpose.xlu0.b32.cont [11/16] %v944_v42, 128 }
  0xa4   :  { %v1182_v2 = vld [vmem:[#allocation2 + $0x661] sm:$0x1]  ;;  %v1183_v19 = vld [vmem:[#allocation2 + $0x671] sm:$0x1]  ;;  %v625_v44 = vld [vmem:[#allocation2 + $0x610] sm:$0x1]  ;;  %v1501_v4 = vsel %vm800_vm7, %v1500_v55, %v1499_v56  ;;  %v948_v40 = vsel %vm788_vm2, %v947_v50, %v946_v12 }
  0xa5   :  { %v957_v63 = vrot.slane %v10050_v28, 1  ;;  %v1504_v25 = vrot.slane %v1177_v9, 7  ;;  %v626_v46 = vld [vmem:[#allocation2 + $0x620] sm:$0x1]  ;;  %v627_v1 = vld [vmem:[#allocation2 + $0x630] sm:$0x1]  ;;  %v1503_v60 = vsel %vm803_vm8, %v1502_v33, %v1501_v4  ;;  %v950_v5 = vsel %vm791_vm4, %v949_v30, %v948_v40 }
  0xa6   :  { %v1506_v52 = vrot.slane %v1178_v58, 6  ;;  %v1508_v26 = vrot.slane %v1179_v45, 5  ;;  %v624_v18 = vld [vmem:[#allocation2 + $0x600] sm:$0x1]  ;;  %v629_v16 = vld [vmem:[#allocation2 + $0x650] sm:$0x1]  ;;  %v952_v23 = vsel %vm794_vm5, %v951_v11, %v950_v5  ;;  %1587 = vxpose.xlu1.b32.cont [12/16] %v1503_v60, 128 }
  0xa7   :  { %v628_v37 = vld [vmem:[#allocation2 + $0x640] sm:$0x1]  ;;  %v1505_v22 = vsel %vm785_vm1, %v1504_v25, %v1176_v51  ;;  %v1510_v15 = vrot.slane %v1180_v47, 4  ;;  %v1512_v0 = vrot.slane %v1181_v3, 3  ;;  %v10067_v32 = vld [vmem:[#allocation2 + $0x670] sm:$0x1]  ;;  %v954_v29 = vsel %vm797_vm6, %v953_v61, %v952_v23 }
  0xa8   :  { %v630_v31 = vld [vmem:[#allocation2 + $0x660] sm:$0x1]  ;;  %v1507_v36 = vsel %vm788_vm2, %v1506_v52, %v1505_v22  ;;  %v1514_v34 = vrot.slane %v1182_v2, 2  ;;  %v1516_v27 = vrot.slane %v1183_v19, 1  ;;  %v1185_v14 = vld [vmem:[#allocation2 + $0x691] sm:$0x1]  ;;  %v956_v57 = vsel %vm800_vm7, %v955_v6, %v954_v29 }
  0xa9   :  { %v1186_v7 = vld [vmem:[#allocation2 + $0x6a1] sm:$0x1]  ;;  %v1509_v10 = vsel %vm791_vm4, %v1508_v26, %v1507_v36  ;;  %v959_v17 = vrot.slane %v625_v44, 7  ;;  %v961_v59 = vrot.slane %v626_v46, 6  ;;  %v1187_v41 = vld [vmem:[#allocation2 + $0x6b1] sm:$0x1]  ;;  %v958_v48 = vsel %vm803_vm8, %v957_v63, %v956_v57 }
  0xaa   :  { %v1184_v38 = vld [vmem:[#allocation2 + $0x681] sm:$0x1]  ;;  %v1511_v49 = vsel %vm794_vm5, %v1510_v15, %v1509_v10  ;;  %v963_v54 = vrot.slane %v627_v1, 5  ;;  %v965_v43 = vrot.slane %v628_v37, 4  ;;  %v1189_v21 = vld [vmem:[#allocation2 + $0x6d1] sm:$0x1]  ;;  %1042 = vxpose.xlu0.b32.cont [12/16] %v958_v48, 128 }
  0xab   :  { %v1188_v8 = vld [vmem:[#allocation2 + $0x6c1] sm:$0x1]  ;;  %v1513_v28 = vsel %vm797_vm6, %v1512_v0, %v1511_v49  ;;  %v960_v62 = vsel %vm785_vm1, %v959_v17, %v624_v18  ;;  %v967_v13 = vrot.slane %v629_v16, 3  ;;  %v969_v55 = vrot.slane %v630_v31, 2  ;;  %v1191_v33 = vld [vmem:[#allocation2 + $0x6f1] sm:$0x1] }
  0xac   :  { %v1190_v53 = vld [vmem:[#allocation2 + $0x6e1] sm:$0x1]  ;;  %v633_v9 = vld [vmem:[#allocation2 + $0x690] sm:$0x1]  ;;  %v1515_v58 = vsel %vm800_vm7, %v1514_v34, %v1513_v28  ;;  %v962_v20 = vsel %vm788_vm2, %v961_v59, %v960_v62  ;;  %v971_v39 = vrot.slane %v10067_v32, 1  ;;  %v1518_v35 = vrot.slane %v1185_v14, 7 }
  0xad   :  { %v634_v50 = vld [vmem:[#allocation2 + $0x6a0] sm:$0x1]  ;;  %v635_v51 = vld [vmem:[#allocation2 + $0x6b0] sm:$0x1]  ;;  %v1517_v45 = vsel %vm803_vm8, %v1516_v27, %v1515_v58  ;;  %v964_v47 = vsel %vm791_vm4, %v963_v54, %v962_v20  ;;  %v1520_v42 = vrot.slane %v1186_v7, 6  ;;  %v1522_v24 = vrot.slane %v1187_v41, 5 }
  0xae   :  { %v632_v30 = vld [vmem:[#allocation2 + $0x680] sm:$0x1]  ;;  %v637_v3 = vld [vmem:[#allocation2 + $0x6d0] sm:$0x1]  ;;  %1588 = vxpose.xlu1.b32.cont [13/16] %v1517_v45, 128  ;;  %v966_v2 = vsel %vm794_vm5, %v965_v43, %v964_v47  ;;  %v1519_v56 = vsel %vm785_vm1, %v1518_v35, %v1184_v38  ;;  %v1524_v12 = vrot.slane %v1188_v8, 4  ;;  %v1526_v61 = vrot.slane %v1189_v21, 3 }
  0xaf   :  { %v636_v11 = vld [vmem:[#allocation2 + $0x6c0] sm:$0x1]  ;;  %v639_v19 = vld [vmem:[#allocation2 + $0x6f0] sm:$0x1]  ;;  %v968_v44 = vsel %vm797_vm6, %v967_v13, %v966_v2  ;;  %v1521_v4 = vsel %vm788_vm2, %v1520_v42, %v1519_v56  ;;  %v1528_v40 = vrot.slane %v1190_v53, 2  ;;  %v1530_v63 = vrot.slane %v1191_v33, 1 }
  0xb0   :  { %v638_v6 = vld [vmem:[#allocation2 + $0x6e0] sm:$0x1]  ;;  %v1193_v25 = vld [vmem:[#allocation2 + $0x711] sm:$0x1]  ;;  %v1194_v46 = vld [vmem:[#allocation2 + $0x721] sm:$0x1]  ;;  %v970_v1 = vsel %vm800_vm7, %v969_v55, %v968_v44  ;;  %v1523_v60 = vsel %vm791_vm4, %v1522_v24, %v1521_v4 }
  0xb1   :  { %v973_v5 = vrot.slane %v633_v9, 7  ;;  %v975_v52 = vrot.slane %v634_v50, 6  ;;  %v1192_v26 = vld [vmem:[#allocation2 + $0x701] sm:$0x1]  ;;  %v1195_v18 = vld [vmem:[#allocation2 + $0x731] sm:$0x1]  ;;  %v972_v16 = vsel %vm803_vm8, %v971_v39, %v970_v1  ;;  %v1525_v23 = vsel %vm794_vm5, %v1524_v12, %v1523_v60 }
  0xb2   :  { %v1196_v37 = vld [vmem:[#allocation2 + $0x741] sm:$0x1]  ;;  %v977_v22 = vrot.slane %v635_v51, 5  ;;  %v979_v15 = vrot.slane %v636_v11, 4  ;;  %v1197_v0 = vld [vmem:[#allocation2 + $0x751] sm:$0x1]  ;;  %1043 = vxpose.xlu0.b32.cont [13/16] %v972_v16, 128  ;;  %v1527_v32 = vsel %vm797_vm6, %v1526_v61, %v1525_v23 }
  0xb3   :  { %v1198_v31 = vld [vmem:[#allocation2 + $0x761] sm:$0x1]  ;;  %v974_v29 = vsel %vm785_vm1, %v973_v5, %v632_v30  ;;  %v981_v36 = vrot.slane %v637_v3, 3  ;;  %v983_v34 = vrot.slane %v638_v6, 2  ;;  %v1199_v27 = vld [vmem:[#allocation2 + $0x771] sm:$0x1]  ;;  %v1529_v7 = vsel %vm800_vm7, %v1528_v40, %v1527_v32 }
  0xb4   :  { %v641_v14 = vld [vmem:[#allocation2 + $0x710] sm:$0x1]  ;;  %v976_v57 = vsel %vm788_vm2, %v975_v52, %v974_v29  ;;  %v985_v10 = vrot.slane %v639_v19, 1  ;;  %v1532_v17 = vrot.slane %v1193_v25, 7  ;;  %v642_v59 = vld [vmem:[#allocation2 + $0x720] sm:$0x1]  ;;  %v1531_v41 = vsel %vm803_vm8, %v1530_v63, %v1529_v7 }
  0xb5   :  { %v643_v38 = vld [vmem:[#allocation2 + $0x730] sm:$0x1]  ;;  %v978_v8 = vsel %vm791_vm4, %v977_v22, %v976_v57  ;;  %v1534_v48 = vrot.slane %v1194_v46, 6  ;;  %v1536_v49 = vrot.slane %v1195_v18, 5  ;;  %v640_v54 = vld [vmem:[#allocation2 + $0x700] sm:$0x1]  ;;  %1589 = vxpose.xlu1.b32.cont [14/16] %v1531_v41, 128 }
  0xb6   :  { %v644_v43 = vld [vmem:[#allocation2 + $0x740] sm:$0x1]  ;;  %v645_v21 = vld [vmem:[#allocation2 + $0x750] sm:$0x1]  ;;  %v980_v53 = vsel %vm794_vm5, %v979_v15, %v978_v8  ;;  %v1533_v28 = vsel %vm785_vm1, %v1532_v17, %v1192_v26  ;;  %v1538_v62 = vrot.slane %v1196_v37, 4  ;;  %v1540_v13 = vrot.slane %v1197_v0, 3 }
  0xb7   :  { %v646_v55 = vld [vmem:[#allocation2 + $0x760] sm:$0x1]  ;;  %v647_v33 = vld [vmem:[#allocation2 + $0x770] sm:$0x1]  ;;  %v982_v9 = vsel %vm797_vm6, %v981_v36, %v980_v53  ;;  %v1535_v58 = vsel %vm788_vm2, %v1534_v48, %v1533_v28  ;;  %v1542_v20 = vrot.slane %v1198_v31, 2  ;;  %v1544_v39 = vrot.slane %v1199_v27, 1 }
  0xb8   :  { %v1201_v35 = vld [vmem:[#allocation2 + $0x791] sm:$0x1]  ;;  %v1202_v50 = vld [vmem:[#allocation2 + $0x7a1] sm:$0x1]  ;;  %v984_v51 = vsel %vm800_vm7, %v983_v34, %v982_v9  ;;  %v1537_v45 = vsel %vm791_vm4, %v1536_v49, %v1535_v58  ;;  %v987_v47 = vrot.slane %v641_v14, 7  ;;  %v989_v42 = vrot.slane %v642_v59, 6 }
  0xb9   :  { %v1200_v24 = vld [vmem:[#allocation2 + $0x781] sm:$0x1]  ;;  %v1203_v30 = vld [vmem:[#allocation2 + $0x7b1] sm:$0x1]  ;;  %v986_v3 = vsel %vm803_vm8, %v985_v10, %v984_v51  ;;  %v1539_v2 = vsel %vm794_vm5, %v1538_v62, %v1537_v45  ;;  %v991_v56 = vrot.slane %v643_v38, 5  ;;  %v993_v12 = vrot.slane %v644_v43, 4 }
  0xba   :  { %v1204_v11 = vld [vmem:[#allocation2 + $0x7c1] sm:$0x1]  ;;  %v1205_v61 = vld [vmem:[#allocation2 + $0x7d1] sm:$0x1]  ;;  %1044 = vxpose.xlu0.b32.cont [14/16] %v986_v3, 128  ;;  %v1541_v19 = vsel %vm797_vm6, %v1540_v13, %v1539_v2  ;;  %v988_v44 = vsel %vm785_vm1, %v987_v47, %v640_v54  ;;  %v995_v4 = vrot.slane %v645_v21, 3  ;;  %v997_v40 = vrot.slane %v646_v55, 2 }
  0xbb   :  { %v1206_v6 = vld [vmem:[#allocation2 + $0x7e1] sm:$0x1]  ;;  %v1207_v63 = vld [vmem:[#allocation2 + $0x7f1] sm:$0x1]  ;;  %v649_v25 = vld [vmem:[#allocation2 + $0x790] sm:$0x1]  ;;  %v1543_v46 = vsel %vm800_vm7, %v1542_v20, %v1541_v19  ;;  %v990_v1 = vsel %vm788_vm2, %v989_v42, %v988_v44 }
  0xbc   :  { %v999_v60 = vrot.slane %v647_v33, 1  ;;  %v1546_v5 = vrot.slane %v1201_v35, 7  ;;  %v650_v52 = vld [vmem:[#allocation2 + $0x7a0] sm:$0x1]  ;;  %v651_v26 = vld [vmem:[#allocation2 + $0x7b0] sm:$0x1]  ;;  %v1545_v18 = vsel %vm803_vm8, %v1544_v39, %v1543_v46  ;;  %v992_v37 = vsel %vm791_vm4, %v991_v56, %v990_v1 }
  0xbd   :  { %v1548_v16 = vrot.slane %v1202_v50, 6  ;;  %v1550_v23 = vrot.slane %v1203_v30, 5  ;;  %v648_v22 = vld [vmem:[#allocation2 + $0x780] sm:$0x1]  ;;  %v653_v0 = vld [vmem:[#allocation2 + $0x7d0] sm:$0x1]  ;;  %1590 = vxpose.xlu1.b32.cont [15/16] %v1545_v18, 128  ;;  %v994_v31 = vsel %vm794_vm5, %v993_v12, %v992_v37 }
  0xbe   :  { %v652_v15 = vld [vmem:[#allocation2 + $0x7c0] sm:$0x1]  ;;  %v1547_v32 = vsel %vm785_vm1, %v1546_v5, %v1200_v24  ;;  %v1552_v29 = vrot.slane %v1204_v11, 4  ;;  %v1554_v36 = vrot.slane %v1205_v61, 3  ;;  %v655_v27 = vld [vmem:[#allocation2 + $0x7f0] sm:$0x1]  ;;  %v996_v14 = vsel %vm797_vm6, %v995_v4, %v994_v31 }
  0xbf   :  { %v654_v34 = vld [vmem:[#allocation2 + $0x7e0] sm:$0x1]  ;;  %v1549_v7 = vsel %vm788_vm2, %v1548_v16, %v1547_v32  ;;  %v1556_v57 = vrot.slane %v1206_v6, 2  ;;  %v1558_v10 = vrot.slane %v1207_v63, 1  ;;  %v2169_v17 = vld [vmem:[#allocation2 + $0x13] sm:$0x1]  ;;  %v998_v38 = vsel %vm800_vm7, %v997_v40, %v996_v14 }
  0xc0   :  { %v2170_v59 = vld [vmem:[#allocation2 + $0x23] sm:$0x1]  ;;  %v1551_v41 = vsel %vm791_vm4, %v1550_v23, %v1549_v7  ;;  %v1001_v8 = vrot.slane %v649_v25, 7  ;;  %v1003_v48 = vrot.slane %v650_v52, 6  ;;  %v2171_v54 = vld [vmem:[#allocation2 + $0x33] sm:$0x1]  ;;  %v1000_v21 = vsel %vm803_vm8, %v999_v60, %v998_v38 }
  0xc1   :  { %v2168_v49 = vld [vmem:[#allocation2 + $0x3] sm:$0x1]  ;;  %v1553_v53 = vsel %vm794_vm5, %v1552_v29, %v1551_v41  ;;  %v1005_v28 = vrot.slane %v651_v26, 5  ;;  %v1007_v62 = vrot.slane %v652_v15, 4  ;;  %v2173_v13 = vld [vmem:[#allocation2 + $0x53] sm:$0x1]  ;;  %1045 = vxpose.xlu0.b32.cont [15/16] %v1000_v21, 128 }
  0xc2   :  { %v2172_v43 = vld [vmem:[#allocation2 + $0x43] sm:$0x1]  ;;  %v1555_v33 = vsel %vm797_vm6, %v1554_v36, %v1553_v53  ;;  %v1002_v9 = vsel %vm785_vm1, %v1001_v8, %v648_v22  ;;  %v1009_v58 = vrot.slane %v653_v0, 3  ;;  %v1011_v20 = vrot.slane %v654_v34, 2  ;;  %v2175_v39 = vld [vmem:[#allocation2 + $0x73] sm:$0x1] }
  0xc3   :  { %v2174_v55 = vld [vmem:[#allocation2 + $0x63] sm:$0x1]  ;;  %v1625_v35 = vld [vmem:[#allocation2 + $0x12] sm:$0x1]  ;;  %v1557_v50 = vsel %vm800_vm7, %v1556_v57, %v1555_v33  ;;  %v1004_v51 = vsel %vm788_vm2, %v1003_v48, %v1002_v9  ;;  %v1013_v45 = vrot.slane %v655_v27, 1  ;;  %v2424_v47 = vrot.slane %v2169_v17, 7 }
  0xc4   :  { %v1626_v42 = vld [vmem:[#allocation2 + $0x22] sm:$0x1]  ;;  %v1627_v24 = vld [vmem:[#allocation2 + $0x32] sm:$0x1]  ;;  %v1559_v30 = vsel %vm803_vm8, %v1558_v10, %v1557_v50  ;;  %v1006_v11 = vsel %vm791_vm4, %v1005_v28, %v1004_v51  ;;  %v2426_v3 = vrot.slane %v2170_v59, 6  ;;  %v2428_v2 = vrot.slane %v2171_v54, 5 }
  0xc5   :  { %v1624_v56 = vld [vmem:[#allocation2 + $0x2] sm:$0x1]  ;;  %v1629_v61 = vld [vmem:[#allocation2 + $0x52] sm:$0x1]  ;;  %1591 = vxpose.xlu1.b32.end [16/16] %v1559_v30, 128  ;;  %v1008_v6 = vsel %vm794_vm5, %v1007_v62, %v1006_v11  ;;  %v2425_v19 = vsel %vm785_vm1, %v2424_v47, %v2168_v49  ;;  %v2430_v44 = vrot.slane %v2172_v43, 4  ;;  %v2432_v4 = vrot.slane %v2173_v13, 3 }
  0xc6   :  { %v1628_v12 = vld [vmem:[#allocation2 + $0x42] sm:$0x1]  ;;  %v1631_v63 = vld [vmem:[#allocation2 + $0x72] sm:$0x1]  ;;  %v1010_v25 = vsel %vm797_vm6, %v1009_v58, %v1008_v6  ;;  %v2427_v46 = vsel %vm788_vm2, %v2426_v3, %v2425_v19  ;;  %v2434_v1 = vrot.slane %v2174_v55, 2  ;;  %v2436_v60 = vrot.slane %v2175_v39, 1 }
  0xc7   :  { %v1630_v40 = vld [vmem:[#allocation2 + $0x62] sm:$0x1]  ;;  %v2177_v5 = vld [vmem:[#allocation2 + $0x93] sm:$0x1]  ;;  %v2178_v52 = vld [vmem:[#allocation2 + $0xa3] sm:$0x1]  ;;  %v1012_v26 = vsel %vm800_vm7, %v1011_v20, %v1010_v25  ;;  %v2429_v18 = vsel %vm791_vm4, %v2428_v2, %v2427_v46 }
  0xc8   :  { %v1880_v37 = vrot.slane %v1625_v35, 7  ;;  %v1882_v16 = vrot.slane %v1626_v42, 6  ;;  %v2176_v23 = vld [vmem:[#allocation2 + $0x83] sm:$0x1]  ;;  %v2179_v22 = vld [vmem:[#allocation2 + $0xb3] sm:$0x1]  ;;  %v1014_v0 = vsel %vm803_vm8, %v1013_v45, %v1012_v26  ;;  %v2431_v31 = vsel %vm794_vm5, %v2430_v44, %v2429_v18 }
  0xc9   :  { %v2180_v15 = vld [vmem:[#allocation2 + $0xc3] sm:$0x1]  ;;  %v1884_v32 = vrot.slane %v1627_v24, 5  ;;  %v1886_v29 = vrot.slane %v1628_v12, 4  ;;  %v2181_v36 = vld [vmem:[#allocation2 + $0xd3] sm:$0x1]  ;;  %1046 = vxpose.xlu0.b32.end [16/16] %v1014_v0, 128  ;;  %v2433_v27 = vsel %vm797_vm6, %v2432_v4, %v2431_v31 }
  0xca   :  { %v2182_v34 = vld [vmem:[#allocation2 + $0xe3] sm:$0x1]  ;;  %v1881_v14 = vsel %vm785_vm1, %v1880_v37, %v1624_v56  ;;  %v1888_v7 = vrot.slane %v1629_v61, 3  ;;  %v1890_v57 = vrot.slane %v1630_v40, 2  ;;  %v2183_v10 = vld [vmem:[#allocation2 + $0xf3] sm:$0x1]  ;;  %v2435_v59 = vsel %vm800_vm7, %v2434_v1, %v2433_v27 }
  0xcb   :  { %v1633_v17 = vld [vmem:[#allocation2 + $0x92] sm:$0x1]  ;;  %v1883_v38 = vsel %vm788_vm2, %v1882_v16, %v1881_v14  ;;  %v1892_v41 = vrot.slane %v1631_v63, 1  ;;  %v2438_v8 = vrot.slane %v2177_v5, 7  ;;  %v1634_v48 = vld [vmem:[#allocation2 + $0xa2] sm:$0x1]  ;;  %v2437_v54 = vsel %vm803_vm8, %v2436_v60, %v2435_v59 }
  0xcc   :  { %v1635_v49 = vld [vmem:[#allocation2 + $0xb2] sm:$0x1]  ;;  %v1885_v43 = vsel %vm791_vm4, %v1884_v32, %v1883_v38  ;;  %v2440_v21 = vrot.slane %v2178_v52, 6  ;;  %v2442_v53 = vrot.slane %v2179_v22, 5  ;;  %v1632_v28 = vld [vmem:[#allocation2 + $0x82] sm:$0x1]  ;;  %2664 = vxpose.xlu1.b32.start [1/16] %v2437_v54, 128 }
  0xcd   :  { %v1636_v62 = vld [vmem:[#allocation2 + $0xc2] sm:$0x1]  ;;  %v1637_v13 = vld [vmem:[#allocation2 + $0xd2] sm:$0x1]  ;;  %v1887_v55 = vsel %vm794_vm5, %v1886_v29, %v1885_v43  ;;  %v2439_v33 = vsel %vm785_vm1, %v2438_v8, %v2176_v23  ;;  %v2444_v9 = vrot.slane %v2180_v15, 4  ;;  %v2446_v58 = vrot.slane %v2181_v36, 3 }
  0xce   :  { %v1638_v20 = vld [vmem:[#allocation2 + $0xe2] sm:$0x1]  ;;  %v1639_v39 = vld [vmem:[#allocation2 + $0xf2] sm:$0x1]  ;;  %v1889_v35 = vsel %vm797_vm6, %v1888_v7, %v1887_v55  ;;  %v2441_v50 = vsel %vm788_vm2, %v2440_v21, %v2439_v33  ;;  %v2448_v51 = vrot.slane %v2182_v34, 2  ;;  %v2450_v45 = vrot.slane %v2183_v10, 1 }
  0xcf   :  { %v2185_v47 = vld [vmem:[#allocation2 + $0x113] sm:$0x1]  ;;  %v2186_v42 = vld [vmem:[#allocation2 + $0x123] sm:$0x1]  ;;  %v1891_v24 = vsel %vm800_vm7, %v1890_v57, %v1889_v35  ;;  %v2443_v30 = vsel %vm791_vm4, %v2442_v53, %v2441_v50  ;;  %v1894_v11 = vrot.slane %v1633_v17, 7  ;;  %v1896_v3 = vrot.slane %v1634_v48, 6 }
  0xd0   :  { %v2184_v2 = vld [vmem:[#allocation2 + $0x103] sm:$0x1]  ;;  %v2187_v56 = vld [vmem:[#allocation2 + $0x133] sm:$0x1]  ;;  %v1893_v61 = vsel %vm803_vm8, %v1892_v41, %v1891_v24  ;;  %v2445_v6 = vsel %vm794_vm5, %v2444_v9, %v2443_v30  ;;  %v1898_v19 = vrot.slane %v1635_v49, 5  ;;  %v1900_v44 = vrot.slane %v1636_v62, 4 }
  0xd1   :  { %v2188_v12 = vld [vmem:[#allocation2 + $0x143] sm:$0x1]  ;;  %v2189_v4 = vld [vmem:[#allocation2 + $0x153] sm:$0x1]  ;;  %2120 = vxpose.xlu0.b32.start [1/16] %v1893_v61, 128  ;;  %v2447_v63 = vsel %vm797_vm6, %v2446_v58, %v2445_v6  ;;  %v1895_v25 = vsel %vm785_vm1, %v1894_v11, %v1632_v28  ;;  %v1902_v46 = vrot.slane %v1637_v13, 3  ;;  %v1904_v1 = vrot.slane %v1638_v20, 2 }
  0xd2   :  { %v2190_v40 = vld [vmem:[#allocation2 + $0x163] sm:$0x1]  ;;  %v2191_v60 = vld [vmem:[#allocation2 + $0x173] sm:$0x1]  ;;  %v1641_v5 = vld [vmem:[#allocation2 + $0x112] sm:$0x1]  ;;  %v2449_v52 = vsel %vm800_vm7, %v2448_v51, %v2447_v63  ;;  %v1897_v26 = vsel %vm788_vm2, %v1896_v3, %v1895_v25 }
  0xd3   :  { %v1906_v18 = vrot.slane %v1639_v39, 1  ;;  %v2452_v37 = vrot.slane %v2185_v47, 7  ;;  %v1642_v16 = vld [vmem:[#allocation2 + $0x122] sm:$0x1]  ;;  %v1643_v23 = vld [vmem:[#allocation2 + $0x132] sm:$0x1]  ;;  %v2451_v22 = vsel %vm803_vm8, %v2450_v45, %v2449_v52  ;;  %v1899_v15 = vsel %vm791_vm4, %v1898_v19, %v1897_v26 }
  0xd4   :  { %v2454_v0 = vrot.slane %v2186_v42, 6  ;;  %v2456_v31 = vrot.slane %v2187_v56, 5  ;;  %v1640_v32 = vld [vmem:[#allocation2 + $0x102] sm:$0x1]  ;;  %v1645_v36 = vld [vmem:[#allocation2 + $0x152] sm:$0x1]  ;;  %2665 = vxpose.xlu1.b32.cont [2/16] %v2451_v22, 128  ;;  %v1901_v34 = vsel %vm794_vm5, %v1900_v44, %v1899_v15 }
  0xd5   :  { %v1644_v29 = vld [vmem:[#allocation2 + $0x142] sm:$0x1]  ;;  %v2453_v27 = vsel %vm785_vm1, %v2452_v37, %v2184_v2  ;;  %v2458_v14 = vrot.slane %v2188_v12, 4  ;;  %v2460_v7 = vrot.slane %v2189_v4, 3  ;;  %v1647_v10 = vld [vmem:[#allocation2 + $0x172] sm:$0x1]  ;;  %v1903_v17 = vsel %vm797_vm6, %v1902_v46, %v1901_v34 }
  0xd6   :  { %v1646_v57 = vld [vmem:[#allocation2 + $0x162] sm:$0x1]  ;;  %v2455_v59 = vsel %vm788_vm2, %v2454_v0, %v2453_v27  ;;  %v2462_v38 = vrot.slane %v2190_v40, 2  ;;  %v2464_v41 = vrot.slane %v2191_v60, 1  ;;  %v2193_v8 = vld [vmem:[#allocation2 + $0x193] sm:$0x1]  ;;  %v1905_v49 = vsel %vm800_vm7, %v1904_v1, %v1903_v17 }
  0xd7   :  { %v2194_v48 = vld [vmem:[#allocation2 + $0x1a3] sm:$0x1]  ;;  %v2457_v54 = vsel %vm791_vm4, %v2456_v31, %v2455_v59  ;;  %v1908_v43 = vrot.slane %v1641_v5, 7  ;;  %v1910_v21 = vrot.slane %v1642_v16, 6  ;;  %v2195_v28 = vld [vmem:[#allocation2 + $0x1b3] sm:$0x1]  ;;  %v1907_v13 = vsel %vm803_vm8, %v1906_v18, %v1905_v49 }
  0xd8   :  { %v2192_v53 = vld [vmem:[#allocation2 + $0x183] sm:$0x1]  ;;  %v2459_v55 = vsel %vm794_vm5, %v2458_v14, %v2457_v54  ;;  %v1912_v33 = vrot.slane %v1643_v23, 5  ;;  %v1914_v9 = vrot.slane %v1644_v29, 4  ;;  %v2197_v58 = vld [vmem:[#allocation2 + $0x1d3] sm:$0x1]  ;;  %2121 = vxpose.xlu0.b32.cont [2/16] %v1907_v13, 128 }
  0xd9   :  { %v2196_v62 = vld [vmem:[#allocation2 + $0x1c3] sm:$0x1]  ;;  %v2461_v39 = vsel %vm797_vm6, %v2460_v7, %v2459_v55  ;;  %v1909_v35 = vsel %vm785_vm1, %v1908_v43, %v1640_v32  ;;  %v1916_v50 = vrot.slane %v1645_v36, 3  ;;  %v1918_v51 = vrot.slane %v1646_v57, 2  ;;  %v2199_v45 = vld [vmem:[#allocation2 + $0x1f3] sm:$0x1] }
  0xda   :  { %v2198_v20 = vld [vmem:[#allocation2 + $0x1e3] sm:$0x1]  ;;  %v1649_v47 = vld [vmem:[#allocation2 + $0x192] sm:$0x1]  ;;  %v2463_v42 = vsel %vm800_vm7, %v2462_v38, %v2461_v39  ;;  %v1911_v24 = vsel %vm788_vm2, %v1910_v21, %v1909_v35  ;;  %v1920_v30 = vrot.slane %v1647_v10, 1  ;;  %v2466_v11 = vrot.slane %v2193_v8, 7 }
  0xdb   :  { %v1650_v3 = vld [vmem:[#allocation2 + $0x1a2] sm:$0x1]  ;;  %v1651_v2 = vld [vmem:[#allocation2 + $0x1b2] sm:$0x1]  ;;  %v2465_v56 = vsel %vm803_vm8, %v2464_v41, %v2463_v42  ;;  %v1913_v12 = vsel %vm791_vm4, %v1912_v33, %v1911_v24  ;;  %v2468_v61 = vrot.slane %v2194_v48, 6  ;;  %v2470_v6 = vrot.slane %v2195_v28, 5 }
  0xdc   :  { %v1648_v19 = vld [vmem:[#allocation2 + $0x182] sm:$0x1]  ;;  %v1653_v4 = vld [vmem:[#allocation2 + $0x1d2] sm:$0x1]  ;;  %2666 = vxpose.xlu1.b32.cont [3/16] %v2465_v56, 128  ;;  %v1915_v40 = vsel %vm794_vm5, %v1914_v9, %v1913_v12  ;;  %v2467_v63 = vsel %vm785_vm1, %v2466_v11, %v2192_v53  ;;  %v2472_v25 = vrot.slane %v2196_v62, 4  ;;  %v2474_v46 = vrot.slane %v2197_v58, 3 }
  0xdd   :  { %v1652_v44 = vld [vmem:[#allocation2 + $0x1c2] sm:$0x1]  ;;  %v1655_v60 = vld [vmem:[#allocation2 + $0x1f2] sm:$0x1]  ;;  %v1917_v5 = vsel %vm797_vm6, %v1916_v50, %v1915_v40  ;;  %v2469_v52 = vsel %vm788_vm2, %v2468_v61, %v2467_v63  ;;  %v2476_v26 = vrot.slane %v2198_v20, 2  ;;  %v2478_v18 = vrot.slane %v2199_v45, 1 }
  0xde   :  { %v1654_v1 = vld [vmem:[#allocation2 + $0x1e2] sm:$0x1]  ;;  %v2201_v37 = vld [vmem:[#allocation2 + $0x213] sm:$0x1]  ;;  %v2202_v16 = vld [vmem:[#allocation2 + $0x223] sm:$0x1]  ;;  %v1919_v23 = vsel %vm800_vm7, %v1918_v51, %v1917_v5  ;;  %v2471_v22 = vsel %vm791_vm4, %v2470_v6, %v2469_v52 }
  0xdf   :  { %v1922_v15 = vrot.slane %v1649_v47, 7  ;;  %v1924_v0 = vrot.slane %v1650_v3, 6  ;;  %v2200_v31 = vld [vmem:[#allocation2 + $0x203] sm:$0x1]  ;;  %v2203_v32 = vld [vmem:[#allocation2 + $0x233] sm:$0x1]  ;;  %v1921_v36 = vsel %vm803_vm8, %v1920_v30, %v1919_v23  ;;  %v2473_v34 = vsel %vm794_vm5, %v2472_v25, %v2471_v22 }
  0xe0   :  { %v2204_v29 = vld [vmem:[#allocation2 + $0x243] sm:$0x1]  ;;  %v1926_v27 = vrot.slane %v1651_v2, 5  ;;  %v1928_v14 = vrot.slane %v1652_v44, 4  ;;  %v2205_v7 = vld [vmem:[#allocation2 + $0x253] sm:$0x1]  ;;  %2122 = vxpose.xlu0.b32.cont [3/16] %v1921_v36, 128  ;;  %v2475_v10 = vsel %vm797_vm6, %v2474_v46, %v2473_v34 }
  0xe1   :  { %v2206_v57 = vld [vmem:[#allocation2 + $0x263] sm:$0x1]  ;;  %v1923_v17 = vsel %vm785_vm1, %v1922_v15, %v1648_v19  ;;  %v1930_v59 = vrot.slane %v1653_v4, 3  ;;  %v1932_v38 = vrot.slane %v1654_v1, 2  ;;  %v2207_v41 = vld [vmem:[#allocation2 + $0x273] sm:$0x1]  ;;  %v2477_v48 = vsel %vm800_vm7, %v2476_v26, %v2475_v10 }
  0xe2   :  { %v1657_v8 = vld [vmem:[#allocation2 + $0x212] sm:$0x1]  ;;  %v1925_v49 = vsel %vm788_vm2, %v1924_v0, %v1923_v17  ;;  %v1934_v54 = vrot.slane %v1655_v60, 1  ;;  %v2480_v43 = vrot.slane %v2201_v37, 7  ;;  %v1658_v21 = vld [vmem:[#allocation2 + $0x222] sm:$0x1]  ;;  %v2479_v28 = vsel %vm803_vm8, %v2478_v18, %v2477_v48 }
  0xe3   :  { %v1659_v53 = vld [vmem:[#allocation2 + $0x232] sm:$0x1]  ;;  %v1927_v62 = vsel %vm791_vm4, %v1926_v27, %v1925_v49  ;;  %v2482_v13 = vrot.slane %v2202_v16, 6  ;;  %v2484_v55 = vrot.slane %v2203_v32, 5  ;;  %v1656_v33 = vld [vmem:[#allocation2 + $0x202] sm:$0x1]  ;;  %2667 = vxpose.xlu1.b32.cont [4/16] %v2479_v28, 128 }
  0xe4   :  { %v1660_v9 = vld [vmem:[#allocation2 + $0x242] sm:$0x1]  ;;  %v1661_v58 = vld [vmem:[#allocation2 + $0x252] sm:$0x1]  ;;  %v1929_v20 = vsel %vm794_vm5, %v1928_v14, %v1927_v62  ;;  %v2481_v39 = vsel %vm785_vm1, %v2480_v43, %v2200_v31  ;;  %v2486_v35 = vrot.slane %v2204_v29, 4  ;;  %v2488_v50 = vrot.slane %v2205_v7, 3 }
  0xe5   :  { %v1662_v51 = vld [vmem:[#allocation2 + $0x262] sm:$0x1]  ;;  %v1663_v45 = vld [vmem:[#allocation2 + $0x272] sm:$0x1]  ;;  %v1931_v47 = vsel %vm797_vm6, %v1930_v59, %v1929_v20  ;;  %v2483_v42 = vsel %vm788_vm2, %v2482_v13, %v2481_v39  ;;  %v2490_v24 = vrot.slane %v2206_v57, 2  ;;  %v2492_v30 = vrot.slane %v2207_v41, 1 }
  0xe6   :  { %v2209_v11 = vld [vmem:[#allocation2 + $0x293] sm:$0x1]  ;;  %v2210_v3 = vld [vmem:[#allocation2 + $0x2a3] sm:$0x1]  ;;  %v1933_v2 = vsel %vm800_vm7, %v1932_v38, %v1931_v47  ;;  %v2485_v56 = vsel %vm791_vm4, %v2484_v55, %v2483_v42  ;;  %v1936_v12 = vrot.slane %v1657_v8, 7  ;;  %v1938_v61 = vrot.slane %v1658_v21, 6 }
  0xe7   :  { %v2208_v6 = vld [vmem:[#allocation2 + $0x283] sm:$0x1]  ;;  %v2211_v19 = vld [vmem:[#allocation2 + $0x2b3] sm:$0x1]  ;;  %v1935_v4 = vsel %vm803_vm8, %v1934_v54, %v1933_v2  ;;  %v2487_v40 = vsel %vm794_vm5, %v2486_v35, %v2485_v56  ;;  %v1940_v63 = vrot.slane %v1659_v53, 5  ;;  %v1942_v25 = vrot.slane %v1660_v9, 4 }
  0xe8   :  { %v2212_v44 = vld [vmem:[#allocation2 + $0x2c3] sm:$0x1]  ;;  %v2213_v46 = vld [vmem:[#allocation2 + $0x2d3] sm:$0x1]  ;;  %2123 = vxpose.xlu0.b32.cont [4/16] %v1935_v4, 128  ;;  %v2489_v60 = vsel %vm797_vm6, %v2488_v50, %v2487_v40  ;;  %v1937_v5 = vsel %vm785_vm1, %v1936_v12, %v1656_v33  ;;  %v1944_v52 = vrot.slane %v1661_v58, 3  ;;  %v1946_v26 = vrot.slane %v1662_v51, 2 }
  0xe9   :  { %v2214_v1 = vld [vmem:[#allocation2 + $0x2e3] sm:$0x1]  ;;  %v2215_v18 = vld [vmem:[#allocation2 + $0x2f3] sm:$0x1]  ;;  %v1665_v37 = vld [vmem:[#allocation2 + $0x292] sm:$0x1]  ;;  %v2491_v16 = vsel %vm800_vm7, %v2490_v24, %v2489_v60  ;;  %v1939_v23 = vsel %vm788_vm2, %v1938_v61, %v1937_v5 }
  0xea   :  { %v1948_v22 = vrot.slane %v1663_v45, 1  ;;  %v2494_v15 = vrot.slane %v2209_v11, 7  ;;  %v1666_v0 = vld [vmem:[#allocation2 + $0x2a2] sm:$0x1]  ;;  %v1667_v31 = vld [vmem:[#allocation2 + $0x2b2] sm:$0x1]  ;;  %v2493_v32 = vsel %vm803_vm8, %v2492_v30, %v2491_v16  ;;  %v1941_v29 = vsel %vm791_vm4, %v1940_v63, %v1939_v23 }
  0xeb   :  { %v2496_v36 = vrot.slane %v2210_v3, 6  ;;  %v2498_v34 = vrot.slane %v2211_v19, 5  ;;  %v1664_v27 = vld [vmem:[#allocation2 + $0x282] sm:$0x1]  ;;  %v1669_v7 = vld [vmem:[#allocation2 + $0x2d2] sm:$0x1]  ;;  %2668 = vxpose.xlu1.b32.cont [5/16] %v2493_v32, 128  ;;  %v1943_v57 = vsel %vm794_vm5, %v1942_v25, %v1941_v29 }
  0xec   :  { %v1668_v14 = vld [vmem:[#allocation2 + $0x2c2] sm:$0x1]  ;;  %v2495_v10 = vsel %vm785_vm1, %v2494_v15, %v2208_v6  ;;  %v2500_v17 = vrot.slane %v2212_v44, 4  ;;  %v2502_v59 = vrot.slane %v2213_v46, 3  ;;  %v1671_v41 = vld [vmem:[#allocation2 + $0x2f2] sm:$0x1]  ;;  %v1945_v8 = vsel %vm797_vm6, %v1944_v52, %v1943_v57 }
  0xed   :  { %v1670_v38 = vld [vmem:[#allocation2 + $0x2e2] sm:$0x1]  ;;  %v2497_v48 = vsel %vm788_vm2, %v2496_v36, %v2495_v10  ;;  %v2504_v49 = vrot.slane %v2214_v1, 2  ;;  %v2506_v54 = vrot.slane %v2215_v18, 1  ;;  %v2217_v43 = vld [vmem:[#allocation2 + $0x313] sm:$0x1]  ;;  %v1947_v53 = vsel %vm800_vm7, %v1946_v26, %v1945_v8 }
  0xee   :  { %v2218_v21 = vld [vmem:[#allocation2 + $0x323] sm:$0x1]  ;;  %v2499_v28 = vsel %vm791_vm4, %v2498_v34, %v2497_v48  ;;  %v1950_v62 = vrot.slane %v1665_v37, 7  ;;  %v1952_v13 = vrot.slane %v1666_v0, 6  ;;  %v2219_v33 = vld [vmem:[#allocation2 + $0x333] sm:$0x1]  ;;  %v1949_v58 = vsel %vm803_vm8, %v1948_v22, %v1947_v53 }
  0xef   :  { %v2216_v55 = vld [vmem:[#allocation2 + $0x303] sm:$0x1]  ;;  %v2501_v20 = vsel %vm794_vm5, %v2500_v17, %v2499_v28  ;;  %v1954_v39 = vrot.slane %v1667_v31, 5  ;;  %v1956_v35 = vrot.slane %v1668_v14, 4  ;;  %v2221_v50 = vld [vmem:[#allocation2 + $0x353] sm:$0x1]  ;;  %2124 = vxpose.xlu0.b32.cont [5/16] %v1949_v58, 128 }
  0xf0   :  { %v2220_v9 = vld [vmem:[#allocation2 + $0x343] sm:$0x1]  ;;  %v2503_v45 = vsel %vm797_vm6, %v2502_v59, %v2501_v20  ;;  %v1951_v47 = vsel %vm785_vm1, %v1950_v62, %v1664_v27  ;;  %v1958_v42 = vrot.slane %v1669_v7, 3  ;;  %v1960_v24 = vrot.slane %v1670_v38, 2  ;;  %v2223_v30 = vld [vmem:[#allocation2 + $0x373] sm:$0x1] }
  0xf1   :  { %v2222_v51 = vld [vmem:[#allocation2 + $0x363] sm:$0x1]  ;;  %v1673_v11 = vld [vmem:[#allocation2 + $0x312] sm:$0x1]  ;;  %v2505_v3 = vsel %vm800_vm7, %v2504_v49, %v2503_v45  ;;  %v1953_v2 = vsel %vm788_vm2, %v1952_v13, %v1951_v47  ;;  %v1962_v56 = vrot.slane %v1671_v41, 1  ;;  %v2508_v12 = vrot.slane %v2217_v43, 7 }
  0xf2   :  { %v1674_v61 = vld [vmem:[#allocation2 + $0x322] sm:$0x1]  ;;  %v1675_v6 = vld [vmem:[#allocation2 + $0x332] sm:$0x1]  ;;  %v2507_v19 = vsel %vm803_vm8, %v2506_v54, %v2505_v3  ;;  %v1955_v44 = vsel %vm791_vm4, %v1954_v39, %v1953_v2  ;;  %v2510_v4 = vrot.slane %v2218_v21, 6  ;;  %v2512_v40 = vrot.slane %v2219_v33, 5 }
  0xf3   :  { %v1672_v63 = vld [vmem:[#allocation2 + $0x302] sm:$0x1]  ;;  %v1677_v46 = vld [vmem:[#allocation2 + $0x352] sm:$0x1]  ;;  %2669 = vxpose.xlu1.b32.cont [6/16] %v2507_v19, 128  ;;  %v1957_v1 = vsel %vm794_vm5, %v1956_v35, %v1955_v44  ;;  %v2509_v60 = vsel %vm785_vm1, %v2508_v12, %v2216_v55  ;;  %v2514_v5 = vrot.slane %v2220_v9, 4  ;;  %v2516_v52 = vrot.slane %v2221_v50, 3 }
  0xf4   :  { %v1676_v25 = vld [vmem:[#allocation2 + $0x342] sm:$0x1]  ;;  %v1679_v18 = vld [vmem:[#allocation2 + $0x372] sm:$0x1]  ;;  %v1959_v37 = vsel %vm797_vm6, %v1958_v42, %v1957_v1  ;;  %v2511_v16 = vsel %vm788_vm2, %v2510_v4, %v2509_v60  ;;  %v2518_v23 = vrot.slane %v2222_v51, 2  ;;  %v2520_v22 = vrot.slane %v2223_v30, 1 }
  0xf5   :  { %v1678_v26 = vld [vmem:[#allocation2 + $0x362] sm:$0x1]  ;;  %v2225_v15 = vld [vmem:[#allocation2 + $0x393] sm:$0x1]  ;;  %v2226_v0 = vld [vmem:[#allocation2 + $0x3a3] sm:$0x1]  ;;  %v1961_v31 = vsel %vm800_vm7, %v1960_v24, %v1959_v37  ;;  %v2513_v32 = vsel %vm791_vm4, %v2512_v40, %v2511_v16 }
  0xf6   :  { %v1964_v29 = vrot.slane %v1673_v11, 7  ;;  %v1966_v36 = vrot.slane %v1674_v61, 6  ;;  %v2224_v34 = vld [vmem:[#allocation2 + $0x383] sm:$0x1]  ;;  %v2227_v27 = vld [vmem:[#allocation2 + $0x3b3] sm:$0x1]  ;;  %v1963_v7 = vsel %vm803_vm8, %v1962_v56, %v1961_v31  ;;  %v2515_v57 = vsel %vm794_vm5, %v2514_v5, %v2513_v32 }
  0xf7   :  { %v2228_v14 = vld [vmem:[#allocation2 + $0x3c3] sm:$0x1]  ;;  %v1968_v10 = vrot.slane %v1675_v6, 5  ;;  %v1970_v17 = vrot.slane %v1676_v25, 4  ;;  %v2229_v59 = vld [vmem:[#allocation2 + $0x3d3] sm:$0x1]  ;;  %2125 = vxpose.xlu0.b32.cont [6/16] %v1963_v7, 128  ;;  %v2517_v41 = vsel %vm797_vm6, %v2516_v52, %v2515_v57 }
  0xf8   :  { %v2230_v38 = vld [vmem:[#allocation2 + $0x3e3] sm:$0x1]  ;;  %v1965_v8 = vsel %vm785_vm1, %v1964_v29, %v1672_v63  ;;  %v1972_v48 = vrot.slane %v1677_v46, 3  ;;  %v1974_v49 = vrot.slane %v1678_v26, 2  ;;  %v2231_v54 = vld [vmem:[#allocation2 + $0x3f3] sm:$0x1]  ;;  %v2519_v21 = vsel %vm800_vm7, %v2518_v23, %v2517_v41 }
  0xf9   :  { %v1681_v43 = vld [vmem:[#allocation2 + $0x392] sm:$0x1]  ;;  %v1967_v53 = vsel %vm788_vm2, %v1966_v36, %v1965_v8  ;;  %v1976_v28 = vrot.slane %v1679_v18, 1  ;;  %v2522_v62 = vrot.slane %v2225_v15, 7  ;;  %v1682_v13 = vld [vmem:[#allocation2 + $0x3a2] sm:$0x1]  ;;  %v2521_v33 = vsel %vm803_vm8, %v2520_v22, %v2519_v21 }
  0xfa   :  { %v1683_v55 = vld [vmem:[#allocation2 + $0x3b2] sm:$0x1]  ;;  %v1969_v9 = vsel %vm791_vm4, %v1968_v10, %v1967_v53  ;;  %v2524_v58 = vrot.slane %v2226_v0, 6  ;;  %v2526_v20 = vrot.slane %v2227_v27, 5  ;;  %v1680_v39 = vld [vmem:[#allocation2 + $0x382] sm:$0x1]  ;;  %2670 = vxpose.xlu1.b32.cont [7/16] %v2521_v33, 128 }
  0xfb   :  { %v1684_v35 = vld [vmem:[#allocation2 + $0x3c2] sm:$0x1]  ;;  %v1685_v50 = vld [vmem:[#allocation2 + $0x3d2] sm:$0x1]  ;;  %v1971_v51 = vsel %vm794_vm5, %v1970_v17, %v1969_v9  ;;  %v2523_v45 = vsel %vm785_vm1, %v2522_v62, %v2224_v34  ;;  %v2528_v47 = vrot.slane %v2228_v14, 4  ;;  %v2530_v42 = vrot.slane %v2229_v59, 3 }
  0xfc   :  { %v1686_v24 = vld [vmem:[#allocation2 + $0x3e2] sm:$0x1]  ;;  %v1687_v30 = vld [vmem:[#allocation2 + $0x3f2] sm:$0x1]  ;;  %v1973_v11 = vsel %vm797_vm6, %v1972_v48, %v1971_v51  ;;  %v2525_v3 = vsel %vm788_vm2, %v2524_v58, %v2523_v45  ;;  %v2532_v2 = vrot.slane %v2230_v38, 2  ;;  %v2534_v56 = vrot.slane %v2231_v54, 1 }
  0xfd   :  { %v2233_v12 = vld [vmem:[#allocation2 + $0x413] sm:$0x1]  ;;  %v2234_v61 = vld [vmem:[#allocation2 + $0x423] sm:$0x1]  ;;  %v1975_v6 = vsel %vm800_vm7, %v1974_v49, %v1973_v11  ;;  %v2527_v19 = vsel %vm791_vm4, %v2526_v20, %v2525_v3  ;;  %v1978_v44 = vrot.slane %v1681_v43, 7  ;;  %v1980_v4 = vrot.slane %v1682_v13, 6 }
  0xfe   :  { %v2232_v40 = vld [vmem:[#allocation2 + $0x403] sm:$0x1]  ;;  %v2235_v63 = vld [vmem:[#allocation2 + $0x433] sm:$0x1]  ;;  %v1977_v46 = vsel %vm803_vm8, %v1976_v28, %v1975_v6  ;;  %v2529_v1 = vsel %vm794_vm5, %v2528_v47, %v2527_v19  ;;  %v1982_v60 = vrot.slane %v1683_v55, 5  ;;  %v1984_v5 = vrot.slane %v1684_v35, 4 }
  0xff   :  { %v2236_v25 = vld [vmem:[#allocation2 + $0x443] sm:$0x1]  ;;  %v2237_v52 = vld [vmem:[#allocation2 + $0x453] sm:$0x1]  ;;  %2126 = vxpose.xlu0.b32.cont [7/16] %v1977_v46, 128  ;;  %v2531_v18 = vsel %vm797_vm6, %v2530_v42, %v2529_v1  ;;  %v1979_v37 = vsel %vm785_vm1, %v1978_v44, %v1680_v39  ;;  %v1986_v16 = vrot.slane %v1685_v50, 3  ;;  %v1988_v23 = vrot.slane %v1686_v24, 2 }
 0x100   :  { %v2238_v26 = vld [vmem:[#allocation2 + $0x463] sm:$0x1]  ;;  %v2239_v22 = vld [vmem:[#allocation2 + $0x473] sm:$0x1]  ;;  %v1689_v15 = vld [vmem:[#allocation2 + $0x412] sm:$0x1]  ;;  %v2533_v0 = vsel %vm800_vm7, %v2532_v2, %v2531_v18  ;;  %v1981_v31 = vsel %vm788_vm2, %v1980_v4, %v1979_v37 }
 0x101   :  { %v1990_v32 = vrot.slane %v1687_v30, 1  ;;  %v2536_v29 = vrot.slane %v2233_v12, 7  ;;  %v1690_v36 = vld [vmem:[#allocation2 + $0x422] sm:$0x1]  ;;  %v1691_v34 = vld [vmem:[#allocation2 + $0x432] sm:$0x1]  ;;  %v2535_v27 = vsel %vm803_vm8, %v2534_v56, %v2533_v0  ;;  %v1983_v14 = vsel %vm791_vm4, %v1982_v60, %v1981_v31 }
 0x102   :  { %v2538_v7 = vrot.slane %v2234_v61, 6  ;;  %v2540_v57 = vrot.slane %v2235_v63, 5  ;;  %v1688_v10 = vld [vmem:[#allocation2 + $0x402] sm:$0x1]  ;;  %v1693_v59 = vld [vmem:[#allocation2 + $0x452] sm:$0x1]  ;;  %2671 = vxpose.xlu1.b32.cont [8/16] %v2535_v27, 128  ;;  %v1985_v38 = vsel %vm794_vm5, %v1984_v5, %v1983_v14 }
 0x103   :  { %v1692_v17 = vld [vmem:[#allocation2 + $0x442] sm:$0x1]  ;;  %v2537_v41 = vsel %vm785_vm1, %v2536_v29, %v2232_v40  ;;  %v2542_v8 = vrot.slane %v2236_v25, 4  ;;  %v2544_v48 = vrot.slane %v2237_v52, 3  ;;  %v1695_v54 = vld [vmem:[#allocation2 + $0x472] sm:$0x1]  ;;  %v1987_v43 = vsel %vm797_vm6, %v1986_v16, %v1985_v38 }
 0x104   :  { %v1694_v49 = vld [vmem:[#allocation2 + $0x462] sm:$0x1]  ;;  %v2539_v21 = vsel %vm788_vm2, %v2538_v7, %v2537_v41  ;;  %v2546_v53 = vrot.slane %v2238_v26, 2  ;;  %v2548_v28 = vrot.slane %v2239_v22, 1  ;;  %v2241_v62 = vld [vmem:[#allocation2 + $0x493] sm:$0x1]  ;;  %v1989_v55 = vsel %vm800_vm7, %v1988_v23, %v1987_v43 }
 0x105   :  { %v2242_v13 = vld [vmem:[#allocation2 + $0x4a3] sm:$0x1]  ;;  %v2541_v33 = vsel %vm791_vm4, %v2540_v57, %v2539_v21  ;;  %v1992_v9 = vrot.slane %v1689_v15, 7  ;;  %v1994_v58 = vrot.slane %v1690_v36, 6  ;;  %v2243_v39 = vld [vmem:[#allocation2 + $0x4b3] sm:$0x1]  ;;  %v1991_v50 = vsel %vm803_vm8, %v1990_v32, %v1989_v55 }
 0x106   :  { %v2240_v20 = vld [vmem:[#allocation2 + $0x483] sm:$0x1]  ;;  %v2543_v51 = vsel %vm794_vm5, %v2542_v8, %v2541_v33  ;;  %v1996_v45 = vrot.slane %v1691_v34, 5  ;;  %v1998_v47 = vrot.slane %v1692_v17, 4  ;;  %v2245_v42 = vld [vmem:[#allocation2 + $0x4d3] sm:$0x1]  ;;  %2127 = vxpose.xlu0.b32.cont [8/16] %v1991_v50, 128 }
 0x107   :  { %v2244_v35 = vld [vmem:[#allocation2 + $0x4c3] sm:$0x1]  ;;  %v2545_v30 = vsel %vm797_vm6, %v2544_v48, %v2543_v51  ;;  %v1993_v11 = vsel %vm785_vm1, %v1992_v9, %v1688_v10  ;;  %v2000_v3 = vrot.slane %v1693_v59, 3  ;;  %v2002_v2 = vrot.slane %v1694_v49, 2  ;;  %v2247_v56 = vld [vmem:[#allocation2 + $0x4f3] sm:$0x1] }
 0x108   :  { %v2246_v24 = vld [vmem:[#allocation2 + $0x4e3] sm:$0x1]  ;;  %v1697_v12 = vld [vmem:[#allocation2 + $0x492] sm:$0x1]  ;;  %v2547_v61 = vsel %vm800_vm7, %v2546_v53, %v2545_v30  ;;  %v1995_v6 = vsel %vm788_vm2, %v1994_v58, %v1993_v11  ;;  %v2004_v19 = vrot.slane %v1695_v54, 1  ;;  %v2550_v44 = vrot.slane %v2241_v62, 7 }
 0x109   :  { %v1698_v4 = vld [vmem:[#allocation2 + $0x4a2] sm:$0x1]  ;;  %v1699_v40 = vld [vmem:[#allocation2 + $0x4b2] sm:$0x1]  ;;  %v2549_v63 = vsel %vm803_vm8, %v2548_v28, %v2547_v61  ;;  %v1997_v25 = vsel %vm791_vm4, %v1996_v45, %v1995_v6  ;;  %v2552_v46 = vrot.slane %v2242_v13, 6  ;;  %v2554_v1 = vrot.slane %v2243_v39, 5  ;;  %v1592_v39 = vpop.trf.xlu1 }
 0x10a   :  { %v1696_v60 = vld [vmem:[#allocation2 + $0x482] sm:$0x1]  ;;  %v1701_v52 = vld [vmem:[#allocation2 + $0x4d2] sm:$0x1]  ;;  %2672 = vxpose.xlu1.b32.cont [9/16] %v2549_v63, 128  ;;  %v1999_v26 = vsel %vm794_vm5, %v1998_v47, %v1997_v25  ;;  %v2551_v18 = vsel %vm785_vm1, %v2550_v44, %v2240_v20  ;;  %v2556_v37 = vrot.slane %v2244_v35, 4  ;;  %v2558_v16 = vrot.slane %v2245_v42, 3 }
 0x10b   :  { %v1700_v5 = vld [vmem:[#allocation2 + $0x4c2] sm:$0x1]  ;;  %v10252_v22 = vld [vmem:[#allocation2 + $0x4f2] sm:$0x1]  ;;  %v2001_v15 = vsel %vm797_vm6, %v2000_v3, %v1999_v26  ;;  %v2553_v0 = vsel %vm788_vm2, %v2552_v46, %v2551_v18  ;;  %v2560_v31 = vrot.slane %v2246_v24, 2  ;;  %v2562_v32 = vrot.slane %v2247_v56, 1 }
 0x10c   :  { %v1702_v23 = vld [vmem:[#allocation2 + $0x4e2] sm:$0x1]  ;;  %v2249_v29 = vld [vmem:[#allocation2 + $0x513] sm:$0x1]  ;;  %v2250_v36 = vld [vmem:[#allocation2 + $0x523] sm:$0x1]  ;;  %v2003_v34 = vsel %vm800_vm7, %v2002_v2, %v2001_v15  ;;  %v2555_v27 = vsel %vm791_vm4, %v2554_v1, %v2553_v0 }
 0x10d   :  { %v2006_v14 = vrot.slane %v1697_v12, 7  ;;  %v2008_v7 = vrot.slane %v1698_v4, 6  ;;  %v2248_v57 = vld [vmem:[#allocation2 + $0x503] sm:$0x1]  ;;  %v2251_v10 = vld [vmem:[#allocation2 + $0x533] sm:$0x1]  ;;  %v2005_v59 = vsel %vm803_vm8, %v2004_v19, %v2003_v34  ;;  %v2557_v38 = vsel %vm794_vm5, %v2556_v37, %v2555_v27  ;;  %v10275_v26 = vpop.trf.xlu0  ;;  %v1593_v18 = vpop.trf.xlu1 }
 0x10e   :  { %v2252_v17 = vld [vmem:[#allocation2 + $0x543] sm:$0x1]  ;;  %v2010_v41 = vrot.slane %v1699_v40, 5  ;;  %v2012_v8 = vrot.slane %v1700_v5, 4  ;;  %v2253_v48 = vld [vmem:[#allocation2 + $0x553] sm:$0x1]  ;;  %2128 = vxpose.xlu0.b32.cont [9/16] %v2005_v59, 128  ;;  %v2559_v54 = vsel %vm797_vm6, %v2558_v16, %v2557_v38 }
 0x10f   :  { %v2254_v49 = vld [vmem:[#allocation2 + $0x563] sm:$0x1]  ;;  %v2007_v43 = vsel %vm785_vm1, %v2006_v14, %v1696_v60  ;;  %v2014_v21 = vrot.slane %v1701_v52, 3  ;;  %v2016_v53 = vrot.slane %v1702_v23, 2  ;;  %v2255_v28 = vld [vmem:[#allocation2 + $0x573] sm:$0x1]  ;;  %v2561_v13 = vsel %vm800_vm7, %v2560_v31, %v2559_v54 }
 0x110   :  { %v1705_v62 = vld [vmem:[#allocation2 + $0x512] sm:$0x1]  ;;  %v2009_v55 = vsel %vm788_vm2, %v2008_v7, %v2007_v43  ;;  %v2018_v33 = vrot.slane %v10252_v22, 1  ;;  %v2564_v9 = vrot.slane %v2249_v29, 7  ;;  %v1706_v58 = vld [vmem:[#allocation2 + $0x522] sm:$0x1]  ;;  %v2563_v35 = vsel %vm803_vm8, %v2562_v32, %v2561_v13 }
 0x111   :  { %v1707_v20 = vld [vmem:[#allocation2 + $0x532] sm:$0x1]  ;;  %v2011_v50 = vsel %vm791_vm4, %v2010_v41, %v2009_v55  ;;  %v2566_v51 = vrot.slane %v2250_v36, 6  ;;  %v2568_v45 = vrot.slane %v2251_v10, 5  ;;  %v1704_v47 = vld [vmem:[#allocation2 + $0x502] sm:$0x1]  ;;  %2673 = vxpose.xlu1.b32.cont [10/16] %v2563_v35, 128 }
 0x112   :  { %v1708_v42 = vld [vmem:[#allocation2 + $0x542] sm:$0x1]  ;;  %v1709_v24 = vld [vmem:[#allocation2 + $0x552] sm:$0x1]  ;;  %v2013_v30 = vsel %vm794_vm5, %v2012_v8, %v2011_v50  ;;  %v2565_v11 = vsel %vm785_vm1, %v2564_v9, %v2248_v57  ;;  %v2570_v3 = vrot.slane %v2252_v17, 4  ;;  %v2572_v2 = vrot.slane %v2253_v48, 3 }
 0x113   :  { %v1710_v56 = vld [vmem:[#allocation2 + $0x562] sm:$0x1]  ;;  %v10269_v12 = vld [vmem:[#allocation2 + $0x572] sm:$0x1]  ;;  %v2015_v61 = vsel %vm797_vm6, %v2014_v21, %v2013_v30  ;;  %v2567_v6 = vsel %vm788_vm2, %v2566_v51, %v2565_v11  ;;  %v2574_v19 = vrot.slane %v2254_v49, 2  ;;  %v2576_v44 = vrot.slane %v2255_v28, 1  ;;  %v10286_v21 = vpop.trf.xlu0 }
 0x114   :  { %v2257_v4 = vld [vmem:[#allocation2 + $0x593] sm:$0x1]  ;;  %v2258_v40 = vld [vmem:[#allocation2 + $0x5a3] sm:$0x1]  ;;  %v2017_v63 = vsel %vm800_vm7, %v2016_v53, %v2015_v61  ;;  %v2569_v25 = vsel %vm791_vm4, %v2568_v45, %v2567_v6  ;;  %v2020_v46 = vrot.slane %v1705_v62, 7  ;;  %v2022_v1 = vrot.slane %v1706_v58, 6  ;;  %v1594_v53 = vpop.trf.xlu1 }
 0x115   :  { %v2256_v60 = vld [vmem:[#allocation2 + $0x583] sm:$0x1]  ;;  %v2259_v5 = vld [vmem:[#allocation2 + $0x5b3] sm:$0x1]  ;;  %v2019_v37 = vsel %vm803_vm8, %v2018_v33, %v2017_v63  ;;  %v2571_v16 = vsel %vm794_vm5, %v2570_v3, %v2569_v25  ;;  %v2024_v23 = vrot.slane %v1707_v20, 5  ;;  %v2026_v22 = vrot.slane %v1708_v42, 4 }
 0x116   :  { %v2260_v52 = vld [vmem:[#allocation2 + $0x5c3] sm:$0x1]  ;;  %v2261_v15 = vld [vmem:[#allocation2 + $0x5d3] sm:$0x1]  ;;  %2129 = vxpose.xlu0.b32.cont [10/16] %v2019_v37, 128  ;;  %v2573_v31 = vsel %vm797_vm6, %v2572_v2, %v2571_v16  ;;  %v2021_v32 = vsel %vm785_vm1, %v2020_v46, %v1704_v47  ;;  %v2028_v29 = vrot.slane %v1709_v24, 3  ;;  %v2030_v36 = vrot.slane %v1710_v56, 2 }
 0x117   :  { %v2262_v0 = vld [vmem:[#allocation2 + $0x5e3] sm:$0x1]  ;;  %v2263_v34 = vld [vmem:[#allocation2 + $0x5f3] sm:$0x1]  ;;  %v1713_v27 = vld [vmem:[#allocation2 + $0x592] sm:$0x1]  ;;  %v2575_v14 = vsel %vm800_vm7, %v2574_v19, %v2573_v31  ;;  %v2023_v7 = vsel %vm788_vm2, %v2022_v1, %v2021_v32 }
 0x118   :  { %v2032_v57 = vrot.slane %v10269_v12, 1  ;;  %v2578_v10 = vrot.slane %v2257_v4, 7  ;;  %v1714_v17 = vld [vmem:[#allocation2 + $0x5a2] sm:$0x1]  ;;  %v1715_v59 = vld [vmem:[#allocation2 + $0x5b2] sm:$0x1]  ;;  %v2577_v38 = vsel %vm803_vm8, %v2576_v44, %v2575_v14  ;;  %v2025_v41 = vsel %vm791_vm4, %v2024_v23, %v2023_v7  ;;  %v10298_v44 = vpop.trf.xlu0  ;;  %v1595_v4 = vpop.trf.xlu1 }
 0x119   :  { %v2580_v8 = vrot.slane %v2258_v40, 6  ;;  %v2582_v48 = vrot.slane %v2259_v5, 5  ;;  %v1712_v49 = vld [vmem:[#allocation2 + $0x582] sm:$0x1]  ;;  %v1717_v43 = vld [vmem:[#allocation2 + $0x5d2] sm:$0x1]  ;;  %2674 = vxpose.xlu1.b32.cont [11/16] %v2577_v38, 128  ;;  %v2027_v28 = vsel %vm794_vm5, %v2026_v22, %v2025_v41 }
 0x11a   :  { %v1716_v54 = vld [vmem:[#allocation2 + $0x5c2] sm:$0x1]  ;;  %v2579_v62 = vsel %vm785_vm1, %v2578_v10, %v2256_v60  ;;  %v2584_v13 = vrot.slane %v2260_v52, 4  ;;  %v2586_v55 = vrot.slane %v2261_v15, 3  ;;  %v10290_v9 = vld [vmem:[#allocation2 + $0x5f2] sm:$0x1]  ;;  %v2029_v58 = vsel %vm797_vm6, %v2028_v29, %v2027_v28 }
 0x11b   :  { %v1718_v33 = vld [vmem:[#allocation2 + $0x5e2] sm:$0x1]  ;;  %v2581_v20 = vsel %vm788_vm2, %v2580_v8, %v2579_v62  ;;  %v2588_v39 = vrot.slane %v2262_v0, 2  ;;  %v2590_v35 = vrot.slane %v2263_v34, 1  ;;  %v2265_v50 = vld [vmem:[#allocation2 + $0x613] sm:$0x1]  ;;  %v2031_v45 = vsel %vm800_vm7, %v2030_v36, %v2029_v58 }
 0x11c   :  { %v2266_v51 = vld [vmem:[#allocation2 + $0x623] sm:$0x1]  ;;  %v2583_v47 = vsel %vm791_vm4, %v2582_v48, %v2581_v20  ;;  %v2034_v42 = vrot.slane %v1713_v27, 7  ;;  %v2036_v24 = vrot.slane %v1714_v17, 6  ;;  %v2267_v11 = vld [vmem:[#allocation2 + $0x633] sm:$0x1]  ;;  %v2033_v2 = vsel %vm803_vm8, %v2032_v57, %v2031_v45  ;;  %v10311_v17 = vpop.trf.xlu0 }
 0x11d   :  { %v2264_v30 = vld [vmem:[#allocation2 + $0x603] sm:$0x1]  ;;  %v2585_v56 = vsel %vm794_vm5, %v2584_v13, %v2583_v47  ;;  %v2038_v12 = vrot.slane %v1715_v59, 5  ;;  %v2040_v61 = vrot.slane %v1716_v54, 4  ;;  %v2269_v6 = vld [vmem:[#allocation2 + $0x653] sm:$0x1]  ;;  %2130 = vxpose.xlu0.b32.cont [11/16] %v2033_v2, 128  ;;  %v1596_v59 = vpop.trf.xlu1 }
 0x11e   :  { %v2268_v3 = vld [vmem:[#allocation2 + $0x643] sm:$0x1]  ;;  %v2587_v40 = vsel %vm797_vm6, %v2586_v55, %v2585_v56  ;;  %v2035_v63 = vsel %vm785_vm1, %v2034_v42, %v1712_v49  ;;  %v2042_v25 = vrot.slane %v1717_v43, 3  ;;  %v2044_v46 = vrot.slane %v1718_v33, 2  ;;  %v2271_v1 = vld [vmem:[#allocation2 + $0x673] sm:$0x1] }
 0x11f   :  { %v2270_v19 = vld [vmem:[#allocation2 + $0x663] sm:$0x1]  ;;  %v1721_v60 = vld [vmem:[#allocation2 + $0x612] sm:$0x1]  ;;  %v2589_v5 = vsel %vm800_vm7, %v2588_v39, %v2587_v40  ;;  %v2037_v52 = vsel %vm788_vm2, %v2036_v24, %v2035_v63  ;;  %v2046_v18 = vrot.slane %v10290_v9, 1  ;;  %v2592_v37 = vrot.slane %v2265_v50, 7 }
 0x120   :  { %v1722_v16 = vld [vmem:[#allocation2 + $0x622] sm:$0x1]  ;;  %v1723_v23 = vld [vmem:[#allocation2 + $0x632] sm:$0x1]  ;;  %v2591_v22 = vsel %vm803_vm8, %v2590_v35, %v2589_v5  ;;  %v2039_v15 = vsel %vm791_vm4, %v2038_v12, %v2037_v52  ;;  %v2594_v0 = vrot.slane %v2266_v51, 6  ;;  %v2596_v31 = vrot.slane %v2267_v11, 5  ;;  %v10321_v11 = vpop.trf.xlu0 }
 0x121   :  { %v1720_v32 = vld [vmem:[#allocation2 + $0x602] sm:$0x1]  ;;  %v1725_v36 = vld [vmem:[#allocation2 + $0x652] sm:$0x1]  ;;  %2675 = vxpose.xlu1.b32.cont [12/16] %v2591_v22, 128  ;;  %v2041_v34 = vsel %vm794_vm5, %v2040_v61, %v2039_v15  ;;  %v2593_v27 = vsel %vm785_vm1, %v2592_v37, %v2264_v30  ;;  %v2598_v14 = vrot.slane %v2268_v3, 4  ;;  %v2600_v7 = vrot.slane %v2269_v6, 3  ;;  %v1597_v3 = vpop.trf.xlu1 }
 0x122   :  { %v1724_v29 = vld [vmem:[#allocation2 + $0x642] sm:$0x1]  ;;  %v10309_v10 = vld [vmem:[#allocation2 + $0x672] sm:$0x1]  ;;  %v2043_v38 = vsel %vm797_vm6, %v2042_v25, %v2041_v34  ;;  %v2595_v41 = vsel %vm788_vm2, %v2594_v0, %v2593_v27  ;;  %v2602_v8 = vrot.slane %v2270_v19, 2  ;;  %v2604_v48 = vrot.slane %v2271_v1, 1 }
 0x123   :  { %v1726_v57 = vld [vmem:[#allocation2 + $0x662] sm:$0x1]  ;;  %v2273_v49 = vld [vmem:[#allocation2 + $0x693] sm:$0x1]  ;;  %v2274_v54 = vld [vmem:[#allocation2 + $0x6a3] sm:$0x1]  ;;  %v2045_v43 = vsel %vm800_vm7, %v2044_v46, %v2043_v38  ;;  %v2597_v53 = vsel %vm791_vm4, %v2596_v31, %v2595_v41 }
 0x124   :  { %v2048_v28 = vrot.slane %v1721_v60, 7  ;;  %v2050_v62 = vrot.slane %v1722_v16, 6  ;;  %v2272_v13 = vld [vmem:[#allocation2 + $0x683] sm:$0x1]  ;;  %v2275_v55 = vld [vmem:[#allocation2 + $0x6b3] sm:$0x1]  ;;  %v2047_v9 = vsel %vm803_vm8, %v2046_v18, %v2045_v43  ;;  %v2599_v58 = vsel %vm794_vm5, %v2598_v14, %v2597_v53 }
 0x125   :  { %v2276_v33 = vld [vmem:[#allocation2 + $0x6c3] sm:$0x1]  ;;  %v2052_v20 = vrot.slane %v1723_v23, 5  ;;  %v2054_v39 = vrot.slane %v1724_v29, 4  ;;  %v2277_v35 = vld [vmem:[#allocation2 + $0x6d3] sm:$0x1]  ;;  %2131 = vxpose.xlu0.b32.cont [12/16] %v2047_v9, 128  ;;  %v2601_v51 = vsel %vm797_vm6, %v2600_v7, %v2599_v58  ;;  %v1598_v34 = vpop.trf.xlu1 }
 0x126   :  { %v2278_v50 = vld [vmem:[#allocation2 + $0x6e3] sm:$0x1]  ;;  %v2049_v45 = vsel %vm785_vm1, %v2048_v28, %v1720_v32  ;;  %v2056_v47 = vrot.slane %v1725_v36, 3  ;;  %v2058_v42 = vrot.slane %v1726_v57, 2  ;;  %v2279_v24 = vld [vmem:[#allocation2 + $0x6f3] sm:$0x1]  ;;  %v2603_v2 = vsel %vm800_vm7, %v2602_v8, %v2601_v51  ;;  %v10334_v36 = vpop.trf.xlu0 }
 0x127   :  { %v1729_v30 = vld [vmem:[#allocation2 + $0x692] sm:$0x1]  ;;  %v2051_v56 = vsel %vm788_vm2, %v2050_v62, %v2049_v45  ;;  %v2060_v12 = vrot.slane %v10309_v10, 1  ;;  %v2606_v61 = vrot.slane %v2273_v49, 7  ;;  %v1730_v6 = vld [vmem:[#allocation2 + $0x6a2] sm:$0x1]  ;;  %v2605_v4 = vsel %vm803_vm8, %v2604_v48, %v2603_v2 }
 0x128   :  { %v1731_v19 = vld [vmem:[#allocation2 + $0x6b2] sm:$0x1]  ;;  %v2053_v40 = vsel %vm791_vm4, %v2052_v20, %v2051_v56  ;;  %v2608_v63 = vrot.slane %v2274_v54, 6  ;;  %v2610_v25 = vrot.slane %v2275_v55, 5  ;;  %v1728_v46 = vld [vmem:[#allocation2 + $0x682] sm:$0x1]  ;;  %2676 = vxpose.xlu1.b32.cont [13/16] %v2605_v4, 128 }
 0x129   :  { %v1732_v1 = vld [vmem:[#allocation2 + $0x6c2] sm:$0x1]  ;;  %v1733_v60 = vld [vmem:[#allocation2 + $0x6d2] sm:$0x1]  ;;  %v2055_v5 = vsel %vm794_vm5, %v2054_v39, %v2053_v40  ;;  %v2607_v52 = vsel %vm785_vm1, %v2606_v61, %v2272_v13  ;;  %v2612_v18 = vrot.slane %v2276_v33, 4  ;;  %v2614_v37 = vrot.slane %v2277_v35, 3  ;;  %v1599_v45 = vpop.trf.xlu1 }
 0x12a   :  { %v1734_v16 = vld [vmem:[#allocation2 + $0x6e2] sm:$0x1]  ;;  %v10330_v23 = vld [vmem:[#allocation2 + $0x6f2] sm:$0x1]  ;;  %v2057_v22 = vsel %vm797_vm6, %v2056_v47, %v2055_v5  ;;  %v2609_v15 = vsel %vm788_vm2, %v2608_v63, %v2607_v52  ;;  %v2616_v0 = vrot.slane %v2278_v50, 2  ;;  %v2618_v31 = vrot.slane %v2279_v24, 1  ;;  %v10345_v51 = vpop.trf.xlu0 }
 0x12b   :  { %v2281_v32 = vld [vmem:[#allocation2 + $0x713] sm:$0x1]  ;;  %v2282_v29 = vld [vmem:[#allocation2 + $0x723] sm:$0x1]  ;;  %v2059_v27 = vsel %vm800_vm7, %v2058_v42, %v2057_v22  ;;  %v2611_v14 = vsel %vm791_vm4, %v2610_v25, %v2609_v15  ;;  %v2062_v7 = vrot.slane %v1729_v30, 7  ;;  %v2064_v57 = vrot.slane %v1730_v6, 6 }
 0x12c   :  { %v2280_v10 = vld [vmem:[#allocation2 + $0x703] sm:$0x1]  ;;  %v2283_v59 = vld [vmem:[#allocation2 + $0x733] sm:$0x1]  ;;  %v2061_v41 = vsel %vm803_vm8, %v2060_v12, %v2059_v27  ;;  %v2613_v8 = vsel %vm794_vm5, %v2612_v18, %v2611_v14  ;;  %v2066_v48 = vrot.slane %v1731_v19, 5  ;;  %v2068_v49 = vrot.slane %v1732_v1, 4 }
 0x12d   :  { %v2284_v38 = vld [vmem:[#allocation2 + $0x743] sm:$0x1]  ;;  %v2285_v54 = vld [vmem:[#allocation2 + $0x753] sm:$0x1]  ;;  %2132 = vxpose.xlu0.b32.cont [13/16] %v2061_v41, 128  ;;  %v2615_v53 = vsel %vm797_vm6, %v2614_v37, %v2613_v8  ;;  %v2063_v28 = vsel %vm785_vm1, %v2062_v7, %v1728_v46  ;;  %v2070_v62 = vrot.slane %v1733_v60, 3  ;;  %v2072_v13 = vrot.slane %v1734_v16, 2 }
 0x12e   :  { %v2286_v43 = vld [vmem:[#allocation2 + $0x763] sm:$0x1]  ;;  %v2287_v55 = vld [vmem:[#allocation2 + $0x773] sm:$0x1]  ;;  %v1737_v33 = vld [vmem:[#allocation2 + $0x712] sm:$0x1]  ;;  %v2617_v9 = vsel %vm800_vm7, %v2616_v0, %v2615_v53  ;;  %v2065_v58 = vsel %vm788_vm2, %v2064_v57, %v2063_v28  ;;  %v10357_v0 = vpop.trf.xlu0 }
 0x12f   :  { %v2074_v20 = vrot.slane %v10330_v23, 1  ;;  %v2620_v39 = vrot.slane %v2281_v32, 7  ;;  %v1738_v35 = vld [vmem:[#allocation2 + $0x722] sm:$0x1]  ;;  %v1739_v50 = vld [vmem:[#allocation2 + $0x732] sm:$0x1]  ;;  %v2619_v47 = vsel %vm803_vm8, %v2618_v31, %v2617_v9  ;;  %v2067_v42 = vsel %vm791_vm4, %v2066_v48, %v2065_v58  ;;  %v1600_v31 = vpop.trf.xlu1 }
 0x130   :  { %v2622_v24 = vrot.slane %v2282_v29, 6  ;;  %v2624_v30 = vrot.slane %v2283_v59, 5  ;;  %v1736_v3 = vld [vmem:[#allocation2 + $0x702] sm:$0x1]  ;;  %v1741_v56 = vld [vmem:[#allocation2 + $0x752] sm:$0x1]  ;;  %2677 = vxpose.xlu1.b32.cont [14/16] %v2619_v47, 128  ;;  %v2069_v12 = vsel %vm794_vm5, %v2068_v49, %v2067_v42 }
 0x131   :  { %v1740_v2 = vld [vmem:[#allocation2 + $0x742] sm:$0x1]  ;;  %v2621_v61 = vsel %vm785_vm1, %v2620_v39, %v2280_v10  ;;  %v2626_v6 = vrot.slane %v2284_v38, 4  ;;  %v2628_v19 = vrot.slane %v2285_v54, 3  ;;  %v10351_v40 = vld [vmem:[#allocation2 + $0x772] sm:$0x1]  ;;  %v2071_v63 = vsel %vm797_vm6, %v2070_v62, %v2069_v12 }
 0x132   :  { %v1742_v4 = vld [vmem:[#allocation2 + $0x762] sm:$0x1]  ;;  %v2623_v25 = vsel %vm788_vm2, %v2622_v24, %v2621_v61  ;;  %v2630_v46 = vrot.slane %v2286_v43, 2  ;;  %v2632_v1 = vrot.slane %v2287_v55, 1  ;;  %v2289_v60 = vld [vmem:[#allocation2 + $0x793] sm:$0x1]  ;;  %v2073_v52 = vsel %vm800_vm7, %v2072_v13, %v2071_v63  ;;  %v1055_v39 = vpop.trf.xlu0 }
 0x133   :  { %v2290_v5 = vld [vmem:[#allocation2 + $0x7a3] sm:$0x1]  ;;  %v2625_v18 = vsel %vm791_vm4, %v2624_v30, %v2623_v25  ;;  %v2076_v37 = vrot.slane %v1737_v33, 7  ;;  %v2078_v16 = vrot.slane %v1738_v35, 6  ;;  %v2291_v22 = vld [vmem:[#allocation2 + $0x7b3] sm:$0x1]  ;;  %v2075_v32 = vsel %vm803_vm8, %v2074_v20, %v2073_v52  ;;  %v1601_v35 = vpop.trf.xlu1 }
 0x134   :  { %v2288_v23 = vld [vmem:[#allocation2 + $0x783] sm:$0x1]  ;;  %v2627_v29 = vsel %vm794_vm5, %v2626_v6, %v2625_v18  ;;  %v2080_v34 = vrot.slane %v1739_v50, 5  ;;  %v2082_v27 = vrot.slane %v1740_v2, 4  ;;  %v2293_v14 = vld [vmem:[#allocation2 + $0x7d3] sm:$0x1]  ;;  %2133 = vxpose.xlu0.b32.cont [14/16] %v2075_v32, 128 }
 0x135   :  { %v2292_v15 = vld [vmem:[#allocation2 + $0x7c3] sm:$0x1]  ;;  %v2629_v57 = vsel %vm797_vm6, %v2628_v19, %v2627_v29  ;;  %v2077_v10 = vsel %vm785_vm1, %v2076_v37, %v1736_v3  ;;  %v2084_v59 = vrot.slane %v1741_v56, 3  ;;  %v2086_v38 = vrot.slane %v1742_v4, 2  ;;  %v2295_v41 = vld [vmem:[#allocation2 + $0x7f3] sm:$0x1] }
 0x136   :  { %v2294_v7 = vld [vmem:[#allocation2 + $0x7e3] sm:$0x1]  ;;  %v1745_v8 = vld [vmem:[#allocation2 + $0x792] sm:$0x1]  ;;  %v2631_v48 = vsel %vm800_vm7, %v2630_v46, %v2629_v57  ;;  %v2079_v49 = vsel %vm788_vm2, %v2078_v16, %v2077_v10  ;;  %v2088_v54 = vrot.slane %v10351_v40, 1  ;;  %v2634_v43 = vrot.slane %v2289_v60, 7 }
 0x137   :  { %v1746_v53 = vld [vmem:[#allocation2 + $0x7a2] sm:$0x1]  ;;  %v1747_v28 = vld [vmem:[#allocation2 + $0x7b2] sm:$0x1]  ;;  %v2633_v62 = vsel %vm803_vm8, %v2632_v1, %v2631_v48  ;;  %v2081_v13 = vsel %vm791_vm4, %v2080_v34, %v2079_v49  ;;  %v2636_v55 = vrot.slane %v2290_v5, 6  ;;  %v2638_v33 = vrot.slane %v2291_v22, 5  ;;  %v1602_v22 = vpop.trf.xlu1 }
 0x138   :  { %v1744_v9 = vld [vmem:[#allocation2 + $0x782] sm:$0x1]  ;;  %v1749_v20 = vld [vmem:[#allocation2 + $0x7d2] sm:$0x1]  ;;  %2678 = vxpose.xlu1.b32.cont [15/16] %v2633_v62, 128  ;;  %v2083_v50 = vsel %vm794_vm5, %v2082_v27, %v2081_v13  ;;  %v2635_v45 = vsel %vm785_vm1, %v2634_v43, %v2288_v23  ;;  %v2640_v47 = vrot.slane %v2292_v15, 4  ;;  %v2642_v42 = vrot.slane %v2293_v14, 3  ;;  %v1056_v23 = vpop.trf.xlu0 }
 0x139   :  { %v1748_v58 = vld [vmem:[#allocation2 + $0x7c2] sm:$0x1]  ;;  %v10370_v30 = vld [vmem:[#allocation2 + $0x7f2] sm:$0x1]  ;;  %v2085_v3 = vsel %vm797_vm6, %v2084_v59, %v2083_v50  ;;  %v2637_v2 = vsel %vm788_vm2, %v2636_v55, %v2635_v45  ;;  %v2644_v56 = vrot.slane %v2294_v7, 2  ;;  %v2646_v12 = vrot.slane %v2295_v41, 1 }
 0x13a   :  { %v1750_v24 = vld [vmem:[#allocation2 + $0x7e2] sm:$0x1]  ;;  %v3257_v61 = vld [vmem:[#allocation2 + $0x15] sm:$0x1]  ;;  %v3258_v6 = vld [vmem:[#allocation2 + $0x25] sm:$0x1]  ;;  %v2087_v19 = vsel %vm800_vm7, %v2086_v38, %v2085_v3  ;;  %v2639_v4 = vsel %vm791_vm4, %v2638_v33, %v2637_v2 }
 0x13b   :  { %v2090_v40 = vrot.slane %v1745_v8, 7  ;;  %v2092_v63 = vrot.slane %v1746_v53, 6  ;;  %v3256_v25 = vld [vmem:[#allocation2 + $0x5] sm:$0x1]  ;;  %v3259_v46 = vld [vmem:[#allocation2 + $0x35] sm:$0x1]  ;;  %v2089_v60 = vsel %vm803_vm8, %v2088_v54, %v2087_v19  ;;  %v2641_v5 = vsel %vm794_vm5, %v2640_v47, %v2639_v4 }
 0x13c   :  { %v3260_v1 = vld [vmem:[#allocation2 + $0x45] sm:$0x1]  ;;  %v2094_v52 = vrot.slane %v1747_v28, 5  ;;  %v2096_v18 = vrot.slane %v1748_v58, 4  ;;  %v10378_v37 = vld [vmem:[#allocation2 + $0x55] sm:$0x1]  ;;  %2134 = vxpose.xlu0.b32.cont [15/16] %v2089_v60, 128  ;;  %v2643_v15 = vsel %vm797_vm6, %v2642_v42, %v2641_v5  ;;  %v1057_v58 = vpop.trf.xlu0 }
 0x13d   :  { %v10380_v16 = vld [vmem:[#allocation2 + $0x65] sm:$0x1]  ;;  %v2091_v31 = vsel %vm785_vm1, %v2090_v40, %v1744_v9  ;;  %v2098_v32 = vrot.slane %v1749_v20, 3  ;;  %v2100_v29 = vrot.slane %v1750_v24, 2  ;;  %v10384_v34 = vld [vmem:[#allocation2 + $0x75] sm:$0x1]  ;;  %v2645_v14 = vsel %vm800_vm7, %v2644_v56, %v2643_v15  ;;  %v1603_v20 = vpop.trf.xlu1 }
 0x13e   :  { %v2713_v27 = vld [vmem:[#allocation2 + $0x14] sm:$0x1]  ;;  %v2093_v7 = vsel %vm788_vm2, %v2092_v63, %v2091_v31  ;;  %v2102_v57 = vrot.slane %v10370_v30, 1  ;;  %v3512_v10 = vrot.slane %v3257_v61, 7  ;;  %v2714_v59 = vld [vmem:[#allocation2 + $0x24] sm:$0x1]  ;;  %v2647_v41 = vsel %vm803_vm8, %v2646_v12, %v2645_v14 }
 0x13f   :  { %v10389_v38 = vld [vmem:[#allocation2 + $0x34] sm:$0x1]  ;;  %v2095_v8 = vsel %vm791_vm4, %v2094_v52, %v2093_v7  ;;  %v3514_v48 = vrot.slane %v3258_v6, 6  ;;  %v3516_v49 = vrot.slane %v3259_v46, 5  ;;  %v2712_v54 = vld [vmem:[#allocation2 + $0x4] sm:$0x1]  ;;  %2679 = vxpose.xlu1.b32.end [16/16] %v2647_v41, 128 }
 0x140   :  { %v10393_v43 = vld [vmem:[#allocation2 + $0x44] sm:$0x1]  ;;  %v10395_v53 = vld [vmem:[#allocation2 + $0x54] sm:$0x1]  ;;  %v2097_v28 = vsel %vm794_vm5, %v2096_v18, %v2095_v8  ;;  %v3513_v62 = vsel %vm785_vm1, %v3512_v10, %v3256_v25  ;;  %v3518_v13 = vrot.slane %v3260_v1, 4  ;;  %v3520_v55 = vrot.slane %v10378_v37, 3  ;;  %v1058_v1 = vpop.trf.xlu0 }
 0x141   :  { %v10400_v33 = vld [vmem:[#allocation2 + $0x64] sm:$0x1]  ;;  %v10402_v9 = vld [vmem:[#allocation2 + $0x74] sm:$0x1]  ;;  %v2099_v39 = vsel %vm797_vm6, %v2098_v32, %v2097_v28  ;;  %v3515_v35 = vsel %vm788_vm2, %v3514_v48, %v3513_v62  ;;  %v3522_v50 = vrot.slane %v10380_v16, 2  ;;  %v3524_v45 = vrot.slane %v10384_v34, 1  ;;  %v1604_v60 = vpop.trf.xlu1 }
 0x142   :  { %v3265_v47 = vld [vmem:[#allocation2 + $0x95] sm:$0x1]  ;;  %v3266_v42 = vld [vmem:[#allocation2 + $0xa5] sm:$0x1]  ;;  %v2101_v24 = vsel %vm800_vm7, %v2100_v29, %v2099_v39  ;;  %v3517_v30 = vsel %vm791_vm4, %v3516_v49, %v3515_v35  ;;  %v2968_v3 = vrot.slane %v2713_v27, 7  ;;  %v2970_v19 = vrot.slane %v2714_v59, 6 }
 0x143   :  { %v10410_v2 = vld [vmem:[#allocation2 + $0xb5] sm:$0x1]  ;;  %v10412_v56 = vld [vmem:[#allocation2 + $0xc5] sm:$0x1]  ;;  %v2103_v61 = vsel %vm803_vm8, %v2102_v57, %v2101_v24  ;;  %v3519_v6 = vsel %vm794_vm5, %v3518_v13, %v3517_v30  ;;  %v2972_v4 = vrot.slane %v10389_v38, 5  ;;  %1064 = vst.msk [vmem:[#allocation5] sm:$0xff] %vm1063_vm9, %v10275_v26 }
 0x144   :  { %v10414_v12 = vld [vmem:[#allocation2 + $0xd5] sm:$0x1]  ;;  %v3264_v40 = vld [vmem:[#allocation2 + $0x85] sm:$0x1]  ;;  %1065 = vst.msk [vmem:[#allocation5 + $0x8] sm:$0xff] %vm1063_vm9, %v10286_v21  ;;  %1066 = vst.msk [vmem:[#allocation5 + $0x10] sm:$0xff] %vm1063_vm9, %v10298_v44  ;;  %2135 = vxpose.xlu0.b32.end [16/16] %v2103_v61, 128  ;;  %v3521_v26 = vsel %vm797_vm6, %v3520_v55, %v3519_v6  ;;  %v2969_v21 = vsel %vm785_vm1, %v2968_v3, %v2712_v54  ;;  %v1059_v48 = vpop.trf.xlu0 }
 0x145   :  { %v10421_v63 = vld [vmem:[#allocation2 + $0xe5] sm:$0x1]  ;;  %v10423_v25 = vld [vmem:[#allocation2 + $0xf5] sm:$0x1]  ;;  %1067 = vst.msk [vmem:[#allocation5 + $0x18] sm:$0xff] %vm1063_vm9, %v10311_v17  ;;  %1068 = vst.msk [vmem:[#allocation5 + $0x20] sm:$0xff] %vm1063_vm9, %v10321_v11  ;;  %v1605_v49 = vpop.trf.xlu1 }
 0x146   :  { %1069 = vst.msk [vmem:[#allocation5 + $0x28] sm:$0xff] %vm1063_vm9, %v10334_v36  ;;  %1070 = vst.msk [vmem:[#allocation5 + $0x30] sm:$0xff] %vm1063_vm9, %v10345_v51  ;;  %v2974_v44 = vrot.slane %v10393_v43, 4  ;;  %v2976_v17 = vrot.slane %v10395_v53, 3  ;;  %v2721_v46 = vld [vmem:[#allocation2 + $0x94] sm:$0x1]  ;;  %v3523_v36 = vsel %vm800_vm7, %v3522_v50, %v3521_v26  ;;  %v2971_v51 = vsel %vm788_vm2, %v2970_v19, %v2969_v21 }
 0x147   :  { %1071 = vst.msk [vmem:[#allocation5 + $0x38] sm:$0xff] %vm1063_vm9, %v10357_v0  ;;  %v2722_v11 = vld [vmem:[#allocation2 + $0xa4] sm:$0x1]  ;;  %v2978_v5 = vrot.slane %v10400_v33, 2  ;;  %v2980_v0 = vrot.slane %v10402_v9, 1  ;;  %v3525_v37 = vsel %vm803_vm8, %v3524_v45, %v3523_v36  ;;  %v2973_v16 = vsel %vm791_vm4, %v2972_v4, %v2971_v51 }
 0x148   :  { %v2723_v52 = vld [vmem:[#allocation2 + $0xb4] sm:$0x1]  ;;  %v10447_v18 = vld [vmem:[#allocation2 + $0xc4] sm:$0x1]  ;;  %v3526_v23 = vrot.slane %v3265_v47, 7  ;;  %v3528_v22 = vrot.slane %v3266_v42, 6  ;;  %3752 = vxpose.xlu1.b32.start [1/16] %v3525_v37, 128  ;;  %v2975_v29 = vsel %vm794_vm5, %v2974_v44, %v2973_v16 }
 0x149   :  { %v2720_v15 = vld [vmem:[#allocation2 + $0x84] sm:$0x1]  ;;  %v10451_v31 = vld [vmem:[#allocation2 + $0xd4] sm:$0x1]  ;;  %v3530_v34 = vrot.slane %v10410_v2, 5  ;;  %v3532_v27 = vrot.slane %v10412_v56, 4  ;;  %v2977_v57 = vsel %vm797_vm6, %v2976_v17, %v2975_v29  ;;  %v1606_v26 = vpop.trf.xlu1 }
 0x14a   :  { %v10453_v32 = vld [vmem:[#allocation2 + $0xe4] sm:$0x1]  ;;  %v3534_v14 = vrot.slane %v10414_v12, 3  ;;  %v10459_v7 = vld [vmem:[#allocation2 + $0xf4] sm:$0x1]  ;;  %v3527_v10 = vsel %vm785_vm1, %v3526_v23, %v3264_v40  ;;  %v3536_v59 = vrot.slane %v10421_v63, 2  ;;  %v2979_v54 = vsel %vm800_vm7, %v2978_v5, %v2977_v57 }
 0x14b   :  { %v3538_v38 = vrot.slane %v10423_v25, 1  ;;  %v3273_v41 = vld [vmem:[#allocation2 + $0x115] sm:$0x1]  ;;  %v3274_v8 = vld [vmem:[#allocation2 + $0x125] sm:$0x1]  ;;  %v3529_v43 = vsel %vm788_vm2, %v3528_v22, %v3527_v10  ;;  %v2982_v53 = vrot.slane %v2721_v46, 7  ;;  %v2981_v33 = vsel %vm803_vm8, %v2980_v0, %v2979_v54  ;;  %v1060_v25 = vpop.trf.xlu0 }
 0x14c   :  { %v2984_v28 = vrot.slane %v2722_v11, 6  ;;  %v3272_v62 = vld [vmem:[#allocation2 + $0x105] sm:$0x1]  ;;  %v3275_v13 = vld [vmem:[#allocation2 + $0x135] sm:$0x1]  ;;  %v3531_v58 = vsel %vm791_vm4, %v3530_v34, %v3529_v43  ;;  %v2986_v20 = vrot.slane %v2723_v52, 5  ;;  %3208 = vxpose.xlu0.b32.start [1/16] %v2981_v33, 128 }
 0x14d   :  { %v10467_v55 = vld [vmem:[#allocation2 + $0x145] sm:$0x1]  ;;  %v9283_v9 = vld [vmem:[#allocation5] sm:$0xff]  ;;  %v2988_v39 = vrot.slane %v10447_v18, 4  ;;  %v9285_v35 = vld [vmem:[#allocation5 + $0x8] sm:$0xff]  ;;  %v3533_v47 = vsel %vm794_vm5, %v3532_v27, %v3531_v58  ;;  %v2983_v42 = vsel %vm785_vm1, %v2982_v53, %v2720_v15  ;;  %v2990_v24 = vrot.slane %v10451_v31, 3 }
 0x14e   :  { %v10472_v50 = vld [vmem:[#allocation2 + $0x155] sm:$0x1]  ;;  %v10474_v45 = vld [vmem:[#allocation2 + $0x165] sm:$0x1]  ;;  %9284 = vst [vmem:[%s12380_s1] sm:$0xff] %v9283_v9  ;;  %v2992_v30 = vrot.slane %v10453_v32, 2  ;;  %9286 = vst [vmem:[%s12380_s1 + $0x8] sm:$0xff] %v9285_v35  ;;  %v3535_v61 = vsel %vm797_vm6, %v3534_v14, %v3533_v47  ;;  %v2985_v6 = vsel %vm788_vm2, %v2984_v28, %v2983_v42 }
 0x14f   :  { %v10486_v3 = vld [vmem:[#allocation2 + $0x175] sm:$0x1]  ;;  %v2729_v2 = vld [vmem:[#allocation2 + $0x114] sm:$0x1]  ;;  %v9287_v56 = vld [vmem:[#allocation5 + $0x10] sm:$0xff]  ;;  %v2994_v19 = vrot.slane %v10459_v7, 1  ;;  %v3537_v21 = vsel %vm800_vm7, %v3536_v59, %v3535_v61  ;;  %v2987_v44 = vsel %vm791_vm4, %v2986_v20, %v2985_v6  ;;  %v1061_v10 = vpop.trf.xlu0  ;;  %v1607_v59 = vpop.trf.xlu1 }
 0x150   :  { %v9289_v12 = vld [vmem:[#allocation5 + $0x18] sm:$0xff]  ;;  %v3540_v4 = vrot.slane %v3273_v41, 7  ;;  %v2730_v40 = vld [vmem:[#allocation2 + $0x124] sm:$0x1]  ;;  %v2731_v63 = vld [vmem:[#allocation2 + $0x134] sm:$0x1]  ;;  %v3539_v36 = vsel %vm803_vm8, %v3538_v38, %v3537_v21  ;;  %v2989_v51 = vsel %vm794_vm5, %v2988_v39, %v2987_v44 }
 0x151   :  { %9288 = vst [vmem:[%s12380_s1 + $0x10] sm:$0xff] %v9287_v56  ;;  %9290 = vst [vmem:[%s12380_s1 + $0x18] sm:$0xff] %v9289_v12  ;;  %v3542_v17 = vrot.slane %v3274_v8, 6  ;;  %v3544_v46 = vrot.slane %v3275_v13, 5  ;;  %v2728_v11 = vld [vmem:[#allocation2 + $0x104] sm:$0x1]  ;;  %3753 = vxpose.xlu1.b32.cont [2/16] %v3539_v36, 128  ;;  %v2991_v16 = vsel %vm797_vm6, %v2990_v24, %v2989_v51 }
 0x152   :  { %v2732_v1 = vld [vmem:[#allocation2 + $0x144] sm:$0x1]  ;;  %v2733_v60 = vld [vmem:[#allocation2 + $0x154] sm:$0x1]  ;;  %v3541_v5 = vsel %vm785_vm1, %v3540_v4, %v3272_v62  ;;  %v3546_v0 = vrot.slane %v10467_v55, 4  ;;  %v3548_v22 = vrot.slane %v10472_v50, 3  ;;  %v2993_v29 = vsel %vm800_vm7, %v2992_v30, %v2991_v16 }
 0x153   :  { %v10503_v52 = vld [vmem:[#allocation2 + $0x164] sm:$0x1]  ;;  %v10505_v18 = vld [vmem:[#allocation2 + $0x174] sm:$0x1]  ;;  %v3543_v23 = vsel %vm788_vm2, %v3542_v17, %v3541_v5  ;;  %v3550_v15 = vrot.slane %v10474_v45, 2  ;;  %v3552_v27 = vrot.slane %v10486_v3, 1  ;;  %v2995_v38 = vsel %vm803_vm8, %v2994_v19, %v2993_v29  ;;  %v1062_v56 = vpop.trf.xlu0 }
 0x154   :  { %v9291_v37 = vld [vmem:[#allocation5 + $0x20] sm:$0xff]  ;;  %v3282_v32 = vld [vmem:[#allocation2 + $0x1a5] sm:$0x1]  ;;  %v3545_v34 = vsel %vm791_vm4, %v3544_v46, %v3543_v23  ;;  %v2996_v14 = vrot.slane %v2729_v2, 7  ;;  %v2998_v8 = vrot.slane %v2730_v40, 6  ;;  %v3000_v48 = vrot.slane %v2731_v63, 5  ;;  %3209 = vxpose.xlu0.b32.cont [2/16] %v2995_v38, 128 }
 0x155   :  { %v3281_v31 = vld [vmem:[#allocation2 + $0x195] sm:$0x1]  ;;  %9292 = vst [vmem:[%s12380_s1 + $0x20] sm:$0xff] %v9291_v37  ;;  %v3284_v57 = vld [vmem:[#allocation2 + $0x1c5] sm:$0x1]  ;;  %v3547_v41 = vsel %vm794_vm5, %v3546_v0, %v3545_v34  ;;  %v3002_v62 = vrot.slane %v2732_v1, 4 }
 0x156   :  { %v3283_v7 = vld [vmem:[#allocation2 + $0x1b5] sm:$0x1]  ;;  %v3280_v49 = vld [vmem:[#allocation2 + $0x185] sm:$0x1]  ;;  %v3549_v53 = vsel %vm797_vm6, %v3548_v22, %v3547_v41  ;;  %v2997_v28 = vsel %vm785_vm1, %v2996_v14, %v2728_v11  ;;  %v3004_v13 = vrot.slane %v2733_v60, 3  ;;  %v3006_v20 = vrot.slane %v10503_v52, 2 }
 0x157   :  { %v3285_v54 = vld [vmem:[#allocation2 + $0x1d5] sm:$0x1]  ;;  %v10519_v43 = vld [vmem:[#allocation2 + $0x1e5] sm:$0x1]  ;;  %v2737_v33 = vld [vmem:[#allocation2 + $0x194] sm:$0x1]  ;;  %v3551_v9 = vsel %vm800_vm7, %v3550_v15, %v3549_v53  ;;  %v2999_v58 = vsel %vm788_vm2, %v2998_v8, %v2997_v28 }
 0x158   :  { %v10523_v55 = vld [vmem:[#allocation2 + $0x1f5] sm:$0x1]  ;;  %v3008_v39 = vrot.slane %v10505_v18, 1  ;;  %v2738_v35 = vld [vmem:[#allocation2 + $0x1a4] sm:$0x1]  ;;  %v3553_v45 = vsel %vm803_vm8, %v3552_v27, %v3551_v9  ;;  %v3001_v47 = vsel %vm791_vm4, %v3000_v48, %v2999_v58  ;;  %v3554_v42 = vrot.slane %v3281_v31, 7 }
 0x159   :  { %v2739_v50 = vld [vmem:[#allocation2 + $0x1b4] sm:$0x1]  ;;  %v3556_v24 = vrot.slane %v3282_v32, 6  ;;  %v2736_v30 = vld [vmem:[#allocation2 + $0x184] sm:$0x1]  ;;  %3754 = vxpose.xlu1.b32.cont [3/16] %v3553_v45, 128  ;;  %v3003_v12 = vsel %vm794_vm5, %v3002_v62, %v3001_v47  ;;  %v3558_v61 = vrot.slane %v3283_v7, 5 }
 0x15a   :  { %v2740_v3 = vld [vmem:[#allocation2 + $0x1c4] sm:$0x1]  ;;  %v2741_v2 = vld [vmem:[#allocation2 + $0x1d4] sm:$0x1]  ;;  %v3560_v6 = vrot.slane %v3284_v57, 4  ;;  %v3562_v19 = vrot.slane %v3285_v54, 3  ;;  %v3005_v63 = vsel %vm797_vm6, %v3004_v13, %v3003_v12  ;;  %v3555_v25 = vsel %vm785_vm1, %v3554_v42, %v3280_v49 }
 0x15b   :  { %v2742_v4 = vld [vmem:[#allocation2 + $0x1e4] sm:$0x1]  ;;  %v9293_v40 = vld [vmem:[#allocation5 + $0x28] sm:$0xff]  ;;  %v3564_v26 = vrot.slane %v10519_v43, 2  ;;  %v3566_v21 = vrot.slane %v10523_v55, 1  ;;  %v3007_v46 = vsel %vm800_vm7, %v3006_v20, %v3005_v63  ;;  %v3557_v11 = vsel %vm788_vm2, %v3556_v24, %v3555_v25 }
 0x15c   :  { %v2743_v44 = vld [vmem:[#allocation2 + $0x1f4] sm:$0x1]  ;;  %v3289_v17 = vld [vmem:[#allocation2 + $0x215] sm:$0x1]  ;;  %9294 = vst [vmem:[%s12380_s1 + $0x28] sm:$0xff] %v9293_v40  ;;  %v3010_v1 = vrot.slane %v2737_v33, 7  ;;  %v3009_v0 = vsel %vm803_vm8, %v3008_v39, %v3007_v46  ;;  %v3559_v52 = vsel %vm791_vm4, %v3558_v61, %v3557_v11 }
 0x15d   :  { %v3012_v60 = vrot.slane %v2738_v35, 6  ;;  %v3288_v36 = vld [vmem:[#allocation2 + $0x205] sm:$0x1]  ;;  %v3291_v5 = vld [vmem:[#allocation2 + $0x235] sm:$0x1]  ;;  %v3014_v18 = vrot.slane %v2739_v50, 5  ;;  %3210 = vxpose.xlu0.b32.cont [3/16] %v3009_v0, 128  ;;  %v3561_v22 = vsel %vm794_vm5, %v3560_v6, %v3559_v52 }
 0x15e   :  { %v3290_v51 = vld [vmem:[#allocation2 + $0x225] sm:$0x1]  ;;  %v3016_v37 = vrot.slane %v2740_v3, 4  ;;  %v3293_v23 = vld [vmem:[#allocation2 + $0x255] sm:$0x1]  ;;  %v3011_v15 = vsel %vm785_vm1, %v3010_v1, %v2736_v30  ;;  %v3018_v31 = vrot.slane %v2741_v2, 3  ;;  %v3563_v27 = vsel %vm797_vm6, %v3562_v19, %v3561_v22 }
 0x15f   :  { %v3292_v16 = vld [vmem:[#allocation2 + $0x245] sm:$0x1]  ;;  %v3020_v32 = vrot.slane %v2742_v4, 2  ;;  %v3295_v34 = vld [vmem:[#allocation2 + $0x275] sm:$0x1]  ;;  %v3013_v14 = vsel %vm788_vm2, %v3012_v60, %v3011_v15  ;;  %v3022_v7 = vrot.slane %v2743_v44, 1  ;;  %v3565_v38 = vsel %vm800_vm7, %v3564_v26, %v3563_v27 }
 0x160   :  { %v3294_v29 = vld [vmem:[#allocation2 + $0x265] sm:$0x1]  ;;  %v3568_v57 = vrot.slane %v3289_v17, 7  ;;  %v2745_v10 = vld [vmem:[#allocation2 + $0x214] sm:$0x1]  ;;  %v3015_v41 = vsel %vm791_vm4, %v3014_v18, %v3013_v14  ;;  %v3570_v8 = vrot.slane %v3290_v51, 6  ;;  %v3567_v53 = vsel %vm803_vm8, %v3566_v21, %v3565_v38 }
 0x161   :  { %v2746_v59 = vld [vmem:[#allocation2 + $0x224] sm:$0x1]  ;;  %v3572_v48 = vrot.slane %v3291_v5, 5  ;;  %v2747_v54 = vld [vmem:[#allocation2 + $0x234] sm:$0x1]  ;;  %v3017_v28 = vsel %vm794_vm5, %v3016_v37, %v3015_v41  ;;  %v3574_v13 = vrot.slane %v3292_v16, 4  ;;  %3755 = vxpose.xlu1.b32.cont [4/16] %v3567_v53, 128 }
 0x162   :  { %v2744_v49 = vld [vmem:[#allocation2 + $0x204] sm:$0x1]  ;;  %v3569_v62 = vsel %vm785_vm1, %v3568_v57, %v3288_v36  ;;  %v2749_v55 = vld [vmem:[#allocation2 + $0x254] sm:$0x1]  ;;  %v3019_v58 = vsel %vm797_vm6, %v3018_v31, %v3017_v28  ;;  %v3576_v39 = vrot.slane %v3293_v23, 3  ;;  %v3578_v35 = vrot.slane %v3294_v29, 2 }
 0x163   :  { %v2748_v43 = vld [vmem:[#allocation2 + $0x244] sm:$0x1]  ;;  %v3571_v20 = vsel %vm788_vm2, %v3570_v8, %v3569_v62  ;;  %v2751_v50 = vld [vmem:[#allocation2 + $0x274] sm:$0x1]  ;;  %v3297_v45 = vld [vmem:[#allocation2 + $0x295] sm:$0x1]  ;;  %v3021_v47 = vsel %vm800_vm7, %v3020_v32, %v3019_v58 }
 0x164   :  { %v2750_v33 = vld [vmem:[#allocation2 + $0x264] sm:$0x1]  ;;  %v3573_v42 = vsel %vm791_vm4, %v3572_v48, %v3571_v20  ;;  %v3580_v24 = vrot.slane %v3295_v34, 1  ;;  %v3024_v30 = vrot.slane %v2745_v10, 7  ;;  %v3298_v3 = vld [vmem:[#allocation2 + $0x2a5] sm:$0x1]  ;;  %v3023_v56 = vsel %vm803_vm8, %v3022_v7, %v3021_v47 }
 0x165   :  { %v9295_v9 = vld [vmem:[#allocation5 + $0x30] sm:$0xff]  ;;  %v3299_v2 = vld [vmem:[#allocation2 + $0x2b5] sm:$0x1]  ;;  %v3575_v12 = vsel %vm794_vm5, %v3574_v13, %v3573_v42  ;;  %v3026_v61 = vrot.slane %v2746_v59, 6  ;;  %v3028_v6 = vrot.slane %v2747_v54, 5  ;;  %3211 = vxpose.xlu0.b32.cont [4/16] %v3023_v56, 128  ;;  %v3030_v26 = vrot.slane %v2748_v43, 4 }
 0x166   :  { %9296 = vst [vmem:[%s12380_s1 + $0x30] sm:$0xff] %v9295_v9  ;;  %v3296_v19 = vld [vmem:[#allocation2 + $0x285] sm:$0x1]  ;;  %v3301_v40 = vld [vmem:[#allocation2 + $0x2d5] sm:$0x1]  ;;  %v3577_v63 = vsel %vm797_vm6, %v3576_v39, %v3575_v12  ;;  %v3025_v25 = vsel %vm785_vm1, %v3024_v30, %v2744_v49  ;;  %v3032_v21 = vrot.slane %v2749_v55, 3 }
 0x167   :  { %v3300_v4 = vld [vmem:[#allocation2 + $0x2c5] sm:$0x1]  ;;  %v3303_v17 = vld [vmem:[#allocation2 + $0x2f5] sm:$0x1]  ;;  %v3579_v46 = vsel %vm800_vm7, %v3578_v35, %v3577_v63  ;;  %v3027_v11 = vsel %vm788_vm2, %v3026_v61, %v3025_v25  ;;  %v3034_v1 = vrot.slane %v2750_v33, 2  ;;  %v3036_v60 = vrot.slane %v2751_v50, 1 }
 0x168   :  { %v3302_v44 = vld [vmem:[#allocation2 + $0x2e5] sm:$0x1]  ;;  %v2753_v36 = vld [vmem:[#allocation2 + $0x294] sm:$0x1]  ;;  %v2754_v51 = vld [vmem:[#allocation2 + $0x2a4] sm:$0x1]  ;;  %v3581_v5 = vsel %vm803_vm8, %v3580_v24, %v3579_v46  ;;  %v3029_v0 = vsel %vm791_vm4, %v3028_v6, %v3027_v11 }
 0x169   :  { %v3582_v52 = vrot.slane %v3297_v45, 7  ;;  %v3584_v18 = vrot.slane %v3298_v3, 6  ;;  %v2752_v37 = vld [vmem:[#allocation2 + $0x284] sm:$0x1]  ;;  %v2755_v16 = vld [vmem:[#allocation2 + $0x2b4] sm:$0x1]  ;;  %3756 = vxpose.xlu1.b32.cont [5/16] %v3581_v5, 128  ;;  %v3031_v22 = vsel %vm794_vm5, %v3030_v26, %v3029_v0 }
 0x16a   :  { %v2756_v23 = vld [vmem:[#allocation2 + $0x2c4] sm:$0x1]  ;;  %v3586_v15 = vrot.slane %v3299_v2, 5  ;;  %v3588_v31 = vrot.slane %v3300_v4, 4  ;;  %v3590_v32 = vrot.slane %v3301_v40, 3  ;;  %v9297_v34 = vld [vmem:[#allocation5 + $0x38] sm:$0xff]  ;;  %v3033_v27 = vsel %vm797_vm6, %v3032_v21, %v3031_v22 }
 0x16b   :  { %v2757_v29 = vld [vmem:[#allocation2 + $0x2d4] sm:$0x1]  ;;  %v3583_v14 = vsel %vm785_vm1, %v3582_v52, %v3296_v19  ;;  %v3592_v7 = vrot.slane %v3302_v44, 2  ;;  %v3594_v57 = vrot.slane %v3303_v17, 1  ;;  %v2758_v10 = vld [vmem:[#allocation2 + $0x2e4] sm:$0x1]  ;;  %v3035_v38 = vsel %vm800_vm7, %v3034_v1, %v3033_v27 }
 0x16c   :  { %v2759_v59 = vld [vmem:[#allocation2 + $0x2f4] sm:$0x1]  ;;  %9298 = vst [vmem:[%s12380_s1 + $0x38] sm:$0xff] %v9297_v34  ;;  %v3585_v41 = vsel %vm788_vm2, %v3584_v18, %v3583_v14  ;;  %v3038_v8 = vrot.slane %v2753_v36, 7  ;;  %v3040_v48 = vrot.slane %v2754_v51, 6  ;;  %v3037_v43 = vsel %vm803_vm8, %v3036_v60, %v3035_v38 }
 0x16d   :  { %v3304_v49 = vld [vmem:[#allocation2 + $0x305] sm:$0x1]  ;;  %v3305_v54 = vld [vmem:[#allocation2 + $0x315] sm:$0x1]  ;;  %v3587_v53 = vsel %vm791_vm4, %v3586_v15, %v3585_v41  ;;  %v3042_v28 = vrot.slane %v2755_v16, 5  ;;  %v3044_v62 = vrot.slane %v2756_v23, 4  ;;  %3212 = vxpose.xlu0.b32.cont [5/16] %v3037_v43, 128 }
 0x16e   :  { %v3306_v13 = vld [vmem:[#allocation2 + $0x325] sm:$0x1]  ;;  %v3307_v55 = vld [vmem:[#allocation2 + $0x335] sm:$0x1]  ;;  %v3589_v33 = vsel %vm794_vm5, %v3588_v31, %v3587_v53  ;;  %v3039_v9 = vsel %vm785_vm1, %v3038_v8, %v2752_v37  ;;  %v3046_v58 = vrot.slane %v2757_v29, 3  ;;  %v3048_v20 = vrot.slane %v2758_v10, 2 }
 0x16f   :  { %v3308_v39 = vld [vmem:[#allocation2 + $0x345] sm:$0x1]  ;;  %v3309_v35 = vld [vmem:[#allocation2 + $0x355] sm:$0x1]  ;;  %v3591_v50 = vsel %vm797_vm6, %v3590_v32, %v3589_v33  ;;  %v3041_v45 = vsel %vm788_vm2, %v3040_v48, %v3039_v9  ;;  %v3050_v47 = vrot.slane %v2759_v59, 1  ;;  %v3596_v30 = vrot.slane %v3305_v54, 7 }
 0x170   :  { %v3310_v42 = vld [vmem:[#allocation2 + $0x365] sm:$0x1]  ;;  %v3311_v24 = vld [vmem:[#allocation2 + $0x375] sm:$0x1]  ;;  %v3593_v3 = vsel %vm800_vm7, %v3592_v7, %v3591_v50  ;;  %v3043_v2 = vsel %vm791_vm4, %v3042_v28, %v3041_v45  ;;  %v3598_v56 = vrot.slane %v3306_v13, 6  ;;  %v3600_v12 = vrot.slane %v3307_v55, 5 }
 0x171   :  { %v2760_v61 = vld [vmem:[#allocation2 + $0x304] sm:$0x1]  ;;  %v2761_v6 = vld [vmem:[#allocation2 + $0x314] sm:$0x1]  ;;  %v3595_v19 = vsel %vm803_vm8, %v3594_v57, %v3593_v3  ;;  %v3045_v4 = vsel %vm794_vm5, %v3044_v62, %v3043_v2  ;;  %v3597_v40 = vsel %vm785_vm1, %v3596_v30, %v3304_v49  ;;  %v3602_v63 = vrot.slane %v3308_v39, 4 }
 0x172   :  { %v2762_v25 = vld [vmem:[#allocation2 + $0x324] sm:$0x1]  ;;  %v2763_v26 = vld [vmem:[#allocation2 + $0x334] sm:$0x1]  ;;  %3757 = vxpose.xlu1.b32.cont [6/16] %v3595_v19, 128  ;;  %v3047_v21 = vsel %vm797_vm6, %v3046_v58, %v3045_v4  ;;  %v3599_v44 = vsel %vm788_vm2, %v3598_v56, %v3597_v40  ;;  %v3604_v17 = vrot.slane %v3309_v35, 3  ;;  %v3606_v46 = vrot.slane %v3310_v42, 2 }
 0x173   :  { %v2764_v11 = vld [vmem:[#allocation2 + $0x344] sm:$0x1]  ;;  %v2765_v1 = vld [vmem:[#allocation2 + $0x354] sm:$0x1]  ;;  %v3049_v60 = vsel %vm800_vm7, %v3048_v20, %v3047_v21  ;;  %v3601_v36 = vsel %vm791_vm4, %v3600_v12, %v3599_v44  ;;  %v3608_v51 = vrot.slane %v3311_v24, 1  ;;  %v3052_v52 = vrot.slane %v2761_v6, 7 }
 0x174   :  { %v2766_v5 = vld [vmem:[#allocation2 + $0x364] sm:$0x1]  ;;  %v2767_v0 = vld [vmem:[#allocation2 + $0x374] sm:$0x1]  ;;  %v3051_v18 = vsel %vm803_vm8, %v3050_v47, %v3049_v60  ;;  %v3603_v37 = vsel %vm794_vm5, %v3602_v63, %v3601_v36  ;;  %v3054_v16 = vrot.slane %v2762_v25, 6  ;;  %v3056_v23 = vrot.slane %v2763_v26, 5 }
 0x175   :  { %v3312_v22 = vld [vmem:[#allocation2 + $0x385] sm:$0x1]  ;;  %v3313_v15 = vld [vmem:[#allocation2 + $0x395] sm:$0x1]  ;;  %3213 = vxpose.xlu0.b32.cont [6/16] %v3051_v18, 128  ;;  %v3605_v32 = vsel %vm797_vm6, %v3604_v17, %v3603_v37  ;;  %v3053_v29 = vsel %vm785_vm1, %v3052_v52, %v2760_v61  ;;  %v3058_v34 = vrot.slane %v2764_v11, 4  ;;  %v3060_v27 = vrot.slane %v2765_v1, 3 }
 0x176   :  { %v3314_v31 = vld [vmem:[#allocation2 + $0x3a5] sm:$0x1]  ;;  %v3315_v14 = vld [vmem:[#allocation2 + $0x3b5] sm:$0x1]  ;;  %v3607_v57 = vsel %vm800_vm7, %v3606_v46, %v3605_v32  ;;  %v3055_v10 = vsel %vm788_vm2, %v3054_v16, %v3053_v29  ;;  %v3062_v59 = vrot.slane %v2766_v5, 2  ;;  %v3064_v38 = vrot.slane %v2767_v0, 1 }
 0x177   :  { %v3316_v7 = vld [vmem:[#allocation2 + $0x3c5] sm:$0x1]  ;;  %v3317_v41 = vld [vmem:[#allocation2 + $0x3d5] sm:$0x1]  ;;  %v3609_v48 = vsel %vm803_vm8, %v3608_v51, %v3607_v57  ;;  %v3057_v49 = vsel %vm791_vm4, %v3056_v23, %v3055_v10  ;;  %v3610_v43 = vrot.slane %v3313_v15, 7  ;;  %v3612_v53 = vrot.slane %v3314_v31, 6 }
 0x178   :  { %v3318_v8 = vld [vmem:[#allocation2 + $0x3e5] sm:$0x1]  ;;  %v3319_v54 = vld [vmem:[#allocation2 + $0x3f5] sm:$0x1]  ;;  %3758 = vxpose.xlu1.b32.cont [7/16] %v3609_v48, 128  ;;  %v3059_v28 = vsel %vm794_vm5, %v3058_v34, %v3057_v49  ;;  %v3614_v62 = vrot.slane %v3315_v14, 5  ;;  %v3616_v13 = vrot.slane %v3316_v7, 4 }
 0x179   :  { %v3618_v55 = vrot.slane %v3317_v41, 3  ;;  %v2768_v33 = vld [vmem:[#allocation2 + $0x384] sm:$0x1]  ;;  %v2769_v9 = vld [vmem:[#allocation2 + $0x394] sm:$0x1]  ;;  %v3061_v58 = vsel %vm797_vm6, %v3060_v27, %v3059_v28  ;;  %v3611_v20 = vsel %vm785_vm1, %v3610_v43, %v3312_v22  ;;  %v3620_v39 = vrot.slane %v3318_v8, 2 }
 0x17a   :  { %v3622_v35 = vrot.slane %v3319_v54, 1  ;;  %v2770_v50 = vld [vmem:[#allocation2 + $0x3a4] sm:$0x1]  ;;  %v2771_v45 = vld [vmem:[#allocation2 + $0x3b4] sm:$0x1]  ;;  %v3063_v47 = vsel %vm800_vm7, %v3062_v59, %v3061_v58  ;;  %v3613_v42 = vsel %vm788_vm2, %v3612_v53, %v3611_v20  ;;  %v3066_v61 = vrot.slane %v2769_v9, 7 }
 0x17b   :  { %v2772_v24 = vld [vmem:[#allocation2 + $0x3c4] sm:$0x1]  ;;  %v2773_v30 = vld [vmem:[#allocation2 + $0x3d4] sm:$0x1]  ;;  %v3065_v2 = vsel %vm803_vm8, %v3064_v38, %v3063_v47  ;;  %v3615_v56 = vsel %vm791_vm4, %v3614_v62, %v3613_v42  ;;  %v3068_v6 = vrot.slane %v2770_v50, 6  ;;  %v3070_v4 = vrot.slane %v2771_v45, 5 }
 0x17c   :  { %v2774_v3 = vld [vmem:[#allocation2 + $0x3e4] sm:$0x1]  ;;  %v2775_v12 = vld [vmem:[#allocation2 + $0x3f4] sm:$0x1]  ;;  %3214 = vxpose.xlu0.b32.cont [7/16] %v3065_v2, 128  ;;  %v3617_v19 = vsel %vm794_vm5, %v3616_v13, %v3615_v56  ;;  %v3072_v40 = vrot.slane %v2772_v24, 4  ;;  %v3074_v63 = vrot.slane %v2773_v30, 3  ;;  %v3067_v44 = vsel %vm785_vm1, %v3066_v61, %v2768_v33 }
 0x17d   :  { %v3320_v25 = vld [vmem:[#allocation2 + $0x405] sm:$0x1]  ;;  %v3321_v26 = vld [vmem:[#allocation2 + $0x415] sm:$0x1]  ;;  %v3619_v21 = vsel %vm797_vm6, %v3618_v55, %v3617_v19  ;;  %v3076_v17 = vrot.slane %v2774_v3, 2  ;;  %v3078_v46 = vrot.slane %v2775_v12, 1  ;;  %v3069_v36 = vsel %vm788_vm2, %v3068_v6, %v3067_v44 }
 0x17e   :  { %v3322_v11 = vld [vmem:[#allocation2 + $0x425] sm:$0x1]  ;;  %v3323_v1 = vld [vmem:[#allocation2 + $0x435] sm:$0x1]  ;;  %v3621_v60 = vsel %vm800_vm7, %v3620_v39, %v3619_v21  ;;  %v3071_v18 = vsel %vm791_vm4, %v3070_v4, %v3069_v36  ;;  %v3624_v16 = vrot.slane %v3321_v26, 7 }
 0x17f   :  { %v3324_v51 = vld [vmem:[#allocation2 + $0x445] sm:$0x1]  ;;  %v3325_v5 = vld [vmem:[#allocation2 + $0x455] sm:$0x1]  ;;  %v3623_v52 = vsel %vm803_vm8, %v3622_v35, %v3621_v60  ;;  %v3626_v23 = vrot.slane %v3322_v11, 6  ;;  %v3073_v22 = vsel %vm794_vm5, %v3072_v40, %v3071_v18  ;;  %v3628_v15 = vrot.slane %v3323_v1, 5 }
 0x180   :  { %v3326_v0 = vld [vmem:[#allocation2 + $0x465] sm:$0x1]  ;;  %v3327_v37 = vld [vmem:[#allocation2 + $0x475] sm:$0x1]  ;;  %3759 = vxpose.xlu1.b32.cont [8/16] %v3623_v52, 128  ;;  %v3630_v31 = vrot.slane %v3324_v51, 4  ;;  %v3632_v32 = vrot.slane %v3325_v5, 3  ;;  %v3075_v27 = vsel %vm797_vm6, %v3074_v63, %v3073_v22  ;;  %v3625_v14 = vsel %vm785_vm1, %v3624_v16, %v3320_v25 }
 0x181   :  { %v2776_v29 = vld [vmem:[#allocation2 + $0x404] sm:$0x1]  ;;  %v2777_v34 = vld [vmem:[#allocation2 + $0x414] sm:$0x1]  ;;  %v3634_v7 = vrot.slane %v3326_v0, 2  ;;  %v3636_v57 = vrot.slane %v3327_v37, 1  ;;  %v3077_v38 = vsel %vm800_vm7, %v3076_v17, %v3075_v27  ;;  %v3627_v41 = vsel %vm788_vm2, %v3626_v23, %v3625_v14 }
 0x182   :  { %v2778_v10 = vld [vmem:[#allocation2 + $0x424] sm:$0x1]  ;;  %v2779_v59 = vld [vmem:[#allocation2 + $0x434] sm:$0x1]  ;;  %v3079_v54 = vsel %vm803_vm8, %v3078_v46, %v3077_v38  ;;  %v3629_v43 = vsel %vm791_vm4, %v3628_v15, %v3627_v41  ;;  %v3080_v28 = vrot.slane %v2777_v34, 7 }
 0x183   :  { %v2780_v8 = vld [vmem:[#allocation2 + $0x444] sm:$0x1]  ;;  %v2781_v48 = vld [vmem:[#allocation2 + $0x454] sm:$0x1]  ;;  %v3082_v62 = vrot.slane %v2778_v10, 6  ;;  %3215 = vxpose.xlu0.b32.cont [8/16] %v3079_v54, 128  ;;  %v3631_v13 = vsel %vm794_vm5, %v3630_v31, %v3629_v43  ;;  %v3084_v55 = vrot.slane %v2779_v59, 5  ;;  %v2680_v31 = vpop.trf.xlu1 }
 0x184   :  { %v2782_v49 = vld [vmem:[#allocation2 + $0x464] sm:$0x1]  ;;  %v2783_v53 = vld [vmem:[#allocation2 + $0x474] sm:$0x1]  ;;  %v3086_v33 = vrot.slane %v2780_v8, 4  ;;  %v3088_v9 = vrot.slane %v2781_v48, 3  ;;  %v3633_v39 = vsel %vm797_vm6, %v3632_v32, %v3631_v13  ;;  %v3081_v35 = vsel %vm785_vm1, %v3080_v28, %v2776_v29 }
 0x185   :  { %v3328_v58 = vld [vmem:[#allocation2 + $0x485] sm:$0x1]  ;;  %v3329_v20 = vld [vmem:[#allocation2 + $0x495] sm:$0x1]  ;;  %v3090_v50 = vrot.slane %v2782_v49, 2  ;;  %v3092_v45 = vrot.slane %v2783_v53, 1  ;;  %v3635_v24 = vsel %vm800_vm7, %v3634_v7, %v3633_v39  ;;  %v3083_v30 = vsel %vm788_vm2, %v3082_v62, %v3081_v35 }
 0x186   :  { %v3330_v47 = vld [vmem:[#allocation2 + $0x4a5] sm:$0x1]  ;;  %v3331_v42 = vld [vmem:[#allocation2 + $0x4b5] sm:$0x1]  ;;  %v3637_v12 = vsel %vm803_vm8, %v3636_v57, %v3635_v24  ;;  %v3085_v61 = vsel %vm791_vm4, %v3084_v55, %v3083_v30  ;;  %v3638_v19 = vrot.slane %v3329_v20, 7 }
 0x187   :  { %v3332_v3 = vld [vmem:[#allocation2 + $0x4c5] sm:$0x1]  ;;  %v3333_v2 = vld [vmem:[#allocation2 + $0x4d5] sm:$0x1]  ;;  %v3640_v4 = vrot.slane %v3330_v47, 6  ;;  %3760 = vxpose.xlu1.b32.cont [9/16] %v3637_v12, 128  ;;  %v3087_v40 = vsel %vm794_vm5, %v3086_v33, %v3085_v61  ;;  %v3642_v63 = vrot.slane %v3331_v42, 5 }
 0x188   :  { %v3334_v56 = vld [vmem:[#allocation2 + $0x4e5] sm:$0x1]  ;;  %v3335_v6 = vld [vmem:[#allocation2 + $0x4f5] sm:$0x1]  ;;  %v3644_v25 = vrot.slane %v3332_v3, 4  ;;  %v3646_v26 = vrot.slane %v3333_v2, 3  ;;  %v3089_v17 = vsel %vm797_vm6, %v3088_v9, %v3087_v40  ;;  %v3639_v46 = vsel %vm785_vm1, %v3638_v19, %v3328_v58  ;;  %v2136_v9 = vpop.trf.xlu0  ;;  %v2681_v58 = vpop.trf.xlu1 }
 0x189   :  { %v2784_v21 = vld [vmem:[#allocation2 + $0x484] sm:$0x1]  ;;  %v2785_v44 = vld [vmem:[#allocation2 + $0x494] sm:$0x1]  ;;  %v3648_v11 = vrot.slane %v3334_v56, 2  ;;  %v3650_v1 = vrot.slane %v3335_v6, 1  ;;  %v3091_v51 = vsel %vm800_vm7, %v3090_v50, %v3089_v17  ;;  %v3641_v5 = vsel %vm788_vm2, %v3640_v4, %v3639_v46 }
 0x18a   :  { %v2786_v60 = vld [vmem:[#allocation2 + $0x4a4] sm:$0x1]  ;;  %v2787_v36 = vld [vmem:[#allocation2 + $0x4b4] sm:$0x1]  ;;  %v3093_v37 = vsel %vm803_vm8, %v3092_v45, %v3091_v51  ;;  %v3643_v16 = vsel %vm791_vm4, %v3642_v63, %v3641_v5  ;;  %v3094_v22 = vrot.slane %v2785_v44, 7 }
 0x18b   :  { %v2788_v0 = vld [vmem:[#allocation2 + $0x4c4] sm:$0x1]  ;;  %v2789_v52 = vld [vmem:[#allocation2 + $0x4d4] sm:$0x1]  ;;  %v3096_v15 = vrot.slane %v2786_v60, 6  ;;  %3216 = vxpose.xlu0.b32.cont [9/16] %v3093_v37, 128  ;;  %v3645_v32 = vsel %vm794_vm5, %v3644_v25, %v3643_v16  ;;  %v3098_v29 = vrot.slane %v2787_v36, 5 }
 0x18c   :  { %v2790_v18 = vld [vmem:[#allocation2 + $0x4e4] sm:$0x1]  ;;  %v2791_v23 = vld [vmem:[#allocation2 + $0x4f4] sm:$0x1]  ;;  %v3100_v34 = vrot.slane %v2788_v0, 4  ;;  %v3102_v27 = vrot.slane %v2789_v52, 3  ;;  %v3647_v57 = vsel %vm797_vm6, %v3646_v26, %v3645_v32  ;;  %v3095_v10 = vsel %vm785_vm1, %v3094_v22, %v2784_v21  ;;  %v2137_v44 = vpop.trf.xlu0  ;;  %v2682_v17 = vpop.trf.xlu1 }
 0x18d   :  { %v3336_v14 = vld [vmem:[#allocation2 + $0x505] sm:$0x1]  ;;  %v3337_v7 = vld [vmem:[#allocation2 + $0x515] sm:$0x1]  ;;  %v3104_v59 = vrot.slane %v2790_v18, 2  ;;  %v3106_v38 = vrot.slane %v2791_v23, 1  ;;  %v3649_v48 = vsel %vm800_vm7, %v3648_v11, %v3647_v57  ;;  %v3097_v49 = vsel %vm788_vm2, %v3096_v15, %v3095_v10 }
 0x18e   :  { %v3338_v41 = vld [vmem:[#allocation2 + $0x525] sm:$0x1]  ;;  %v3339_v8 = vld [vmem:[#allocation2 + $0x535] sm:$0x1]  ;;  %v3651_v28 = vsel %vm803_vm8, %v3650_v1, %v3649_v48  ;;  %v3099_v62 = vsel %vm791_vm4, %v3098_v29, %v3097_v49  ;;  %v3652_v55 = vrot.slane %v3337_v7, 7 }
 0x18f   :  { %v3340_v54 = vld [vmem:[#allocation2 + $0x545] sm:$0x1]  ;;  %v3341_v43 = vld [vmem:[#allocation2 + $0x555] sm:$0x1]  ;;  %v3654_v33 = vrot.slane %v3338_v41, 6  ;;  %3761 = vxpose.xlu1.b32.cont [10/16] %v3651_v28, 128  ;;  %v3101_v20 = vsel %vm794_vm5, %v3100_v34, %v3099_v62  ;;  %v3656_v39 = vrot.slane %v3339_v8, 5 }
 0x190   :  { %v3342_v53 = vld [vmem:[#allocation2 + $0x565] sm:$0x1]  ;;  %v3343_v13 = vld [vmem:[#allocation2 + $0x575] sm:$0x1]  ;;  %v3658_v35 = vrot.slane %v3340_v54, 4  ;;  %v3660_v50 = vrot.slane %v3341_v43, 3  ;;  %v3103_v42 = vsel %vm797_vm6, %v3102_v27, %v3101_v20  ;;  %v3653_v24 = vsel %vm785_vm1, %v3652_v55, %v3336_v14  ;;  %v2138_v57 = vpop.trf.xlu0  ;;  %v2683_v10 = vpop.trf.xlu1 }
 0x191   :  { %v2792_v45 = vld [vmem:[#allocation2 + $0x504] sm:$0x1]  ;;  %v2793_v47 = vld [vmem:[#allocation2 + $0x514] sm:$0x1]  ;;  %v3662_v30 = vrot.slane %v3342_v53, 2  ;;  %v3664_v3 = vrot.slane %v3343_v13, 1  ;;  %v3105_v12 = vsel %vm800_vm7, %v3104_v59, %v3103_v42  ;;  %v3655_v61 = vsel %vm788_vm2, %v3654_v33, %v3653_v24 }
 0x192   :  { %v2794_v2 = vld [vmem:[#allocation2 + $0x524] sm:$0x1]  ;;  %v2795_v56 = vld [vmem:[#allocation2 + $0x534] sm:$0x1]  ;;  %v3107_v40 = vsel %vm803_vm8, %v3106_v38, %v3105_v12  ;;  %v3657_v63 = vsel %vm791_vm4, %v3656_v39, %v3655_v61  ;;  %v3108_v26 = vrot.slane %v2793_v47, 7 }
 0x193   :  { %v2796_v6 = vld [vmem:[#allocation2 + $0x544] sm:$0x1]  ;;  %v2797_v19 = vld [vmem:[#allocation2 + $0x554] sm:$0x1]  ;;  %v3110_v21 = vrot.slane %v2794_v2, 6  ;;  %3217 = vxpose.xlu0.b32.cont [10/16] %v3107_v40, 128  ;;  %v3659_v46 = vsel %vm794_vm5, %v3658_v35, %v3657_v63  ;;  %v3112_v11 = vrot.slane %v2795_v56, 5 }
 0x194   :  { %v2798_v4 = vld [vmem:[#allocation2 + $0x564] sm:$0x1]  ;;  %v2799_v25 = vld [vmem:[#allocation2 + $0x574] sm:$0x1]  ;;  %v3114_v1 = vrot.slane %v2796_v6, 4  ;;  %v3116_v60 = vrot.slane %v2797_v19, 3  ;;  %v3661_v5 = vsel %vm797_vm6, %v3660_v50, %v3659_v46  ;;  %v3109_v0 = vsel %vm785_vm1, %v3108_v26, %v2792_v45  ;;  %v2139_v42 = vpop.trf.xlu0  ;;  %v2684_v24 = vpop.trf.xlu1 }
 0x195   :  { %v3344_v36 = vld [vmem:[#allocation2 + $0x585] sm:$0x1]  ;;  %v3345_v51 = vld [vmem:[#allocation2 + $0x595] sm:$0x1]  ;;  %v3118_v52 = vrot.slane %v2798_v4, 2  ;;  %v3120_v18 = vrot.slane %v2799_v25, 1  ;;  %v3663_v23 = vsel %vm800_vm7, %v3662_v30, %v3661_v5  ;;  %v3111_v22 = vsel %vm788_vm2, %v3110_v21, %v3109_v0 }
 0x196   :  { %v3346_v37 = vld [vmem:[#allocation2 + $0x5a5] sm:$0x1]  ;;  %v3347_v16 = vld [vmem:[#allocation2 + $0x5b5] sm:$0x1]  ;;  %v3665_v29 = vsel %vm803_vm8, %v3664_v3, %v3663_v23  ;;  %v3113_v34 = vsel %vm791_vm4, %v3112_v11, %v3111_v22  ;;  %v3666_v14 = vrot.slane %v3345_v51, 7 }
 0x197   :  { %v3348_v15 = vld [vmem:[#allocation2 + $0x5c5] sm:$0x1]  ;;  %v3349_v31 = vld [vmem:[#allocation2 + $0x5d5] sm:$0x1]  ;;  %v3668_v7 = vrot.slane %v3346_v37, 6  ;;  %3762 = vxpose.xlu1.b32.cont [11/16] %v3665_v29, 128  ;;  %v3115_v59 = vsel %vm794_vm5, %v3114_v1, %v3113_v34  ;;  %v3670_v38 = vrot.slane %v3347_v16, 5 }
 0x198   :  { %v3350_v32 = vld [vmem:[#allocation2 + $0x5e5] sm:$0x1]  ;;  %v3351_v27 = vld [vmem:[#allocation2 + $0x5f5] sm:$0x1]  ;;  %v3672_v41 = vrot.slane %v3348_v15, 4  ;;  %v3674_v8 = vrot.slane %v3349_v31, 3  ;;  %v3117_v54 = vsel %vm797_vm6, %v3116_v60, %v3115_v59  ;;  %v3667_v43 = vsel %vm785_vm1, %v3666_v14, %v3344_v36  ;;  %v2140_v5 = vpop.trf.xlu0  ;;  %v2685_v0 = vpop.trf.xlu1 }
 0x199   :  { %v2800_v48 = vld [vmem:[#allocation2 + $0x584] sm:$0x1]  ;;  %v2801_v49 = vld [vmem:[#allocation2 + $0x594] sm:$0x1]  ;;  %v3676_v53 = vrot.slane %v3350_v32, 2  ;;  %v3678_v28 = vrot.slane %v3351_v27, 1  ;;  %v3119_v55 = vsel %vm800_vm7, %v3118_v52, %v3117_v54  ;;  %v3669_v33 = vsel %vm788_vm2, %v3668_v7, %v3667_v43 }
 0x19a   :  { %v2802_v62 = vld [vmem:[#allocation2 + $0x5a4] sm:$0x1]  ;;  %v2803_v13 = vld [vmem:[#allocation2 + $0x5b4] sm:$0x1]  ;;  %v3121_v39 = vsel %vm803_vm8, %v3120_v18, %v3119_v55  ;;  %v3671_v35 = vsel %vm791_vm4, %v3670_v38, %v3669_v33  ;;  %v3122_v45 = vrot.slane %v2801_v49, 7 }
 0x19b   :  { %v2804_v9 = vld [vmem:[#allocation2 + $0x5c4] sm:$0x1]  ;;  %v2805_v58 = vld [vmem:[#allocation2 + $0x5d4] sm:$0x1]  ;;  %v3124_v47 = vrot.slane %v2802_v62, 6  ;;  %3218 = vxpose.xlu0.b32.cont [11/16] %v3121_v39, 128  ;;  %v3673_v30 = vsel %vm794_vm5, %v3672_v41, %v3671_v35  ;;  %v3126_v3 = vrot.slane %v2803_v13, 5 }
 0x19c   :  { %v2806_v20 = vld [vmem:[#allocation2 + $0x5e4] sm:$0x1]  ;;  %v2807_v50 = vld [vmem:[#allocation2 + $0x5f4] sm:$0x1]  ;;  %v3128_v2 = vrot.slane %v2804_v9, 4  ;;  %v3130_v56 = vrot.slane %v2805_v58, 3  ;;  %v3675_v6 = vsel %vm797_vm6, %v3674_v8, %v3673_v30  ;;  %v3123_v19 = vsel %vm785_vm1, %v3122_v45, %v2800_v48  ;;  %v2141_v54 = vpop.trf.xlu0  ;;  %v2686_v43 = vpop.trf.xlu1 }
 0x19d   :  { %v3352_v12 = vld [vmem:[#allocation2 + $0x605] sm:$0x1]  ;;  %v3353_v61 = vld [vmem:[#allocation2 + $0x615] sm:$0x1]  ;;  %v3132_v4 = vrot.slane %v2806_v20, 2  ;;  %v3134_v40 = vrot.slane %v2807_v50, 1  ;;  %v3677_v26 = vsel %vm800_vm7, %v3676_v53, %v3675_v6  ;;  %v3125_v21 = vsel %vm788_vm2, %v3124_v47, %v3123_v19 }
 0x19e   :  { %v3354_v63 = vld [vmem:[#allocation2 + $0x625] sm:$0x1]  ;;  %v3355_v25 = vld [vmem:[#allocation2 + $0x635] sm:$0x1]  ;;  %v3679_v11 = vsel %vm803_vm8, %v3678_v28, %v3677_v26  ;;  %v3127_v1 = vsel %vm791_vm4, %v3126_v3, %v3125_v21  ;;  %v3680_v36 = vrot.slane %v3353_v61, 7 }
 0x19f   :  { %v3356_v44 = vld [vmem:[#allocation2 + $0x645] sm:$0x1]  ;;  %v3357_v17 = vld [vmem:[#allocation2 + $0x655] sm:$0x1]  ;;  %v3682_v51 = vrot.slane %v3354_v63, 6  ;;  %3763 = vxpose.xlu1.b32.cont [12/16] %v3679_v11, 128  ;;  %v3129_v52 = vsel %vm794_vm5, %v3128_v2, %v3127_v1  ;;  %v3684_v18 = vrot.slane %v3355_v25, 5 }
 0x1a0   :  { %v3358_v46 = vld [vmem:[#allocation2 + $0x665] sm:$0x1]  ;;  %v3359_v60 = vld [vmem:[#allocation2 + $0x675] sm:$0x1]  ;;  %v3686_v37 = vrot.slane %v3356_v44, 4  ;;  %v3688_v16 = vrot.slane %v3357_v17, 3  ;;  %v3131_v15 = vsel %vm797_vm6, %v3130_v56, %v3129_v52  ;;  %v3681_v31 = vsel %vm785_vm1, %v3680_v36, %v3352_v12  ;;  %v2142_v6 = vpop.trf.xlu0  ;;  %v2687_v19 = vpop.trf.xlu1 }
 0x1a1   :  { %v2808_v23 = vld [vmem:[#allocation2 + $0x604] sm:$0x1]  ;;  %v2809_v22 = vld [vmem:[#allocation2 + $0x614] sm:$0x1]  ;;  %v3690_v32 = vrot.slane %v3358_v46, 2  ;;  %v3692_v29 = vrot.slane %v3359_v60, 1  ;;  %v3133_v14 = vsel %vm800_vm7, %v3132_v4, %v3131_v15  ;;  %v3683_v7 = vsel %vm788_vm2, %v3682_v51, %v3681_v31 }
 0x1a2   :  { %v2810_v34 = vld [vmem:[#allocation2 + $0x624] sm:$0x1]  ;;  %v2811_v27 = vld [vmem:[#allocation2 + $0x634] sm:$0x1]  ;;  %v3135_v38 = vsel %vm803_vm8, %v3134_v40, %v3133_v14  ;;  %v3685_v41 = vsel %vm791_vm4, %v3684_v18, %v3683_v7  ;;  %v3136_v48 = vrot.slane %v2809_v22, 7 }
 0x1a3   :  { %v2812_v57 = vld [vmem:[#allocation2 + $0x644] sm:$0x1]  ;;  %v2813_v10 = vld [vmem:[#allocation2 + $0x654] sm:$0x1]  ;;  %v3138_v49 = vrot.slane %v2810_v34, 6  ;;  %3219 = vxpose.xlu0.b32.cont [12/16] %v3135_v38, 128  ;;  %v3687_v53 = vsel %vm794_vm5, %v3686_v37, %v3685_v41  ;;  %v3140_v28 = vrot.slane %v2811_v27, 5 }
 0x1a4   :  { %v2814_v59 = vld [vmem:[#allocation2 + $0x664] sm:$0x1]  ;;  %v2815_v8 = vld [vmem:[#allocation2 + $0x674] sm:$0x1]  ;;  %v3142_v62 = vrot.slane %v2812_v57, 4  ;;  %v3144_v13 = vrot.slane %v2813_v10, 3  ;;  %v3689_v9 = vsel %vm797_vm6, %v3688_v16, %v3687_v53  ;;  %v3137_v58 = vsel %vm785_vm1, %v3136_v48, %v2808_v23  ;;  %v2143_v15 = vpop.trf.xlu0  ;;  %v2688_v31 = vpop.trf.xlu1 }
 0x1a5   :  { %v3360_v55 = vld [vmem:[#allocation2 + $0x685] sm:$0x1]  ;;  %v3361_v33 = vld [vmem:[#allocation2 + $0x695] sm:$0x1]  ;;  %v3146_v20 = vrot.slane %v2814_v59, 2  ;;  %v3148_v39 = vrot.slane %v2815_v8, 1  ;;  %v3691_v45 = vsel %vm800_vm7, %v3690_v32, %v3689_v9  ;;  %v3139_v47 = vsel %vm788_vm2, %v3138_v49, %v3137_v58 }
 0x1a6   :  { %v3362_v35 = vld [vmem:[#allocation2 + $0x6a5] sm:$0x1]  ;;  %v3363_v50 = vld [vmem:[#allocation2 + $0x6b5] sm:$0x1]  ;;  %v3693_v3 = vsel %vm803_vm8, %v3692_v29, %v3691_v45  ;;  %v3141_v2 = vsel %vm791_vm4, %v3140_v28, %v3139_v47  ;;  %v3694_v12 = vrot.slane %v3361_v33, 7 }
 0x1a7   :  { %v3364_v42 = vld [vmem:[#allocation2 + $0x6c5] sm:$0x1]  ;;  %v3365_v24 = vld [vmem:[#allocation2 + $0x6d5] sm:$0x1]  ;;  %v3696_v61 = vrot.slane %v3362_v35, 6  ;;  %3764 = vxpose.xlu1.b32.cont [13/16] %v3693_v3, 128  ;;  %v3143_v4 = vsel %vm794_vm5, %v3142_v62, %v3141_v2  ;;  %v3698_v40 = vrot.slane %v3363_v50, 5 }
 0x1a8   :  { %v3366_v30 = vld [vmem:[#allocation2 + $0x6e5] sm:$0x1]  ;;  %v3367_v56 = vld [vmem:[#allocation2 + $0x6f5] sm:$0x1]  ;;  %v3700_v63 = vrot.slane %v3364_v42, 4  ;;  %v3702_v25 = vrot.slane %v3365_v24, 3  ;;  %v3145_v44 = vsel %vm797_vm6, %v3144_v13, %v3143_v4  ;;  %v3695_v17 = vsel %vm785_vm1, %v3694_v12, %v3360_v55  ;;  %v2144_v9 = vpop.trf.xlu0  ;;  %v2689_v58 = vpop.trf.xlu1 }
 0x1a9   :  { %v2816_v26 = vld [vmem:[#allocation2 + $0x684] sm:$0x1]  ;;  %v2817_v21 = vld [vmem:[#allocation2 + $0x694] sm:$0x1]  ;;  %v3704_v46 = vrot.slane %v3366_v30, 2  ;;  %v3706_v11 = vrot.slane %v3367_v56, 1  ;;  %v3147_v36 = vsel %vm800_vm7, %v3146_v20, %v3145_v44  ;;  %v3697_v51 = vsel %vm788_vm2, %v3696_v61, %v3695_v17 }
 0x1aa   :  { %v2818_v1 = vld [vmem:[#allocation2 + $0x6a4] sm:$0x1]  ;;  %v2819_v60 = vld [vmem:[#allocation2 + $0x6b4] sm:$0x1]  ;;  %v3149_v18 = vsel %vm803_vm8, %v3148_v39, %v3147_v36  ;;  %v3699_v37 = vsel %vm791_vm4, %v3698_v40, %v3697_v51  ;;  %v3150_v23 = vrot.slane %v2817_v21, 7 }
 0x1ab   :  { %v2820_v5 = vld [vmem:[#allocation2 + $0x6c4] sm:$0x1]  ;;  %v2821_v0 = vld [vmem:[#allocation2 + $0x6d4] sm:$0x1]  ;;  %v3152_v22 = vrot.slane %v2818_v1, 6  ;;  %3220 = vxpose.xlu0.b32.cont [13/16] %v3149_v18, 128  ;;  %v3701_v32 = vsel %vm794_vm5, %v3700_v63, %v3699_v37  ;;  %v3154_v29 = vrot.slane %v2819_v60, 5 }
 0x1ac   :  { %v2822_v52 = vld [vmem:[#allocation2 + $0x6e4] sm:$0x1]  ;;  %v2823_v16 = vld [vmem:[#allocation2 + $0x6f4] sm:$0x1]  ;;  %v3156_v34 = vrot.slane %v2820_v5, 4  ;;  %v3158_v27 = vrot.slane %v2821_v0, 3  ;;  %v3703_v57 = vsel %vm797_vm6, %v3702_v25, %v3701_v32  ;;  %v3151_v10 = vsel %vm785_vm1, %v3150_v23, %v2816_v26  ;;  %v2145_v44 = vpop.trf.xlu0  ;;  %v2690_v17 = vpop.trf.xlu1 }
 0x1ad   :  { %v3368_v14 = vld [vmem:[#allocation2 + $0x705] sm:$0x1]  ;;  %v3369_v7 = vld [vmem:[#allocation2 + $0x715] sm:$0x1]  ;;  %v3160_v59 = vrot.slane %v2822_v52, 2  ;;  %v3162_v38 = vrot.slane %v2823_v16, 1  ;;  %v3705_v48 = vsel %vm800_vm7, %v3704_v46, %v3703_v57  ;;  %v3153_v49 = vsel %vm788_vm2, %v3152_v22, %v3151_v10 }
 0x1ae   :  { %v3370_v41 = vld [vmem:[#allocation2 + $0x725] sm:$0x1]  ;;  %v3371_v8 = vld [vmem:[#allocation2 + $0x735] sm:$0x1]  ;;  %v3707_v28 = vsel %vm803_vm8, %v3706_v11, %v3705_v48  ;;  %v3155_v62 = vsel %vm791_vm4, %v3154_v29, %v3153_v49  ;;  %v3708_v55 = vrot.slane %v3369_v7, 7 }
 0x1af   :  { %v3372_v54 = vld [vmem:[#allocation2 + $0x745] sm:$0x1]  ;;  %v3373_v43 = vld [vmem:[#allocation2 + $0x755] sm:$0x1]  ;;  %v3710_v33 = vrot.slane %v3370_v41, 6  ;;  %3765 = vxpose.xlu1.b32.cont [14/16] %v3707_v28, 128  ;;  %v3157_v20 = vsel %vm794_vm5, %v3156_v34, %v3155_v62  ;;  %v3712_v39 = vrot.slane %v3371_v8, 5 }
 0x1b0   :  { %v3374_v53 = vld [vmem:[#allocation2 + $0x765] sm:$0x1]  ;;  %v3375_v13 = vld [vmem:[#allocation2 + $0x775] sm:$0x1]  ;;  %v3714_v35 = vrot.slane %v3372_v54, 4  ;;  %v3716_v50 = vrot.slane %v3373_v43, 3  ;;  %v3159_v42 = vsel %vm797_vm6, %v3158_v27, %v3157_v20  ;;  %v3709_v24 = vsel %vm785_vm1, %v3708_v55, %v3368_v14  ;;  %v2146_v57 = vpop.trf.xlu0  ;;  %v2691_v10 = vpop.trf.xlu1 }
 0x1b1   :  { %v2824_v45 = vld [vmem:[#allocation2 + $0x704] sm:$0x1]  ;;  %v2825_v47 = vld [vmem:[#allocation2 + $0x714] sm:$0x1]  ;;  %v3718_v30 = vrot.slane %v3374_v53, 2  ;;  %v3720_v3 = vrot.slane %v3375_v13, 1  ;;  %v3161_v12 = vsel %vm800_vm7, %v3160_v59, %v3159_v42  ;;  %v3711_v61 = vsel %vm788_vm2, %v3710_v33, %v3709_v24 }
 0x1b2   :  { %v2826_v2 = vld [vmem:[#allocation2 + $0x724] sm:$0x1]  ;;  %v2827_v56 = vld [vmem:[#allocation2 + $0x734] sm:$0x1]  ;;  %v3163_v40 = vsel %vm803_vm8, %v3162_v38, %v3161_v12  ;;  %v3713_v63 = vsel %vm791_vm4, %v3712_v39, %v3711_v61  ;;  %v3164_v26 = vrot.slane %v2825_v47, 7 }
 0x1b3   :  { %v2828_v6 = vld [vmem:[#allocation2 + $0x744] sm:$0x1]  ;;  %v2829_v19 = vld [vmem:[#allocation2 + $0x754] sm:$0x1]  ;;  %v3166_v21 = vrot.slane %v2826_v2, 6  ;;  %3221 = vxpose.xlu0.b32.cont [14/16] %v3163_v40, 128  ;;  %v3715_v46 = vsel %vm794_vm5, %v3714_v35, %v3713_v63  ;;  %v3168_v11 = vrot.slane %v2827_v56, 5 }
 0x1b4   :  { %v2830_v4 = vld [vmem:[#allocation2 + $0x764] sm:$0x1]  ;;  %v2831_v25 = vld [vmem:[#allocation2 + $0x774] sm:$0x1]  ;;  %v3170_v1 = vrot.slane %v2828_v6, 4  ;;  %v3172_v60 = vrot.slane %v2829_v19, 3  ;;  %v3717_v5 = vsel %vm797_vm6, %v3716_v50, %v3715_v46  ;;  %v3165_v0 = vsel %vm785_vm1, %v3164_v26, %v2824_v45  ;;  %v2147_v42 = vpop.trf.xlu0  ;;  %v2692_v24 = vpop.trf.xlu1 }
 0x1b5   :  { %v3376_v36 = vld [vmem:[#allocation2 + $0x785] sm:$0x1]  ;;  %v3377_v51 = vld [vmem:[#allocation2 + $0x795] sm:$0x1]  ;;  %v3174_v52 = vrot.slane %v2830_v4, 2  ;;  %v3176_v18 = vrot.slane %v2831_v25, 1  ;;  %v3719_v23 = vsel %vm800_vm7, %v3718_v30, %v3717_v5  ;;  %v3167_v22 = vsel %vm788_vm2, %v3166_v21, %v3165_v0 }
 0x1b6   :  { %v3378_v37 = vld [vmem:[#allocation2 + $0x7a5] sm:$0x1]  ;;  %v3379_v16 = vld [vmem:[#allocation2 + $0x7b5] sm:$0x1]  ;;  %v3721_v29 = vsel %vm803_vm8, %v3720_v3, %v3719_v23  ;;  %v3169_v34 = vsel %vm791_vm4, %v3168_v11, %v3167_v22  ;;  %v3722_v14 = vrot.slane %v3377_v51, 7 }
 0x1b7   :  { %v3380_v15 = vld [vmem:[#allocation2 + $0x7c5] sm:$0x1]  ;;  %v3381_v31 = vld [vmem:[#allocation2 + $0x7d5] sm:$0x1]  ;;  %v3724_v7 = vrot.slane %v3378_v37, 6  ;;  %3766 = vxpose.xlu1.b32.cont [15/16] %v3721_v29, 128  ;;  %v3171_v59 = vsel %vm794_vm5, %v3170_v1, %v3169_v34  ;;  %v3726_v38 = vrot.slane %v3379_v16, 5 }
 0x1b8   :  { %v3382_v32 = vld [vmem:[#allocation2 + $0x7e5] sm:$0x1]  ;;  %v3383_v27 = vld [vmem:[#allocation2 + $0x7f5] sm:$0x1]  ;;  %v3728_v41 = vrot.slane %v3380_v15, 4  ;;  %v3730_v8 = vrot.slane %v3381_v31, 3  ;;  %v3173_v54 = vsel %vm797_vm6, %v3172_v60, %v3171_v59  ;;  %v3723_v43 = vsel %vm785_vm1, %v3722_v14, %v3376_v36  ;;  %v2148_v5 = vpop.trf.xlu0  ;;  %v2693_v0 = vpop.trf.xlu1 }
 0x1b9   :  { %v2832_v48 = vld [vmem:[#allocation2 + $0x784] sm:$0x1]  ;;  %v2833_v49 = vld [vmem:[#allocation2 + $0x794] sm:$0x1]  ;;  %v3732_v53 = vrot.slane %v3382_v32, 2  ;;  %v3734_v28 = vrot.slane %v3383_v27, 1  ;;  %v3175_v55 = vsel %vm800_vm7, %v3174_v52, %v3173_v54  ;;  %v3725_v33 = vsel %vm788_vm2, %v3724_v7, %v3723_v43 }
 0x1ba   :  { %v2834_v62 = vld [vmem:[#allocation2 + $0x7a4] sm:$0x1]  ;;  %v2835_v13 = vld [vmem:[#allocation2 + $0x7b4] sm:$0x1]  ;;  %v3177_v39 = vsel %vm803_vm8, %v3176_v18, %v3175_v55  ;;  %v3727_v35 = vsel %vm791_vm4, %v3726_v38, %v3725_v33  ;;  %v3178_v45 = vrot.slane %v2833_v49, 7 }
 0x1bb   :  { %v2836_v9 = vld [vmem:[#allocation2 + $0x7c4] sm:$0x1]  ;;  %v2837_v58 = vld [vmem:[#allocation2 + $0x7d4] sm:$0x1]  ;;  %v3180_v47 = vrot.slane %v2834_v62, 6  ;;  %3222 = vxpose.xlu0.b32.cont [15/16] %v3177_v39, 128  ;;  %v3729_v30 = vsel %vm794_vm5, %v3728_v41, %v3727_v35  ;;  %v3182_v3 = vrot.slane %v2835_v13, 5 }
 0x1bc   :  { %v2838_v20 = vld [vmem:[#allocation2 + $0x7e4] sm:$0x1]  ;;  %v2839_v50 = vld [vmem:[#allocation2 + $0x7f4] sm:$0x1]  ;;  %v3184_v2 = vrot.slane %v2836_v9, 4  ;;  %v3186_v56 = vrot.slane %v2837_v58, 3  ;;  %v3731_v6 = vsel %vm797_vm6, %v3730_v8, %v3729_v30  ;;  %v3179_v19 = vsel %vm785_vm1, %v3178_v45, %v2832_v48  ;;  %v2149_v54 = vpop.trf.xlu0  ;;  %v2694_v43 = vpop.trf.xlu1 }
 0x1bd   :  { %v4344_v12 = vld [vmem:[#allocation2 + $0x7] sm:$0x1]  ;;  %v4345_v61 = vld [vmem:[#allocation2 + $0x17] sm:$0x1]  ;;  %v3188_v4 = vrot.slane %v2838_v20, 2  ;;  %v3190_v40 = vrot.slane %v2839_v50, 1  ;;  %v3733_v26 = vsel %vm800_vm7, %v3732_v53, %v3731_v6  ;;  %v3181_v21 = vsel %vm788_vm2, %v3180_v47, %v3179_v19 }
 0x1be   :  { %v4346_v63 = vld [vmem:[#allocation2 + $0x27] sm:$0x1]  ;;  %v4347_v25 = vld [vmem:[#allocation2 + $0x37] sm:$0x1]  ;;  %v3735_v11 = vsel %vm803_vm8, %v3734_v28, %v3733_v26  ;;  %v3183_v1 = vsel %vm791_vm4, %v3182_v3, %v3181_v21  ;;  %v4600_v36 = vrot.slane %v4345_v61, 7 }
 0x1bf   :  { %v4348_v44 = vld [vmem:[#allocation2 + $0x47] sm:$0x1]  ;;  %v4349_v17 = vld [vmem:[#allocation2 + $0x57] sm:$0x1]  ;;  %v4602_v51 = vrot.slane %v4346_v63, 6  ;;  %3767 = vxpose.xlu1.b32.end [16/16] %v3735_v11, 128  ;;  %v3185_v52 = vsel %vm794_vm5, %v3184_v2, %v3183_v1  ;;  %v4604_v18 = vrot.slane %v4347_v25, 5 }
 0x1c0   :  { %v4350_v46 = vld [vmem:[#allocation2 + $0x67] sm:$0x1]  ;;  %v4351_v60 = vld [vmem:[#allocation2 + $0x77] sm:$0x1]  ;;  %v4606_v37 = vrot.slane %v4348_v44, 4  ;;  %v4608_v16 = vrot.slane %v4349_v17, 3  ;;  %v3187_v15 = vsel %vm797_vm6, %v3186_v56, %v3185_v52  ;;  %v4601_v31 = vsel %vm785_vm1, %v4600_v36, %v4344_v12  ;;  %v2150_v6 = vpop.trf.xlu0  ;;  %v2695_v19 = vpop.trf.xlu1 }
 0x1c1   :  { %v3800_v23 = vld [vmem:[#allocation2 + $0x6] sm:$0x1]  ;;  %v3801_v22 = vld [vmem:[#allocation2 + $0x16] sm:$0x1]  ;;  %v4610_v32 = vrot.slane %v4350_v46, 2  ;;  %v4612_v29 = vrot.slane %v4351_v60, 1  ;;  %v3189_v14 = vsel %vm800_vm7, %v3188_v4, %v3187_v15  ;;  %v4603_v7 = vsel %vm788_vm2, %v4602_v51, %v4601_v31 }
 0x1c2   :  { %v3802_v34 = vld [vmem:[#allocation2 + $0x26] sm:$0x1]  ;;  %v3803_v27 = vld [vmem:[#allocation2 + $0x36] sm:$0x1]  ;;  %v3191_v38 = vsel %vm803_vm8, %v3190_v40, %v3189_v14  ;;  %v4605_v41 = vsel %vm791_vm4, %v4604_v18, %v4603_v7  ;;  %v4056_v48 = vrot.slane %v3801_v22, 7 }
 0x1c3   :  { %v3804_v57 = vld [vmem:[#allocation2 + $0x46] sm:$0x1]  ;;  %v3805_v10 = vld [vmem:[#allocation2 + $0x56] sm:$0x1]  ;;  %v4058_v49 = vrot.slane %v3802_v34, 6  ;;  %3223 = vxpose.xlu0.b32.end [16/16] %v3191_v38, 128  ;;  %v4607_v53 = vsel %vm794_vm5, %v4606_v37, %v4605_v41  ;;  %v4060_v28 = vrot.slane %v3803_v27, 5 }
 0x1c4   :  { %v3806_v59 = vld [vmem:[#allocation2 + $0x66] sm:$0x1]  ;;  %v3807_v8 = vld [vmem:[#allocation2 + $0x76] sm:$0x1]  ;;  %v4062_v62 = vrot.slane %v3804_v57, 4  ;;  %v4064_v13 = vrot.slane %v3805_v10, 3  ;;  %v4609_v9 = vsel %vm797_vm6, %v4608_v16, %v4607_v53  ;;  %v4057_v58 = vsel %vm785_vm1, %v4056_v48, %v3800_v23  ;;  %v2151_v15 = vpop.trf.xlu0 }
 0x1c5   :  { %v4352_v55 = vld [vmem:[#allocation2 + $0x87] sm:$0x1]  ;;  %v4353_v33 = vld [vmem:[#allocation2 + $0x97] sm:$0x1]  ;;  %v4066_v20 = vrot.slane %v3806_v59, 2  ;;  %v4068_v39 = vrot.slane %v3807_v8, 1  ;;  %v4611_v45 = vsel %vm800_vm7, %v4610_v32, %v4609_v9  ;;  %v4059_v47 = vsel %vm788_vm2, %v4058_v49, %v4057_v58 }
 0x1c6   :  { %v4354_v35 = vld [vmem:[#allocation2 + $0xa7] sm:$0x1]  ;;  %v4355_v50 = vld [vmem:[#allocation2 + $0xb7] sm:$0x1]  ;;  %v4613_v3 = vsel %vm803_vm8, %v4612_v29, %v4611_v45  ;;  %v4061_v2 = vsel %vm791_vm4, %v4060_v28, %v4059_v47  ;;  %v4614_v12 = vrot.slane %v4353_v33, 7 }
 0x1c7   :  { %v4356_v42 = vld [vmem:[#allocation2 + $0xc7] sm:$0x1]  ;;  %v4357_v24 = vld [vmem:[#allocation2 + $0xd7] sm:$0x1]  ;;  %v4616_v61 = vrot.slane %v4354_v35, 6  ;;  %4840 = vxpose.xlu1.b32.start [1/16] %v4613_v3, 128  ;;  %v4063_v4 = vsel %vm794_vm5, %v4062_v62, %v4061_v2  ;;  %v4618_v40 = vrot.slane %v4355_v50, 5 }
 0x1c8   :  { %v4358_v30 = vld [vmem:[#allocation2 + $0xe7] sm:$0x1]  ;;  %v4359_v56 = vld [vmem:[#allocation2 + $0xf7] sm:$0x1]  ;;  %v4620_v63 = vrot.slane %v4356_v42, 4  ;;  %v4622_v25 = vrot.slane %v4357_v24, 3  ;;  %v4065_v44 = vsel %vm797_vm6, %v4064_v13, %v4063_v4  ;;  %v4615_v17 = vsel %vm785_vm1, %v4614_v12, %v4352_v55 }
 0x1c9   :  { %v3808_v26 = vld [vmem:[#allocation2 + $0x86] sm:$0x1]  ;;  %v3809_v21 = vld [vmem:[#allocation2 + $0x96] sm:$0x1]  ;;  %v4624_v46 = vrot.slane %v4358_v30, 2  ;;  %v4626_v11 = vrot.slane %v4359_v56, 1  ;;  %v4067_v36 = vsel %vm800_vm7, %v4066_v20, %v4065_v44  ;;  %v4617_v51 = vsel %vm788_vm2, %v4616_v61, %v4615_v17 }
 0x1ca   :  { %v3810_v1 = vld [vmem:[#allocation2 + $0xa6] sm:$0x1]  ;;  %v3811_v60 = vld [vmem:[#allocation2 + $0xb6] sm:$0x1]  ;;  %v4069_v18 = vsel %vm803_vm8, %v4068_v39, %v4067_v36  ;;  %v4619_v37 = vsel %vm791_vm4, %v4618_v40, %v4617_v51  ;;  %v4070_v23 = vrot.slane %v3809_v21, 7 }
 0x1cb   :  { %v3812_v5 = vld [vmem:[#allocation2 + $0xc6] sm:$0x1]  ;;  %v3813_v0 = vld [vmem:[#allocation2 + $0xd6] sm:$0x1]  ;;  %v4072_v22 = vrot.slane %v3810_v1, 6  ;;  %4296 = vxpose.xlu0.b32.start [1/16] %v4069_v18, 128  ;;  %v4621_v31 = vsel %vm794_vm5, %v4620_v63, %v4619_v37  ;;  %v4074_v32 = vrot.slane %v3811_v60, 5 }
 0x1cc   :  { %v3814_v52 = vld [vmem:[#allocation2 + $0xe6] sm:$0x1]  ;;  %v3815_v16 = vld [vmem:[#allocation2 + $0xf6] sm:$0x1]  ;;  %v4076_v29 = vrot.slane %v3812_v5, 4  ;;  %v4078_v34 = vrot.slane %v3813_v0, 3  ;;  %v4623_v7 = vsel %vm797_vm6, %v4622_v25, %v4621_v31  ;;  %v4071_v57 = vsel %vm785_vm1, %v4070_v23, %v3808_v26 }
 0x1cd   :  { %v4360_v27 = vld [vmem:[#allocation2 + $0x107] sm:$0x1]  ;;  %v4361_v14 = vld [vmem:[#allocation2 + $0x117] sm:$0x1]  ;;  %v4080_v10 = vrot.slane %v3814_v52, 2  ;;  %v4082_v59 = vrot.slane %v3815_v16, 1  ;;  %v4625_v8 = vsel %vm800_vm7, %v4624_v46, %v4623_v7  ;;  %v4073_v48 = vsel %vm788_vm2, %v4072_v22, %v4071_v57 }
 0x1ce   :  { %v4362_v38 = vld [vmem:[#allocation2 + $0x127] sm:$0x1]  ;;  %v4363_v41 = vld [vmem:[#allocation2 + $0x137] sm:$0x1]  ;;  %v4627_v53 = vsel %vm803_vm8, %v4626_v11, %v4625_v8  ;;  %v4075_v28 = vsel %vm791_vm4, %v4074_v32, %v4073_v48  ;;  %v4628_v13 = vrot.slane %v4361_v14, 7 }
 0x1cf   :  { %v4364_v49 = vld [vmem:[#allocation2 + $0x147] sm:$0x1]  ;;  %v4365_v54 = vld [vmem:[#allocation2 + $0x157] sm:$0x1]  ;;  %v4630_v55 = vrot.slane %v4362_v38, 6  ;;  %4841 = vxpose.xlu1.b32.cont [2/16] %v4627_v53, 128  ;;  %v4077_v33 = vsel %vm794_vm5, %v4076_v29, %v4075_v28  ;;  %v4632_v9 = vrot.slane %v4363_v41, 5 }
 0x1d0   :  { %v4366_v43 = vld [vmem:[#allocation2 + $0x167] sm:$0x1]  ;;  %v4367_v62 = vld [vmem:[#allocation2 + $0x177] sm:$0x1]  ;;  %v4634_v58 = vrot.slane %v4364_v49, 4  ;;  %v4636_v20 = vrot.slane %v4365_v54, 3  ;;  %v4079_v50 = vsel %vm797_vm6, %v4078_v34, %v4077_v33  ;;  %v4629_v45 = vsel %vm785_vm1, %v4628_v13, %v4360_v27 }
 0x1d1   :  { %v3816_v39 = vld [vmem:[#allocation2 + $0x106] sm:$0x1]  ;;  %v3817_v35 = vld [vmem:[#allocation2 + $0x116] sm:$0x1]  ;;  %v4638_v47 = vrot.slane %v4366_v43, 2  ;;  %v4640_v42 = vrot.slane %v4367_v62, 1  ;;  %v4081_v3 = vsel %vm800_vm7, %v4080_v10, %v4079_v50  ;;  %v4631_v2 = vsel %vm788_vm2, %v4630_v55, %v4629_v45 }
 0x1d2   :  { %v3818_v24 = vld [vmem:[#allocation2 + $0x126] sm:$0x1]  ;;  %v3819_v30 = vld [vmem:[#allocation2 + $0x136] sm:$0x1]  ;;  %v4083_v6 = vsel %vm803_vm8, %v4082_v59, %v4081_v3  ;;  %v4633_v19 = vsel %vm791_vm4, %v4632_v9, %v4631_v2  ;;  %v4084_v40 = vrot.slane %v3817_v35, 7 }
 0x1d3   :  { %v3820_v56 = vld [vmem:[#allocation2 + $0x146] sm:$0x1]  ;;  %v3821_v12 = vld [vmem:[#allocation2 + $0x156] sm:$0x1]  ;;  %v4086_v63 = vrot.slane %v3818_v24, 6  ;;  %4297 = vxpose.xlu0.b32.cont [2/16] %v4083_v6, 128  ;;  %v4635_v25 = vsel %vm794_vm5, %v4634_v58, %v4633_v19  ;;  %v4088_v26 = vrot.slane %v3819_v30, 5 }
 0x1d4   :  { %v3822_v61 = vld [vmem:[#allocation2 + $0x166] sm:$0x1]  ;;  %v3823_v4 = vld [vmem:[#allocation2 + $0x176] sm:$0x1]  ;;  %v4090_v21 = vrot.slane %v3820_v56, 4  ;;  %v4092_v44 = vrot.slane %v3821_v12, 3  ;;  %v4637_v11 = vsel %vm797_vm6, %v4636_v20, %v4635_v25  ;;  %v4085_v1 = vsel %vm785_vm1, %v4084_v40, %v3816_v39 }
 0x1d5   :  { %v4368_v17 = vld [vmem:[#allocation2 + $0x187] sm:$0x1]  ;;  %v4369_v46 = vld [vmem:[#allocation2 + $0x197] sm:$0x1]  ;;  %v4094_v60 = vrot.slane %v3822_v61, 2  ;;  %v4096_v36 = vrot.slane %v3823_v4, 1  ;;  %v4639_v0 = vsel %vm800_vm7, %v4638_v47, %v4637_v11  ;;  %v4087_v52 = vsel %vm788_vm2, %v4086_v63, %v4085_v1 }
 0x1d6   :  { %v4370_v51 = vld [vmem:[#allocation2 + $0x1a7] sm:$0x1]  ;;  %v4371_v5 = vld [vmem:[#allocation2 + $0x1b7] sm:$0x1]  ;;  %v4641_v23 = vsel %vm803_vm8, %v4640_v42, %v4639_v0  ;;  %v4089_v22 = vsel %vm791_vm4, %v4088_v26, %v4087_v52  ;;  %v4642_v31 = vrot.slane %v4369_v46, 7 }
 0x1d7   :  { %v4372_v18 = vld [vmem:[#allocation2 + $0x1c7] sm:$0x1]  ;;  %v4373_v37 = vld [vmem:[#allocation2 + $0x1d7] sm:$0x1]  ;;  %v4644_v32 = vrot.slane %v4370_v51, 6  ;;  %4842 = vxpose.xlu1.b32.cont [3/16] %v4641_v23, 128  ;;  %v4091_v29 = vsel %vm794_vm5, %v4090_v21, %v4089_v22  ;;  %v4646_v34 = vrot.slane %v4371_v5, 5 }
 0x1d8   :  { %v4374_v16 = vld [vmem:[#allocation2 + $0x1e7] sm:$0x1]  ;;  %v4375_v15 = vld [vmem:[#allocation2 + $0x1f7] sm:$0x1]  ;;  %v4648_v27 = vrot.slane %v4372_v18, 4  ;;  %v4650_v14 = vrot.slane %v4373_v37, 3  ;;  %v4093_v10 = vsel %vm797_vm6, %v4092_v44, %v4091_v29  ;;  %v4643_v59 = vsel %vm785_vm1, %v4642_v31, %v4368_v17 }
 0x1d9   :  { %v3824_v7 = vld [vmem:[#allocation2 + $0x186] sm:$0x1]  ;;  %v3825_v57 = vld [vmem:[#allocation2 + $0x196] sm:$0x1]  ;;  %v4652_v38 = vrot.slane %v4374_v16, 2  ;;  %v4654_v41 = vrot.slane %v4375_v15, 1  ;;  %v4095_v49 = vsel %vm800_vm7, %v4094_v60, %v4093_v10  ;;  %v4645_v54 = vsel %vm788_vm2, %v4644_v32, %v4643_v59 }
 0x1da   :  { %v3826_v8 = vld [vmem:[#allocation2 + $0x1a6] sm:$0x1]  ;;  %v3827_v48 = vld [vmem:[#allocation2 + $0x1b6] sm:$0x1]  ;;  %v4097_v62 = vsel %vm803_vm8, %v4096_v36, %v4095_v49  ;;  %v4647_v13 = vsel %vm791_vm4, %v4646_v34, %v4645_v54  ;;  %v4098_v33 = vrot.slane %v3825_v57, 7 }
 0x1db   :  { %v3828_v43 = vld [vmem:[#allocation2 + $0x1c6] sm:$0x1]  ;;  %v3829_v53 = vld [vmem:[#allocation2 + $0x1d6] sm:$0x1]  ;;  %v4100_v9 = vrot.slane %v3826_v8, 6  ;;  %4298 = vxpose.xlu0.b32.cont [3/16] %v4097_v62, 128  ;;  %v4649_v58 = vsel %vm794_vm5, %v4648_v27, %v4647_v13  ;;  %v4102_v20 = vrot.slane %v3827_v48, 5 }
 0x1dc   :  { %v3830_v28 = vld [vmem:[#allocation2 + $0x1e6] sm:$0x1]  ;;  %v3831_v55 = vld [vmem:[#allocation2 + $0x1f6] sm:$0x1]  ;;  %v4104_v39 = vrot.slane %v3828_v43, 4  ;;  %v4106_v35 = vrot.slane %v3829_v53, 3  ;;  %v4651_v47 = vsel %vm797_vm6, %v4650_v14, %v4649_v58  ;;  %v4099_v42 = vsel %vm785_vm1, %v4098_v33, %v3824_v7 }
 0x1dd   :  { %v4376_v50 = vld [vmem:[#allocation2 + $0x207] sm:$0x1]  ;;  %v4377_v45 = vld [vmem:[#allocation2 + $0x217] sm:$0x1]  ;;  %v4108_v24 = vrot.slane %v3830_v28, 2  ;;  %v4110_v30 = vrot.slane %v3831_v55, 1  ;;  %v4653_v56 = vsel %vm800_vm7, %v4652_v38, %v4651_v47  ;;  %v4101_v12 = vsel %vm788_vm2, %v4100_v9, %v4099_v42 }
 0x1de   :  { %v4378_v3 = vld [vmem:[#allocation2 + $0x227] sm:$0x1]  ;;  %v4379_v2 = vld [vmem:[#allocation2 + $0x237] sm:$0x1]  ;;  %v4655_v4 = vsel %vm803_vm8, %v4654_v41, %v4653_v56  ;;  %v4103_v40 = vsel %vm791_vm4, %v4102_v20, %v4101_v12  ;;  %v4656_v25 = vrot.slane %v4377_v45, 7 }
 0x1df   :  { %v4380_v61 = vld [vmem:[#allocation2 + $0x247] sm:$0x1]  ;;  %v4381_v6 = vld [vmem:[#allocation2 + $0x257] sm:$0x1]  ;;  %v4658_v26 = vrot.slane %v4378_v3, 6  ;;  %4843 = vxpose.xlu1.b32.cont [4/16] %v4655_v4, 128  ;;  %v4105_v21 = vsel %vm794_vm5, %v4104_v39, %v4103_v40  ;;  %v4660_v44 = vrot.slane %v4379_v2, 5 }
 0x1e0   :  { %v4382_v19 = vld [vmem:[#allocation2 + $0x267] sm:$0x1]  ;;  %v4383_v63 = vld [vmem:[#allocation2 + $0x277] sm:$0x1]  ;;  %v4662_v17 = vrot.slane %v4380_v61, 4  ;;  %v4664_v46 = vrot.slane %v4381_v6, 3  ;;  %v4107_v60 = vsel %vm797_vm6, %v4106_v35, %v4105_v21  ;;  %v4657_v36 = vsel %vm785_vm1, %v4656_v25, %v4376_v50 }
 0x1e1   :  { %v3832_v11 = vld [vmem:[#allocation2 + $0x206] sm:$0x1]  ;;  %v3833_v1 = vld [vmem:[#allocation2 + $0x216] sm:$0x1]  ;;  %v4666_v51 = vrot.slane %v4382_v19, 2  ;;  %v4668_v5 = vrot.slane %v4383_v63, 1  ;;  %v4109_v18 = vsel %vm800_vm7, %v4108_v24, %v4107_v60  ;;  %v4659_v37 = vsel %vm788_vm2, %v4658_v26, %v4657_v36 }
 0x1e2   :  { %v3834_v0 = vld [vmem:[#allocation2 + $0x226] sm:$0x1]  ;;  %v3835_v52 = vld [vmem:[#allocation2 + $0x236] sm:$0x1]  ;;  %v4111_v15 = vsel %vm803_vm8, %v4110_v30, %v4109_v18  ;;  %v4661_v31 = vsel %vm791_vm4, %v4660_v44, %v4659_v37  ;;  %v4112_v29 = vrot.slane %v3833_v1, 7 }
 0x1e3   :  { %v3836_v16 = vld [vmem:[#allocation2 + $0x246] sm:$0x1]  ;;  %v3837_v23 = vld [vmem:[#allocation2 + $0x256] sm:$0x1]  ;;  %v4114_v34 = vrot.slane %v3834_v0, 6  ;;  %4299 = vxpose.xlu0.b32.cont [4/16] %v4111_v15, 128  ;;  %v4663_v27 = vsel %vm794_vm5, %v4662_v17, %v4661_v31  ;;  %v4116_v14 = vrot.slane %v3835_v52, 5 }
 0x1e4   :  { %v3838_v22 = vld [vmem:[#allocation2 + $0x266] sm:$0x1]  ;;  %v3839_v32 = vld [vmem:[#allocation2 + $0x276] sm:$0x1]  ;;  %v4118_v7 = vrot.slane %v3836_v16, 4  ;;  %v4120_v57 = vrot.slane %v3837_v23, 3  ;;  %v4665_v38 = vsel %vm797_vm6, %v4664_v46, %v4663_v27  ;;  %v4113_v41 = vsel %vm785_vm1, %v4112_v29, %v3832_v11 }
 0x1e5   :  { %v4384_v10 = vld [vmem:[#allocation2 + $0x287] sm:$0x1]  ;;  %v4385_v59 = vld [vmem:[#allocation2 + $0x297] sm:$0x1]  ;;  %v4122_v8 = vrot.slane %v3838_v22, 2  ;;  %v4124_v48 = vrot.slane %v3839_v32, 1  ;;  %v4667_v43 = vsel %vm800_vm7, %v4666_v51, %v4665_v38  ;;  %v4115_v53 = vsel %vm788_vm2, %v4114_v34, %v4113_v41 }
 0x1e6   :  { %v4386_v49 = vld [vmem:[#allocation2 + $0x2a7] sm:$0x1]  ;;  %v4387_v54 = vld [vmem:[#allocation2 + $0x2b7] sm:$0x1]  ;;  %v4669_v55 = vsel %vm803_vm8, %v4668_v5, %v4667_v43  ;;  %v4117_v33 = vsel %vm791_vm4, %v4116_v14, %v4115_v53  ;;  %v4670_v58 = vrot.slane %v4385_v59, 7 }
 0x1e7   :  { %v4388_v28 = vld [vmem:[#allocation2 + $0x2c7] sm:$0x1]  ;;  %v4389_v62 = vld [vmem:[#allocation2 + $0x2d7] sm:$0x1]  ;;  %v4672_v20 = vrot.slane %v4386_v49, 6  ;;  %4844 = vxpose.xlu1.b32.cont [5/16] %v4669_v55, 128  ;;  %v4119_v39 = vsel %vm794_vm5, %v4118_v7, %v4117_v33  ;;  %v4674_v35 = vrot.slane %v4387_v54, 5 }
 0x1e8   :  { %v4390_v13 = vld [vmem:[#allocation2 + $0x2e7] sm:$0x1]  ;;  %v4391_v9 = vld [vmem:[#allocation2 + $0x2f7] sm:$0x1]  ;;  %v4676_v50 = vrot.slane %v4388_v28, 4  ;;  %v4678_v45 = vrot.slane %v4389_v62, 3  ;;  %v4121_v24 = vsel %vm797_vm6, %v4120_v57, %v4119_v39  ;;  %v4671_v30 = vsel %vm785_vm1, %v4670_v58, %v4384_v10 }
 0x1e9   :  { %v3840_v47 = vld [vmem:[#allocation2 + $0x286] sm:$0x1]  ;;  %v3841_v42 = vld [vmem:[#allocation2 + $0x296] sm:$0x1]  ;;  %v4680_v3 = vrot.slane %v4390_v13, 2  ;;  %v4682_v2 = vrot.slane %v4391_v9, 1  ;;  %v4123_v61 = vsel %vm800_vm7, %v4122_v8, %v4121_v24  ;;  %v4673_v6 = vsel %vm788_vm2, %v4672_v20, %v4671_v30 }
 0x1ea   :  { %v3842_v56 = vld [vmem:[#allocation2 + $0x2a6] sm:$0x1]  ;;  %v3843_v12 = vld [vmem:[#allocation2 + $0x2b6] sm:$0x1]  ;;  %v4125_v63 = vsel %vm803_vm8, %v4124_v48, %v4123_v61  ;;  %v4675_v25 = vsel %vm791_vm4, %v4674_v35, %v4673_v6  ;;  %v4126_v21 = vrot.slane %v3841_v42, 7 }
 0x1eb   :  { %v3844_v19 = vld [vmem:[#allocation2 + $0x2c6] sm:$0x1]  ;;  %v3845_v4 = vld [vmem:[#allocation2 + $0x2d6] sm:$0x1]  ;;  %v4128_v44 = vrot.slane %v3842_v56, 6  ;;  %4300 = vxpose.xlu0.b32.cont [5/16] %v4125_v63, 128  ;;  %v4677_v17 = vsel %vm794_vm5, %v4676_v50, %v4675_v25  ;;  %v4130_v46 = vrot.slane %v3843_v12, 5 }
 0x1ec   :  { %v3846_v40 = vld [vmem:[#allocation2 + $0x2e6] sm:$0x1]  ;;  %v3847_v26 = vld [vmem:[#allocation2 + $0x2f6] sm:$0x1]  ;;  %v4132_v11 = vrot.slane %v3844_v19, 4  ;;  %v4134_v1 = vrot.slane %v3845_v4, 3  ;;  %v4679_v51 = vsel %vm797_vm6, %v4678_v45, %v4677_v17  ;;  %v4127_v5 = vsel %vm785_vm1, %v4126_v21, %v3840_v47 }
 0x1ed   :  { %v4392_v60 = vld [vmem:[#allocation2 + $0x307] sm:$0x1]  ;;  %v4393_v36 = vld [vmem:[#allocation2 + $0x317] sm:$0x1]  ;;  %v4136_v0 = vrot.slane %v3846_v40, 2  ;;  %v4138_v52 = vrot.slane %v3847_v26, 1  ;;  %v4681_v16 = vsel %vm800_vm7, %v4680_v3, %v4679_v51  ;;  %v4129_v23 = vsel %vm788_vm2, %v4128_v44, %v4127_v5 }
 0x1ee   :  { %v4394_v18 = vld [vmem:[#allocation2 + $0x327] sm:$0x1]  ;;  %v4395_v37 = vld [vmem:[#allocation2 + $0x337] sm:$0x1]  ;;  %v4683_v32 = vsel %vm803_vm8, %v4682_v2, %v4681_v16  ;;  %v4131_v29 = vsel %vm791_vm4, %v4130_v46, %v4129_v23  ;;  %v4684_v27 = vrot.slane %v4393_v36, 7 }
 0x1ef   :  { %v4396_v22 = vld [vmem:[#allocation2 + $0x347] sm:$0x1]  ;;  %v4397_v15 = vld [vmem:[#allocation2 + $0x357] sm:$0x1]  ;;  %v4686_v14 = vrot.slane %v4394_v18, 6  ;;  %4845 = vxpose.xlu1.b32.cont [6/16] %v4683_v32, 128  ;;  %v4133_v7 = vsel %vm794_vm5, %v4132_v11, %v4131_v29  ;;  %v4688_v57 = vrot.slane %v4395_v37, 5 }
 0x1f0   :  { %v4398_v31 = vld [vmem:[#allocation2 + $0x367] sm:$0x1]  ;;  %v4399_v34 = vld [vmem:[#allocation2 + $0x377] sm:$0x1]  ;;  %v4690_v10 = vrot.slane %v4396_v22, 4  ;;  %v4692_v59 = vrot.slane %v4397_v15, 3  ;;  %v4135_v8 = vsel %vm797_vm6, %v4134_v1, %v4133_v7  ;;  %v4685_v48 = vsel %vm785_vm1, %v4684_v27, %v4392_v60 }
 0x1f1   :  { %v3848_v38 = vld [vmem:[#allocation2 + $0x306] sm:$0x1]  ;;  %v3849_v41 = vld [vmem:[#allocation2 + $0x316] sm:$0x1]  ;;  %v4694_v49 = vrot.slane %v4398_v31, 2  ;;  %v4696_v54 = vrot.slane %v4399_v34, 1  ;;  %v4137_v28 = vsel %vm800_vm7, %v4136_v0, %v4135_v8  ;;  %v4687_v62 = vsel %vm788_vm2, %v4686_v14, %v4685_v48 }
 0x1f2   :  { %v3850_v43 = vld [vmem:[#allocation2 + $0x326] sm:$0x1]  ;;  %v3851_v53 = vld [vmem:[#allocation2 + $0x336] sm:$0x1]  ;;  %v4139_v9 = vsel %vm803_vm8, %v4138_v52, %v4137_v28  ;;  %v4689_v58 = vsel %vm791_vm4, %v4688_v57, %v4687_v62  ;;  %v4140_v39 = vrot.slane %v3849_v41, 7 }
 0x1f3   :  { %v3852_v13 = vld [vmem:[#allocation2 + $0x346] sm:$0x1]  ;;  %v3853_v55 = vld [vmem:[#allocation2 + $0x356] sm:$0x1]  ;;  %v4142_v35 = vrot.slane %v3850_v43, 6  ;;  %4301 = vxpose.xlu0.b32.cont [6/16] %v4139_v9, 128  ;;  %v4691_v50 = vsel %vm794_vm5, %v4690_v10, %v4689_v58  ;;  %v4144_v45 = vrot.slane %v3851_v53, 5 }
 0x1f4   :  { %v3854_v33 = vld [vmem:[#allocation2 + $0x366] sm:$0x1]  ;;  %v3855_v20 = vld [vmem:[#allocation2 + $0x376] sm:$0x1]  ;;  %v4146_v47 = vrot.slane %v3852_v13, 4  ;;  %v4148_v42 = vrot.slane %v3853_v55, 3  ;;  %v4693_v3 = vsel %vm797_vm6, %v4692_v59, %v4691_v50  ;;  %v4141_v2 = vsel %vm785_vm1, %v4140_v39, %v3848_v38 }
 0x1f5   :  { %v4400_v24 = vld [vmem:[#allocation2 + $0x387] sm:$0x1]  ;;  %v4401_v30 = vld [vmem:[#allocation2 + $0x397] sm:$0x1]  ;;  %v4150_v56 = vrot.slane %v3854_v33, 2  ;;  %v4152_v12 = vrot.slane %v3855_v20, 1  ;;  %v4695_v19 = vsel %vm800_vm7, %v4694_v49, %v4693_v3  ;;  %v4143_v4 = vsel %vm788_vm2, %v4142_v35, %v4141_v2 }
 0x1f6   :  { %v4402_v61 = vld [vmem:[#allocation2 + $0x3a7] sm:$0x1]  ;;  %v4403_v6 = vld [vmem:[#allocation2 + $0x3b7] sm:$0x1]  ;;  %v4697_v26 = vsel %vm803_vm8, %v4696_v54, %v4695_v19  ;;  %v4145_v21 = vsel %vm791_vm4, %v4144_v45, %v4143_v4  ;;  %v4698_v17 = vrot.slane %v4401_v30, 7 }
 0x1f7   :  { %v4404_v40 = vld [vmem:[#allocation2 + $0x3c7] sm:$0x1]  ;;  %v4405_v63 = vld [vmem:[#allocation2 + $0x3d7] sm:$0x1]  ;;  %v4700_v46 = vrot.slane %v4402_v61, 6  ;;  %4846 = vxpose.xlu1.b32.cont [7/16] %v4697_v26, 128  ;;  %v4147_v11 = vsel %vm794_vm5, %v4146_v47, %v4145_v21  ;;  %v4702_v1 = vrot.slane %v4403_v6, 5 }
 0x1f8   :  { %v4406_v25 = vld [vmem:[#allocation2 + $0x3e7] sm:$0x1]  ;;  %v4407_v44 = vld [vmem:[#allocation2 + $0x3f7] sm:$0x1]  ;;  %v4704_v60 = vrot.slane %v4404_v40, 4  ;;  %v4706_v36 = vrot.slane %v4405_v63, 3  ;;  %v4149_v0 = vsel %vm797_vm6, %v4148_v42, %v4147_v11  ;;  %v4699_v52 = vsel %vm785_vm1, %v4698_v17, %v4400_v24 }
 0x1f9   :  { %v3856_v51 = vld [vmem:[#allocation2 + $0x386] sm:$0x1]  ;;  %v3857_v5 = vld [vmem:[#allocation2 + $0x396] sm:$0x1]  ;;  %v4708_v18 = vrot.slane %v4406_v25, 2  ;;  %v4710_v37 = vrot.slane %v4407_v44, 1  ;;  %v4151_v22 = vsel %vm800_vm7, %v4150_v56, %v4149_v0  ;;  %v4701_v15 = vsel %vm788_vm2, %v4700_v46, %v4699_v52 }
 0x1fa   :  { %v3858_v16 = vld [vmem:[#allocation2 + $0x3a6] sm:$0x1]  ;;  %v3859_v23 = vld [vmem:[#allocation2 + $0x3b6] sm:$0x1]  ;;  %v4153_v34 = vsel %vm803_vm8, %v4152_v12, %v4151_v22  ;;  %v4703_v27 = vsel %vm791_vm4, %v4702_v1, %v4701_v15  ;;  %v4154_v7 = vrot.slane %v3857_v5, 7 }
 0x1fb   :  { %v3860_v31 = vld [vmem:[#allocation2 + $0x3c6] sm:$0x1]  ;;  %v3861_v32 = vld [vmem:[#allocation2 + $0x3d6] sm:$0x1]  ;;  %v4156_v57 = vrot.slane %v3858_v16, 6  ;;  %4302 = vxpose.xlu0.b32.cont [7/16] %v4153_v34, 128  ;;  %v4705_v10 = vsel %vm794_vm5, %v4704_v60, %v4703_v27  ;;  %v4158_v59 = vrot.slane %v3859_v23, 5 }
 0x1fc   :  { %v3862_v29 = vld [vmem:[#allocation2 + $0x3e6] sm:$0x1]  ;;  %v3863_v14 = vld [vmem:[#allocation2 + $0x3f6] sm:$0x1]  ;;  %v4160_v38 = vrot.slane %v3860_v31, 4  ;;  %v4162_v41 = vrot.slane %v3861_v32, 3  ;;  %v4707_v49 = vsel %vm797_vm6, %v4706_v36, %v4705_v10  ;;  %v4155_v54 = vsel %vm785_vm1, %v4154_v7, %v3856_v51 }
 0x1fd   :  { %v4408_v8 = vld [vmem:[#allocation2 + $0x407] sm:$0x1]  ;;  %v4409_v48 = vld [vmem:[#allocation2 + $0x417] sm:$0x1]  ;;  %v4164_v43 = vrot.slane %v3862_v29, 2  ;;  %v4166_v53 = vrot.slane %v3863_v14, 1  ;;  %v4709_v13 = vsel %vm800_vm7, %v4708_v18, %v4707_v49  ;;  %v4157_v55 = vsel %vm788_vm2, %v4156_v57, %v4155_v54 }
 0x1fe   :  { %v4410_v28 = vld [vmem:[#allocation2 + $0x427] sm:$0x1]  ;;  %v4411_v62 = vld [vmem:[#allocation2 + $0x437] sm:$0x1]  ;;  %v4711_v20 = vsel %vm803_vm8, %v4710_v37, %v4709_v13  ;;  %v4159_v39 = vsel %vm791_vm4, %v4158_v59, %v4157_v55  ;;  %v4712_v50 = vrot.slane %v4409_v48, 7 }
 0x1ff   :  { %v4412_v33 = vld [vmem:[#allocation2 + $0x447] sm:$0x1]  ;;  %v4413_v9 = vld [vmem:[#allocation2 + $0x457] sm:$0x1]  ;;  %v4714_v45 = vrot.slane %v4410_v28, 6  ;;  %4847 = vxpose.xlu1.b32.cont [8/16] %v4711_v20, 128  ;;  %v4161_v47 = vsel %vm794_vm5, %v4160_v38, %v4159_v39  ;;  %v4716_v42 = vrot.slane %v4411_v62, 5 }
 0x200   :  { %v4414_v58 = vld [vmem:[#allocation2 + $0x467] sm:$0x1]  ;;  %v4415_v35 = vld [vmem:[#allocation2 + $0x477] sm:$0x1]  ;;  %v4718_v24 = vrot.slane %v4412_v33, 4  ;;  %v4720_v30 = vrot.slane %v4413_v9, 3  ;;  %v4163_v56 = vsel %vm797_vm6, %v4162_v41, %v4161_v47  ;;  %v4713_v12 = vsel %vm785_vm1, %v4712_v50, %v4408_v8 }
 0x201   :  { %v3864_v3 = vld [vmem:[#allocation2 + $0x406] sm:$0x1]  ;;  %v3865_v2 = vld [vmem:[#allocation2 + $0x416] sm:$0x1]  ;;  %v4722_v61 = vrot.slane %v4414_v58, 2  ;;  %v4724_v6 = vrot.slane %v4415_v35, 1  ;;  %v4165_v40 = vsel %vm800_vm7, %v4164_v43, %v4163_v56  ;;  %v4715_v63 = vsel %vm788_vm2, %v4714_v45, %v4713_v12 }
 0x202   :  { %v3866_v19 = vld [vmem:[#allocation2 + $0x426] sm:$0x1]  ;;  %v3867_v4 = vld [vmem:[#allocation2 + $0x436] sm:$0x1]  ;;  %v4167_v44 = vsel %vm803_vm8, %v4166_v53, %v4165_v40  ;;  %v4717_v17 = vsel %vm791_vm4, %v4716_v42, %v4715_v63  ;;  %v4168_v11 = vrot.slane %v3865_v2, 7 }
 0x203   :  { %v3868_v25 = vld [vmem:[#allocation2 + $0x446] sm:$0x1]  ;;  %v3869_v26 = vld [vmem:[#allocation2 + $0x456] sm:$0x1]  ;;  %v4170_v1 = vrot.slane %v3866_v19, 6  ;;  %4303 = vxpose.xlu0.b32.cont [8/16] %v4167_v44, 128  ;;  %v4719_v60 = vsel %vm794_vm5, %v4718_v24, %v4717_v17  ;;  %v4172_v36 = vrot.slane %v3867_v4, 5  ;;  %v3768_v18 = vpop.trf.xlu1 }
 0x204   :  { %v3870_v21 = vld [vmem:[#allocation2 + $0x466] sm:$0x1]  ;;  %v3871_v46 = vld [vmem:[#allocation2 + $0x476] sm:$0x1]  ;;  %v4174_v51 = vrot.slane %v3868_v25, 4  ;;  %v4176_v5 = vrot.slane %v3869_v26, 3  ;;  %v4721_v37 = vsel %vm797_vm6, %v4720_v30, %v4719_v60  ;;  %v4169_v16 = vsel %vm785_vm1, %v4168_v11, %v3864_v3 }
 0x205   :  { %v4416_v0 = vld [vmem:[#allocation2 + $0x487] sm:$0x1]  ;;  %v4417_v52 = vld [vmem:[#allocation2 + $0x497] sm:$0x1]  ;;  %v4178_v23 = vrot.slane %v3870_v21, 2  ;;  %v4180_v22 = vrot.slane %v3871_v46, 1  ;;  %v4723_v32 = vsel %vm800_vm7, %v4722_v61, %v4721_v37  ;;  %v4171_v29 = vsel %vm788_vm2, %v4170_v1, %v4169_v16 }
 0x206   :  { %v4418_v15 = vld [vmem:[#allocation2 + $0x4a7] sm:$0x1]  ;;  %v4419_v31 = vld [vmem:[#allocation2 + $0x4b7] sm:$0x1]  ;;  %v4725_v7 = vsel %vm803_vm8, %v4724_v6, %v4723_v32  ;;  %v4173_v57 = vsel %vm791_vm4, %v4172_v36, %v4171_v29  ;;  %v4726_v59 = vrot.slane %v4417_v52, 7 }
 0x207   :  { %v4420_v34 = vld [vmem:[#allocation2 + $0x4c7] sm:$0x1]  ;;  %v4421_v27 = vld [vmem:[#allocation2 + $0x4d7] sm:$0x1]  ;;  %v4728_v38 = vrot.slane %v4418_v15, 6  ;;  %4848 = vxpose.xlu1.b32.cont [9/16] %v4725_v7, 128  ;;  %v4175_v41 = vsel %vm794_vm5, %v4174_v51, %v4173_v57  ;;  %v4730_v8 = vrot.slane %v4419_v31, 5  ;;  %v3224_v53 = vpop.trf.xlu0  ;;  %v3769_v28 = vpop.trf.xlu1 }
 0x208   :  { %v4422_v14 = vld [vmem:[#allocation2 + $0x4e7] sm:$0x1]  ;;  %v4423_v10 = vld [vmem:[#allocation2 + $0x4f7] sm:$0x1]  ;;  %v4732_v48 = vrot.slane %v4420_v34, 4  ;;  %v4734_v49 = vrot.slane %v4421_v27, 3  ;;  %v4177_v62 = vsel %vm797_vm6, %v4176_v5, %v4175_v41  ;;  %v4727_v13 = vsel %vm785_vm1, %v4726_v59, %v4416_v0 }
 0x209   :  { %v3872_v54 = vld [vmem:[#allocation2 + $0x486] sm:$0x1]  ;;  %v3873_v43 = vld [vmem:[#allocation2 + $0x496] sm:$0x1]  ;;  %v4736_v55 = vrot.slane %v4422_v14, 2  ;;  %v4738_v33 = vrot.slane %v4423_v10, 1  ;;  %v4179_v20 = vsel %vm800_vm7, %v4178_v23, %v4177_v62  ;;  %v4729_v39 = vsel %vm788_vm2, %v4728_v38, %v4727_v13 }
 0x20a   :  { %v3874_v9 = vld [vmem:[#allocation2 + $0x4a6] sm:$0x1]  ;;  %v3875_v58 = vld [vmem:[#allocation2 + $0x4b6] sm:$0x1]  ;;  %v4181_v47 = vsel %vm803_vm8, %v4180_v22, %v4179_v20  ;;  %v4731_v42 = vsel %vm791_vm4, %v4730_v8, %v4729_v39  ;;  %v4182_v30 = vrot.slane %v3873_v43, 7 }
 0x20b   :  { %v3876_v35 = vld [vmem:[#allocation2 + $0x4c6] sm:$0x1]  ;;  %v3877_v50 = vld [vmem:[#allocation2 + $0x4d6] sm:$0x1]  ;;  %v4184_v3 = vrot.slane %v3874_v9, 6  ;;  %4304 = vxpose.xlu0.b32.cont [9/16] %v4181_v47, 128  ;;  %v4733_v2 = vsel %vm794_vm5, %v4732_v48, %v4731_v42  ;;  %v4186_v56 = vrot.slane %v3875_v58, 5  ;;  %v3225_v4 = vpop.trf.xlu0  ;;  %v3770_v40 = vpop.trf.xlu1 }
 0x20c   :  { %v3878_v45 = vld [vmem:[#allocation2 + $0x4e6] sm:$0x1]  ;;  %v3879_v24 = vld [vmem:[#allocation2 + $0x4f6] sm:$0x1]  ;;  %v4188_v12 = vrot.slane %v3876_v35, 4  ;;  %v4190_v61 = vrot.slane %v3877_v50, 3  ;;  %v4735_v63 = vsel %vm797_vm6, %v4734_v49, %v4733_v2  ;;  %v4183_v25 = vsel %vm785_vm1, %v4182_v30, %v3872_v54 }
 0x20d   :  { %v4424_v6 = vld [vmem:[#allocation2 + $0x507] sm:$0x1]  ;;  %v4425_v19 = vld [vmem:[#allocation2 + $0x517] sm:$0x1]  ;;  %v4192_v26 = vrot.slane %v3878_v45, 2  ;;  %v4194_v21 = vrot.slane %v3879_v24, 1  ;;  %v4737_v46 = vsel %vm800_vm7, %v4736_v55, %v4735_v63  ;;  %v4185_v11 = vsel %vm788_vm2, %v4184_v3, %v4183_v25 }
 0x20e   :  { %v4426_v44 = vld [vmem:[#allocation2 + $0x527] sm:$0x1]  ;;  %v4427_v17 = vld [vmem:[#allocation2 + $0x537] sm:$0x1]  ;;  %v4739_v51 = vsel %vm803_vm8, %v4738_v33, %v4737_v46  ;;  %v4187_v5 = vsel %vm791_vm4, %v4186_v56, %v4185_v11  ;;  %v4740_v52 = vrot.slane %v4425_v19, 7 }
 0x20f   :  { %v4428_v1 = vld [vmem:[#allocation2 + $0x547] sm:$0x1]  ;;  %v4429_v60 = vld [vmem:[#allocation2 + $0x557] sm:$0x1]  ;;  %v4742_v18 = vrot.slane %v4426_v44, 6  ;;  %4849 = vxpose.xlu1.b32.cont [10/16] %v4739_v51, 128  ;;  %v4189_v37 = vsel %vm794_vm5, %v4188_v12, %v4187_v5  ;;  %v4744_v16 = vrot.slane %v4427_v17, 5  ;;  %v3226_v32 = vpop.trf.xlu0  ;;  %v3771_v28 = vpop.trf.xlu1 }
 0x210   :  { %v4430_v36 = vld [vmem:[#allocation2 + $0x567] sm:$0x1]  ;;  %v4431_v0 = vld [vmem:[#allocation2 + $0x577] sm:$0x1]  ;;  %v4746_v23 = vrot.slane %v4428_v1, 4  ;;  %v4748_v22 = vrot.slane %v4429_v60, 3  ;;  %v4191_v29 = vsel %vm797_vm6, %v4190_v61, %v4189_v37  ;;  %v4741_v34 = vsel %vm785_vm1, %v4740_v52, %v4424_v6 }
 0x211   :  { %v3880_v15 = vld [vmem:[#allocation2 + $0x506] sm:$0x1]  ;;  %v3881_v31 = vld [vmem:[#allocation2 + $0x516] sm:$0x1]  ;;  %v4750_v27 = vrot.slane %v4430_v36, 2  ;;  %v4752_v14 = vrot.slane %v4431_v0, 1  ;;  %v4193_v10 = vsel %vm800_vm7, %v4192_v26, %v4191_v29  ;;  %v4743_v59 = vsel %vm788_vm2, %v4742_v18, %v4741_v34 }
 0x212   :  { %v3882_v7 = vld [vmem:[#allocation2 + $0x526] sm:$0x1]  ;;  %v3883_v57 = vld [vmem:[#allocation2 + $0x536] sm:$0x1]  ;;  %v4195_v48 = vsel %vm803_vm8, %v4194_v21, %v4193_v10  ;;  %v4745_v49 = vsel %vm791_vm4, %v4744_v16, %v4743_v59  ;;  %v4196_v43 = vrot.slane %v3881_v31, 7 }
 0x213   :  { %v3884_v38 = vld [vmem:[#allocation2 + $0x546] sm:$0x1]  ;;  %v3885_v41 = vld [vmem:[#allocation2 + $0x556] sm:$0x1]  ;;  %v4198_v53 = vrot.slane %v3882_v7, 6  ;;  %4305 = vxpose.xlu0.b32.cont [10/16] %v4195_v48, 128  ;;  %v4747_v62 = vsel %vm794_vm5, %v4746_v23, %v4745_v49  ;;  %v4200_v13 = vrot.slane %v3883_v57, 5  ;;  %v3227_v20 = vpop.trf.xlu0  ;;  %v3772_v7 = vpop.trf.xlu1 }
 0x214   :  { %v3886_v8 = vld [vmem:[#allocation2 + $0x566] sm:$0x1]  ;;  %v3887_v54 = vld [vmem:[#allocation2 + $0x576] sm:$0x1]  ;;  %v4202_v55 = vrot.slane %v3884_v38, 4  ;;  %v4204_v33 = vrot.slane %v3885_v41, 3  ;;  %v4749_v39 = vsel %vm797_vm6, %v4748_v22, %v4747_v62  ;;  %v4197_v35 = vsel %vm785_vm1, %v4196_v43, %v3880_v15 }
 0x215   :  { %v4432_v9 = vld [vmem:[#allocation2 + $0x587] sm:$0x1]  ;;  %v4433_v58 = vld [vmem:[#allocation2 + $0x597] sm:$0x1]  ;;  %v4206_v50 = vrot.slane %v3886_v8, 2  ;;  %v4208_v45 = vrot.slane %v3887_v54, 1  ;;  %v4751_v24 = vsel %vm800_vm7, %v4750_v27, %v4749_v39  ;;  %v4199_v30 = vsel %vm788_vm2, %v4198_v53, %v4197_v35 }
 0x216   :  { %v4434_v47 = vld [vmem:[#allocation2 + $0x5a7] sm:$0x1]  ;;  %v4435_v42 = vld [vmem:[#allocation2 + $0x5b7] sm:$0x1]  ;;  %v4753_v12 = vsel %vm803_vm8, %v4752_v14, %v4751_v24  ;;  %v4201_v61 = vsel %vm791_vm4, %v4200_v13, %v4199_v30  ;;  %v4754_v19 = vrot.slane %v4433_v58, 7 }
 0x217   :  { %v4436_v3 = vld [vmem:[#allocation2 + $0x5c7] sm:$0x1]  ;;  %v4437_v2 = vld [vmem:[#allocation2 + $0x5d7] sm:$0x1]  ;;  %v4756_v4 = vrot.slane %v4434_v47, 6  ;;  %4850 = vxpose.xlu1.b32.cont [11/16] %v4753_v12, 128  ;;  %v4203_v40 = vsel %vm794_vm5, %v4202_v55, %v4201_v61  ;;  %v4758_v63 = vrot.slane %v4435_v42, 5  ;;  %v3228_v57 = vpop.trf.xlu0 }
 0x218   :  { %v4438_v56 = vld [vmem:[#allocation2 + $0x5e7] sm:$0x1]  ;;  %v4439_v6 = vld [vmem:[#allocation2 + $0x5f7] sm:$0x1]  ;;  %v4760_v25 = vrot.slane %v4436_v3, 4  ;;  %v4762_v26 = vrot.slane %v4437_v2, 3  ;;  %v4205_v17 = vsel %vm797_vm6, %v4204_v33, %v4203_v40  ;;  %v4755_v46 = vsel %vm785_vm1, %v4754_v19, %v4432_v9 }
 0x219   :  { %v3888_v21 = vld [vmem:[#allocation2 + $0x586] sm:$0x1]  ;;  %v3889_v44 = vld [vmem:[#allocation2 + $0x596] sm:$0x1]  ;;  %v4764_v11 = vrot.slane %v4438_v56, 2  ;;  %v4766_v1 = vrot.slane %v4439_v6, 1  ;;  %v4207_v51 = vsel %vm800_vm7, %v4206_v50, %v4205_v17  ;;  %v4757_v5 = vsel %vm788_vm2, %v4756_v4, %v4755_v46 }
 0x21a   :  { %v3890_v60 = vld [vmem:[#allocation2 + $0x5a6] sm:$0x1]  ;;  %v3891_v36 = vld [vmem:[#allocation2 + $0x5b6] sm:$0x1]  ;;  %v4209_v37 = vsel %vm803_vm8, %v4208_v45, %v4207_v51  ;;  %v4759_v16 = vsel %vm791_vm4, %v4758_v63, %v4757_v5  ;;  %v4210_v22 = vrot.slane %v3889_v44, 7 }
 0x21b   :  { %v3892_v0 = vld [vmem:[#allocation2 + $0x5c6] sm:$0x1]  ;;  %v3893_v52 = vld [vmem:[#allocation2 + $0x5d6] sm:$0x1]  ;;  %v4212_v15 = vrot.slane %v3890_v60, 6  ;;  %4306 = vxpose.xlu0.b32.cont [11/16] %v4209_v37, 128  ;;  %v4761_v31 = vsel %vm794_vm5, %v4760_v25, %v4759_v16  ;;  %v4214_v32 = vrot.slane %v3891_v36, 5 }
 0x21c   :  { %v3894_v18 = vld [vmem:[#allocation2 + $0x5e6] sm:$0x1]  ;;  %v3895_v23 = vld [vmem:[#allocation2 + $0x5f6] sm:$0x1]  ;;  %v4216_v29 = vrot.slane %v3892_v0, 4  ;;  %v4218_v34 = vrot.slane %v3893_v52, 3  ;;  %v4763_v10 = vsel %vm797_vm6, %v4762_v26, %v4761_v31  ;;  %v4211_v59 = vsel %vm785_vm1, %v4210_v22, %v3888_v21 }
 0x21d   :  { %v4440_v27 = vld [vmem:[#allocation2 + $0x607] sm:$0x1]  ;;  %v4441_v14 = vld [vmem:[#allocation2 + $0x617] sm:$0x1]  ;;  %v4220_v38 = vrot.slane %v3894_v18, 2  ;;  %v4222_v41 = vrot.slane %v3895_v23, 1  ;;  %v4765_v49 = vsel %vm800_vm7, %v4764_v11, %v4763_v10  ;;  %v4213_v54 = vsel %vm788_vm2, %v4212_v15, %v4211_v59 }
 0x21e   :  { %v4442_v8 = vld [vmem:[#allocation2 + $0x627] sm:$0x1]  ;;  %v4443_v48 = vld [vmem:[#allocation2 + $0x637] sm:$0x1]  ;;  %v4767_v62 = vsel %vm803_vm8, %v4766_v1, %v4765_v49  ;;  %v4215_v13 = vsel %vm791_vm4, %v4214_v32, %v4213_v54  ;;  %v4768_v33 = vrot.slane %v4441_v14, 7 }
 0x21f   :  { %v4444_v43 = vld [vmem:[#allocation2 + $0x647] sm:$0x1]  ;;  %v4445_v53 = vld [vmem:[#allocation2 + $0x657] sm:$0x1]  ;;  %v4770_v9 = vrot.slane %v4442_v8, 6  ;;  %4851 = vxpose.xlu1.b32.cont [12/16] %v4767_v62, 128  ;;  %v4217_v58 = vsel %vm794_vm5, %v4216_v29, %v4215_v13  ;;  %v4772_v20 = vrot.slane %v4443_v48, 5 }
 0x220   :  { %v4446_v28 = vld [vmem:[#allocation2 + $0x667] sm:$0x1]  ;;  %v4447_v55 = vld [vmem:[#allocation2 + $0x677] sm:$0x1]  ;;  %v4774_v39 = vrot.slane %v4444_v43, 4  ;;  %v4776_v35 = vrot.slane %v4445_v53, 3  ;;  %v4219_v47 = vsel %vm797_vm6, %v4218_v34, %v4217_v58  ;;  %v4769_v42 = vsel %vm785_vm1, %v4768_v33, %v4440_v27 }
 0x221   :  { %v3896_v50 = vld [vmem:[#allocation2 + $0x606] sm:$0x1]  ;;  %v3897_v45 = vld [vmem:[#allocation2 + $0x616] sm:$0x1]  ;;  %v4778_v24 = vrot.slane %v4446_v28, 2  ;;  %v4780_v30 = vrot.slane %v4447_v55, 1  ;;  %v4221_v56 = vsel %vm800_vm7, %v4220_v38, %v4219_v47  ;;  %v4771_v12 = vsel %vm788_vm2, %v4770_v9, %v4769_v42 }
 0x222   :  { %v3898_v3 = vld [vmem:[#allocation2 + $0x626] sm:$0x1]  ;;  %v3899_v2 = vld [vmem:[#allocation2 + $0x636] sm:$0x1]  ;;  %v4223_v4 = vsel %vm803_vm8, %v4222_v41, %v4221_v56  ;;  %v4773_v40 = vsel %vm791_vm4, %v4772_v20, %v4771_v12  ;;  %v4224_v25 = vrot.slane %v3897_v45, 7 }
 0x223   :  { %v3900_v61 = vld [vmem:[#allocation2 + $0x646] sm:$0x1]  ;;  %v3901_v6 = vld [vmem:[#allocation2 + $0x656] sm:$0x1]  ;;  %v4226_v26 = vrot.slane %v3898_v3, 6  ;;  %4307 = vxpose.xlu0.b32.cont [12/16] %v4223_v4, 128  ;;  %v4775_v21 = vsel %vm794_vm5, %v4774_v39, %v4773_v40  ;;  %v4228_v44 = vrot.slane %v3899_v2, 5 }
 0x224   :  { %v3902_v19 = vld [vmem:[#allocation2 + $0x666] sm:$0x1]  ;;  %v3903_v63 = vld [vmem:[#allocation2 + $0x676] sm:$0x1]  ;;  %v4230_v17 = vrot.slane %v3900_v61, 4  ;;  %v4232_v46 = vrot.slane %v3901_v6, 3  ;;  %v4777_v60 = vsel %vm797_vm6, %v4776_v35, %v4775_v21  ;;  %v4225_v36 = vsel %vm785_vm1, %v4224_v25, %v3896_v50 }
 0x225   :  { %v4448_v11 = vld [vmem:[#allocation2 + $0x687] sm:$0x1]  ;;  %v4449_v1 = vld [vmem:[#allocation2 + $0x697] sm:$0x1]  ;;  %v4234_v51 = vrot.slane %v3902_v19, 2  ;;  %v4236_v5 = vrot.slane %v3903_v63, 1  ;;  %v4779_v18 = vsel %vm800_vm7, %v4778_v24, %v4777_v60  ;;  %v4227_v37 = vsel %vm788_vm2, %v4226_v26, %v4225_v36  ;;  %v3773_v24 = vpop.trf.xlu1 }
 0x226   :  { %v4450_v0 = vld [vmem:[#allocation2 + $0x6a7] sm:$0x1]  ;;  %v4451_v52 = vld [vmem:[#allocation2 + $0x6b7] sm:$0x1]  ;;  %v4781_v15 = vsel %vm803_vm8, %v4780_v30, %v4779_v18  ;;  %v4229_v31 = vsel %vm791_vm4, %v4228_v44, %v4227_v37  ;;  %v4782_v29 = vrot.slane %v4449_v1, 7  ;;  %v3229_v30 = vpop.trf.xlu0  ;;  %v10922_v1 = vld [vmem:[#allocation3 + $0x18] sm:$0xff] }
 0x227   :  { %v4452_v16 = vld [vmem:[#allocation2 + $0x6c7] sm:$0x1]  ;;  %v4453_v23 = vld [vmem:[#allocation2 + $0x6d7] sm:$0x1]  ;;  %v4784_v34 = vrot.slane %v4450_v0, 6  ;;  %4852 = vxpose.xlu1.b32.cont [13/16] %v4781_v15, 128  ;;  %v4231_v27 = vsel %vm794_vm5, %v4230_v17, %v4229_v31  ;;  %v4786_v14 = vrot.slane %v4451_v52, 5 }
 0x228   :  { %v4454_v22 = vld [vmem:[#allocation2 + $0x6e7] sm:$0x1]  ;;  %v4455_v32 = vld [vmem:[#allocation2 + $0x6f7] sm:$0x1]  ;;  %v4788_v7 = vrot.slane %v4452_v16, 4  ;;  %v4790_v57 = vrot.slane %v4453_v23, 3  ;;  %v4233_v38 = vsel %vm797_vm6, %v4232_v46, %v4231_v27  ;;  %v4783_v41 = vsel %vm785_vm1, %v4782_v29, %v4448_v11 }
 0x229   :  { %v3904_v10 = vld [vmem:[#allocation2 + $0x686] sm:$0x1]  ;;  %v3905_v59 = vld [vmem:[#allocation2 + $0x696] sm:$0x1]  ;;  %v4792_v8 = vrot.slane %v4454_v22, 2  ;;  %v4794_v48 = vrot.slane %v4455_v32, 1  ;;  %v4235_v43 = vsel %vm800_vm7, %v4234_v51, %v4233_v38  ;;  %v4785_v53 = vsel %vm788_vm2, %v4784_v34, %v4783_v41  ;;  %v3774_v18 = vpop.trf.xlu1 }
 0x22a   :  { %v3906_v49 = vld [vmem:[#allocation2 + $0x6a6] sm:$0x1]  ;;  %v3907_v54 = vld [vmem:[#allocation2 + $0x6b6] sm:$0x1]  ;;  %v4237_v55 = vsel %vm803_vm8, %v4236_v5, %v4235_v43  ;;  %v4787_v33 = vsel %vm791_vm4, %v4786_v14, %v4785_v53  ;;  %v4238_v58 = vrot.slane %v3905_v59, 7  ;;  %v10920_v11 = vld [vmem:[#allocation3 + $0x8] sm:$0xff]  ;;  %v3230_v37 = vpop.trf.xlu0 }
 0x22b   :  { %v3908_v28 = vld [vmem:[#allocation2 + $0x6c6] sm:$0x1]  ;;  %v3909_v62 = vld [vmem:[#allocation2 + $0x6d6] sm:$0x1]  ;;  %v4240_v20 = vrot.slane %v3906_v49, 6  ;;  %4308 = vxpose.xlu0.b32.cont [13/16] %v4237_v55, 128  ;;  %v4789_v39 = vsel %vm794_vm5, %v4788_v7, %v4787_v33  ;;  %v4242_v35 = vrot.slane %v3907_v54, 5 }
 0x22c   :  { %v3910_v13 = vld [vmem:[#allocation2 + $0x6e6] sm:$0x1]  ;;  %v3911_v9 = vld [vmem:[#allocation2 + $0x6f6] sm:$0x1]  ;;  %v4244_v50 = vrot.slane %v3908_v28, 4  ;;  %v4246_v45 = vrot.slane %v3909_v62, 3  ;;  %v4791_v3 = vsel %vm797_vm6, %v4790_v57, %v4789_v39  ;;  %v4239_v2 = vsel %vm785_vm1, %v4238_v58, %v3904_v10 }
 0x22d   :  { %v4456_v47 = vld [vmem:[#allocation2 + $0x707] sm:$0x1]  ;;  %v4457_v42 = vld [vmem:[#allocation2 + $0x717] sm:$0x1]  ;;  %v4248_v56 = vrot.slane %v3910_v13, 2  ;;  %v4250_v12 = vrot.slane %v3911_v9, 1  ;;  %v4793_v19 = vsel %vm800_vm7, %v4792_v8, %v4791_v3  ;;  %v4241_v4 = vsel %vm788_vm2, %v4240_v20, %v4239_v2  ;;  %v3775_v55 = vpop.trf.xlu1 }
 0x22e   :  { %v4458_v61 = vld [vmem:[#allocation2 + $0x727] sm:$0x1]  ;;  %v4459_v6 = vld [vmem:[#allocation2 + $0x737] sm:$0x1]  ;;  %v4795_v26 = vsel %vm803_vm8, %v4794_v48, %v4793_v19  ;;  %v4243_v21 = vsel %vm791_vm4, %v4242_v35, %v4241_v4  ;;  %v4796_v17 = vrot.slane %v4457_v42, 7  ;;  %v31_v57 = vmul.f32 %v10920_v11, %v10920_v11  ;;  %v10935_v49 = vld [vmem:[#allocation3 + $0x28] sm:$0xff]  ;;  %v3231_v33 = vpop.trf.xlu0 }
 0x22f   :  { %v4460_v40 = vld [vmem:[#allocation2 + $0x747] sm:$0x1]  ;;  %v4461_v63 = vld [vmem:[#allocation2 + $0x757] sm:$0x1]  ;;  %v4798_v46 = vrot.slane %v4458_v61, 6  ;;  %4853 = vxpose.xlu1.b32.cont [14/16] %v4795_v26, 128  ;;  %v4245_v60 = vsel %vm794_vm5, %v4244_v50, %v4243_v21  ;;  %v4800_v36 = vrot.slane %v4459_v6, 5  ;;  %v33_v10 = vmul.f32 %v10922_v1, %v10922_v1 }
 0x230   :  { %v4462_v25 = vld [vmem:[#allocation2 + $0x767] sm:$0x1]  ;;  %v4463_v44 = vld [vmem:[#allocation2 + $0x777] sm:$0x1]  ;;  %v4802_v51 = vrot.slane %v4460_v40, 4  ;;  %v4804_v5 = vrot.slane %v4461_v63, 3  ;;  %v4247_v16 = vsel %vm797_vm6, %v4246_v45, %v4245_v60  ;;  %v4797_v23 = vsel %vm785_vm1, %v4796_v17, %v4456_v47 }
 0x231   :  { %v3912_v0 = vld [vmem:[#allocation2 + $0x706] sm:$0x1]  ;;  %v3913_v52 = vld [vmem:[#allocation2 + $0x716] sm:$0x1]  ;;  %v4806_v22 = vrot.slane %v4462_v25, 2  ;;  %v4808_v15 = vrot.slane %v4463_v44, 1  ;;  %v4249_v29 = vsel %vm800_vm7, %v4248_v56, %v4247_v16  ;;  %v4799_v34 = vsel %vm788_vm2, %v4798_v46, %v4797_v23  ;;  %v3776_v44 = vpop.trf.xlu1 }
 0x232   :  { %v3914_v31 = vld [vmem:[#allocation2 + $0x726] sm:$0x1]  ;;  %v3915_v32 = vld [vmem:[#allocation2 + $0x736] sm:$0x1]  ;;  %v4251_v59 = vsel %vm803_vm8, %v4250_v12, %v4249_v29  ;;  %v4801_v38 = vsel %vm791_vm4, %v4800_v36, %v4799_v34  ;;  %v4252_v8 = vrot.slane %v3913_v52, 7  ;;  %v10942_v3 = vadd.f32 %v33_v10, %v31_v57  ;;  %v3232_v17 = vpop.trf.xlu0 }
 0x233   :  { %v3916_v27 = vld [vmem:[#allocation2 + $0x746] sm:$0x1]  ;;  %v3917_v14 = vld [vmem:[#allocation2 + $0x756] sm:$0x1]  ;;  %v4254_v48 = vrot.slane %v3914_v31, 6  ;;  %4309 = vxpose.xlu0.b32.cont [14/16] %v4251_v59, 128  ;;  %v4803_v54 = vsel %vm794_vm5, %v4802_v51, %v4801_v38  ;;  %v4256_v43 = vrot.slane %v3915_v32, 5  ;;  %v37_v2 = vmul.f32 %v10935_v49, %v10935_v49 }
 0x234   :  { %v3918_v7 = vld [vmem:[#allocation2 + $0x766] sm:$0x1]  ;;  %v3919_v41 = vld [vmem:[#allocation2 + $0x776] sm:$0x1]  ;;  %v4258_v53 = vrot.slane %v3916_v27, 4  ;;  %v4260_v28 = vrot.slane %v3917_v14, 3  ;;  %v4805_v9 = vsel %vm797_vm6, %v4804_v5, %v4803_v54  ;;  %v4253_v58 = vsel %vm785_vm1, %v4252_v8, %v3912_v0 }
 0x235   :  { %v4464_v62 = vld [vmem:[#allocation2 + $0x787] sm:$0x1]  ;;  %v4465_v13 = vld [vmem:[#allocation2 + $0x797] sm:$0x1]  ;;  %v4262_v20 = vrot.slane %v3918_v7, 2  ;;  %v4264_v39 = vrot.slane %v3919_v41, 1  ;;  %v4807_v45 = vsel %vm800_vm7, %v4806_v22, %v4805_v9  ;;  %v4255_v47 = vsel %vm788_vm2, %v4254_v48, %v4253_v58  ;;  %v3777_v10 = vpop.trf.xlu1 }
 0x236   :  { %v4466_v35 = vld [vmem:[#allocation2 + $0x7a7] sm:$0x1]  ;;  %v4467_v50 = vld [vmem:[#allocation2 + $0x7b7] sm:$0x1]  ;;  %v4809_v56 = vsel %vm803_vm8, %v4808_v15, %v4807_v45  ;;  %v4257_v12 = vsel %vm791_vm4, %v4256_v43, %v4255_v47  ;;  %v4810_v6 = vrot.slane %v4465_v13, 7  ;;  %v39_v22 = vadd.f32 %v37_v2, %v10942_v3  ;;  %v3233_v59 = vpop.trf.xlu0 }
 0x237   :  { %v4468_v42 = vld [vmem:[#allocation2 + $0x7c7] sm:$0x1]  ;;  %v4469_v24 = vld [vmem:[#allocation2 + $0x7d7] sm:$0x1]  ;;  %v4812_v19 = vrot.slane %v4466_v35, 6  ;;  %4854 = vxpose.xlu1.b32.cont [15/16] %v4809_v56, 128  ;;  %v4259_v4 = vsel %vm794_vm5, %v4258_v53, %v4257_v12  ;;  %v4814_v40 = vrot.slane %v4467_v50, 5 }
 0x238   :  { %v4470_v30 = vld [vmem:[#allocation2 + $0x7e7] sm:$0x1]  ;;  %v4471_v61 = vld [vmem:[#allocation2 + $0x7f7] sm:$0x1]  ;;  %v4816_v63 = vrot.slane %v4468_v42, 4  ;;  %v4818_v25 = vrot.slane %v4469_v24, 3  ;;  %v4261_v46 = vsel %vm797_vm6, %v4260_v28, %v4259_v4  ;;  %v4811_v60 = vsel %vm785_vm1, %v4810_v6, %v4464_v62 }
 0x239   :  { %v3920_v26 = vld [vmem:[#allocation2 + $0x786] sm:$0x1]  ;;  %v3921_v21 = vld [vmem:[#allocation2 + $0x796] sm:$0x1]  ;;  %v4820_v36 = vrot.slane %v4470_v30, 2  ;;  %v4822_v51 = vrot.slane %v4471_v61, 1  ;;  %v4263_v52 = vsel %vm800_vm7, %v4262_v20, %v4261_v46  ;;  %v4813_v18 = vsel %vm788_vm2, %v4812_v19, %v4811_v60  ;;  %v3778_v20 = vpop.trf.xlu1 }
 0x23a   :  { %v3922_v5 = vld [vmem:[#allocation2 + $0x7a6] sm:$0x1]  ;;  %v3923_v0 = vld [vmem:[#allocation2 + $0x7b6] sm:$0x1]  ;;  %v4265_v15 = vsel %vm803_vm8, %v4264_v39, %v4263_v52  ;;  %v4815_v31 = vsel %vm791_vm4, %v4814_v40, %v4813_v18  ;;  %v4266_v29 = vrot.slane %v3921_v21, 7  ;;  %vm41_vm10 = vcmp.gt.f32.partialorder %v39_v22, 0.0  ;;  %v3234_v24 = vpop.trf.xlu0 }
 0x23b   :  { %v3924_v37 = vld [vmem:[#allocation2 + $0x7c6] sm:$0x1]  ;;  %v3925_v16 = vld [vmem:[#allocation2 + $0x7d6] sm:$0x1]  ;;  %v4268_v34 = vrot.slane %v3922_v5, 6  ;;  %4310 = vxpose.xlu0.b32.cont [15/16] %v4265_v15, 128  ;;  %v4817_v27 = vsel %vm794_vm5, %v4816_v63, %v4815_v31  ;;  %v4270_v14 = vrot.slane %v3923_v0, 5 }
 0x23c   :  { %v3926_v23 = vld [vmem:[#allocation2 + $0x7e6] sm:$0x1]  ;;  %v3927_v32 = vld [vmem:[#allocation2 + $0x7f6] sm:$0x1]  ;;  %v4272_v7 = vrot.slane %v3924_v37, 4  ;;  %v4274_v57 = vrot.slane %v3925_v16, 3  ;;  %v4819_v38 = vsel %vm797_vm6, %v4818_v25, %v4817_v27  ;;  %v4267_v41 = vsel %vm785_vm1, %v4266_v29, %v3920_v26 }
 0x23d   :  { %v4276_v8 = vrot.slane %v3926_v23, 2  ;;  %v4278_v48 = vrot.slane %v3927_v32, 1  ;;  %v4821_v54 = vsel %vm800_vm7, %v4820_v36, %v4819_v38  ;;  %v4269_v43 = vsel %vm788_vm2, %v4268_v34, %v4267_v41  ;;  %v10968_v33 = vld [vmem:[#allocation2 + $0x319] sm:$0x1]  ;;  %v10970_v9 = vld [vmem:[#allocation2 + $0x329] sm:$0x1]  ;;  %v3779_v44 = vpop.trf.xlu1 }
 0x23e   :  { %vm47_vm11 = vcmp.gt.f32.partialorder %v10942_v3, 0.0  ;;  %v4823_v53 = vsel %vm803_vm8, %v4822_v51, %v4821_v54  ;;  %v4271_v28 = vsel %vm791_vm4, %v4270_v14, %v4269_v43  ;;  %v43_v62 = vsel %vm41_vm10, %v39_v22, 1.0  ;;  %v10972_v58 = vld [vmem:[#allocation2 + $0x339] sm:$0x1]  ;;  %v10975_v35 = vld [vmem:[#allocation2 + $0x349] sm:$0x1]  ;;  %v3235_v32 = vpop.trf.xlu0 }
 0x23f   :  { %v49_v13 = vsel %vm47_vm11, %v10942_v3, 1.0  ;;  %4855 = vxpose.xlu1.b32.end [16/16] %v4823_v53, 128  ;;  %v4273_v55 = vsel %vm794_vm5, %v4272_v7, %v4271_v28  ;;  %9319 = vrsqrt.f32 %v43_v62  ;;  %v10977_v50 = vld [vmem:[#allocation2 + $0x359] sm:$0x1]  ;;  %v10980_v47 = vld [vmem:[#allocation2 + $0x369] sm:$0x1] }
 0x240   :  { %v4275_v39 = vsel %vm797_vm6, %v4274_v57, %v4273_v55  ;;  %9321 = vrsqrt.f32 %v49_v13  ;;  %12463 = vst [vmem:[#allocation21_spill] sm:$0xff] %v10977_v50  ;;  %12464 = vst [vmem:[#allocation7_spill] sm:$0xff] %v10980_v47  ;;  %v10982_v42 = vld [vmem:[#allocation2 + $0x379] sm:$0x1]  ;;  %v10988_v61 = vld [vmem:[#allocation2 + $0x318] sm:$0x1] }
 0x241   :  { %v4277_v45 = vsel %vm800_vm7, %v4276_v8, %v4275_v39  ;;  %12465 = vst [vmem:[#allocation12_spill] sm:$0xff] %v10982_v42  ;;  %v10992_v4 = vld [vmem:[#allocation2 + $0x328] sm:$0x1]  ;;  %v10994_v40 = vld [vmem:[#allocation2 + $0x338] sm:$0x1]  ;;  %v3780_v28 = vpop.trf.xlu1 }
 0x242   :  { %v4279_v30 = vsel %vm803_vm8, %v4278_v48, %v4277_v45  ;;  %v10998_v26 = vld [vmem:[#allocation2 + $0x348] sm:$0x1]  ;;  %v11000_v21 = vld [vmem:[#allocation2 + $0x358] sm:$0x1]  ;;  %v5489_v60 = vld [vmem:[#allocation2 + $0x399] sm:$0x1] }
 0x243   :  { %4311 = vxpose.xlu0.b32.end [16/16] %v4279_v30, 128  ;;  %12466 = vst [vmem:[#allocation8_spill] sm:$0xff] %v10998_v26  ;;  %12467 = vst [vmem:[#allocation13_spill] sm:$0xff] %v11000_v21  ;;  %v11002_v17 = vld [vmem:[#allocation2 + $0x368] sm:$0x1]  ;;  %v11004_v46 = vld [vmem:[#allocation2 + $0x378] sm:$0x1] }
 0x244   :  { %12468 = vst [vmem:[#allocation9_spill] sm:$0xff] %v11002_v17  ;;  %12469 = vst [vmem:[#allocation14_spill] sm:$0xff] %v11004_v46  ;;  %v11008_v5 = vld [vmem:[#allocation2 + $0x3a9] sm:$0x1]  ;;  %v11010_v0 = vld [vmem:[#allocation2 + $0x3b9] sm:$0x1] }
 0x245   :  { %v11012_v52 = vld [vmem:[#allocation2 + $0x3c9] sm:$0x1]  ;;  %v11014_v18 = vld [vmem:[#allocation2 + $0x3d9] sm:$0x1]  ;;  %v5786_v31 = vrot.slane %v5489_v60, 7  ;;  %v5788_v7 = vrot.slane %v11008_v5, 6 }
 0x246   :  { %v11016_v37 = vld [vmem:[#allocation2 + $0x3e9] sm:$0x1]  ;;  %v11021_v15 = vld [vmem:[#allocation2 + $0x3f9] sm:$0x1] }
 0x247   :  { %12470 = vst [vmem:[#allocation15_spill] sm:$0xff] %v11016_v37  ;;  %12471 = vst [vmem:[#allocation10_spill] sm:$0xff] %v11021_v15  ;;  %v5488_v14 = vld [vmem:[#allocation2 + $0x389] sm:$0x1] }
 0x248   :  { %v11043_v55 = vsel %vm785_vm1, %v5786_v31, %v5488_v14 }
 0x249   :  { %v9320_v29 = vpop.eup %9319 }
 0x24a   :  { %v9322_v10 = vpop.eup %9321  ;;  %v11028_v59 = vmul.f32 %v9320_v29, %v10935_v49 }
 0x24b   :  { %v55_v48 = vmul.f32 %v9322_v10, %v10942_v3  ;;  %v59_v54 = vmul.f32 %v9322_v10, %v10920_v11  ;;  %v11036_v43 = vmul.f32 %v9322_v10, %v10922_v1 }
 0x24c   :  { %v67_v62 = vmul.f32 1.7320508, %v11028_v59  ;;  %v74_v49 = vmul.f32 1.9364917, %v11028_v59  ;;  %v83_v13 = vmul.f32 1.9720266, %v11028_v59 }
 0x24d   :  { %v11045_v20 = vmul.f32 %v9320_v29, %v55_v48  ;;  %v11049_v11 = vsel %vm47_vm11, %v59_v54, 1.0  ;;  %v131_v1 = vmul.f32 0.0, %v11036_v43  ;;  %v149_v39 = vmul.f32 2.236068, %v11028_v59  ;;  %v3236_v29 = vpop.trf.xlu0 }
 0x24e   :  { %v69_v45 = vmul.f32 0.2820948, %v67_v62  ;;  %v135_v24 = vmul.f32 0.0, %v11049_v11  ;;  %v163_v30 = vmul.f32 2.09165, %v11028_v59  ;;  %v11056_v44 = vmul.f32 3.0, %v11028_v59 }
 0x24f   :  { %v127_v60 = vmul.f32 -1.7320508, %v11045_v20  ;;  %v11060_v31 = vsub.f32 %v11049_v11, %v131_v1  ;;  %v235_v3 = vmul.f32 -1.118034, %v11045_v20  ;;  %v261_v32 = vmul.f32 2.6457512, %v11028_v59 }
 0x250   :  { %72 = vst [vmem:[#allocation2 + $0x28] sm:$0xff] %v69_v45  ;;  %v76_v14 = vmul.f32 %v74_v49, %v69_v45  ;;  %v11065_v10 = vadd.f32 %v135_v24, %v11036_v43  ;;  %v87_v48 = vmul.f32 1.0183501, %v69_v45  ;;  %v329_v54 = vmul.f32 -1.0801234, %v11045_v20  ;;  %v3781_v24 = vpop.trf.xlu1 }
 0x251   :  { %v129_v28 = vmul.f32 0.2820948, %v127_v60  ;;  %v247_v62 = vmul.f32 %v11060_v31, %v11036_v43  ;;  %v239_v1 = vmul.f32 %v11060_v31, %v11049_v11  ;;  %v94_v53 = vmul.f32 1.9843135, %v11028_v59 }
 0x252   :  { %v9310_v27 = vadd.f32 -0.3153916, %v76_v14  ;;  %v245_v29 = vmul.f32 %v11065_v10, %v11049_v11  ;;  %v241_v49 = vmul.f32 %v11065_v10, %v11036_v43  ;;  %v181_v45 = vmul.f32 2.04939, %v11028_v59 }
 0x253   :  { %v139_v60 = vmul.f32 %v11060_v31, %v129_v28  ;;  %v144_v25 = vmul.f32 %v11065_v10, %v129_v28  ;;  %v151_v8 = vmul.f32 %v149_v39, %v129_v28  ;;  %v11080_v34 = vmul.f32 %v235_v3, %v129_v28 }
 0x254   :  { %81 = vst [vmem:[#allocation2 + $0x68] sm:$0xff] %v9310_v27  ;;  %v85_v63 = vmul.f32 %v9310_v27, %v83_v13  ;;  %v98_v22 = vmul.f32 1.0062306, %v9310_v27  ;;  %v11082_v14 = vadd.f32 %v247_v62, %v245_v29  ;;  %v167_v19 = vmul.f32 0.9354144, %v129_v28  ;;  %v3237_v28 = vpop.trf.xlu0 }
 0x255   :  { %142 = vst [vmem:[#allocation2 + $0x38] sm:$0xff] %v139_v60  ;;  %147 = vst [vmem:[#allocation2 + $0x18] sm:$0xff] %v144_v25  ;;  %v153_v23 = vmul.f32 %v151_v8, %v11060_v31  ;;  %v158_v6 = vmul.f32 %v151_v8, %v11065_v10  ;;  %v165_v24 = vmul.f32 %v163_v30, %v151_v8  ;;  %v185_v51 = vmul.f32 0.9797959, %v151_v8 }
 0x256   :  { %v11086_v16 = vsub.f32 %v239_v1, %v241_v49  ;;  %v256_v39 = vmul.f32 %v11082_v14, %v11080_v34  ;;  %v11090_v3 = vsub.f32 %v85_v63, %v87_v48  ;;  %v11093_v13 = vmul.f32 %v261_v32, %v11080_v34 }
 0x257   :  { %v11096_v27 = vmul.f32 %v329_v54, %v11080_v34  ;;  %156 = vst [vmem:[#allocation2 + $0x78] sm:$0xff] %v153_v23  ;;  %161 = vst [vmem:[#allocation2 + $0x58] sm:$0xff] %v158_v6  ;;  %v11098_v25 = vld [vmem:[#allocation2 + $0x29] sm:$0x1]  ;;  %v11100_v62 = vld [vmem:[#allocation2 + $0x28] sm:$0x1]  ;;  %v11102_v30 = vsub.f32 %v165_v24, %v167_v19  ;;  %v335_v32 = vmul.f32 %v11082_v14, %v11036_v43  ;;  %v3782_v24 = vpop.trf.xlu1 }
 0x258   :  { %v251_v1 = vmul.f32 %v11086_v16, %v11080_v34  ;;  %v333_v63 = vmul.f32 %v11086_v16, %v11049_v11  ;;  %259 = vst [vmem:[#allocation2 + $0x48] sm:$0xff] %v256_v39  ;;  %v5690_v48 = vrot.slane %v11098_v25, 6  ;;  %92 = vst [vmem:[#allocation2 + $0xc8] sm:$0xff] %v11090_v3  ;;  %v265_v19 = vmul.f32 %v11093_v13, %v11086_v16  ;;  %v5432_v39 = vld [vmem:[#allocation2 + $0x9] sm:$0x1] }
 0x259   :  { %v270_v23 = vmul.f32 %v11093_v13, %v11082_v14  ;;  %v171_v54 = vmul.f32 %v11102_v30, %v11060_v31  ;;  %v176_v29 = vmul.f32 %v11102_v30, %v11065_v10  ;;  %v339_v60 = vmul.f32 %v11082_v14, %v11049_v11 }
 0x25a   :  { %254 = vst [vmem:[#allocation2 + $0x88] sm:$0xff] %v251_v1  ;;  %v11121_v49 = vsub.f32 %v333_v63, %v335_v32  ;;  %268 = vst [vmem:[#allocation2 + $0xe8] sm:$0xff] %v265_v19  ;;  %v341_v28 = vmul.f32 %v11086_v16, %v11036_v43  ;;  %v96_v25 = vmul.f32 %v94_v53, %v11090_v3  ;;  %v11136_v32 = vmul.f32 2.291288, %v11028_v59 }
 0x25b   :  { %273 = vst [vmem:[#allocation2 + $0xa8] sm:$0xff] %v270_v23  ;;  %v183_v12 = vmul.f32 %v181_v45, %v11102_v30  ;;  %v11129_v56 = vld [vmem:[#allocation2 + $0x69] sm:$0x1]  ;;  %v11131_v1 = vld [vmem:[#allocation2 + $0x68] sm:$0x1]  ;;  %174 = vst [vmem:[#allocation2 + $0xd8] sm:$0xff] %v171_v54  ;;  %v11140_v19 = vmul.f32 %v11056_v44, %v11096_v27  ;;  %v11146_v8 = vsel %vm788_vm2, %v5788_v7, %v11043_v55  ;;  %v3238_v55 = vpop.trf.xlu0  ;;  %v3783_v17 = vpop.trf.xlu1 }
 0x25c   :  { %179 = vst [vmem:[#allocation2 + $0xb8] sm:$0xff] %v176_v29  ;;  %v345_v63 = vmul.f32 %v11121_v49, %v11096_v27  ;;  %v5433_v53 = vld [vmem:[#allocation2 + $0x19] sm:$0x1]  ;;  %v5698_v23 = vrot.slane %v11129_v56, 2  ;;  %v11150_v29 = vadd.f32 %v341_v28, %v339_v60  ;;  %v11152_v24 = vsub.f32 %v96_v25, %v98_v22  ;;  %v4888_v44 = vld [vmem:[#allocation2 + $0x8] sm:$0x1] }
 0x25d   :  { %v5435_v45 = vld [vmem:[#allocation2 + $0x39] sm:$0x1]  ;;  %v5688_v36 = vrot.slane %v5433_v53, 7  ;;  %v4889_v41 = vld [vmem:[#allocation2 + $0x18] sm:$0x1]  ;;  %v11154_v5 = vsub.f32 %v183_v12, %v185_v51  ;;  %v417_v7 = vmul.f32 %v11121_v49, %v11036_v43  ;;  %v359_v22 = vmul.f32 %v11140_v19, %v11121_v49 }
 0x25e   :  { %v5692_v2 = vrot.slane %v5435_v45, 5  ;;  %v4891_v38 = vld [vmem:[#allocation2 + $0x38] sm:$0x1]  ;;  %348 = vst [vmem:[#allocation2 + $0xf8] sm:$0xff] %v345_v63  ;;  %v5437_v57 = vld [vmem:[#allocation2 + $0x59] sm:$0x1]  ;;  %v350_v60 = vmul.f32 %v11150_v29, %v11096_v27  ;;  %v364_v28 = vmul.f32 %v11140_v19, %v11150_v29  ;;  %v415_v12 = vmul.f32 %v11150_v29, %v11049_v11 }
 0x25f   :  { %v5439_v56 = vld [vmem:[#allocation2 + $0x79] sm:$0x1]  ;;  %v4893_v6 = vld [vmem:[#allocation2 + $0x58] sm:$0x1]  ;;  %103 = vst [vmem:[#allocation2 + $0x148] sm:$0xff] %v11152_v24  ;;  %v5689_v25 = vsel %vm785_vm1, %v5688_v36, %v5432_v39  ;;  %v5696_v63 = vrot.slane %v5437_v57, 3  ;;  %v189_v55 = vmul.f32 %v11154_v5, %v11060_v31 }
 0x260   :  { %v5436_v51 = vld [vmem:[#allocation2 + $0x49] sm:$0x1]  ;;  %v5700_v53 = vrot.slane %v5439_v56, 1  ;;  %v4892_v45 = vld [vmem:[#allocation2 + $0x48] sm:$0x1]  ;;  %v5691_v54 = vsel %vm788_vm2, %v5690_v48, %v5689_v25  ;;  %v5144_v42 = vrot.slane %v4889_v41, 7  ;;  %v11178_v41 = vadd.f32 %v417_v7, %v415_v12 }
 0x261   :  { %v5694_v15 = vrot.slane %v5436_v51, 4  ;;  %v4895_v46 = vld [vmem:[#allocation2 + $0x78] sm:$0x1]  ;;  %v5148_v37 = vrot.slane %v4891_v38, 5  ;;  %353 = vst [vmem:[#allocation2 + $0x98] sm:$0xff] %v350_v60  ;;  %362 = vst [vmem:[#allocation2 + $0x178] sm:$0xff] %v359_v22  ;;  %v5693_v47 = vsel %vm791_vm4, %v5692_v2, %v5691_v54  ;;  %v194_v38 = vmul.f32 %v11154_v5, %v11065_v10 }
 0x262   :  { %367 = vst [vmem:[#allocation2 + $0x118] sm:$0xff] %v364_v28  ;;  %v5150_v21 = vrot.slane %v4892_v45, 4  ;;  %v5152_v36 = vrot.slane %v4893_v6, 3  ;;  %v5156_v57 = vrot.slane %v4895_v46, 1  ;;  %192 = vst [vmem:[#allocation2 + $0x158] sm:$0xff] %v189_v55  ;;  %v5145_v56 = vsel %vm785_vm1, %v5144_v42, %v4888_v44 }
 0x263   :  { %v5695_v39 = vsel %vm794_vm5, %v5694_v15, %v5693_v47  ;;  %v5442_v50 = vld [vmem:[#allocation2 + $0xa9] sm:$0x1]  ;;  %v5443_v48 = vld [vmem:[#allocation2 + $0xb9] sm:$0x1]  ;;  %v12472_v2 = vrot.slane %v11100_v62, 6  ;;  %197 = vst [vmem:[#allocation2 + $0x138] sm:$0xff] %v194_v38  ;;  %v3239_v62 = vpop.trf.xlu0 }
 0x264   :  { %v11174_v51 = vld [vmem:[#allocation2 + $0xc9] sm:$0x1]  ;;  %v5697_v17 = vsel %vm797_vm6, %v5696_v63, %v5695_v39  ;;  %v11184_v6 = vld [vmem:[#allocation2 + $0xd9] sm:$0x1]  ;;  %v5704_v42 = vrot.slane %v5442_v50, 6  ;;  %v5706_v15 = vrot.slane %v5443_v48, 5 }
 0x265   :  { %v5147_v46 = vsel %vm788_vm2, %v12472_v2, %v5145_v56  ;;  %v11186_v47 = vld [vmem:[#allocation2 + $0xe9] sm:$0x1]  ;;  %v5699_v54 = vsel %vm800_vm7, %v5698_v23, %v5697_v17  ;;  %v11190_v60 = vld [vmem:[#allocation2 + $0xf9] sm:$0x1]  ;;  %v5708_v7 = vrot.slane %v11174_v51, 4  ;;  %v5710_v22 = vrot.slane %v11184_v6, 3 }
 0x266   :  { %v5149_v44 = vsel %vm791_vm4, %v5148_v37, %v5147_v46  ;;  %v5701_v28 = vsel %vm803_vm8, %v5700_v53, %v5699_v54  ;;  %v5440_v25 = vld [vmem:[#allocation2 + $0x89] sm:$0x1]  ;;  %v5712_v50 = vrot.slane %v11186_v47, 2  ;;  %v5714_v63 = vrot.slane %v11190_v60, 1  ;;  %v4896_v23 = vld [vmem:[#allocation2 + $0x88] sm:$0x1] }
 0x267   :  { %v5151_v12 = vsel %vm794_vm5, %v5150_v21, %v5149_v44  ;;  %v4898_v45 = vld [vmem:[#allocation2 + $0xa8] sm:$0x1]  ;;  %5928 = vxpose.xlu1.b32.start [1/16] %v5701_v28, 128  ;;  %v4899_v55 = vld [vmem:[#allocation2 + $0xb8] sm:$0x1]  ;;  %v12473_v48 = vrot.slane %v11010_v0, 5  ;;  %v12474_v21 = vrot.slane %v11131_v1, 2  ;;  %v277_v46 = vmul.f32 %v11136_v32, %v11093_v13 }
 0x268   :  { %v5153_v37 = vsel %vm797_vm6, %v5152_v36, %v5151_v12  ;;  %v4900_v39 = vld [vmem:[#allocation2 + $0xc8] sm:$0x1]  ;;  %v4901_v56 = vld [vmem:[#allocation2 + $0xd8] sm:$0x1]  ;;  %v5441_v38 = vld [vmem:[#allocation2 + $0x99] sm:$0x1]  ;;  %v409_v36 = vmul.f32 %v11121_v49, %v11049_v11  ;;  %v411_v6 = vmul.f32 %v11150_v29, %v11036_v43  ;;  %v11217_v28 = vmul.f32 %v11178_v41, %v11049_v11 }
 0x269   :  { %v11203_v53 = vsel %vm791_vm4, %v12473_v48, %v11146_v8  ;;  %v5155_v51 = vsel %vm800_vm7, %v12474_v21, %v5153_v37  ;;  %v4897_v17 = vld [vmem:[#allocation2 + $0x98] sm:$0x1]  ;;  %v4902_v2 = vld [vmem:[#allocation2 + $0xe8] sm:$0x1]  ;;  %v5702_v8 = vrot.slane %v5441_v38, 7  ;;  %v5160_v1 = vrot.slane %v4898_v45, 6 }
 0x26a   :  { %v5157_v0 = vsel %vm803_vm8, %v5156_v57, %v5155_v51  ;;  %v4903_v47 = vld [vmem:[#allocation2 + $0xf8] sm:$0x1]  ;;  %v5158_v54 = vrot.slane %v4897_v17, 7  ;;  %v5162_v44 = vrot.slane %v4899_v55, 5  ;;  %v5164_v60 = vrot.slane %v4900_v39, 4 }
 0x26b   :  { %5384 = vxpose.xlu0.b32.start [1/16] %v5157_v0, 128  ;;  %v5166_v62 = vrot.slane %v4901_v56, 3  ;;  %v5703_v32 = vsel %vm785_vm1, %v5702_v8, %v5440_v25  ;;  %v5168_v37 = vrot.slane %v4902_v2, 2  ;;  %v279_v48 = vmul.f32 0.8660254, %v11080_v34  ;;  %v11222_v57 = vld [vmem:[#allocation2 + $0x119] sm:$0x1] }
 0x26c   :  { %v5159_v12 = vsel %vm785_vm1, %v5158_v54, %v4896_v23  ;;  %v5705_v21 = vsel %vm788_vm2, %v5704_v42, %v5703_v32  ;;  %v5170_v55 = vrot.slane %v4903_v47, 1  ;;  %v405_v39 = vmul.f32 -1.0606601, %v11045_v20  ;;  %v11231_v25 = vld [vmem:[#allocation2 + $0x139] sm:$0x1] }
 0x26d   :  { %v5161_v45 = vsel %vm788_vm2, %v5160_v1, %v5159_v12  ;;  %v5707_v56 = vsel %vm791_vm4, %v5706_v15, %v5705_v21  ;;  %v11229_v38 = vsub.f32 %v277_v46, %v279_v48  ;;  %v11233_v23 = vld [vmem:[#allocation2 + $0x149] sm:$0x1]  ;;  %v11235_v34 = vsub.f32 %v409_v36, %v411_v6  ;;  %v11242_v0 = vld [vmem:[#allocation2 + $0x159] sm:$0x1]  ;;  %v4905_v6 = vld [vmem:[#allocation2 + $0x118] sm:$0x1] }
 0x26e   :  { %v5163_v51 = vsel %vm791_vm4, %v5162_v44, %v5161_v45  ;;  %v5709_v17 = vsel %vm794_vm5, %v5708_v7, %v5707_v56  ;;  %v11240_v2 = vmul.f32 %v405_v39, %v11096_v27  ;;  %v11244_v15 = vld [vmem:[#allocation2 + $0x179] sm:$0x1]  ;;  %v5716_v46 = vrot.slane %v11222_v57, 7  ;;  %v11253_v54 = vld [vmem:[#allocation2 + $0x138] sm:$0x1] }
 0x26f   :  { %v5165_v42 = vsel %vm794_vm5, %v5164_v60, %v5163_v51  ;;  %v5711_v8 = vsel %vm797_vm6, %v5710_v22, %v5709_v17  ;;  %v283_v36 = vmul.f32 %v11229_v38, %v11086_v16  ;;  %v288_v7 = vmul.f32 %v11229_v38, %v11082_v14  ;;  %v11255_v1 = vld [vmem:[#allocation2 + $0x148] sm:$0x1]  ;;  %v11262_v32 = vld [vmem:[#allocation2 + $0x158] sm:$0x1] }
 0x270   :  { %v5167_v47 = vsel %vm797_vm6, %v5166_v62, %v5165_v42  ;;  %v5713_v44 = vsel %vm800_vm7, %v5712_v50, %v5711_v8  ;;  %v426_v22 = vmul.f32 %v11178_v41, %v11240_v2  ;;  %v5720_v62 = vrot.slane %v11231_v25, 5  ;;  %v11268_v50 = vld [vmem:[#allocation2 + $0x178] sm:$0x1] }
 0x271   :  { %v5169_v60 = vsel %vm800_vm7, %v5168_v37, %v5167_v47  ;;  %v5715_v12 = vsel %vm803_vm8, %v5714_v63, %v5713_v44  ;;  %286 = vst [vmem:[#allocation2 + $0x168] sm:$0xff] %v283_v36  ;;  %291 = vst [vmem:[#allocation2 + $0x128] sm:$0xff] %v288_v7  ;;  %v5722_v21 = vrot.slane %v11233_v23, 4  ;;  %v5172_v39 = vrot.slane %v4905_v6, 7 }
 0x272   :  { %v5171_v48 = vsel %vm803_vm8, %v5170_v55, %v5169_v60  ;;  %5929 = vxpose.xlu1.b32.cont [2/16] %v5715_v12, 128  ;;  %429 = vst [vmem:[#allocation2 + $0x108] sm:$0xff] %v426_v22  ;;  %v5176_v56 = vrot.slane %v11253_v54, 5  ;;  %v5178_v63 = vrot.slane %v11255_v1, 4  ;;  %v5180_v55 = vrot.slane %v11262_v32, 3 }
 0x273   :  { %5385 = vxpose.xlu0.b32.cont [2/16] %v5171_v48, 128  ;;  %v105_v51 = vmul.f32 1.9899749, %v11028_v59  ;;  %v109_v25 = vmul.f32 1.002853, %v11090_v3  ;;  %v421_v23 = vmul.f32 %v11235_v34, %v11240_v2  ;;  %v116_v42 = vmul.f32 1.9930434, %v11028_v59 }
 0x274   :  { %v199_v8 = vmul.f32 2.0310097, %v11028_v59  ;;  %v475_v47 = vmul.f32 %v11235_v34, %v11036_v43  ;;  %v120_v7 = vmul.f32 1.001542, %v11152_v24  ;;  %v203_v6 = vmul.f32 0.9910312, %v11102_v30 }
 0x275   :  { %v107_v36 = vmul.f32 %v105_v51, %v11152_v24  ;;  %v293_v3 = vmul.f32 2.1712406, %v11028_v59  ;;  %424 = vst [vmem:[#allocation2 + $0x188] sm:$0xff] %v421_v23  ;;  %v297_v1 = vmul.f32 0.9476071, %v11093_v13  ;;  %v467_v45 = vmul.f32 %v11235_v34, %v11049_v11 }
 0x276   :  { %v201_v54 = vmul.f32 %v199_v8, %v11154_v5  ;;  %v369_v44 = vmul.f32 2.4874685, %v11028_v59  ;;  %v373_v60 = vmul.f32 0.8291562, %v11096_v27  ;;  %v431_v12 = vmul.f32 3.3166249, %v11028_v59 }
 0x277   :  { %v111_v22 = vsub.f32 %v107_v36, %v109_v25  ;;  %v295_v32 = vmul.f32 %v293_v3, %v11229_v38  ;;  %v463_v24 = vmul.f32 -1.0488088, %v11045_v20  ;;  %v11298_v13 = vadd.f32 %v475_v47, %v11217_v28 }
 0x278   :  { %v5450_v48 = vld [vmem:[#allocation2 + $0x129] sm:$0x1]  ;;  %v4906_v51 = vld [vmem:[#allocation2 + $0x128] sm:$0x1]  ;;  %v11294_v17 = vsub.f32 %v201_v54, %v203_v6  ;;  %v371_v23 = vmul.f32 %v369_v44, %v11140_v19  ;;  %v469_v27 = vmul.f32 %v11178_v41, %v11036_v43 }
 0x279   :  { %v5454_v30 = vld [vmem:[#allocation2 + $0x169] sm:$0x1]  ;;  %v5718_v8 = vrot.slane %v5450_v48, 6  ;;  %v4904_v36 = vld [vmem:[#allocation2 + $0x108] sm:$0x1]  ;;  %114 = vst [vmem:[#allocation2 + $0x1e8] sm:$0xff] %v111_v22  ;;  %v118_v3 = vmul.f32 %v116_v42, %v111_v22  ;;  %v11302_v37 = vsub.f32 %v295_v32, %v297_v1 }
 0x27a   :  { %v5448_v25 = vld [vmem:[#allocation2 + $0x109] sm:$0x1]  ;;  %v4910_v54 = vld [vmem:[#allocation2 + $0x168] sm:$0x1]  ;;  %v5173_v28 = vsel %vm785_vm1, %v5172_v39, %v4904_v36  ;;  %v5174_v47 = vrot.slane %v4906_v51, 6  ;;  %v207_v44 = vmul.f32 %v11294_v17, %v11060_v31  ;;  %v5726_v26 = vrot.slane %v5454_v30, 2 }
 0x27b   :  { %v5717_v6 = vsel %vm785_vm1, %v5716_v46, %v5448_v25  ;;  %v122_v42 = vsub.f32 %v118_v3, %v120_v7  ;;  %v212_v1 = vmul.f32 %v11294_v17, %v11065_v10  ;;  %v5182_v32 = vrot.slane %v4910_v54, 2 }
 0x27c   :  { %v5719_v48 = vsel %vm788_vm2, %v5718_v8, %v5717_v6  ;;  %v5175_v57 = vsel %vm788_vm2, %v5174_v47, %v5173_v28  ;;  %210 = vst [vmem:[#allocation2 + $0x1f8] sm:$0xff] %v207_v44  ;;  %v306_v46 = vmul.f32 %v11302_v37, %v11082_v14  ;;  %v375_v30 = vsub.f32 %v371_v23, %v373_v60 }
 0x27d   :  { %v5721_v22 = vsel %vm791_vm4, %v5720_v62, %v5719_v48  ;;  %v5177_v51 = vsel %vm791_vm4, %v5176_v56, %v5175_v57  ;;  %125 = vst [vmem:[#allocation2 + $0x2a8] sm:$0xff] %v122_v42  ;;  %215 = vst [vmem:[#allocation2 + $0x1d8] sm:$0xff] %v212_v1  ;;  %v433_v7 = vmul.f32 %v431_v12, %v11240_v2  ;;  %v12475_v25 = vrot.slane %v11242_v0, 3 }
 0x27e   :  { %v5723_v39 = vsel %vm794_vm5, %v5722_v21, %v5721_v22  ;;  %v5179_v8 = vsel %vm794_vm5, %v5178_v63, %v5177_v51  ;;  %309 = vst [vmem:[#allocation2 + $0x1c8] sm:$0xff] %v306_v46  ;;  %v11327_v36 = vmul.f32 %v463_v24, %v11240_v2  ;;  %v301_v21 = vmul.f32 %v11302_v37, %v11086_v16 }
 0x27f   :  { %v5725_v62 = vsel %vm797_vm6, %v12475_v25, %v5723_v39  ;;  %v5181_v3 = vsel %vm797_vm6, %v5180_v55, %v5179_v8  ;;  %v382_v60 = vmul.f32 %v375_v30, %v11150_v29  ;;  %v440_v12 = vmul.f32 %v433_v7, %v11178_v41 }
 0x280   :  { %v5727_v56 = vsel %vm800_vm7, %v5726_v26, %v5725_v62  ;;  %v12476_v0 = vrot.slane %v11244_v15, 1  ;;  %v5183_v63 = vsel %vm800_vm7, %v5182_v32, %v5181_v3  ;;  %v484_v24 = vmul.f32 %v11298_v13, %v11327_v36  ;;  %304 = vst [vmem:[#allocation2 + $0x208] sm:$0xff] %v301_v21  ;;  %v11345_v54 = vld [vmem:[#allocation2 + $0x1e9] sm:$0x1]  ;;  %v11347_v15 = vld [vmem:[#allocation2 + $0x1e8] sm:$0x1] }
 0x281   :  { %v377_v6 = vmul.f32 %v375_v30, %v11121_v49  ;;  %v12477_v26 = vrot.slane %v11268_v50, 1  ;;  %385 = vst [vmem:[#allocation2 + $0x1b8] sm:$0xff] %v382_v60  ;;  %443 = vst [vmem:[#allocation2 + $0x1a8] sm:$0xff] %v440_v12  ;;  %v387_v28 = vmul.f32 2.3013682, %v11028_v59  ;;  %v12478_v47 = vrot.slane %v11012_v52, 4 }
 0x282   :  { %v5729_v23 = vsel %vm803_vm8, %v12476_v0, %v5727_v56  ;;  %487 = vst [vmem:[#allocation2 + $0x198] sm:$0xff] %v484_v24  ;;  %v391_v50 = vmul.f32 0.9251849, %v11140_v19  ;;  %v435_v48 = vmul.f32 %v433_v7, %v11235_v34  ;;  %v445_v42 = vmul.f32 2.6739483, %v11028_v59 }
 0x283   :  { %5930 = vxpose.xlu1.b32.cont [3/16] %v5729_v23, 128  ;;  %v5185_v55 = vsel %vm803_vm8, %v12477_v26, %v5183_v63  ;;  %v11354_v44 = vsel %vm794_vm5, %v12478_v47, %v11203_v53  ;;  %380 = vst [vmem:[#allocation2 + $0x218] sm:$0xff] %v377_v6  ;;  %v449_v1 = vmul.f32 0.8062258, %v11240_v2  ;;  %v11361_v22 = vmul.f32 2.021315, %v11028_v59  ;;  %v4856_v25 = vpop.trf.xlu1 }
 0x284   :  { %5386 = vxpose.xlu0.b32.cont [3/16] %v5185_v55, 128  ;;  %v389_v57 = vmul.f32 %v387_v28, %v375_v30  ;;  %v471_v32 = vsub.f32 %v467_v45, %v469_v27  ;;  %v489_v52 = vmul.f32 3.6055512, %v11028_v59  ;;  %v11364_v53 = vld [vmem:[#allocation2 + $0x1d9] sm:$0x1]  ;;  %v5740_v46 = vrot.slane %v11345_v54, 2  ;;  %438 = vst [vmem:[#allocation2 + $0x228] sm:$0xff] %v435_v48 }
 0x285   :  { %v11367_v39 = vld [vmem:[#allocation2 + $0x1d8] sm:$0x1]  ;;  %v447_v51 = vmul.f32 %v445_v42, %v433_v7  ;;  %v509_v2 = vmul.f32 %v11298_v13, %v11036_v43  ;;  %v11372_v62 = vld [vmem:[#allocation2 + $0x1c9] sm:$0x1]  ;;  %v5738_v45 = vrot.slane %v11364_v53, 3  ;;  %v513_v8 = vmul.f32 %v11298_v13, %v11049_v11 }
 0x286   :  { %v393_v27 = vsub.f32 %v389_v57, %v391_v50  ;;  %v479_v30 = vmul.f32 %v471_v32, %v11327_v36  ;;  %v5736_v21 = vrot.slane %v11372_v62, 4  ;;  %v5194_v56 = vrot.slane %v11367_v39, 3  ;;  %v5456_v60 = vld [vmem:[#allocation2 + $0x189] sm:$0x1]  ;;  %v4912_v12 = vld [vmem:[#allocation2 + $0x188] sm:$0x1] }
 0x287   :  { %v451_v3 = vsub.f32 %v447_v51, %v449_v1  ;;  %v491_v7 = vmul.f32 %v489_v52, %v11327_v36  ;;  %v11381_v0 = vld [vmem:[#allocation2 + $0x1c8] sm:$0x1]  ;;  %v503_v24 = vmul.f32 -1.040833, %v11045_v20  ;;  %v507_v6 = vmul.f32 %v471_v32, %v11049_v11  ;;  %v11387_v28 = vld [vmem:[#allocation2 + $0x1f9] sm:$0x1]  ;;  %v4312_v1 = vpop.trf.xlu0 }
 0x288   :  { %v395_v23 = vmul.f32 %v393_v27, %v11121_v49  ;;  %v400_v63 = vmul.f32 %v393_v27, %v11150_v29  ;;  %482 = vst [vmem:[#allocation2 + $0x238] sm:$0xff] %v479_v30  ;;  %v5458_v26 = vld [vmem:[#allocation2 + $0x1a9] sm:$0x1]  ;;  %v5459_v55 = vld [vmem:[#allocation2 + $0x1b9] sm:$0x1]  ;;  %v515_v42 = vmul.f32 %v471_v32, %v11036_v43  ;;  %v4857_v29 = vpop.trf.xlu1 }
 0x289   :  { %v4914_v47 = vld [vmem:[#allocation2 + $0x1a8] sm:$0x1]  ;;  %v458_v50 = vmul.f32 %v451_v3, %v11178_v41  ;;  %v498_v48 = vmul.f32 %v491_v7, %v11298_v13  ;;  %v453_v49 = vmul.f32 %v451_v3, %v11235_v34  ;;  %v5457_v57 = vld [vmem:[#allocation2 + $0x199] sm:$0x1]  ;;  %v5732_v52 = vrot.slane %v5458_v26, 6 }
 0x28a   :  { %v5734_v20 = vrot.slane %v5459_v55, 5  ;;  %v4913_v51 = vld [vmem:[#allocation2 + $0x198] sm:$0x1]  ;;  %403 = vst [vmem:[#allocation2 + $0x278] sm:$0xff] %v400_v63  ;;  %v505_v25 = vmul.f32 %v503_v24, %v11327_v36  ;;  %v511_v27 = vsub.f32 %v507_v6, %v509_v2  ;;  %398 = vst [vmem:[#allocation2 + $0x2d8] sm:$0xff] %v395_v23  ;;  %v5730_v30 = vrot.slane %v5457_v57, 7 }
 0x28b   :  { %v4919_v11 = vld [vmem:[#allocation2 + $0x1f8] sm:$0x1]  ;;  %v5186_v19 = vrot.slane %v4913_v51, 7  ;;  %v5188_v13 = vrot.slane %v4914_v47, 6  ;;  %461 = vst [vmem:[#allocation2 + $0x268] sm:$0xff] %v458_v50  ;;  %501 = vst [vmem:[#allocation2 + $0x258] sm:$0xff] %v498_v48  ;;  %v517_v43 = vadd.f32 %v515_v42, %v513_v8  ;;  %v493_v63 = vmul.f32 %v491_v7, %v471_v32  ;;  %v4313_v50 = vpop.trf.xlu0 }
 0x28c   :  { %v4915_v41 = vld [vmem:[#allocation2 + $0x1b8] sm:$0x1]  ;;  %v5464_v34 = vld [vmem:[#allocation2 + $0x209] sm:$0x1]  ;;  %456 = vst [vmem:[#allocation2 + $0x2e8] sm:$0xff] %v453_v49  ;;  %v5192_v26 = vrot.slane %v11381_v0, 4  ;;  %v519_v55 = vmul.f32 %v511_v27, %v505_v25  ;;  %v5731_v36 = vsel %vm785_vm1, %v5730_v30, %v5456_v60  ;;  %v4858_v48 = vpop.trf.xlu1  ;;  %v219_v30 = vmul.f32 %v11361_v22, %v11294_v17 }
 0x28d   :  { %v5190_v3 = vrot.slane %v4915_v41, 5  ;;  %v5465_v1 = vld [vmem:[#allocation2 + $0x219] sm:$0x1]  ;;  %v5466_v29 = vld [vmem:[#allocation2 + $0x229] sm:$0x1]  ;;  %v5187_v2 = vsel %vm785_vm1, %v5186_v19, %v4912_v12  ;;  %v524_v23 = vmul.f32 %v517_v43, %v505_v25  ;;  %v5733_v8 = vsel %vm788_vm2, %v5732_v52, %v5731_v36  ;;  %496 = vst [vmem:[#allocation2 + $0x2f8] sm:$0xff] %v493_v63 }
 0x28e   :  { %v5744_v24 = vrot.slane %v5465_v1, 7  ;;  %v4921_v6 = vld [vmem:[#allocation2 + $0x218] sm:$0x1]  ;;  %v4922_v47 = vld [vmem:[#allocation2 + $0x228] sm:$0x1]  ;;  %v5742_v42 = vrot.slane %v11387_v28, 1  ;;  %v5189_v0 = vsel %vm788_vm2, %v5188_v13, %v5187_v2  ;;  %v5735_v32 = vsel %vm791_vm4, %v5734_v20, %v5733_v8 }
 0x28f   :  { %522 = vst [vmem:[#allocation2 + $0x308] sm:$0xff] %v519_v55  ;;  %v4920_v49 = vld [vmem:[#allocation2 + $0x208] sm:$0x1]  ;;  %v5200_v57 = vrot.slane %v4921_v6, 7  ;;  %v5191_v19 = vsel %vm791_vm4, %v5190_v3, %v5189_v0  ;;  %v5198_v7 = vrot.slane %v4919_v11, 1  ;;  %527 = vst [vmem:[#allocation2 + $0x248] sm:$0xff] %v524_v23  ;;  %v5737_v52 = vsel %vm794_vm5, %v5736_v21, %v5735_v32  ;;  %v4314_v41 = vpop.trf.xlu0 }
 0x290   :  { %v5467_v60 = vld [vmem:[#allocation2 + $0x239] sm:$0x1]  ;;  %v5746_v12 = vrot.slane %v5466_v29, 6  ;;  %v4923_v51 = vld [vmem:[#allocation2 + $0x238] sm:$0x1]  ;;  %v5193_v28 = vsel %vm794_vm5, %v5192_v26, %v5191_v19  ;;  %v5745_v25 = vsel %vm785_vm1, %v5744_v24, %v5464_v34  ;;  %v5202_v27 = vrot.slane %v4922_v47, 6  ;;  %v4859_v21 = vpop.trf.xlu1 }
 0x291   :  { %v5739_v20 = vsel %vm797_vm6, %v5738_v45, %v5737_v52  ;;  %v5195_v11 = vsel %vm797_vm6, %v5194_v56, %v5193_v28  ;;  %v5201_v62 = vsel %vm785_vm1, %v5200_v57, %v4920_v49  ;;  %v12479_v43 = vrot.slane %v11347_v15, 2  ;;  %v5471_v3 = vld [vmem:[#allocation2 + $0x279] sm:$0x1]  ;;  %v11425_v29 = vld [vmem:[#allocation2 + $0x2a9] sm:$0x1] }
 0x292   :  { %v5741_v13 = vsel %vm800_vm7, %v5740_v46, %v5739_v20  ;;  %v5469_v22 = vld [vmem:[#allocation2 + $0x259] sm:$0x1]  ;;  %v5470_v53 = vld [vmem:[#allocation2 + $0x269] sm:$0x1]  ;;  %v5748_v34 = vrot.slane %v5467_v60, 5  ;;  %v5204_v45 = vrot.slane %v4923_v51, 5  ;;  %v5747_v26 = vsel %vm788_vm2, %v5746_v12, %v5745_v25 }
 0x293   :  { %v5197_v17 = vsel %vm800_vm7, %v12479_v43, %v5195_v11  ;;  %v5743_v39 = vsel %vm803_vm8, %v5742_v42, %v5741_v13  ;;  %v5752_v55 = vrot.slane %v5469_v22, 3  ;;  %v4925_v1 = vld [vmem:[#allocation2 + $0x258] sm:$0x1]  ;;  %v4926_v54 = vld [vmem:[#allocation2 + $0x268] sm:$0x1]  ;;  %v5754_v15 = vrot.slane %v5470_v53, 2  ;;  %v4315_v47 = vpop.trf.xlu0 }
 0x294   :  { %v5199_v56 = vsel %vm803_vm8, %v5198_v7, %v5197_v17  ;;  %5931 = vxpose.xlu1.b32.cont [4/16] %v5743_v39, 128  ;;  %v4927_v46 = vld [vmem:[#allocation2 + $0x278] sm:$0x1]  ;;  %v5203_v63 = vsel %vm788_vm2, %v5202_v27, %v5201_v62  ;;  %v5208_v36 = vrot.slane %v4925_v1, 3  ;;  %v5210_v2 = vrot.slane %v4926_v54, 2  ;;  %v11430_v6 = vld [vmem:[#allocation2 + $0x2d9] sm:$0x1]  ;;  %v4860_v50 = vpop.trf.xlu1 }
 0x295   :  { %5387 = vxpose.xlu0.b32.cont [4/16] %v5199_v56, 128  ;;  %v221_v23 = vmul.f32 0.9952267, %v11154_v5  ;;  %v311_v24 = vmul.f32 2.113942, %v11028_v59  ;;  %v5749_v8 = vsel %vm791_vm4, %v5748_v34, %v5747_v26  ;;  %v5205_v0 = vsel %vm791_vm4, %v5204_v45, %v5203_v63  ;;  %v11442_v60 = vld [vmem:[#allocation2 + $0x2e9] sm:$0x1] }
 0x296   :  { %v5468_v48 = vld [vmem:[#allocation2 + $0x249] sm:$0x1]  ;;  %v4924_v42 = vld [vmem:[#allocation2 + $0x248] sm:$0x1]  ;;  %v315_v49 = vmul.f32 0.9736101, %v11229_v38 }
 0x297   :  { %v12480_v57 = vrot.slane %v11014_v18, 3  ;;  %v5750_v5 = vrot.slane %v5468_v48, 4  ;;  %v5206_v59 = vrot.slane %v4924_v42, 4  ;;  %v223_v19 = vsub.f32 %v219_v30, %v221_v23  ;;  %v11444_v12 = vld [vmem:[#allocation2 + $0x2a8] sm:$0x1]  ;;  %v4316_v11 = vpop.trf.xlu0 }
 0x298   :  { %v313_v7 = vmul.f32 %v311_v24, %v11302_v37  ;;  %v5756_v51 = vrot.slane %v5471_v3, 1  ;;  %v5212_v52 = vrot.slane %v4927_v46, 1  ;;  %v11446_v28 = vld [vmem:[#allocation2 + $0x2f9] sm:$0x1]  ;;  %v5760_v38 = vrot.slane %v11425_v29, 6  ;;  %v4861_v62 = vpop.trf.xlu1  ;;  %v12492_v11 = vld [vmem:[#allocation13_spill] sm:$0xff] }
 0x299   :  { %v11439_v32 = vsel %vm797_vm6, %v12480_v57, %v11354_v44  ;;  %v5766_v18 = vrot.slane %v11430_v6, 3  ;;  %v5751_v44 = vsel %vm794_vm5, %v5750_v5, %v5749_v8  ;;  %v5207_v25 = vsel %vm794_vm5, %v5206_v59, %v5205_v0  ;;  %v11454_v30 = vld [vmem:[#allocation2 + $0x2d8] sm:$0x1]  ;;  %v5480_v17 = vld [vmem:[#allocation2 + $0x309] sm:$0x1] }
 0x29a   :  { %v225_v27 = vmul.f32 %v223_v19, %v11060_v31  ;;  %v230_v37 = vmul.f32 %v223_v19, %v11065_v10  ;;  %v4945_v20 = vld [vmem:[#allocation2 + $0x398] sm:$0x1]  ;;  %v5753_v41 = vsel %vm797_vm6, %v5752_v55, %v5751_v44  ;;  %v5209_v21 = vsel %vm797_vm6, %v5208_v36, %v5207_v25  ;;  %v4936_v22 = vld [vmem:[#allocation2 + $0x308] sm:$0x1] }
 0x29b   :  { %v317_v13 = vsub.f32 %v313_v7, %v315_v49  ;;  %v5768_v43 = vrot.slane %v11442_v60, 2  ;;  %v5755_v53 = vsel %vm800_vm7, %v5754_v15, %v5753_v41  ;;  %v5211_v31 = vsel %vm800_vm7, %v5210_v2, %v5209_v21  ;;  %v4946_v45 = vld [vmem:[#allocation2 + $0x3a8] sm:$0x1]  ;;  %v4947_v39 = vld [vmem:[#allocation2 + $0x3b8] sm:$0x1]  ;;  %v4317_v47 = vpop.trf.xlu0 }
 0x29c   :  { %228 = vst [vmem:[#allocation2 + $0x2b8] sm:$0xff] %v225_v27  ;;  %233 = vst [vmem:[#allocation2 + $0x298] sm:$0xff] %v230_v37  ;;  %v5770_v10 = vrot.slane %v11446_v28, 1  ;;  %v5216_v34 = vrot.slane %v11444_v12, 6  ;;  %v5757_v56 = vsel %vm803_vm8, %v5756_v51, %v5755_v53  ;;  %v5213_v3 = vsel %vm803_vm8, %v5212_v52, %v5211_v31  ;;  %v4944_v1 = vld [vmem:[#allocation2 + $0x388] sm:$0x1] }
 0x29d   :  { %v319_v26 = vmul.f32 %v317_v13, %v11086_v16  ;;  %v324_v55 = vmul.f32 %v317_v13, %v11082_v14  ;;  %v4948_v54 = vld [vmem:[#allocation2 + $0x3c8] sm:$0x1]  ;;  %5932 = vxpose.xlu1.b32.cont [5/16] %v5757_v56, 128  ;;  %5388 = vxpose.xlu0.b32.cont [5/16] %v5213_v3, 128  ;;  %v5222_v15 = vrot.slane %v11454_v30, 3  ;;  %v12481_v46 = vrot.slane %v10968_v33, 7  ;;  %v4949_v23 = vld [vmem:[#allocation2 + $0x3d8] sm:$0x1]  ;;  %v4862_v16 = vpop.trf.xlu1 }
 0x29e   :  { %v12482_v36 = vrot.slane %v10988_v61, 7  ;;  %v5242_v24 = vrot.slane %v4945_v20, 7  ;;  %v12483_v14 = vrot.slane %v10970_v9, 6  ;;  %v12484_v48 = vrot.slane %v10992_v4, 6  ;;  %v4950_v8 = vld [vmem:[#allocation2 + $0x3e8] sm:$0x1] }
 0x29f   :  { %v5773_v63 = vsel %vm785_vm1, %v12481_v46, %v5480_v17  ;;  %322 = vst [vmem:[#allocation2 + $0x2c8] sm:$0xff] %v319_v26  ;;  %327 = vst [vmem:[#allocation2 + $0x288] sm:$0xff] %v324_v55  ;;  %v5244_v42 = vrot.slane %v4946_v45, 6  ;;  %v5246_v0 = vrot.slane %v4947_v39, 5  ;;  %v12485_v61 = vrot.slane %v10972_v58, 5  ;;  %v12488_v52 = vld [vmem:[#allocation8_spill] sm:$0xff]  ;;  %v4318_v17 = vpop.trf.xlu0 }
 0x2a0   :  { %v5229_v2 = vsel %vm785_vm1, %v12482_v36, %v4936_v22  ;;  %v5775_v50 = vsel %vm788_vm2, %v12483_v14, %v5773_v63  ;;  %v12486_v57 = vrot.slane %v10994_v40, 5  ;;  %v5243_v59 = vsel %vm785_vm1, %v5242_v24, %v4944_v1  ;;  %v11487_v19 = vld [vmem:[#allocation2 + $0x2e8] sm:$0x1]  ;;  %v11489_v7 = vld [vmem:[#allocation2 + $0x2f8] sm:$0x1]  ;;  %v12490_v27 = vld [vmem:[#allocation21_spill] sm:$0xff] }
 0x2a1   :  { %v5231_v33 = vsel %vm788_vm2, %v12484_v48, %v5229_v2  ;;  %v5777_v49 = vsel %vm791_vm4, %v12485_v61, %v5775_v50  ;;  %v5248_v9 = vrot.slane %v4948_v54, 4  ;;  %v12487_v4 = vrot.slane %v10975_v35, 4  ;;  %v4951_v21 = vld [vmem:[#allocation2 + $0x3f8] sm:$0x1]  ;;  %v4863_v22 = vpop.trf.xlu1  ;;  %v12494_v39 = vld [vmem:[#allocation7_spill] sm:$0xff]  ;;  %v12496_v26 = vld [vmem:[#allocation9_spill] sm:$0xff] }
 0x2a2   :  { %v5233_v5 = vsel %vm791_vm4, %v12486_v57, %v5231_v33  ;;  %v12489_v44 = vrot.slane %v12488_v52, 4  ;;  %v5245_v25 = vsel %vm788_vm2, %v5244_v42, %v5243_v59  ;;  %v5250_v40 = vrot.slane %v4949_v23, 3  ;;  %v12498_v54 = vld [vmem:[#allocation15_spill] sm:$0xff]  ;;  %v5497_v2 = vld [vmem:[#allocation2 + $0x419] sm:$0x1]  ;;  %v12504_v52 = vld [vmem:[#allocation10_spill] sm:$0xff] }
 0x2a3   :  { %v5779_v51 = vsel %vm794_vm5, %v12487_v4, %v5777_v49  ;;  %v12491_v37 = vrot.slane %v12490_v27, 3  ;;  %v12493_v62 = vrot.slane %v12492_v11, 3  ;;  %v5247_v35 = vsel %vm791_vm4, %v5246_v0, %v5245_v25  ;;  %v5473_v53 = vld [vmem:[#allocation2 + $0x299] sm:$0x1]  ;;  %v4929_v45 = vld [vmem:[#allocation2 + $0x298] sm:$0x1] }
 0x2a4   :  { %v5235_v58 = vsel %vm794_vm5, %v12489_v44, %v5233_v5  ;;  %v5252_v13 = vrot.slane %v4950_v8, 2  ;;  %v5475_v31 = vld [vmem:[#allocation2 + $0x2b9] sm:$0x1]  ;;  %v12495_v56 = vrot.slane %v12494_v39, 2  ;;  %v12497_v55 = vrot.slane %v12496_v26, 2 }
 0x2a5   :  { %v5781_v20 = vsel %vm797_vm6, %v12491_v37, %v5779_v51  ;;  %v5237_v41 = vsel %vm797_vm6, %v12493_v62, %v5235_v58  ;;  %v12499_v46 = vrot.slane %v12498_v54, 2  ;;  %v5249_v36 = vsel %vm794_vm5, %v5248_v9, %v5247_v35  ;;  %v4931_v24 = vld [vmem:[#allocation2 + $0x2b8] sm:$0x1]  ;;  %v5498_v50 = vld [vmem:[#allocation2 + $0x429] sm:$0x1]  ;;  %v4864_v27 = vpop.trf.xlu1 }
 0x2a6   :  { %v5783_v3 = vsel %vm800_vm7, %v12495_v56, %v5781_v20  ;;  %v5239_v1 = vsel %vm800_vm7, %v12497_v55, %v5237_v41  ;;  %v5758_v23 = vrot.slane %v5473_v53, 7  ;;  %v5214_v47 = vrot.slane %v4929_v45, 7  ;;  %v5499_v48 = vld [vmem:[#allocation2 + $0x439] sm:$0x1]  ;;  %v5496_v61 = vld [vmem:[#allocation2 + $0x409] sm:$0x1] }
 0x2a7   :  { %v5797_v63 = vsel %vm800_vm7, %v12499_v46, %v11439_v32  ;;  %v5224_v16 = vrot.slane %v11487_v19, 2  ;;  %v5226_v14 = vrot.slane %v11489_v7, 1  ;;  %v5762_v33 = vrot.slane %v5475_v31, 5  ;;  %v5500_v49 = vld [vmem:[#allocation2 + $0x449] sm:$0x1]  ;;  %v12500_v59 = vld [vmem:[#allocation12_spill] sm:$0xff] }
 0x2a8   :  { %v5218_v8 = vrot.slane %v4931_v24, 5  ;;  %v5251_v42 = vsel %vm797_vm6, %v5250_v40, %v5249_v36  ;;  %v5254_v0 = vrot.slane %v4951_v21, 1  ;;  %v5472_v32 = vld [vmem:[#allocation2 + $0x289] sm:$0x1]  ;;  %v4928_v5 = vld [vmem:[#allocation2 + $0x288] sm:$0x1]  ;;  %v4319_v40 = vpop.trf.xlu0 }
 0x2a9   :  { %v5476_v57 = vld [vmem:[#allocation2 + $0x2c9] sm:$0x1]  ;;  %v12501_v9 = vrot.slane %v12500_v59, 1  ;;  %v12505_v44 = vrot.slane %v12504_v52, 1  ;;  %v5253_v25 = vsel %vm800_vm7, %v5252_v13, %v5251_v42  ;;  %v5759_v37 = vsel %vm785_vm1, %v5758_v23, %v5472_v32  ;;  %v4932_v11 = vld [vmem:[#allocation2 + $0x2c8] sm:$0x1] }
 0x2aa   :  { %v12502_v19 = vld [vmem:[#allocation14_spill] sm:$0xff]  ;;  %v5764_v20 = vrot.slane %v5476_v57, 4  ;;  %v5215_v62 = vsel %vm785_vm1, %v5214_v47, %v4928_v5  ;;  %v11538_v41 = vsel %vm803_vm8, %v5254_v0, %v5253_v25  ;;  %v5501_v21 = vld [vmem:[#allocation2 + $0x459] sm:$0x1]  ;;  %v5761_v35 = vsel %vm788_vm2, %v5760_v38, %v5759_v37  ;;  %v4953_v26 = vld [vmem:[#allocation2 + $0x418] sm:$0x1] }
 0x2ab   :  { %v11522_v4 = vsel %vm803_vm8, %v12501_v9, %v5783_v3  ;;  %v12503_v51 = vrot.slane %v12502_v19, 1  ;;  %v11532_v58 = vsel %vm803_vm8, %v12505_v44, %v5797_v63  ;;  %v5217_v13 = vsel %vm788_vm2, %v5216_v34, %v5215_v62  ;;  %v5502_v22 = vld [vmem:[#allocation2 + $0x469] sm:$0x1]  ;;  %v5503_v53 = vld [vmem:[#allocation2 + $0x479] sm:$0x1] }
 0x2ac   :  { %v5220_v17 = vrot.slane %v4932_v11, 4  ;;  %v5800_v31 = vrot.slane %v5497_v2, 7  ;;  %v5763_v45 = vsel %vm791_vm4, %v5762_v33, %v5761_v35  ;;  %v5219_v39 = vsel %vm791_vm4, %v5218_v8, %v5217_v13  ;;  %v4954_v55 = vld [vmem:[#allocation2 + $0x428] sm:$0x1]  ;;  %v11553_v46 = vld [vmem:[#allocation2 + $0x458] sm:$0x1]  ;;  %v4320_v36 = vpop.trf.xlu0  ;;  %v4865_v2 = vpop.trf.xlu1 }
 0x2ad   :  { %v11527_v7 = vsel %vm803_vm8, %v12503_v51, %v5239_v1  ;;  %v5802_v56 = vrot.slane %v5498_v50, 6  ;;  %v5804_v3 = vrot.slane %v5499_v48, 5  ;;  %v4955_v1 = vld [vmem:[#allocation2 + $0x438] sm:$0x1]  ;;  %v5765_v29 = vsel %vm794_vm5, %v5764_v20, %v5763_v45  ;;  %v11551_v54 = vld [vmem:[#allocation2 + $0x448] sm:$0x1] }
 0x2ae   :  { %v5221_v38 = vsel %vm794_vm5, %v5220_v17, %v5219_v39  ;;  %v5801_v12 = vsel %vm785_vm1, %v5800_v31, %v5496_v61  ;;  %v5806_v34 = vrot.slane %v5500_v49, 4  ;;  %v11555_v63 = vld [vmem:[#allocation2 + $0x468] sm:$0x1]  ;;  %v5767_v23 = vsel %vm797_vm6, %v5766_v18, %v5765_v29  ;;  %v11564_v33 = vld [vmem:[#allocation2 + $0x478] sm:$0x1] }
 0x2af   :  { %v5223_v24 = vsel %vm797_vm6, %v5222_v15, %v5221_v38  ;;  %v5803_v47 = vsel %vm788_vm2, %v5802_v56, %v5801_v12  ;;  %v5808_v50 = vrot.slane %v5501_v21, 3  ;;  %v4952_v48 = vld [vmem:[#allocation2 + $0x408] sm:$0x1]  ;;  %v5505_v8 = vld [vmem:[#allocation2 + $0x499] sm:$0x1]  ;;  %v5769_v42 = vsel %vm800_vm7, %v5768_v43, %v5767_v23 }
 0x2b0   :  { %v5225_v0 = vsel %vm800_vm7, %v5224_v16, %v5223_v24  ;;  %v5805_v6 = vsel %vm791_vm4, %v5804_v3, %v5803_v47  ;;  %v5810_v18 = vrot.slane %v5502_v22, 2  ;;  %v5506_v61 = vld [vmem:[#allocation2 + $0x4a9] sm:$0x1]  ;;  %v5507_v30 = vld [vmem:[#allocation2 + $0x4b9] sm:$0x1]  ;;  %v5771_v15 = vsel %vm803_vm8, %v5770_v10, %v5769_v42  ;;  %v4321_v10 = vpop.trf.xlu0  ;;  %v4866_v17 = vpop.trf.xlu1 }
 0x2b1   :  { %v5508_v49 = vld [vmem:[#allocation2 + $0x4c9] sm:$0x1]  ;;  %v5227_v32 = vsel %vm803_vm8, %v5226_v14, %v5225_v0  ;;  %v5807_v57 = vsel %vm794_vm5, %v5806_v34, %v5805_v6  ;;  %v5812_v5 = vrot.slane %v5503_v53, 1  ;;  %v5509_v59 = vld [vmem:[#allocation2 + $0x4d9] sm:$0x1]  ;;  %5933 = vxpose.xlu1.b32.cont [6/16] %v5771_v15, 128  ;;  %v5256_v9 = vrot.slane %v4953_v26, 7 }
 0x2b2   :  { %v5504_v60 = vld [vmem:[#allocation2 + $0x489] sm:$0x1]  ;;  %5389 = vxpose.xlu0.b32.cont [6/16] %v5227_v32, 128  ;;  %v5809_v16 = vsel %vm797_vm6, %v5808_v50, %v5807_v57  ;;  %v5258_v19 = vrot.slane %v4954_v55, 6  ;;  %v5260_v51 = vrot.slane %v4955_v1, 5  ;;  %v11579_v52 = vld [vmem:[#allocation2 + $0x4f9] sm:$0x1] }
 0x2b3   :  { %v11576_v43 = vld [vmem:[#allocation2 + $0x4e9] sm:$0x1]  ;;  %v4961_v28 = vld [vmem:[#allocation2 + $0x498] sm:$0x1]  ;;  %v5811_v14 = vsel %vm800_vm7, %v5810_v18, %v5809_v16  ;;  %v5262_v44 = vrot.slane %v11551_v54, 4  ;;  %v5264_v25 = vrot.slane %v11553_v46, 3  ;;  %v5257_v20 = vsel %vm785_vm1, %v5256_v9, %v4952_v48 }
 0x2b4   :  { %v5266_v40 = vrot.slane %v11555_v63, 2  ;;  %v4962_v27 = vld [vmem:[#allocation2 + $0x4a8] sm:$0x1]  ;;  %v11586_v37 = vsel %vm803_vm8, %v5812_v5, %v5811_v14  ;;  %v5268_v11 = vrot.slane %v11564_v33, 1  ;;  %v5814_v62 = vrot.slane %v5505_v8, 7  ;;  %v4322_v47 = vpop.trf.xlu0  ;;  %v4867_v16 = vpop.trf.xlu1 }
 0x2b5   :  { %v4960_v21 = vld [vmem:[#allocation2 + $0x488] sm:$0x1]  ;;  %v4963_v35 = vld [vmem:[#allocation2 + $0x4b8] sm:$0x1]  ;;  %v5259_v22 = vsel %vm788_vm2, %v5258_v19, %v5257_v20  ;;  %v5816_v53 = vrot.slane %v5506_v61, 6  ;;  %v5818_v31 = vrot.slane %v5507_v30, 5  ;;  %5934 = vxpose.xlu1.b32.cont [7/16] %v11522_v4, 128 }
 0x2b6   :  { %v4964_v13 = vld [vmem:[#allocation2 + $0x4c8] sm:$0x1]  ;;  %v5820_v45 = vrot.slane %v5508_v49, 4  ;;  %v4965_v39 = vld [vmem:[#allocation2 + $0x4d8] sm:$0x1]  ;;  %5390 = vxpose.xlu0.b32.cont [7/16] %v11527_v7, 128  ;;  %v5261_v56 = vsel %vm791_vm4, %v5260_v51, %v5259_v22  ;;  %v5815_v3 = vsel %vm785_vm1, %v5814_v62, %v5504_v60  ;;  %v5822_v26 = vrot.slane %v5509_v59, 3 }
 0x2b7   :  { %v5824_v55 = vrot.slane %v11576_v43, 2  ;;  %v4966_v1 = vld [vmem:[#allocation2 + $0x4e8] sm:$0x1]  ;;  %v4967_v29 = vld [vmem:[#allocation2 + $0x4f8] sm:$0x1]  ;;  %v5263_v38 = vsel %vm794_vm5, %v5262_v44, %v5261_v56  ;;  %v5817_v12 = vsel %vm788_vm2, %v5816_v53, %v5815_v3  ;;  %v5826_v34 = vrot.slane %v11579_v52, 1 }
 0x2b8   :  { %v5270_v54 = vrot.slane %v4961_v28, 7  ;;  %v5513_v46 = vld [vmem:[#allocation2 + $0x519] sm:$0x1]  ;;  %v5514_v4 = vld [vmem:[#allocation2 + $0x529] sm:$0x1]  ;;  %v5265_v7 = vsel %vm797_vm6, %v5264_v25, %v5263_v38  ;;  %v5819_v63 = vsel %vm791_vm4, %v5818_v31, %v5817_v12  ;;  %v5272_v36 = vrot.slane %v4962_v27, 6  ;;  %v4323_v56 = vpop.trf.xlu0  ;;  %v4868_v47 = vpop.trf.xlu1 }
 0x2b9   :  { %v5274_v2 = vrot.slane %v4963_v35, 5  ;;  %v5515_v23 = vld [vmem:[#allocation2 + $0x539] sm:$0x1]  ;;  %v5516_v24 = vld [vmem:[#allocation2 + $0x549] sm:$0x1]  ;;  %v5267_v50 = vsel %vm800_vm7, %v5266_v40, %v5265_v7  ;;  %v5821_v48 = vsel %vm794_vm5, %v5820_v45, %v5819_v63  ;;  %v5276_v8 = vrot.slane %v4964_v13, 4  ;;  %5935 = vxpose.xlu1.b32.cont [8/16] %v11532_v58, 128 }
 0x2ba   :  { %v5271_v33 = vsel %vm785_vm1, %v5270_v54, %v4960_v21  ;;  %v5512_v42 = vld [vmem:[#allocation2 + $0x509] sm:$0x1]  ;;  %v5517_v0 = vld [vmem:[#allocation2 + $0x559] sm:$0x1]  ;;  %5391 = vxpose.xlu0.b32.cont [8/16] %v11538_v41, 128  ;;  %v5269_v18 = vsel %vm803_vm8, %v5268_v11, %v5267_v50  ;;  %v5823_v61 = vsel %vm797_vm6, %v5822_v26, %v5821_v48  ;;  %v5278_v49 = vrot.slane %v4965_v39, 3 }
 0x2bb   :  { %v11604_v6 = vld [vmem:[#allocation2 + $0x569] sm:$0x1]  ;;  %v5273_v30 = vsel %vm788_vm2, %v5272_v36, %v5271_v33  ;;  %v11611_v15 = vld [vmem:[#allocation2 + $0x579] sm:$0x1]  ;;  %v4969_v32 = vld [vmem:[#allocation2 + $0x518] sm:$0x1]  ;;  %v5825_v57 = vsel %vm800_vm7, %v5824_v55, %v5823_v61 }
 0x2bc   :  { %v5275_v5 = vsel %vm791_vm4, %v5274_v2, %v5273_v30  ;;  %v5280_v60 = vrot.slane %v4966_v1, 2  ;;  %v5282_v59 = vrot.slane %v4967_v29, 1  ;;  %v4970_v43 = vld [vmem:[#allocation2 + $0x528] sm:$0x1]  ;;  %v4971_v58 = vld [vmem:[#allocation2 + $0x538] sm:$0x1]  ;;  %v5827_v41 = vsel %vm803_vm8, %v5826_v34, %v5825_v57  ;;  %v4869_v56 = vpop.trf.xlu1 }
 0x2bd   :  { %v5277_v9 = vsel %vm794_vm5, %v5276_v8, %v5275_v5  ;;  %v5828_v19 = vrot.slane %v5513_v46, 7  ;;  %v5830_v51 = vrot.slane %v5514_v4, 6  ;;  %v4968_v52 = vld [vmem:[#allocation2 + $0x508] sm:$0x1]  ;;  %v4973_v10 = vld [vmem:[#allocation2 + $0x558] sm:$0x1]  ;;  %5936 = vxpose.xlu1.b32.cont [9/16] %v11586_v37, 128 }
 0x2be   :  { %v4972_v28 = vld [vmem:[#allocation2 + $0x548] sm:$0x1]  ;;  %v5279_v14 = vsel %vm797_vm6, %v5278_v49, %v5277_v9  ;;  %v5832_v44 = vrot.slane %v5515_v23, 5  ;;  %v5834_v25 = vrot.slane %v5516_v24, 4  ;;  %v5836_v40 = vrot.slane %v5517_v0, 3  ;;  %5392 = vxpose.xlu0.b32.cont [9/16] %v5269_v18, 128 }
 0x2bf   :  { %v4974_v27 = vld [vmem:[#allocation2 + $0x568] sm:$0x1]  ;;  %v5281_v20 = vsel %vm800_vm7, %v5280_v60, %v5279_v14  ;;  %v5829_v11 = vsel %vm785_vm1, %v5828_v19, %v5512_v42  ;;  %v5838_v62 = vrot.slane %v11604_v6, 2  ;;  %v5840_v21 = vrot.slane %v11611_v15, 1  ;;  %v4975_v35 = vld [vmem:[#allocation2 + $0x578] sm:$0x1] }
 0x2c0   :  { %v5521_v13 = vld [vmem:[#allocation2 + $0x599] sm:$0x1]  ;;  %v5283_v17 = vsel %vm803_vm8, %v5282_v59, %v5281_v20  ;;  %v5831_v22 = vsel %vm788_vm2, %v5830_v51, %v5829_v11  ;;  %v5284_v53 = vrot.slane %v4969_v32, 7  ;;  %v5286_v31 = vrot.slane %v4970_v43, 6  ;;  %v5520_v45 = vld [vmem:[#allocation2 + $0x589] sm:$0x1] }
 0x2c1   :  { %v5522_v39 = vld [vmem:[#allocation2 + $0x5a9] sm:$0x1]  ;;  %v5523_v37 = vld [vmem:[#allocation2 + $0x5b9] sm:$0x1]  ;;  %v5833_v3 = vsel %vm791_vm4, %v5832_v44, %v5831_v22  ;;  %v5288_v26 = vrot.slane %v4971_v58, 5  ;;  %v5290_v55 = vrot.slane %v4972_v28, 4  ;;  %5937 = vxpose.xlu1.b32.cont [10/16] %v5827_v41, 128 }
 0x2c2   :  { %v5292_v1 = vrot.slane %v4973_v10, 3  ;;  %v5524_v29 = vld [vmem:[#allocation2 + $0x5c9] sm:$0x1]  ;;  %v5835_v38 = vsel %vm794_vm5, %v5834_v25, %v5833_v3  ;;  %v5285_v12 = vsel %vm785_vm1, %v5284_v53, %v4968_v52  ;;  %v5294_v34 = vrot.slane %v4974_v27, 2  ;;  %v5525_v46 = vld [vmem:[#allocation2 + $0x5d9] sm:$0x1]  ;;  %5393 = vxpose.xlu0.b32.cont [10/16] %v5283_v17, 128  ;;  %v4324_v10 = vpop.trf.xlu0 }
 0x2c3   :  { %v5296_v54 = vrot.slane %v4975_v35, 1  ;;  %v5526_v4 = vld [vmem:[#allocation2 + $0x5e9] sm:$0x1]  ;;  %v5837_v7 = vsel %vm797_vm6, %v5836_v40, %v5835_v38  ;;  %v5287_v63 = vsel %vm788_vm2, %v5286_v31, %v5285_v12  ;;  %v5527_v36 = vld [vmem:[#allocation2 + $0x5f9] sm:$0x1]  ;;  %v5842_v2 = vrot.slane %v5521_v13, 7 }
 0x2c4   :  { %v5844_v23 = vrot.slane %v5522_v39, 6  ;;  %v4977_v24 = vld [vmem:[#allocation2 + $0x598] sm:$0x1]  ;;  %v5839_v50 = vsel %vm800_vm7, %v5838_v62, %v5837_v7  ;;  %v5289_v48 = vsel %vm791_vm4, %v5288_v26, %v5287_v63  ;;  %v5846_v33 = vrot.slane %v5523_v37, 5  ;;  %v4976_v42 = vld [vmem:[#allocation2 + $0x588] sm:$0x1] }
 0x2c5   :  { %v5848_v8 = vrot.slane %v5524_v29, 4  ;;  %v4978_v0 = vld [vmem:[#allocation2 + $0x5a8] sm:$0x1]  ;;  %v4979_v6 = vld [vmem:[#allocation2 + $0x5b8] sm:$0x1]  ;;  %v5841_v18 = vsel %vm803_vm8, %v5840_v21, %v5839_v50  ;;  %v5291_v61 = vsel %vm794_vm5, %v5290_v55, %v5289_v48  ;;  %v5843_v30 = vsel %vm785_vm1, %v5842_v2, %v5520_v45 }
 0x2c6   :  { %v5850_v49 = vrot.slane %v5525_v46, 3  ;;  %v4980_v15 = vld [vmem:[#allocation2 + $0x5c8] sm:$0x1]  ;;  %v4981_v32 = vld [vmem:[#allocation2 + $0x5d8] sm:$0x1]  ;;  %v5293_v57 = vsel %vm797_vm6, %v5292_v1, %v5291_v61  ;;  %v5845_v5 = vsel %vm788_vm2, %v5844_v23, %v5843_v30  ;;  %v5852_v60 = vrot.slane %v5526_v4, 2  ;;  %5938 = vxpose.xlu1.b32.cont [11/16] %v5841_v18, 128  ;;  %v4325_v61 = vpop.trf.xlu0 }
 0x2c7   :  { %v5854_v59 = vrot.slane %v5527_v36, 1  ;;  %v4982_v43 = vld [vmem:[#allocation2 + $0x5e8] sm:$0x1]  ;;  %v4983_v58 = vld [vmem:[#allocation2 + $0x5f8] sm:$0x1]  ;;  %v5295_v16 = vsel %vm800_vm7, %v5294_v34, %v5293_v57  ;;  %v5847_v41 = vsel %vm791_vm4, %v5846_v33, %v5845_v5  ;;  %v5298_v9 = vrot.slane %v4977_v24, 7 }
 0x2c8   :  { %v5300_v19 = vrot.slane %v4978_v0, 6  ;;  %v5528_v51 = vld [vmem:[#allocation2 + $0x609] sm:$0x1]  ;;  %v5529_v52 = vld [vmem:[#allocation2 + $0x619] sm:$0x1]  ;;  %v5297_v14 = vsel %vm803_vm8, %v5296_v54, %v5295_v16  ;;  %v5849_v44 = vsel %vm794_vm5, %v5848_v8, %v5847_v41  ;;  %v5302_v25 = vrot.slane %v4979_v6, 5 }
 0x2c9   :  { %v5530_v28 = vld [vmem:[#allocation2 + $0x629] sm:$0x1]  ;;  %v5304_v40 = vrot.slane %v4980_v15, 4  ;;  %v5531_v27 = vld [vmem:[#allocation2 + $0x639] sm:$0x1]  ;;  %5394 = vxpose.xlu0.b32.cont [11/16] %v5297_v14, 128  ;;  %v5851_v11 = vsel %vm797_vm6, %v5850_v49, %v5849_v44  ;;  %v5299_v62 = vsel %vm785_vm1, %v5298_v9, %v4976_v42  ;;  %v5306_v21 = vrot.slane %v4981_v32, 3  ;;  %v4870_v14 = vpop.trf.xlu1 }
 0x2ca   :  { %v5532_v20 = vld [vmem:[#allocation2 + $0x649] sm:$0x1]  ;;  %v5308_v35 = vrot.slane %v4982_v43, 2  ;;  %v5533_v13 = vld [vmem:[#allocation2 + $0x659] sm:$0x1]  ;;  %v5853_v22 = vsel %vm800_vm7, %v5852_v60, %v5851_v11  ;;  %v5301_v53 = vsel %vm788_vm2, %v5300_v19, %v5299_v62  ;;  %v5310_v31 = vrot.slane %v4983_v58, 1 }
 0x2cb   :  { %v5534_v17 = vld [vmem:[#allocation2 + $0x669] sm:$0x1]  ;;  %v5535_v45 = vld [vmem:[#allocation2 + $0x679] sm:$0x1]  ;;  %v5856_v39 = vrot.slane %v5529_v52, 7  ;;  %v5855_v3 = vsel %vm803_vm8, %v5854_v59, %v5853_v22  ;;  %v5303_v26 = vsel %vm791_vm4, %v5302_v25, %v5301_v53  ;;  %v5858_v55 = vrot.slane %v5530_v28, 6 }
 0x2cc   :  { %v4985_v37 = vld [vmem:[#allocation2 + $0x618] sm:$0x1]  ;;  %v5860_v1 = vrot.slane %v5531_v27, 5  ;;  %v4984_v29 = vld [vmem:[#allocation2 + $0x608] sm:$0x1]  ;;  %5939 = vxpose.xlu1.b32.cont [12/16] %v5855_v3, 128  ;;  %v5305_v34 = vsel %vm794_vm5, %v5304_v40, %v5303_v26  ;;  %v5862_v46 = vrot.slane %v5532_v20, 4 }
 0x2cd   :  { %v4986_v38 = vld [vmem:[#allocation2 + $0x628] sm:$0x1]  ;;  %v4987_v12 = vld [vmem:[#allocation2 + $0x638] sm:$0x1]  ;;  %v5857_v54 = vsel %vm785_vm1, %v5856_v39, %v5528_v51  ;;  %v5864_v4 = vrot.slane %v5533_v13, 3  ;;  %v5307_v36 = vsel %vm797_vm6, %v5306_v21, %v5305_v34  ;;  %v5866_v23 = vrot.slane %v5534_v17, 2 }
 0x2ce   :  { %v4988_v7 = vld [vmem:[#allocation2 + $0x648] sm:$0x1]  ;;  %v4989_v63 = vld [vmem:[#allocation2 + $0x658] sm:$0x1]  ;;  %v5859_v2 = vsel %vm788_vm2, %v5858_v55, %v5857_v54  ;;  %v5868_v24 = vrot.slane %v5535_v45, 1  ;;  %v5309_v48 = vsel %vm800_vm7, %v5308_v35, %v5307_v36  ;;  %v5312_v8 = vrot.slane %v4985_v37, 7  ;;  %v4326_v54 = vpop.trf.xlu0 }
 0x2cf   :  { %v4990_v47 = vld [vmem:[#allocation2 + $0x668] sm:$0x1]  ;;  %v4991_v50 = vld [vmem:[#allocation2 + $0x678] sm:$0x1]  ;;  %v5861_v33 = vsel %vm791_vm4, %v5860_v1, %v5859_v2  ;;  %v5314_v42 = vrot.slane %v4986_v38, 6  ;;  %v5311_v30 = vsel %vm803_vm8, %v5310_v31, %v5309_v48  ;;  %v5316_v15 = vrot.slane %v4987_v12, 5 }
 0x2d0   :  { %v5536_v0 = vld [vmem:[#allocation2 + $0x689] sm:$0x1]  ;;  %v5537_v6 = vld [vmem:[#allocation2 + $0x699] sm:$0x1]  ;;  %v5863_v49 = vsel %vm794_vm5, %v5862_v46, %v5861_v33  ;;  %v5318_v32 = vrot.slane %v4988_v7, 4  ;;  %5395 = vxpose.xlu0.b32.cont [12/16] %v5311_v30, 128  ;;  %v5313_v59 = vsel %vm785_vm1, %v5312_v8, %v4984_v29  ;;  %v5320_v43 = vrot.slane %v4989_v63, 3  ;;  %v4871_v30 = vpop.trf.xlu1 }
 0x2d1   :  { %v5538_v18 = vld [vmem:[#allocation2 + $0x6a9] sm:$0x1]  ;;  %v5539_v57 = vld [vmem:[#allocation2 + $0x6b9] sm:$0x1]  ;;  %v5865_v60 = vsel %vm797_vm6, %v5864_v4, %v5863_v49  ;;  %v5322_v58 = vrot.slane %v4990_v47, 2  ;;  %v5315_v19 = vsel %vm788_vm2, %v5314_v42, %v5313_v59  ;;  %v5324_v51 = vrot.slane %v4991_v50, 1 }
 0x2d2   :  { %v5540_v5 = vld [vmem:[#allocation2 + $0x6c9] sm:$0x1]  ;;  %v5541_v16 = vld [vmem:[#allocation2 + $0x6d9] sm:$0x1]  ;;  %v5867_v9 = vsel %vm800_vm7, %v5866_v23, %v5865_v60  ;;  %v5870_v28 = vrot.slane %v5537_v6, 7  ;;  %v5317_v25 = vsel %vm791_vm4, %v5316_v15, %v5315_v19  ;;  %v5872_v40 = vrot.slane %v5538_v18, 6 }
 0x2d3   :  { %v5542_v41 = vld [vmem:[#allocation2 + $0x6e9] sm:$0x1]  ;;  %v5543_v52 = vld [vmem:[#allocation2 + $0x6f9] sm:$0x1]  ;;  %v4993_v10 = vld [vmem:[#allocation2 + $0x698] sm:$0x1]  ;;  %v5869_v44 = vsel %vm803_vm8, %v5868_v24, %v5867_v9  ;;  %v5319_v21 = vsel %vm794_vm5, %v5318_v32, %v5317_v25 }
 0x2d4   :  { %v5874_v27 = vrot.slane %v5539_v57, 5  ;;  %v4992_v20 = vld [vmem:[#allocation2 + $0x688] sm:$0x1]  ;;  %v4995_v62 = vld [vmem:[#allocation2 + $0x6b8] sm:$0x1]  ;;  %5940 = vxpose.xlu1.b32.cont [13/16] %v5869_v44, 128  ;;  %v5871_v35 = vsel %vm785_vm1, %v5870_v28, %v5536_v0  ;;  %v5876_v13 = vrot.slane %v5540_v5, 4  ;;  %v5321_v31 = vsel %vm797_vm6, %v5320_v43, %v5319_v21 }
 0x2d5   :  { %v4994_v11 = vld [vmem:[#allocation2 + $0x6a8] sm:$0x1]  ;;  %v5878_v17 = vrot.slane %v5541_v16, 3  ;;  %v4997_v53 = vld [vmem:[#allocation2 + $0x6d8] sm:$0x1]  ;;  %v5873_v45 = vsel %vm788_vm2, %v5872_v40, %v5871_v35  ;;  %v5880_v39 = vrot.slane %v5542_v41, 2  ;;  %v5323_v26 = vsel %vm800_vm7, %v5322_v58, %v5321_v31  ;;  %v4327_v35 = vpop.trf.xlu0 }
 0x2d6   :  { %v4996_v22 = vld [vmem:[#allocation2 + $0x6c8] sm:$0x1]  ;;  %v5882_v37 = vrot.slane %v5543_v52, 1  ;;  %v4999_v3 = vld [vmem:[#allocation2 + $0x6f8] sm:$0x1]  ;;  %v5875_v55 = vsel %vm791_vm4, %v5874_v27, %v5873_v45  ;;  %v5326_v1 = vrot.slane %v4993_v10, 7  ;;  %v5325_v46 = vsel %vm803_vm8, %v5324_v51, %v5323_v26 }
 0x2d7   :  { %v4998_v56 = vld [vmem:[#allocation2 + $0x6e8] sm:$0x1]  ;;  %v5328_v29 = vrot.slane %v4994_v11, 6  ;;  %v5544_v38 = vld [vmem:[#allocation2 + $0x709] sm:$0x1]  ;;  %v5877_v4 = vsel %vm794_vm5, %v5876_v13, %v5875_v55  ;;  %v5330_v7 = vrot.slane %v4995_v62, 5  ;;  %5396 = vxpose.xlu0.b32.cont [13/16] %v5325_v46, 128 }
 0x2d8   :  { %v5545_v12 = vld [vmem:[#allocation2 + $0x719] sm:$0x1]  ;;  %v5546_v34 = vld [vmem:[#allocation2 + $0x729] sm:$0x1]  ;;  %v5332_v63 = vrot.slane %v4996_v22, 4  ;;  %v5879_v23 = vsel %vm797_vm6, %v5878_v17, %v5877_v4  ;;  %v5327_v24 = vsel %vm785_vm1, %v5326_v1, %v4992_v20  ;;  %v5334_v47 = vrot.slane %v4997_v53, 3 }
 0x2d9   :  { %v5547_v36 = vld [vmem:[#allocation2 + $0x739] sm:$0x1]  ;;  %v5548_v2 = vld [vmem:[#allocation2 + $0x749] sm:$0x1]  ;;  %v5336_v50 = vrot.slane %v4998_v56, 2  ;;  %v5881_v8 = vsel %vm800_vm7, %v5880_v39, %v5879_v23  ;;  %v5329_v42 = vsel %vm788_vm2, %v5328_v29, %v5327_v24  ;;  %v5338_v0 = vrot.slane %v4999_v3, 1 }
 0x2da   :  { %v5549_v48 = vld [vmem:[#allocation2 + $0x759] sm:$0x1]  ;;  %v5550_v33 = vld [vmem:[#allocation2 + $0x769] sm:$0x1]  ;;  %v5884_v18 = vrot.slane %v5545_v12, 7  ;;  %v5883_v49 = vsel %vm803_vm8, %v5882_v37, %v5881_v8  ;;  %v5331_v15 = vsel %vm791_vm4, %v5330_v7, %v5329_v42  ;;  %v5886_v32 = vrot.slane %v5546_v34, 6 }
 0x2db   :  { %v5551_v6 = vld [vmem:[#allocation2 + $0x779] sm:$0x1]  ;;  %v5001_v61 = vld [vmem:[#allocation2 + $0x718] sm:$0x1]  ;;  %v5888_v57 = vrot.slane %v5547_v36, 5  ;;  %5941 = vxpose.xlu1.b32.cont [14/16] %v5883_v49, 128  ;;  %v5333_v43 = vsel %vm794_vm5, %v5332_v63, %v5331_v15  ;;  %v5890_v16 = vrot.slane %v5548_v2, 4 }
 0x2dc   :  { %v5000_v5 = vld [vmem:[#allocation2 + $0x708] sm:$0x1]  ;;  %v5003_v59 = vld [vmem:[#allocation2 + $0x738] sm:$0x1]  ;;  %v5885_v58 = vsel %vm785_vm1, %v5884_v18, %v5544_v38  ;;  %v5892_v41 = vrot.slane %v5549_v48, 3  ;;  %v5335_v51 = vsel %vm797_vm6, %v5334_v47, %v5333_v43  ;;  %v5894_v28 = vrot.slane %v5550_v33, 2 }
 0x2dd   :  { %v5002_v60 = vld [vmem:[#allocation2 + $0x728] sm:$0x1]  ;;  %v5005_v19 = vld [vmem:[#allocation2 + $0x758] sm:$0x1]  ;;  %v5887_v52 = vsel %vm788_vm2, %v5886_v32, %v5885_v58  ;;  %v5896_v10 = vrot.slane %v5551_v6, 1  ;;  %v5337_v25 = vsel %vm800_vm7, %v5336_v50, %v5335_v51  ;;  %v5340_v27 = vrot.slane %v5001_v61, 7 }
 0x2de   :  { %v5004_v9 = vld [vmem:[#allocation2 + $0x748] sm:$0x1]  ;;  %v5007_v44 = vld [vmem:[#allocation2 + $0x778] sm:$0x1]  ;;  %v5889_v40 = vsel %vm791_vm4, %v5888_v57, %v5887_v52  ;;  %v5342_v20 = vrot.slane %v5002_v60, 6  ;;  %v5339_v13 = vsel %vm803_vm8, %v5338_v0, %v5337_v25  ;;  %v5344_v22 = vrot.slane %v5003_v59, 5 }
 0x2df   :  { %v5006_v14 = vld [vmem:[#allocation2 + $0x768] sm:$0x1]  ;;  %v5552_v11 = vld [vmem:[#allocation2 + $0x789] sm:$0x1]  ;;  %v5553_v62 = vld [vmem:[#allocation2 + $0x799] sm:$0x1]  ;;  %v5891_v17 = vsel %vm794_vm5, %v5890_v16, %v5889_v40  ;;  %5397 = vxpose.xlu0.b32.cont [14/16] %v5339_v13, 128  ;;  %v5341_v37 = vsel %vm785_vm1, %v5340_v27, %v5000_v5 }
 0x2e0   :  { %v5554_v21 = vld [vmem:[#allocation2 + $0x7a9] sm:$0x1]  ;;  %v5346_v53 = vrot.slane %v5004_v9, 4  ;;  %v5555_v31 = vld [vmem:[#allocation2 + $0x7b9] sm:$0x1]  ;;  %v5893_v39 = vsel %vm797_vm6, %v5892_v41, %v5891_v17  ;;  %v5348_v56 = vrot.slane %v5005_v19, 3  ;;  %v5343_v29 = vsel %vm788_vm2, %v5342_v20, %v5341_v37 }
 0x2e1   :  { %v5556_v45 = vld [vmem:[#allocation2 + $0x7c9] sm:$0x1]  ;;  %v5350_v3 = vrot.slane %v5006_v14, 2  ;;  %v5557_v26 = vld [vmem:[#allocation2 + $0x7d9] sm:$0x1]  ;;  %v5895_v1 = vsel %vm800_vm7, %v5894_v28, %v5893_v39  ;;  %v5352_v38 = vrot.slane %v5007_v44, 1  ;;  %v5345_v4 = vsel %vm791_vm4, %v5344_v22, %v5343_v29 }
 0x2e2   :  { %v5558_v55 = vld [vmem:[#allocation2 + $0x7e9] sm:$0x1]  ;;  %v5559_v12 = vld [vmem:[#allocation2 + $0x7f9] sm:$0x1]  ;;  %v5898_v34 = vrot.slane %v5553_v62, 7  ;;  %v5897_v46 = vsel %vm803_vm8, %v5896_v10, %v5895_v1  ;;  %v5900_v7 = vrot.slane %v5554_v21, 6  ;;  %v5347_v24 = vsel %vm794_vm5, %v5346_v53, %v5345_v4 }
 0x2e3   :  { %v5009_v54 = vld [vmem:[#allocation2 + $0x798] sm:$0x1]  ;;  %v5902_v63 = vrot.slane %v5555_v31, 5  ;;  %v5008_v36 = vld [vmem:[#allocation2 + $0x788] sm:$0x1]  ;;  %5942 = vxpose.xlu1.b32.cont [15/16] %v5897_v46, 128  ;;  %v5904_v50 = vrot.slane %v5556_v45, 4  ;;  %v5349_v42 = vsel %vm797_vm6, %v5348_v56, %v5347_v24 }
 0x2e4   :  { %v5010_v2 = vld [vmem:[#allocation2 + $0x7a8] sm:$0x1]  ;;  %v5011_v23 = vld [vmem:[#allocation2 + $0x7b8] sm:$0x1]  ;;  %v5899_v47 = vsel %vm785_vm1, %v5898_v34, %v5552_v11  ;;  %v5906_v48 = vrot.slane %v5557_v26, 3  ;;  %v5908_v6 = vrot.slane %v5558_v55, 2  ;;  %v5351_v49 = vsel %vm800_vm7, %v5350_v3, %v5349_v42 }
 0x2e5   :  { %v5012_v33 = vld [vmem:[#allocation2 + $0x7c8] sm:$0x1]  ;;  %v5013_v8 = vld [vmem:[#allocation2 + $0x7d8] sm:$0x1]  ;;  %v5901_v0 = vsel %vm788_vm2, %v5900_v7, %v5899_v47  ;;  %v5910_v18 = vrot.slane %v5559_v12, 1  ;;  %v5354_v32 = vrot.slane %v5009_v54, 7  ;;  %v5353_v43 = vsel %vm803_vm8, %v5352_v38, %v5351_v49 }
 0x2e6   :  { %v5014_v61 = vld [vmem:[#allocation2 + $0x7e8] sm:$0x1]  ;;  %v5015_v30 = vld [vmem:[#allocation2 + $0x7f8] sm:$0x1]  ;;  %v5903_v15 = vsel %vm791_vm4, %v5902_v63, %v5901_v0  ;;  %v5356_v57 = vrot.slane %v5010_v2, 6  ;;  %v5358_v16 = vrot.slane %v5011_v23, 5  ;;  %5398 = vxpose.xlu0.b32.cont [15/16] %v5353_v43, 128 }
 0x2e7   :  { %v6520_v5 = vld [vmem:[#allocation2 + $0xb] sm:$0x1]  ;;  %v6521_v60 = vld [vmem:[#allocation2 + $0x1b] sm:$0x1]  ;;  %v5905_v58 = vsel %vm794_vm5, %v5904_v50, %v5903_v15  ;;  %v5360_v41 = vrot.slane %v5012_v33, 4  ;;  %v5355_v52 = vsel %vm785_vm1, %v5354_v32, %v5008_v36  ;;  %v5362_v28 = vrot.slane %v5013_v8, 3 }
 0x2e8   :  { %v6522_v59 = vld [vmem:[#allocation2 + $0x2b] sm:$0x1]  ;;  %v6523_v9 = vld [vmem:[#allocation2 + $0x3b] sm:$0x1]  ;;  %v5907_v51 = vsel %vm797_vm6, %v5906_v48, %v5905_v58  ;;  %v5364_v10 = vrot.slane %v5014_v61, 2  ;;  %v5357_v40 = vsel %vm788_vm2, %v5356_v57, %v5355_v52  ;;  %v5366_v27 = vrot.slane %v5015_v30, 1 }
 0x2e9   :  { %v6524_v19 = vld [vmem:[#allocation2 + $0x4b] sm:$0x1]  ;;  %v6525_v14 = vld [vmem:[#allocation2 + $0x5b] sm:$0x1]  ;;  %v5909_v25 = vsel %vm800_vm7, %v5908_v6, %v5907_v51  ;;  %v6776_v11 = vrot.slane %v6521_v60, 7  ;;  %v5359_v35 = vsel %vm791_vm4, %v5358_v16, %v5357_v40  ;;  %v6778_v13 = vrot.slane %v6522_v59, 6 }
 0x2ea   :  { %v6526_v44 = vld [vmem:[#allocation2 + $0x6b] sm:$0x1]  ;;  %v6527_v20 = vld [vmem:[#allocation2 + $0x7b] sm:$0x1]  ;;  %v5977_v62 = vld [vmem:[#allocation2 + $0x1a] sm:$0x1]  ;;  %v5911_v21 = vsel %vm803_vm8, %v5910_v18, %v5909_v25  ;;  %v5361_v45 = vsel %vm794_vm5, %v5360_v41, %v5359_v35 }
 0x2eb   :  { %v6780_v17 = vrot.slane %v6523_v9, 5  ;;  %v5976_v22 = vld [vmem:[#allocation2 + $0xa] sm:$0x1]  ;;  %v5979_v31 = vld [vmem:[#allocation2 + $0x3a] sm:$0x1]  ;;  %5943 = vxpose.xlu1.b32.end [16/16] %v5911_v21, 128  ;;  %v6777_v39 = vsel %vm785_vm1, %v6776_v11, %v6520_v5  ;;  %v6782_v37 = vrot.slane %v6524_v19, 4  ;;  %v5363_v55 = vsel %vm797_vm6, %v5362_v28, %v5361_v45 }
 0x2ec   :  { %v5978_v53 = vld [vmem:[#allocation2 + $0x2a] sm:$0x1]  ;;  %v6784_v56 = vrot.slane %v6525_v14, 3  ;;  %v5981_v26 = vld [vmem:[#allocation2 + $0x5a] sm:$0x1]  ;;  %v6779_v1 = vsel %vm788_vm2, %v6778_v13, %v6777_v39  ;;  %v6786_v29 = vrot.slane %v6526_v44, 2  ;;  %v5365_v54 = vsel %vm800_vm7, %v5364_v10, %v5363_v55 }
 0x2ed   :  { %v5980_v3 = vld [vmem:[#allocation2 + $0x4a] sm:$0x1]  ;;  %v6788_v38 = vrot.slane %v6527_v20, 1  ;;  %v5983_v34 = vld [vmem:[#allocation2 + $0x7a] sm:$0x1]  ;;  %v6781_v46 = vsel %vm791_vm4, %v6780_v17, %v6779_v1  ;;  %v6232_v4 = vrot.slane %v5977_v62, 7  ;;  %v5367_v23 = vsel %vm803_vm8, %v5366_v27, %v5365_v54 }
 0x2ee   :  { %v5982_v12 = vld [vmem:[#allocation2 + $0x6a] sm:$0x1]  ;;  %v6234_v7 = vrot.slane %v5978_v53, 6  ;;  %v6528_v63 = vld [vmem:[#allocation2 + $0x8b] sm:$0x1]  ;;  %v6783_v24 = vsel %vm794_vm5, %v6782_v37, %v6781_v46  ;;  %v6236_v47 = vrot.slane %v5979_v31, 5  ;;  %5399 = vxpose.xlu0.b32.end [16/16] %v5367_v23, 128 }
 0x2ef   :  { %v6529_v36 = vld [vmem:[#allocation2 + $0x9b] sm:$0x1]  ;;  %v6530_v2 = vld [vmem:[#allocation2 + $0xab] sm:$0x1]  ;;  %v6238_v50 = vrot.slane %v5980_v3, 4  ;;  %v6785_v8 = vsel %vm797_vm6, %v6784_v56, %v6783_v24  ;;  %v6233_v42 = vsel %vm785_vm1, %v6232_v4, %v5976_v22  ;;  %v6240_v0 = vrot.slane %v5981_v26, 3 }
 0x2f0   :  { %v6531_v48 = vld [vmem:[#allocation2 + $0xbb] sm:$0x1]  ;;  %v6532_v33 = vld [vmem:[#allocation2 + $0xcb] sm:$0x1]  ;;  %v6242_v6 = vrot.slane %v5982_v12, 2  ;;  %v6787_v30 = vsel %vm800_vm7, %v6786_v29, %v6785_v8  ;;  %v6235_v49 = vsel %vm788_vm2, %v6234_v7, %v6233_v42  ;;  %v6244_v15 = vrot.slane %v5983_v34, 1 }
 0x2f1   :  { %v6533_v18 = vld [vmem:[#allocation2 + $0xdb] sm:$0x1]  ;;  %v6534_v61 = vld [vmem:[#allocation2 + $0xeb] sm:$0x1]  ;;  %v6790_v57 = vrot.slane %v6529_v36, 7  ;;  %v6789_v60 = vsel %vm803_vm8, %v6788_v38, %v6787_v30  ;;  %v6237_v59 = vsel %vm791_vm4, %v6236_v47, %v6235_v49  ;;  %v6792_v43 = vrot.slane %v6530_v2, 6 }
 0x2f2   :  { %v6535_v32 = vld [vmem:[#allocation2 + $0xfb] sm:$0x1]  ;;  %v5985_v5 = vld [vmem:[#allocation2 + $0x9a] sm:$0x1]  ;;  %v6794_v58 = vrot.slane %v6531_v48, 5  ;;  %7016 = vxpose.xlu1.b32.start [1/16] %v6789_v60, 128  ;;  %v6239_v19 = vsel %vm794_vm5, %v6238_v50, %v6237_v59  ;;  %v6796_v52 = vrot.slane %v6532_v33, 4 }
 0x2f3   :  { %v5984_v16 = vld [vmem:[#allocation2 + $0x8a] sm:$0x1]  ;;  %v5987_v9 = vld [vmem:[#allocation2 + $0xba] sm:$0x1]  ;;  %v6791_v51 = vsel %vm785_vm1, %v6790_v57, %v6528_v63  ;;  %v6798_v28 = vrot.slane %v6533_v18, 3  ;;  %v6241_v44 = vsel %vm797_vm6, %v6240_v0, %v6239_v19  ;;  %v6800_v40 = vrot.slane %v6534_v61, 2 }
 0x2f4   :  { %v5986_v41 = vld [vmem:[#allocation2 + $0xaa] sm:$0x1]  ;;  %v5989_v14 = vld [vmem:[#allocation2 + $0xda] sm:$0x1]  ;;  %v6793_v25 = vsel %vm788_vm2, %v6792_v43, %v6791_v51  ;;  %v6802_v27 = vrot.slane %v6535_v32, 1  ;;  %v6243_v62 = vsel %vm800_vm7, %v6242_v6, %v6241_v44  ;;  %v6246_v35 = vrot.slane %v5985_v5, 7 }
 0x2f5   :  { %v5988_v10 = vld [vmem:[#allocation2 + $0xca] sm:$0x1]  ;;  %v5991_v11 = vld [vmem:[#allocation2 + $0xfa] sm:$0x1]  ;;  %v6795_v21 = vsel %vm791_vm4, %v6794_v58, %v6793_v25  ;;  %v6248_v13 = vrot.slane %v5986_v41, 6  ;;  %v6245_v31 = vsel %vm803_vm8, %v6244_v15, %v6243_v62  ;;  %v6250_v39 = vrot.slane %v5987_v9, 5 }
 0x2f6   :  { %v5990_v20 = vld [vmem:[#allocation2 + $0xea] sm:$0x1]  ;;  %v6536_v17 = vld [vmem:[#allocation2 + $0x10b] sm:$0x1]  ;;  %v6537_v22 = vld [vmem:[#allocation2 + $0x11b] sm:$0x1]  ;;  %v6797_v45 = vsel %vm794_vm5, %v6796_v52, %v6795_v21  ;;  %6472 = vxpose.xlu0.b32.start [1/16] %v6245_v31, 128  ;;  %v6247_v55 = vsel %vm785_vm1, %v6246_v35, %v5984_v16 }
 0x2f7   :  { %v6538_v53 = vld [vmem:[#allocation2 + $0x12b] sm:$0x1]  ;;  %v6252_v37 = vrot.slane %v5988_v10, 4  ;;  %v6539_v56 = vld [vmem:[#allocation2 + $0x13b] sm:$0x1]  ;;  %v6799_v26 = vsel %vm797_vm6, %v6798_v28, %v6797_v45  ;;  %v6254_v1 = vrot.slane %v5989_v14, 3  ;;  %v6249_v54 = vsel %vm788_vm2, %v6248_v13, %v6247_v55 }
 0x2f8   :  { %v6540_v3 = vld [vmem:[#allocation2 + $0x14b] sm:$0x1]  ;;  %v6256_v29 = vrot.slane %v5990_v20, 2  ;;  %v6541_v38 = vld [vmem:[#allocation2 + $0x15b] sm:$0x1]  ;;  %v6801_v34 = vsel %vm800_vm7, %v6800_v40, %v6799_v26  ;;  %v6258_v46 = vrot.slane %v5991_v11, 1  ;;  %v6251_v2 = vsel %vm791_vm4, %v6250_v39, %v6249_v54 }
 0x2f9   :  { %v6542_v12 = vld [vmem:[#allocation2 + $0x16b] sm:$0x1]  ;;  %v6543_v4 = vld [vmem:[#allocation2 + $0x17b] sm:$0x1]  ;;  %v6804_v7 = vrot.slane %v6537_v22, 7  ;;  %v6803_v36 = vsel %vm803_vm8, %v6802_v27, %v6801_v34  ;;  %v6806_v23 = vrot.slane %v6538_v53, 6  ;;  %v6253_v33 = vsel %vm794_vm5, %v6252_v37, %v6251_v2 }
 0x2fa   :  { %v5993_v63 = vld [vmem:[#allocation2 + $0x11a] sm:$0x1]  ;;  %v6808_v24 = vrot.slane %v6539_v56, 5  ;;  %v5992_v47 = vld [vmem:[#allocation2 + $0x10a] sm:$0x1]  ;;  %7017 = vxpose.xlu1.b32.cont [2/16] %v6803_v36, 128  ;;  %v6810_v42 = vrot.slane %v6540_v3, 4  ;;  %v6255_v61 = vsel %vm797_vm6, %v6254_v1, %v6253_v33 }
 0x2fb   :  { %v5994_v50 = vld [vmem:[#allocation2 + $0x12a] sm:$0x1]  ;;  %v5995_v48 = vld [vmem:[#allocation2 + $0x13a] sm:$0x1]  ;;  %v6805_v8 = vsel %vm785_vm1, %v6804_v7, %v6536_v17  ;;  %v6812_v0 = vrot.slane %v6541_v38, 3  ;;  %v6814_v49 = vrot.slane %v6542_v12, 2  ;;  %v6257_v5 = vsel %vm800_vm7, %v6256_v29, %v6255_v61 }
 0x2fc   :  { %v5996_v6 = vld [vmem:[#allocation2 + $0x14a] sm:$0x1]  ;;  %v5997_v18 = vld [vmem:[#allocation2 + $0x15a] sm:$0x1]  ;;  %v6807_v30 = vsel %vm788_vm2, %v6806_v23, %v6805_v8  ;;  %v6816_v15 = vrot.slane %v6543_v4, 1  ;;  %v6260_v59 = vrot.slane %v5993_v63, 7  ;;  %v6259_v9 = vsel %vm803_vm8, %v6258_v46, %v6257_v5 }
 0x2fd   :  { %v5998_v32 = vld [vmem:[#allocation2 + $0x16a] sm:$0x1]  ;;  %v5999_v57 = vld [vmem:[#allocation2 + $0x17a] sm:$0x1]  ;;  %v6809_v60 = vsel %vm791_vm4, %v6808_v24, %v6807_v30  ;;  %v6262_v43 = vrot.slane %v5994_v50, 6  ;;  %v6264_v51 = vrot.slane %v5995_v48, 5  ;;  %6473 = vxpose.xlu0.b32.cont [2/16] %v6259_v9, 128 }
 0x2fe   :  { %v6544_v58 = vld [vmem:[#allocation2 + $0x18b] sm:$0x1]  ;;  %v6545_v16 = vld [vmem:[#allocation2 + $0x19b] sm:$0x1]  ;;  %v6811_v19 = vsel %vm794_vm5, %v6810_v42, %v6809_v60  ;;  %v6266_v52 = vrot.slane %v5996_v6, 4  ;;  %v6261_v44 = vsel %vm785_vm1, %v6260_v59, %v5992_v47  ;;  %v6268_v25 = vrot.slane %v5997_v18, 3 }
 0x2ff   :  { %v6546_v41 = vld [vmem:[#allocation2 + $0x1ab] sm:$0x1]  ;;  %v6547_v28 = vld [vmem:[#allocation2 + $0x1bb] sm:$0x1]  ;;  %v6813_v14 = vsel %vm797_vm6, %v6812_v0, %v6811_v19  ;;  %v6270_v40 = vrot.slane %v5998_v32, 2  ;;  %v6263_v62 = vsel %vm788_vm2, %v6262_v43, %v6261_v44  ;;  %v6272_v21 = vrot.slane %v5999_v57, 1 }
 0x300   :  { %v6548_v10 = vld [vmem:[#allocation2 + $0x1cb] sm:$0x1]  ;;  %v6549_v27 = vld [vmem:[#allocation2 + $0x1db] sm:$0x1]  ;;  %v6815_v11 = vsel %vm800_vm7, %v6814_v49, %v6813_v14  ;;  %v6818_v13 = vrot.slane %v6545_v16, 7  ;;  %v6265_v53 = vsel %vm791_vm4, %v6264_v51, %v6263_v62  ;;  %v6820_v31 = vrot.slane %v6546_v41, 6 }
 0x301   :  { %v6550_v20 = vld [vmem:[#allocation2 + $0x1eb] sm:$0x1]  ;;  %v6551_v35 = vld [vmem:[#allocation2 + $0x1fb] sm:$0x1]  ;;  %v6001_v17 = vld [vmem:[#allocation2 + $0x19a] sm:$0x1]  ;;  %v6817_v22 = vsel %vm803_vm8, %v6816_v15, %v6815_v11  ;;  %v6267_v3 = vsel %vm794_vm5, %v6266_v52, %v6265_v53 }
 0x302   :  { %v6822_v45 = vrot.slane %v6547_v28, 5  ;;  %v6000_v39 = vld [vmem:[#allocation2 + $0x18a] sm:$0x1]  ;;  %v6003_v56 = vld [vmem:[#allocation2 + $0x1ba] sm:$0x1]  ;;  %7018 = vxpose.xlu1.b32.cont [3/16] %v6817_v22, 128  ;;  %v6819_v26 = vsel %vm785_vm1, %v6818_v13, %v6544_v58  ;;  %v6824_v55 = vrot.slane %v6548_v10, 4  ;;  %v6269_v12 = vsel %vm797_vm6, %v6268_v25, %v6267_v3 }
 0x303   :  { %v6002_v37 = vld [vmem:[#allocation2 + $0x1aa] sm:$0x1]  ;;  %v6826_v1 = vrot.slane %v6549_v27, 3  ;;  %v6005_v38 = vld [vmem:[#allocation2 + $0x1da] sm:$0x1]  ;;  %v6821_v34 = vsel %vm788_vm2, %v6820_v31, %v6819_v26  ;;  %v6828_v54 = vrot.slane %v6550_v20, 2  ;;  %v6271_v63 = vsel %vm800_vm7, %v6270_v40, %v6269_v12 }
 0x304   :  { %v6004_v29 = vld [vmem:[#allocation2 + $0x1ca] sm:$0x1]  ;;  %v6830_v46 = vrot.slane %v6551_v35, 1  ;;  %v6007_v7 = vld [vmem:[#allocation2 + $0x1fa] sm:$0x1]  ;;  %v6823_v36 = vsel %vm791_vm4, %v6822_v45, %v6821_v34  ;;  %v6274_v2 = vrot.slane %v6001_v17, 7  ;;  %v6273_v48 = vsel %vm803_vm8, %v6272_v21, %v6271_v63 }
 0x305   :  { %v6006_v4 = vld [vmem:[#allocation2 + $0x1ea] sm:$0x1]  ;;  %v6276_v23 = vrot.slane %v6002_v37, 6  ;;  %v6552_v24 = vld [vmem:[#allocation2 + $0x20b] sm:$0x1]  ;;  %v6825_v33 = vsel %vm794_vm5, %v6824_v55, %v6823_v36  ;;  %v6278_v8 = vrot.slane %v6003_v56, 5  ;;  %6474 = vxpose.xlu0.b32.cont [3/16] %v6273_v48, 128 }
 0x306   :  { %v6553_v47 = vld [vmem:[#allocation2 + $0x21b] sm:$0x1]  ;;  %v6554_v50 = vld [vmem:[#allocation2 + $0x22b] sm:$0x1]  ;;  %v6280_v42 = vrot.slane %v6004_v29, 4  ;;  %v6827_v18 = vsel %vm797_vm6, %v6826_v1, %v6825_v33  ;;  %v6275_v61 = vsel %vm785_vm1, %v6274_v2, %v6000_v39  ;;  %v6282_v30 = vrot.slane %v6005_v38, 3 }
 0x307   :  { %v6555_v0 = vld [vmem:[#allocation2 + $0x23b] sm:$0x1]  ;;  %v6556_v6 = vld [vmem:[#allocation2 + $0x24b] sm:$0x1]  ;;  %v6284_v49 = vrot.slane %v6006_v4, 2  ;;  %v6829_v57 = vsel %vm800_vm7, %v6828_v54, %v6827_v18  ;;  %v6277_v5 = vsel %vm788_vm2, %v6276_v23, %v6275_v61  ;;  %v6286_v60 = vrot.slane %v6007_v7, 1 }
 0x308   :  { %v6557_v15 = vld [vmem:[#allocation2 + $0x25b] sm:$0x1]  ;;  %v6558_v32 = vld [vmem:[#allocation2 + $0x26b] sm:$0x1]  ;;  %v6832_v43 = vrot.slane %v6553_v47, 7  ;;  %v6831_v16 = vsel %vm803_vm8, %v6830_v46, %v6829_v57  ;;  %v6279_v41 = vsel %vm791_vm4, %v6278_v8, %v6277_v5  ;;  %v6834_v9 = vrot.slane %v6554_v50, 6 }
 0x309   :  { %v6559_v59 = vld [vmem:[#allocation2 + $0x27b] sm:$0x1]  ;;  %v6009_v58 = vld [vmem:[#allocation2 + $0x21a] sm:$0x1]  ;;  %v6836_v19 = vrot.slane %v6555_v0, 5  ;;  %7019 = vxpose.xlu1.b32.cont [4/16] %v6831_v16, 128  ;;  %v6281_v10 = vsel %vm794_vm5, %v6280_v42, %v6279_v41  ;;  %v6838_v44 = vrot.slane %v6556_v6, 4 }
 0x30a   :  { %v6008_v51 = vld [vmem:[#allocation2 + $0x20a] sm:$0x1]  ;;  %v6011_v28 = vld [vmem:[#allocation2 + $0x23a] sm:$0x1]  ;;  %v6833_v14 = vsel %vm785_vm1, %v6832_v43, %v6552_v24  ;;  %v6840_v25 = vrot.slane %v6557_v15, 3  ;;  %v6283_v20 = vsel %vm797_vm6, %v6282_v30, %v6281_v10  ;;  %v6842_v62 = vrot.slane %v6558_v32, 2 }
 0x30b   :  { %v6010_v52 = vld [vmem:[#allocation2 + $0x22a] sm:$0x1]  ;;  %v6013_v27 = vld [vmem:[#allocation2 + $0x25a] sm:$0x1]  ;;  %v6835_v11 = vsel %vm788_vm2, %v6834_v9, %v6833_v14  ;;  %v6844_v21 = vrot.slane %v6559_v59, 1  ;;  %v6285_v17 = vsel %vm800_vm7, %v6284_v49, %v6283_v20  ;;  %v6288_v53 = vrot.slane %v6009_v58, 7 }
 0x30c   :  { %v6012_v40 = vld [vmem:[#allocation2 + $0x24a] sm:$0x1]  ;;  %v6015_v13 = vld [vmem:[#allocation2 + $0x27a] sm:$0x1]  ;;  %v6837_v22 = vsel %vm791_vm4, %v6836_v19, %v6835_v11  ;;  %v6290_v31 = vrot.slane %v6010_v52, 6  ;;  %v6287_v56 = vsel %vm803_vm8, %v6286_v60, %v6285_v17  ;;  %v6292_v26 = vrot.slane %v6011_v28, 5 }
 0x30d   :  { %v6014_v35 = vld [vmem:[#allocation2 + $0x26a] sm:$0x1]  ;;  %v6560_v45 = vld [vmem:[#allocation2 + $0x28b] sm:$0x1]  ;;  %v6561_v39 = vld [vmem:[#allocation2 + $0x29b] sm:$0x1]  ;;  %v6839_v3 = vsel %vm794_vm5, %v6838_v44, %v6837_v22  ;;  %6475 = vxpose.xlu0.b32.cont [4/16] %v6287_v56, 128  ;;  %v6289_v12 = vsel %vm785_vm1, %v6288_v53, %v6008_v51 }
 0x30e   :  { %v6562_v37 = vld [vmem:[#allocation2 + $0x2ab] sm:$0x1]  ;;  %v6294_v55 = vrot.slane %v6012_v40, 4  ;;  %v6563_v1 = vld [vmem:[#allocation2 + $0x2bb] sm:$0x1]  ;;  %v6841_v38 = vsel %vm797_vm6, %v6840_v25, %v6839_v3  ;;  %v6296_v34 = vrot.slane %v6013_v27, 3  ;;  %v6291_v63 = vsel %vm788_vm2, %v6290_v31, %v6289_v12 }
 0x30f   :  { %v6564_v29 = vld [vmem:[#allocation2 + $0x2cb] sm:$0x1]  ;;  %v6298_v54 = vrot.slane %v6014_v35, 2  ;;  %v6565_v46 = vld [vmem:[#allocation2 + $0x2db] sm:$0x1]  ;;  %v6843_v7 = vsel %vm800_vm7, %v6842_v62, %v6841_v38  ;;  %v6300_v36 = vrot.slane %v6015_v13, 1  ;;  %v6293_v50 = vsel %vm791_vm4, %v6292_v26, %v6291_v63 }
 0x310   :  { %v6566_v4 = vld [vmem:[#allocation2 + $0x2eb] sm:$0x1]  ;;  %v6567_v2 = vld [vmem:[#allocation2 + $0x2fb] sm:$0x1]  ;;  %v6846_v23 = vrot.slane %v6561_v39, 7  ;;  %v6845_v47 = vsel %vm803_vm8, %v6844_v21, %v6843_v7  ;;  %v6848_v48 = vrot.slane %v6562_v37, 6  ;;  %v6295_v6 = vsel %vm794_vm5, %v6294_v55, %v6293_v50 }
 0x311   :  { %v6017_v24 = vld [vmem:[#allocation2 + $0x29a] sm:$0x1]  ;;  %v6850_v33 = vrot.slane %v6563_v1, 5  ;;  %v6016_v8 = vld [vmem:[#allocation2 + $0x28a] sm:$0x1]  ;;  %7020 = vxpose.xlu1.b32.cont [5/16] %v6845_v47, 128  ;;  %v6852_v61 = vrot.slane %v6564_v29, 4  ;;  %v6297_v32 = vsel %vm797_vm6, %v6296_v34, %v6295_v6 }
 0x312   :  { %v6018_v42 = vld [vmem:[#allocation2 + $0x2aa] sm:$0x1]  ;;  %v6019_v0 = vld [vmem:[#allocation2 + $0x2ba] sm:$0x1]  ;;  %v6847_v18 = vsel %vm785_vm1, %v6846_v23, %v6560_v45  ;;  %v6854_v30 = vrot.slane %v6565_v46, 3  ;;  %v6856_v5 = vrot.slane %v6566_v4, 2  ;;  %v6299_v58 = vsel %vm800_vm7, %v6298_v54, %v6297_v32 }
 0x313   :  { %v6020_v49 = vld [vmem:[#allocation2 + $0x2ca] sm:$0x1]  ;;  %v6021_v15 = vld [vmem:[#allocation2 + $0x2da] sm:$0x1]  ;;  %v6849_v57 = vsel %vm788_vm2, %v6848_v48, %v6847_v18  ;;  %v6858_v60 = vrot.slane %v6567_v2, 1  ;;  %v6302_v41 = vrot.slane %v6017_v24, 7  ;;  %v6301_v28 = vsel %vm803_vm8, %v6300_v36, %v6299_v58 }
 0x314   :  { %v6022_v59 = vld [vmem:[#allocation2 + $0x2ea] sm:$0x1]  ;;  %v6023_v43 = vld [vmem:[#allocation2 + $0x2fa] sm:$0x1]  ;;  %v6851_v16 = vsel %vm791_vm4, %v6850_v33, %v6849_v57  ;;  %v6304_v9 = vrot.slane %v6018_v42, 6  ;;  %v6306_v14 = vrot.slane %v6019_v0, 5  ;;  %6476 = vxpose.xlu0.b32.cont [5/16] %v6301_v28, 128 }
 0x315   :  { %v6568_v19 = vld [vmem:[#allocation2 + $0x30b] sm:$0x1]  ;;  %v6569_v51 = vld [vmem:[#allocation2 + $0x31b] sm:$0x1]  ;;  %v6853_v10 = vsel %vm794_vm5, %v6852_v61, %v6851_v16  ;;  %v6308_v44 = vrot.slane %v6020_v49, 4  ;;  %v6303_v20 = vsel %vm785_vm1, %v6302_v41, %v6016_v8  ;;  %v6310_v11 = vrot.slane %v6021_v15, 3 }
 0x316   :  { %v6570_v52 = vld [vmem:[#allocation2 + $0x32b] sm:$0x1]  ;;  %v6571_v25 = vld [vmem:[#allocation2 + $0x33b] sm:$0x1]  ;;  %v6855_v27 = vsel %vm797_vm6, %v6854_v30, %v6853_v10  ;;  %v6312_v62 = vrot.slane %v6022_v59, 2  ;;  %v6305_v17 = vsel %vm788_vm2, %v6304_v9, %v6303_v20  ;;  %v6314_v22 = vrot.slane %v6023_v43, 1 }
 0x317   :  { %v6572_v40 = vld [vmem:[#allocation2 + $0x34b] sm:$0x1]  ;;  %v6573_v21 = vld [vmem:[#allocation2 + $0x35b] sm:$0x1]  ;;  %v6857_v13 = vsel %vm800_vm7, %v6856_v5, %v6855_v27  ;;  %v6860_v31 = vrot.slane %v6569_v51, 7  ;;  %v6307_v37 = vsel %vm791_vm4, %v6306_v14, %v6305_v17  ;;  %v6862_v56 = vrot.slane %v6570_v52, 6 }
 0x318   :  { %v6574_v35 = vld [vmem:[#allocation2 + $0x36b] sm:$0x1]  ;;  %v6575_v53 = vld [vmem:[#allocation2 + $0x37b] sm:$0x1]  ;;  %v6025_v45 = vld [vmem:[#allocation2 + $0x31a] sm:$0x1]  ;;  %v6859_v39 = vsel %vm803_vm8, %v6858_v60, %v6857_v13  ;;  %v6309_v29 = vsel %vm794_vm5, %v6308_v44, %v6307_v37 }
 0x319   :  { %v6864_v3 = vrot.slane %v6571_v25, 5  ;;  %v6024_v26 = vld [vmem:[#allocation2 + $0x30a] sm:$0x1]  ;;  %v6027_v1 = vld [vmem:[#allocation2 + $0x33a] sm:$0x1]  ;;  %7021 = vxpose.xlu1.b32.cont [6/16] %v6859_v39, 128  ;;  %v6861_v38 = vsel %vm785_vm1, %v6860_v31, %v6568_v19  ;;  %v6866_v12 = vrot.slane %v6572_v40, 4  ;;  %v6311_v4 = vsel %vm797_vm6, %v6310_v11, %v6309_v29 }
 0x31a   :  { %v6026_v55 = vld [vmem:[#allocation2 + $0x32a] sm:$0x1]  ;;  %v6868_v34 = vrot.slane %v6573_v21, 3  ;;  %v6029_v46 = vld [vmem:[#allocation2 + $0x35a] sm:$0x1]  ;;  %v6863_v7 = vsel %vm788_vm2, %v6862_v56, %v6861_v38  ;;  %v6870_v63 = vrot.slane %v6574_v35, 2  ;;  %v6313_v24 = vsel %vm800_vm7, %v6312_v62, %v6311_v4 }
 0x31b   :  { %v6028_v54 = vld [vmem:[#allocation2 + $0x34a] sm:$0x1]  ;;  %v6872_v36 = vrot.slane %v6575_v53, 1  ;;  %v6031_v23 = vld [vmem:[#allocation2 + $0x37a] sm:$0x1]  ;;  %v6865_v47 = vsel %vm791_vm4, %v6864_v3, %v6863_v7  ;;  %v6316_v50 = vrot.slane %v6025_v45, 7  ;;  %v6315_v0 = vsel %vm803_vm8, %v6314_v22, %v6313_v24 }
 0x31c   :  { %v6030_v2 = vld [vmem:[#allocation2 + $0x36a] sm:$0x1]  ;;  %v6318_v48 = vrot.slane %v6026_v55, 6  ;;  %v6576_v33 = vld [vmem:[#allocation2 + $0x38b] sm:$0x1]  ;;  %v6867_v6 = vsel %vm794_vm5, %v6866_v12, %v6865_v47  ;;  %v6320_v18 = vrot.slane %v6027_v1, 5  ;;  %6477 = vxpose.xlu0.b32.cont [6/16] %v6315_v0, 128 }
 0x31d   :  { %v6577_v8 = vld [vmem:[#allocation2 + $0x39b] sm:$0x1]  ;;  %v6578_v42 = vld [vmem:[#allocation2 + $0x3ab] sm:$0x1]  ;;  %v6322_v61 = vrot.slane %v6028_v54, 4  ;;  %v6869_v15 = vsel %vm797_vm6, %v6868_v34, %v6867_v6  ;;  %v6317_v32 = vsel %vm785_vm1, %v6316_v50, %v6024_v26  ;;  %v6324_v57 = vrot.slane %v6029_v46, 3 }
 0x31e   :  { %v6579_v30 = vld [vmem:[#allocation2 + $0x3bb] sm:$0x1]  ;;  %v6580_v49 = vld [vmem:[#allocation2 + $0x3cb] sm:$0x1]  ;;  %v6326_v5 = vrot.slane %v6030_v2, 2  ;;  %v6871_v43 = vsel %vm800_vm7, %v6870_v63, %v6869_v15  ;;  %v6319_v58 = vsel %vm788_vm2, %v6318_v48, %v6317_v32  ;;  %v6328_v16 = vrot.slane %v6031_v23, 1 }
 0x31f   :  { %v6581_v60 = vld [vmem:[#allocation2 + $0x3db] sm:$0x1]  ;;  %v6582_v59 = vld [vmem:[#allocation2 + $0x3eb] sm:$0x1]  ;;  %v6874_v9 = vrot.slane %v6577_v8, 7  ;;  %v6873_v51 = vsel %vm803_vm8, %v6872_v36, %v6871_v43  ;;  %v6321_v52 = vsel %vm791_vm4, %v6320_v18, %v6319_v58  ;;  %v6876_v28 = vrot.slane %v6578_v42, 6 }
 0x320   :  { %v6583_v41 = vld [vmem:[#allocation2 + $0x3fb] sm:$0x1]  ;;  %v6033_v19 = vld [vmem:[#allocation2 + $0x39a] sm:$0x1]  ;;  %v6878_v10 = vrot.slane %v6579_v30, 5  ;;  %7022 = vxpose.xlu1.b32.cont [7/16] %v6873_v51, 128  ;;  %v6323_v40 = vsel %vm794_vm5, %v6322_v61, %v6321_v52  ;;  %v6880_v20 = vrot.slane %v6580_v49, 4 }
 0x321   :  { %v6032_v14 = vld [vmem:[#allocation2 + $0x38a] sm:$0x1]  ;;  %v6035_v25 = vld [vmem:[#allocation2 + $0x3ba] sm:$0x1]  ;;  %v6875_v27 = vsel %vm785_vm1, %v6874_v9, %v6576_v33  ;;  %v6882_v11 = vrot.slane %v6581_v60, 3  ;;  %v6325_v35 = vsel %vm797_vm6, %v6324_v57, %v6323_v40  ;;  %v6884_v17 = vrot.slane %v6582_v59, 2 }
 0x322   :  { %v6034_v44 = vld [vmem:[#allocation2 + $0x3aa] sm:$0x1]  ;;  %v6037_v21 = vld [vmem:[#allocation2 + $0x3da] sm:$0x1]  ;;  %v6877_v13 = vsel %vm788_vm2, %v6876_v28, %v6875_v27  ;;  %v6886_v22 = vrot.slane %v6583_v41, 1  ;;  %v6327_v45 = vsel %vm800_vm7, %v6326_v5, %v6325_v35  ;;  %v6330_v37 = vrot.slane %v6033_v19, 7 }
 0x323   :  { %v6036_v62 = vld [vmem:[#allocation2 + $0x3ca] sm:$0x1]  ;;  %v6039_v31 = vld [vmem:[#allocation2 + $0x3fa] sm:$0x1]  ;;  %v6879_v39 = vsel %vm791_vm4, %v6878_v10, %v6877_v13  ;;  %v6332_v56 = vrot.slane %v6034_v44, 6  ;;  %v6329_v1 = vsel %vm803_vm8, %v6328_v16, %v6327_v45  ;;  %v6334_v38 = vrot.slane %v6035_v25, 5 }
 0x324   :  { %v6038_v53 = vld [vmem:[#allocation2 + $0x3ea] sm:$0x1]  ;;  %v6584_v3 = vld [vmem:[#allocation2 + $0x40b] sm:$0x1]  ;;  %v6585_v26 = vld [vmem:[#allocation2 + $0x41b] sm:$0x1]  ;;  %v6881_v29 = vsel %vm794_vm5, %v6880_v20, %v6879_v39  ;;  %6478 = vxpose.xlu0.b32.cont [7/16] %v6329_v1, 128  ;;  %v6331_v4 = vsel %vm785_vm1, %v6330_v37, %v6032_v14 }
 0x325   :  { %v6586_v55 = vld [vmem:[#allocation2 + $0x42b] sm:$0x1]  ;;  %v6336_v12 = vrot.slane %v6036_v62, 4  ;;  %v6587_v34 = vld [vmem:[#allocation2 + $0x43b] sm:$0x1]  ;;  %v6883_v46 = vsel %vm797_vm6, %v6882_v11, %v6881_v29  ;;  %v6338_v7 = vrot.slane %v6037_v21, 3  ;;  %v6333_v24 = vsel %vm788_vm2, %v6332_v56, %v6331_v4 }
 0x326   :  { %v6588_v54 = vld [vmem:[#allocation2 + $0x44b] sm:$0x1]  ;;  %v6340_v63 = vrot.slane %v6038_v53, 2  ;;  %v6589_v36 = vld [vmem:[#allocation2 + $0x45b] sm:$0x1]  ;;  %v6885_v23 = vsel %vm800_vm7, %v6884_v17, %v6883_v46  ;;  %v6342_v47 = vrot.slane %v6039_v31, 1  ;;  %v6335_v42 = vsel %vm791_vm4, %v6334_v38, %v6333_v24 }
 0x327   :  { %v6590_v2 = vld [vmem:[#allocation2 + $0x46b] sm:$0x1]  ;;  %v6591_v50 = vld [vmem:[#allocation2 + $0x47b] sm:$0x1]  ;;  %v6888_v48 = vrot.slane %v6585_v26, 7  ;;  %v6887_v8 = vsel %vm803_vm8, %v6886_v22, %v6885_v23  ;;  %v6890_v0 = vrot.slane %v6586_v55, 6  ;;  %v6337_v49 = vsel %vm794_vm5, %v6336_v12, %v6335_v42 }
 0x328   :  { %v6041_v33 = vld [vmem:[#allocation2 + $0x41a] sm:$0x1]  ;;  %v6892_v6 = vrot.slane %v6587_v34, 5  ;;  %v6040_v18 = vld [vmem:[#allocation2 + $0x40a] sm:$0x1]  ;;  %7023 = vxpose.xlu1.b32.cont [8/16] %v6887_v8, 128  ;;  %v6894_v32 = vrot.slane %v6588_v54, 4  ;;  %v6339_v59 = vsel %vm797_vm6, %v6338_v7, %v6337_v49 }
 0x329   :  { %v6042_v61 = vld [vmem:[#allocation2 + $0x42a] sm:$0x1]  ;;  %v6043_v30 = vld [vmem:[#allocation2 + $0x43a] sm:$0x1]  ;;  %v6889_v15 = vsel %vm785_vm1, %v6888_v48, %v6584_v3  ;;  %v6896_v57 = vrot.slane %v6589_v36, 3  ;;  %v6898_v58 = vrot.slane %v6590_v2, 2  ;;  %v6341_v19 = vsel %vm800_vm7, %v6340_v63, %v6339_v59 }
 0x32a   :  { %v6044_v5 = vld [vmem:[#allocation2 + $0x44a] sm:$0x1]  ;;  %v6045_v60 = vld [vmem:[#allocation2 + $0x45a] sm:$0x1]  ;;  %v6891_v43 = vsel %vm788_vm2, %v6890_v0, %v6889_v15  ;;  %v6900_v16 = vrot.slane %v6591_v50, 1  ;;  %v6344_v52 = vrot.slane %v6041_v33, 7  ;;  %v6343_v25 = vsel %vm803_vm8, %v6342_v47, %v6341_v19 }
 0x32b   :  { %v6046_v41 = vld [vmem:[#allocation2 + $0x46a] sm:$0x1]  ;;  %v6047_v9 = vld [vmem:[#allocation2 + $0x47a] sm:$0x1]  ;;  %v6893_v51 = vsel %vm791_vm4, %v6892_v6, %v6891_v43  ;;  %v6346_v28 = vrot.slane %v6042_v61, 6  ;;  %v6348_v27 = vrot.slane %v6043_v30, 5  ;;  %6479 = vxpose.xlu0.b32.cont [8/16] %v6343_v25, 128 }
 0x32c   :  { %v6592_v10 = vld [vmem:[#allocation2 + $0x48b] sm:$0x1]  ;;  %v6593_v14 = vld [vmem:[#allocation2 + $0x49b] sm:$0x1]  ;;  %v6895_v40 = vsel %vm794_vm5, %v6894_v32, %v6893_v51  ;;  %v6350_v20 = vrot.slane %v6044_v5, 4  ;;  %v6345_v35 = vsel %vm785_vm1, %v6344_v52, %v6040_v18  ;;  %v6352_v13 = vrot.slane %v6045_v60, 3 }
 0x32d   :  { %v6594_v44 = vld [vmem:[#allocation2 + $0x4ab] sm:$0x1]  ;;  %v6595_v11 = vld [vmem:[#allocation2 + $0x4bb] sm:$0x1]  ;;  %v6897_v21 = vsel %vm797_vm6, %v6896_v57, %v6895_v40  ;;  %v6354_v17 = vrot.slane %v6046_v41, 2  ;;  %v6347_v45 = vsel %vm788_vm2, %v6346_v28, %v6345_v35  ;;  %v6356_v39 = vrot.slane %v6047_v9, 1 }
 0x32e   :  { %v6596_v62 = vld [vmem:[#allocation2 + $0x4cb] sm:$0x1]  ;;  %v6597_v22 = vld [vmem:[#allocation2 + $0x4db] sm:$0x1]  ;;  %v6899_v31 = vsel %vm800_vm7, %v6898_v58, %v6897_v21  ;;  %v6902_v56 = vrot.slane %v6593_v14, 7  ;;  %v6349_v55 = vsel %vm791_vm4, %v6348_v27, %v6347_v45  ;;  %v6904_v1 = vrot.slane %v6594_v44, 6 }
 0x32f   :  { %v6598_v53 = vld [vmem:[#allocation2 + $0x4eb] sm:$0x1]  ;;  %v6599_v37 = vld [vmem:[#allocation2 + $0x4fb] sm:$0x1]  ;;  %v6049_v3 = vld [vmem:[#allocation2 + $0x49a] sm:$0x1]  ;;  %v6901_v26 = vsel %vm803_vm8, %v6900_v16, %v6899_v31  ;;  %v6351_v54 = vsel %vm794_vm5, %v6350_v20, %v6349_v55  ;;  %v5944_v14 = vpop.trf.xlu1 }
 0x330   :  { %v6906_v29 = vrot.slane %v6595_v11, 5  ;;  %v6048_v38 = vld [vmem:[#allocation2 + $0x48a] sm:$0x1]  ;;  %v6051_v34 = vld [vmem:[#allocation2 + $0x4ba] sm:$0x1]  ;;  %7024 = vxpose.xlu1.b32.cont [9/16] %v6901_v26, 128  ;;  %v6903_v46 = vsel %vm785_vm1, %v6902_v56, %v6592_v10  ;;  %v6908_v4 = vrot.slane %v6596_v62, 4  ;;  %v6353_v2 = vsel %vm797_vm6, %v6352_v13, %v6351_v54 }
 0x331   :  { %v6050_v12 = vld [vmem:[#allocation2 + $0x4aa] sm:$0x1]  ;;  %v6910_v7 = vrot.slane %v6597_v22, 3  ;;  %v6053_v36 = vld [vmem:[#allocation2 + $0x4da] sm:$0x1]  ;;  %v6905_v23 = vsel %vm788_vm2, %v6904_v1, %v6903_v46  ;;  %v6912_v24 = vrot.slane %v6598_v53, 2  ;;  %v6355_v33 = vsel %vm800_vm7, %v6354_v17, %v6353_v2 }
 0x332   :  { %v6052_v63 = vld [vmem:[#allocation2 + $0x4ca] sm:$0x1]  ;;  %v6914_v47 = vrot.slane %v6599_v37, 1  ;;  %v6055_v48 = vld [vmem:[#allocation2 + $0x4fa] sm:$0x1]  ;;  %v6907_v8 = vsel %vm791_vm4, %v6906_v29, %v6905_v23  ;;  %v6358_v42 = vrot.slane %v6049_v3, 7  ;;  %v6357_v30 = vsel %vm803_vm8, %v6356_v39, %v6355_v33  ;;  %v5400_v54 = vpop.trf.xlu0 }
 0x333   :  { %v6054_v50 = vld [vmem:[#allocation2 + $0x4ea] sm:$0x1]  ;;  %v6360_v0 = vrot.slane %v6050_v12, 6  ;;  %v6600_v6 = vld [vmem:[#allocation2 + $0x50b] sm:$0x1]  ;;  %v6909_v49 = vsel %vm794_vm5, %v6908_v4, %v6907_v8  ;;  %v6362_v15 = vrot.slane %v6051_v34, 5  ;;  %6480 = vxpose.xlu0.b32.cont [9/16] %v6357_v30, 128  ;;  %v5945_v46 = vpop.trf.xlu1 }
 0x334   :  { %v6601_v18 = vld [vmem:[#allocation2 + $0x51b] sm:$0x1]  ;;  %v6602_v61 = vld [vmem:[#allocation2 + $0x52b] sm:$0x1]  ;;  %v6364_v32 = vrot.slane %v6052_v63, 4  ;;  %v6911_v60 = vsel %vm797_vm6, %v6910_v7, %v6909_v49  ;;  %v6359_v59 = vsel %vm785_vm1, %v6358_v42, %v6048_v38  ;;  %v6366_v43 = vrot.slane %v6053_v36, 3 }
 0x335   :  { %v6603_v57 = vld [vmem:[#allocation2 + $0x53b] sm:$0x1]  ;;  %v6604_v5 = vld [vmem:[#allocation2 + $0x54b] sm:$0x1]  ;;  %v6368_v58 = vrot.slane %v6054_v50, 2  ;;  %v6913_v9 = vsel %vm800_vm7, %v6912_v24, %v6911_v60  ;;  %v6361_v19 = vsel %vm788_vm2, %v6360_v0, %v6359_v59  ;;  %v6370_v51 = vrot.slane %v6055_v48, 1 }
 0x336   :  { %v6605_v16 = vld [vmem:[#allocation2 + $0x55b] sm:$0x1]  ;;  %v6606_v41 = vld [vmem:[#allocation2 + $0x56b] sm:$0x1]  ;;  %v6916_v28 = vrot.slane %v6601_v18, 7  ;;  %v6915_v44 = vsel %vm803_vm8, %v6914_v47, %v6913_v9  ;;  %v6363_v25 = vsel %vm791_vm4, %v6362_v15, %v6361_v19  ;;  %v6918_v40 = vrot.slane %v6602_v61, 6 }
 0x337   :  { %v6607_v52 = vld [vmem:[#allocation2 + $0x57b] sm:$0x1]  ;;  %v6057_v10 = vld [vmem:[#allocation2 + $0x51a] sm:$0x1]  ;;  %v6920_v27 = vrot.slane %v6603_v57, 5  ;;  %7025 = vxpose.xlu1.b32.cont [10/16] %v6915_v44, 128  ;;  %v6365_v21 = vsel %vm794_vm5, %v6364_v32, %v6363_v25  ;;  %v6922_v13 = vrot.slane %v6604_v5, 4 }
 0x338   :  { %v6056_v20 = vld [vmem:[#allocation2 + $0x50a] sm:$0x1]  ;;  %v6059_v62 = vld [vmem:[#allocation2 + $0x53a] sm:$0x1]  ;;  %v6917_v35 = vsel %vm785_vm1, %v6916_v28, %v6600_v6  ;;  %v6924_v17 = vrot.slane %v6605_v16, 3  ;;  %v6367_v31 = vsel %vm797_vm6, %v6366_v43, %v6365_v21  ;;  %v6926_v39 = vrot.slane %v6606_v41, 2  ;;  %v5401_v43 = vpop.trf.xlu0 }
 0x339   :  { %v6058_v11 = vld [vmem:[#allocation2 + $0x52a] sm:$0x1]  ;;  %v6061_v53 = vld [vmem:[#allocation2 + $0x55a] sm:$0x1]  ;;  %v6919_v45 = vsel %vm788_vm2, %v6918_v40, %v6917_v35  ;;  %v6928_v37 = vrot.slane %v6607_v52, 1  ;;  %v6369_v26 = vsel %vm800_vm7, %v6368_v58, %v6367_v31  ;;  %v6372_v1 = vrot.slane %v6057_v10, 7  ;;  %v5946_v58 = vpop.trf.xlu1 }
 0x33a   :  { %v6060_v22 = vld [vmem:[#allocation2 + $0x54a] sm:$0x1]  ;;  %v6063_v3 = vld [vmem:[#allocation2 + $0x57a] sm:$0x1]  ;;  %v6921_v55 = vsel %vm791_vm4, %v6920_v27, %v6919_v45  ;;  %v6374_v29 = vrot.slane %v6058_v11, 6  ;;  %v6371_v4 = vsel %vm803_vm8, %v6370_v51, %v6369_v26  ;;  %v6376_v63 = vrot.slane %v6059_v62, 5 }
 0x33b   :  { %v6062_v56 = vld [vmem:[#allocation2 + $0x56a] sm:$0x1]  ;;  %v6608_v38 = vld [vmem:[#allocation2 + $0x58b] sm:$0x1]  ;;  %v6609_v12 = vld [vmem:[#allocation2 + $0x59b] sm:$0x1]  ;;  %v6923_v7 = vsel %vm794_vm5, %v6922_v13, %v6921_v55  ;;  %6481 = vxpose.xlu0.b32.cont [10/16] %v6371_v4, 128  ;;  %v6373_v47 = vsel %vm785_vm1, %v6372_v1, %v6056_v20 }
 0x33c   :  { %v6610_v34 = vld [vmem:[#allocation2 + $0x5ab] sm:$0x1]  ;;  %v6378_v36 = vrot.slane %v6060_v22, 4  ;;  %v6611_v2 = vld [vmem:[#allocation2 + $0x5bb] sm:$0x1]  ;;  %v6925_v24 = vsel %vm797_vm6, %v6924_v17, %v6923_v7  ;;  %v6380_v50 = vrot.slane %v6061_v53, 3  ;;  %v6375_v0 = vsel %vm788_vm2, %v6374_v29, %v6373_v47 }
 0x33d   :  { %v6612_v23 = vld [vmem:[#allocation2 + $0x5cb] sm:$0x1]  ;;  %v6382_v48 = vrot.slane %v6062_v56, 2  ;;  %v6613_v33 = vld [vmem:[#allocation2 + $0x5db] sm:$0x1]  ;;  %v6927_v42 = vsel %vm800_vm7, %v6926_v39, %v6925_v24  ;;  %v6384_v6 = vrot.slane %v6063_v3, 1  ;;  %v6377_v15 = vsel %vm791_vm4, %v6376_v63, %v6375_v0  ;;  %v5947_v56 = vpop.trf.xlu1 }
 0x33e   :  { %v6614_v8 = vld [vmem:[#allocation2 + $0x5eb] sm:$0x1]  ;;  %v6615_v18 = vld [vmem:[#allocation2 + $0x5fb] sm:$0x1]  ;;  %v6930_v61 = vrot.slane %v6609_v12, 7  ;;  %v6929_v49 = vsel %vm803_vm8, %v6928_v37, %v6927_v42  ;;  %v6932_v32 = vrot.slane %v6610_v34, 6  ;;  %v6379_v16 = vsel %vm794_vm5, %v6378_v36, %v6377_v15  ;;  %v5402_v37 = vpop.trf.xlu0 }
 0x33f   :  { %v6065_v30 = vld [vmem:[#allocation2 + $0x59a] sm:$0x1]  ;;  %v6934_v57 = vrot.slane %v6611_v2, 5  ;;  %v6064_v5 = vld [vmem:[#allocation2 + $0x58a] sm:$0x1]  ;;  %7026 = vxpose.xlu1.b32.cont [11/16] %v6929_v49, 128  ;;  %v6936_v9 = vrot.slane %v6612_v23, 4  ;;  %v6381_v28 = vsel %vm797_vm6, %v6380_v50, %v6379_v16 }
 0x340   :  { %v6066_v60 = vld [vmem:[#allocation2 + $0x5aa] sm:$0x1]  ;;  %v6067_v59 = vld [vmem:[#allocation2 + $0x5ba] sm:$0x1]  ;;  %v6931_v41 = vsel %vm785_vm1, %v6930_v61, %v6608_v38  ;;  %v6938_v19 = vrot.slane %v6613_v33, 3  ;;  %v6940_v14 = vrot.slane %v6614_v8, 2  ;;  %v6383_v27 = vsel %vm800_vm7, %v6382_v48, %v6381_v28 }
 0x341   :  { %v6068_v51 = vld [vmem:[#allocation2 + $0x5ca] sm:$0x1]  ;;  %v6069_v52 = vld [vmem:[#allocation2 + $0x5da] sm:$0x1]  ;;  %v6933_v10 = vsel %vm788_vm2, %v6932_v32, %v6931_v41  ;;  %v6942_v44 = vrot.slane %v6615_v18, 1  ;;  %v6386_v11 = vrot.slane %v6065_v30, 7  ;;  %v6385_v17 = vsel %vm803_vm8, %v6384_v6, %v6383_v27  ;;  %v5948_v61 = vpop.trf.xlu1 }
 0x342   :  { %v6070_v25 = vld [vmem:[#allocation2 + $0x5ea] sm:$0x1]  ;;  %v6071_v40 = vld [vmem:[#allocation2 + $0x5fa] sm:$0x1]  ;;  %v6935_v20 = vsel %vm791_vm4, %v6934_v57, %v6933_v10  ;;  %v6388_v62 = vrot.slane %v6066_v60, 6  ;;  %v6390_v53 = vrot.slane %v6067_v59, 5  ;;  %6482 = vxpose.xlu0.b32.cont [11/16] %v6385_v17, 128  ;;  %v5403_v18 = vpop.trf.xlu0 }
 0x343   :  { %v6616_v21 = vld [vmem:[#allocation2 + $0x60b] sm:$0x1]  ;;  %v6617_v35 = vld [vmem:[#allocation2 + $0x61b] sm:$0x1]  ;;  %v6937_v22 = vsel %vm794_vm5, %v6936_v9, %v6935_v20  ;;  %v6392_v31 = vrot.slane %v6068_v51, 4  ;;  %v6387_v26 = vsel %vm785_vm1, %v6386_v11, %v6064_v5  ;;  %v6394_v55 = vrot.slane %v6069_v52, 3 }
 0x344   :  { %v6618_v13 = vld [vmem:[#allocation2 + $0x62b] sm:$0x1]  ;;  %v6619_v45 = vld [vmem:[#allocation2 + $0x63b] sm:$0x1]  ;;  %v6939_v3 = vsel %vm797_vm6, %v6938_v19, %v6937_v22  ;;  %v6396_v1 = vrot.slane %v6070_v25, 2  ;;  %v6389_v34 = vsel %vm788_vm2, %v6388_v62, %v6387_v26  ;;  %v6398_v54 = vrot.slane %v6071_v40, 1 }
 0x345   :  { %v6620_v39 = vld [vmem:[#allocation2 + $0x64b] sm:$0x1]  ;;  %v6621_v29 = vld [vmem:[#allocation2 + $0x65b] sm:$0x1]  ;;  %v6941_v12 = vsel %vm800_vm7, %v6940_v14, %v6939_v3  ;;  %v6944_v4 = vrot.slane %v6617_v35, 7  ;;  %v6391_v36 = vsel %vm791_vm4, %v6390_v53, %v6389_v34  ;;  %v6946_v2 = vrot.slane %v6618_v13, 6 }
 0x346   :  { %v6622_v38 = vld [vmem:[#allocation2 + $0x66b] sm:$0x1]  ;;  %v6623_v46 = vld [vmem:[#allocation2 + $0x67b] sm:$0x1]  ;;  %v6073_v7 = vld [vmem:[#allocation2 + $0x61a] sm:$0x1]  ;;  %v6943_v63 = vsel %vm803_vm8, %v6942_v44, %v6941_v12  ;;  %v6393_v48 = vsel %vm794_vm5, %v6392_v31, %v6391_v36  ;;  %v5404_v62 = vpop.trf.xlu0 }
 0x347   :  { %v6948_v23 = vrot.slane %v6619_v45, 5  ;;  %v6072_v24 = vld [vmem:[#allocation2 + $0x60a] sm:$0x1]  ;;  %v6075_v50 = vld [vmem:[#allocation2 + $0x63a] sm:$0x1]  ;;  %7027 = vxpose.xlu1.b32.cont [12/16] %v6943_v63, 128  ;;  %v6945_v33 = vsel %vm785_vm1, %v6944_v4, %v6616_v21  ;;  %v6950_v8 = vrot.slane %v6620_v39, 4  ;;  %v6395_v30 = vsel %vm797_vm6, %v6394_v55, %v6393_v48  ;;  %v5949_v21 = vpop.trf.xlu1 }
 0x348   :  { %v6074_v47 = vld [vmem:[#allocation2 + $0x62a] sm:$0x1]  ;;  %v6952_v42 = vrot.slane %v6621_v29, 3  ;;  %v6077_v6 = vld [vmem:[#allocation2 + $0x65a] sm:$0x1]  ;;  %v6947_v49 = vsel %vm788_vm2, %v6946_v2, %v6945_v33  ;;  %v6954_v15 = vrot.slane %v6622_v38, 2  ;;  %v6397_v60 = vsel %vm800_vm7, %v6396_v1, %v6395_v30 }
 0x349   :  { %v6076_v0 = vld [vmem:[#allocation2 + $0x64a] sm:$0x1]  ;;  %v6956_v32 = vrot.slane %v6623_v46, 1  ;;  %v6079_v5 = vld [vmem:[#allocation2 + $0x67a] sm:$0x1]  ;;  %v6949_v59 = vsel %vm791_vm4, %v6948_v23, %v6947_v49  ;;  %v6400_v43 = vrot.slane %v6073_v7, 7  ;;  %v6399_v19 = vsel %vm803_vm8, %v6398_v54, %v6397_v60 }
 0x34a   :  { %v6078_v57 = vld [vmem:[#allocation2 + $0x66a] sm:$0x1]  ;;  %v6402_v58 = vrot.slane %v6074_v47, 6  ;;  %v6624_v16 = vld [vmem:[#allocation2 + $0x68b] sm:$0x1]  ;;  %v6951_v51 = vsel %vm794_vm5, %v6950_v8, %v6949_v59  ;;  %v6404_v52 = vrot.slane %v6075_v50, 5  ;;  %6483 = vxpose.xlu0.b32.cont [12/16] %v6399_v19, 128  ;;  %v5405_v23 = vpop.trf.xlu0 }
 0x34b   :  { %v6625_v41 = vld [vmem:[#allocation2 + $0x69b] sm:$0x1]  ;;  %v6626_v9 = vld [vmem:[#allocation2 + $0x6ab] sm:$0x1]  ;;  %v6406_v28 = vrot.slane %v6076_v0, 4  ;;  %v6953_v44 = vsel %vm797_vm6, %v6952_v42, %v6951_v51  ;;  %v6401_v25 = vsel %vm785_vm1, %v6400_v43, %v6072_v24  ;;  %v6408_v40 = vrot.slane %v6077_v6, 3  ;;  %v5950_v24 = vpop.trf.xlu1 }
 0x34c   :  { %v6627_v10 = vld [vmem:[#allocation2 + $0x6bb] sm:$0x1]  ;;  %v6628_v14 = vld [vmem:[#allocation2 + $0x6cb] sm:$0x1]  ;;  %v6410_v27 = vrot.slane %v6078_v57, 2  ;;  %v6955_v35 = vsel %vm800_vm7, %v6954_v15, %v6953_v44  ;;  %v6403_v13 = vsel %vm788_vm2, %v6402_v58, %v6401_v25  ;;  %v6412_v17 = vrot.slane %v6079_v5, 1 }
 0x34d   :  { %v6629_v20 = vld [vmem:[#allocation2 + $0x6db] sm:$0x1]  ;;  %v6630_v11 = vld [vmem:[#allocation2 + $0x6eb] sm:$0x1]  ;;  %v6958_v53 = vrot.slane %v6625_v41, 7  ;;  %v6957_v45 = vsel %vm803_vm8, %v6956_v32, %v6955_v35  ;;  %v6405_v39 = vsel %vm791_vm4, %v6404_v52, %v6403_v13  ;;  %v6960_v37 = vrot.slane %v6626_v9, 6 }
 0x34e   :  { %v6631_v22 = vld [vmem:[#allocation2 + $0x6fb] sm:$0x1]  ;;  %v6081_v31 = vld [vmem:[#allocation2 + $0x69a] sm:$0x1]  ;;  %v6962_v56 = vrot.slane %v6627_v10, 5  ;;  %7028 = vxpose.xlu1.b32.cont [13/16] %v6957_v45, 128  ;;  %v6407_v1 = vsel %vm794_vm5, %v6406_v28, %v6405_v39  ;;  %v6964_v38 = vrot.slane %v6628_v14, 4  ;;  %v5406_v52 = vpop.trf.xlu0 }
 0x34f   :  { %v6080_v3 = vld [vmem:[#allocation2 + $0x68a] sm:$0x1]  ;;  %v6083_v55 = vld [vmem:[#allocation2 + $0x6ba] sm:$0x1]  ;;  %v6959_v29 = vsel %vm785_vm1, %v6958_v53, %v6624_v16  ;;  %v6966_v12 = vrot.slane %v6629_v20, 3  ;;  %v6409_v46 = vsel %vm797_vm6, %v6408_v40, %v6407_v1  ;;  %v6968_v7 = vrot.slane %v6630_v11, 2  ;;  %v5951_v28 = vpop.trf.xlu1 }
 0x350   :  { %v6082_v26 = vld [vmem:[#allocation2 + $0x6aa] sm:$0x1]  ;;  %v6085_v54 = vld [vmem:[#allocation2 + $0x6da] sm:$0x1]  ;;  %v6961_v4 = vsel %vm788_vm2, %v6960_v37, %v6959_v29  ;;  %v6970_v63 = vrot.slane %v6631_v22, 1  ;;  %v6411_v47 = vsel %vm800_vm7, %v6410_v27, %v6409_v46  ;;  %v6414_v48 = vrot.slane %v6081_v31, 7 }
 0x351   :  { %v6084_v34 = vld [vmem:[#allocation2 + $0x6ca] sm:$0x1]  ;;  %v6087_v2 = vld [vmem:[#allocation2 + $0x6fa] sm:$0x1]  ;;  %v6963_v50 = vsel %vm791_vm4, %v6962_v56, %v6961_v4  ;;  %v6416_v33 = vrot.slane %v6082_v26, 6  ;;  %v6413_v6 = vsel %vm803_vm8, %v6412_v17, %v6411_v47  ;;  %v6418_v61 = vrot.slane %v6083_v55, 5 }
 0x352   :  { %v6086_v36 = vld [vmem:[#allocation2 + $0x6ea] sm:$0x1]  ;;  %v6632_v8 = vld [vmem:[#allocation2 + $0x70b] sm:$0x1]  ;;  %v6633_v42 = vld [vmem:[#allocation2 + $0x71b] sm:$0x1]  ;;  %v6965_v18 = vsel %vm794_vm5, %v6964_v38, %v6963_v50  ;;  %6484 = vxpose.xlu0.b32.cont [13/16] %v6413_v6, 128  ;;  %v6415_v57 = vsel %vm785_vm1, %v6414_v48, %v6080_v3 }
 0x353   :  { %v6634_v0 = vld [vmem:[#allocation2 + $0x72b] sm:$0x1]  ;;  %v6420_v30 = vrot.slane %v6084_v34, 4  ;;  %v6635_v49 = vld [vmem:[#allocation2 + $0x73b] sm:$0x1]  ;;  %v6967_v32 = vsel %vm797_vm6, %v6966_v12, %v6965_v18  ;;  %v6422_v5 = vrot.slane %v6085_v54, 3  ;;  %v6417_v16 = vsel %vm788_vm2, %v6416_v33, %v6415_v57  ;;  %v5407_v12 = vpop.trf.xlu0  ;;  %v5952_v34 = vpop.trf.xlu1 }
 0x354   :  { %v6636_v15 = vld [vmem:[#allocation2 + $0x74b] sm:$0x1]  ;;  %v6424_v60 = vrot.slane %v6086_v36, 2  ;;  %v6637_v59 = vld [vmem:[#allocation2 + $0x75b] sm:$0x1]  ;;  %v6969_v58 = vsel %vm800_vm7, %v6968_v7, %v6967_v32  ;;  %v6426_v41 = vrot.slane %v6087_v2, 1  ;;  %v6419_v14 = vsel %vm791_vm4, %v6418_v61, %v6417_v16 }
 0x355   :  { %v6638_v43 = vld [vmem:[#allocation2 + $0x76b] sm:$0x1]  ;;  %v6639_v9 = vld [vmem:[#allocation2 + $0x77b] sm:$0x1]  ;;  %v6972_v19 = vrot.slane %v6633_v42, 7  ;;  %v6971_v10 = vsel %vm803_vm8, %v6970_v63, %v6969_v58  ;;  %v6974_v44 = vrot.slane %v6634_v0, 6  ;;  %v6421_v11 = vsel %vm794_vm5, %v6420_v30, %v6419_v14 }
 0x356   :  { %v6089_v51 = vld [vmem:[#allocation2 + $0x71a] sm:$0x1]  ;;  %v6976_v25 = vrot.slane %v6635_v49, 5  ;;  %v6088_v40 = vld [vmem:[#allocation2 + $0x70a] sm:$0x1]  ;;  %7029 = vxpose.xlu1.b32.cont [14/16] %v6971_v10, 128  ;;  %v6978_v21 = vrot.slane %v6636_v15, 4  ;;  %v6423_v22 = vsel %vm797_vm6, %v6422_v5, %v6421_v11 }
 0x357   :  { %v6090_v27 = vld [vmem:[#allocation2 + $0x72a] sm:$0x1]  ;;  %v6091_v20 = vld [vmem:[#allocation2 + $0x73a] sm:$0x1]  ;;  %v6973_v62 = vsel %vm785_vm1, %v6972_v19, %v6632_v8  ;;  %v6980_v35 = vrot.slane %v6637_v59, 3  ;;  %v6982_v31 = vrot.slane %v6638_v43, 2  ;;  %v6425_v56 = vsel %vm800_vm7, %v6424_v60, %v6423_v22  ;;  %v5408_v60 = vpop.trf.xlu0  ;;  %v5953_v59 = vpop.trf.xlu1 }
 0x358   :  { %v6092_v13 = vld [vmem:[#allocation2 + $0x74a] sm:$0x1]  ;;  %v6093_v17 = vld [vmem:[#allocation2 + $0x75a] sm:$0x1]  ;;  %v6975_v53 = vsel %vm788_vm2, %v6974_v44, %v6973_v62  ;;  %v6984_v45 = vrot.slane %v6639_v9, 1  ;;  %v6428_v26 = vrot.slane %v6089_v51, 7  ;;  %v6427_v54 = vsel %vm803_vm8, %v6426_v41, %v6425_v56 }
 0x359   :  { %v6094_v39 = vld [vmem:[#allocation2 + $0x76a] sm:$0x1]  ;;  %v6095_v37 = vld [vmem:[#allocation2 + $0x77a] sm:$0x1]  ;;  %v6977_v3 = vsel %vm791_vm4, %v6976_v25, %v6975_v53  ;;  %v6430_v55 = vrot.slane %v6090_v27, 6  ;;  %v6432_v4 = vrot.slane %v6091_v20, 5  ;;  %6485 = vxpose.xlu0.b32.cont [14/16] %v6427_v54, 128 }
 0x35a   :  { %v6640_v1 = vld [vmem:[#allocation2 + $0x78b] sm:$0x1]  ;;  %v6641_v29 = vld [vmem:[#allocation2 + $0x79b] sm:$0x1]  ;;  %v6979_v46 = vsel %vm794_vm5, %v6978_v21, %v6977_v3  ;;  %v6434_v7 = vrot.slane %v6092_v13, 4  ;;  %v6429_v23 = vsel %vm785_vm1, %v6428_v26, %v6088_v40  ;;  %v6436_v24 = vrot.slane %v6093_v17, 3 }
 0x35b   :  { %v6642_v38 = vld [vmem:[#allocation2 + $0x7ab] sm:$0x1]  ;;  %v6643_v63 = vld [vmem:[#allocation2 + $0x7bb] sm:$0x1]  ;;  %v6981_v2 = vsel %vm797_vm6, %v6980_v35, %v6979_v46  ;;  %v6438_v47 = vrot.slane %v6094_v39, 2  ;;  %v6431_v8 = vsel %vm788_vm2, %v6430_v55, %v6429_v23  ;;  %v6440_v42 = vrot.slane %v6095_v37, 1  ;;  %v5954_v39 = vpop.trf.xlu1 }
 0x35c   :  { %v6644_v36 = vld [vmem:[#allocation2 + $0x7cb] sm:$0x1]  ;;  %v6645_v50 = vld [vmem:[#allocation2 + $0x7db] sm:$0x1]  ;;  %v6983_v33 = vsel %vm800_vm7, %v6982_v31, %v6981_v2  ;;  %v6986_v6 = vrot.slane %v6641_v29, 7  ;;  %v6433_v30 = vsel %vm791_vm4, %v6432_v4, %v6431_v8  ;;  %v6988_v49 = vrot.slane %v6642_v38, 6 }
 0x35d   :  { %v6646_v48 = vld [vmem:[#allocation2 + $0x7eb] sm:$0x1]  ;;  %v6647_v0 = vld [vmem:[#allocation2 + $0x7fb] sm:$0x1]  ;;  %v6097_v18 = vld [vmem:[#allocation2 + $0x79a] sm:$0x1]  ;;  %v6985_v61 = vsel %vm803_vm8, %v6984_v45, %v6983_v33  ;;  %v6435_v43 = vsel %vm794_vm5, %v6434_v7, %v6433_v30  ;;  %v5409_v45 = vpop.trf.xlu0 }
 0x35e   :  { %v6990_v15 = vrot.slane %v6643_v63, 5  ;;  %v6096_v32 = vld [vmem:[#allocation2 + $0x78a] sm:$0x1]  ;;  %v6099_v5 = vld [vmem:[#allocation2 + $0x7ba] sm:$0x1]  ;;  %7030 = vxpose.xlu1.b32.cont [15/16] %v6985_v61, 128  ;;  %v6987_v58 = vsel %vm785_vm1, %v6986_v6, %v6640_v1  ;;  %v6992_v16 = vrot.slane %v6644_v36, 4  ;;  %v6437_v51 = vsel %vm797_vm6, %v6436_v24, %v6435_v43 }
 0x35f   :  { %v6098_v57 = vld [vmem:[#allocation2 + $0x7aa] sm:$0x1]  ;;  %v6994_v41 = vrot.slane %v6645_v50, 3  ;;  %v6101_v19 = vld [vmem:[#allocation2 + $0x7da] sm:$0x1]  ;;  %v6989_v52 = vsel %vm788_vm2, %v6988_v49, %v6987_v58  ;;  %v6996_v28 = vrot.slane %v6646_v48, 2  ;;  %v6439_v25 = vsel %vm800_vm7, %v6438_v47, %v6437_v51  ;;  %v5955_v6 = vpop.trf.xlu1 }
 0x360   :  { %v6100_v9 = vld [vmem:[#allocation2 + $0x7ca] sm:$0x1]  ;;  %v6998_v10 = vrot.slane %v6647_v0, 1  ;;  %v6103_v44 = vld [vmem:[#allocation2 + $0x7fa] sm:$0x1]  ;;  %v6991_v40 = vsel %vm791_vm4, %v6990_v15, %v6989_v52  ;;  %v6442_v27 = vrot.slane %v6097_v18, 7  ;;  %v6441_v35 = vsel %vm803_vm8, %v6440_v42, %v6439_v25 }
 0x361   :  { %v6102_v14 = vld [vmem:[#allocation2 + $0x7ea] sm:$0x1]  ;;  %v6444_v20 = vrot.slane %v6098_v57, 6  ;;  %v7608_v11 = vld [vmem:[#allocation2 + $0xd] sm:$0x1]  ;;  %v6993_v13 = vsel %vm794_vm5, %v6992_v16, %v6991_v40  ;;  %v6446_v17 = vrot.slane %v6099_v5, 5  ;;  %6486 = vxpose.xlu0.b32.cont [15/16] %v6441_v35, 128  ;;  %v5410_v0 = vpop.trf.xlu0 }
 0x362   :  { %v7609_v62 = vld [vmem:[#allocation2 + $0x1d] sm:$0x1]  ;;  %v7610_v21 = vld [vmem:[#allocation2 + $0x2d] sm:$0x1]  ;;  %v6448_v22 = vrot.slane %v6100_v9, 4  ;;  %v6995_v37 = vsel %vm797_vm6, %v6994_v41, %v6993_v13  ;;  %v6443_v56 = vsel %vm785_vm1, %v6442_v27, %v6096_v32  ;;  %v6450_v3 = vrot.slane %v6101_v19, 3 }
 0x363   :  { %v7611_v53 = vld [vmem:[#allocation2 + $0x3d] sm:$0x1]  ;;  %v7612_v31 = vld [vmem:[#allocation2 + $0x4d] sm:$0x1]  ;;  %v6452_v26 = vrot.slane %v6102_v14, 2  ;;  %v6997_v29 = vsel %vm800_vm7, %v6996_v28, %v6995_v37  ;;  %v6445_v38 = vsel %vm788_vm2, %v6444_v20, %v6443_v56  ;;  %v6454_v12 = vrot.slane %v6103_v44, 1 }
 0x364   :  { %v7613_v55 = vld [vmem:[#allocation2 + $0x5d] sm:$0x1]  ;;  %v7614_v1 = vld [vmem:[#allocation2 + $0x6d] sm:$0x1]  ;;  %v7864_v54 = vrot.slane %v7609_v62, 7  ;;  %v6999_v4 = vsel %vm803_vm8, %v6998_v10, %v6997_v29  ;;  %v6447_v7 = vsel %vm791_vm4, %v6446_v17, %v6445_v38  ;;  %v7866_v63 = vrot.slane %v7610_v21, 6 }
 0x365   :  { %v7615_v34 = vld [vmem:[#allocation2 + $0x7d] sm:$0x1]  ;;  %v7065_v46 = vld [vmem:[#allocation2 + $0x1c] sm:$0x1]  ;;  %v7868_v36 = vrot.slane %v7611_v53, 5  ;;  %7031 = vxpose.xlu1.b32.end [16/16] %v6999_v4, 128  ;;  %v6449_v47 = vsel %vm794_vm5, %v6448_v22, %v6447_v7  ;;  %v7870_v48 = vrot.slane %v7612_v31, 4  ;;  %v5411_v20 = vpop.trf.xlu0 }
 0x366   :  { %v7064_v2 = vld [vmem:[#allocation2 + $0xc] sm:$0x1]  ;;  %v7067_v24 = vld [vmem:[#allocation2 + $0x3c] sm:$0x1]  ;;  %v7865_v50 = vsel %vm785_vm1, %v7864_v54, %v7608_v11  ;;  %v7872_v33 = vrot.slane %v7613_v55, 3  ;;  %v6451_v18 = vsel %vm797_vm6, %v6450_v3, %v6449_v47  ;;  %v7874_v30 = vrot.slane %v7614_v1, 2  ;;  %v5956_v11 = vpop.trf.xlu1 }
 0x367   :  { %v7066_v23 = vld [vmem:[#allocation2 + $0x2c] sm:$0x1]  ;;  %v7069_v42 = vld [vmem:[#allocation2 + $0x5c] sm:$0x1]  ;;  %v7867_v61 = vsel %vm788_vm2, %v7866_v63, %v7865_v50  ;;  %v7876_v49 = vrot.slane %v7615_v34, 1  ;;  %v6453_v57 = vsel %vm800_vm7, %v6452_v26, %v6451_v18  ;;  %v7320_v60 = vrot.slane %v7065_v46, 7 }
 0x368   :  { %v7068_v8 = vld [vmem:[#allocation2 + $0x4c] sm:$0x1]  ;;  %v7071_v32 = vld [vmem:[#allocation2 + $0x7c] sm:$0x1]  ;;  %v7869_v5 = vsel %vm791_vm4, %v7868_v36, %v7867_v61  ;;  %v7322_v59 = vrot.slane %v7066_v23, 6  ;;  %v6455_v41 = vsel %vm803_vm8, %v6454_v12, %v6453_v57  ;;  %v7324_v19 = vrot.slane %v7067_v24, 5 }
 0x369   :  { %v7070_v15 = vld [vmem:[#allocation2 + $0x6c] sm:$0x1]  ;;  %v7616_v43 = vld [vmem:[#allocation2 + $0x8d] sm:$0x1]  ;;  %v7617_v58 = vld [vmem:[#allocation2 + $0x9d] sm:$0x1]  ;;  %v7871_v9 = vsel %vm794_vm5, %v7870_v48, %v7869_v5  ;;  %6487 = vxpose.xlu0.b32.end [16/16] %v6455_v41, 128  ;;  %v7321_v14 = vsel %vm785_vm1, %v7320_v60, %v7064_v2  ;;  %v5412_v36 = vpop.trf.xlu0 }
 0x36a   :  { %v7618_v16 = vld [vmem:[#allocation2 + $0xad] sm:$0x1]  ;;  %v7326_v51 = vrot.slane %v7068_v8, 4  ;;  %v7619_v52 = vld [vmem:[#allocation2 + $0xbd] sm:$0x1]  ;;  %v7873_v10 = vsel %vm797_vm6, %v7872_v33, %v7871_v9  ;;  %v7328_v44 = vrot.slane %v7069_v42, 3  ;;  %v7323_v21 = vsel %vm788_vm2, %v7322_v59, %v7321_v14  ;;  %v5957_v2 = vpop.trf.xlu1 }
 0x36b   :  { %v7620_v28 = vld [vmem:[#allocation2 + $0xcd] sm:$0x1]  ;;  %v7330_v25 = vrot.slane %v7070_v15, 2  ;;  %v7621_v40 = vld [vmem:[#allocation2 + $0xdd] sm:$0x1]  ;;  %v7875_v62 = vsel %vm800_vm7, %v7874_v30, %v7873_v10  ;;  %v7332_v35 = vrot.slane %v7071_v32, 1  ;;  %v7325_v31 = vsel %vm791_vm4, %v7324_v19, %v7323_v21 }
 0x36c   :  { %v7622_v27 = vld [vmem:[#allocation2 + $0xed] sm:$0x1]  ;;  %v7623_v13 = vld [vmem:[#allocation2 + $0xfd] sm:$0x1]  ;;  %v7878_v17 = vrot.slane %v7617_v58, 7  ;;  %v7877_v53 = vsel %vm803_vm8, %v7876_v49, %v7875_v62  ;;  %v7880_v45 = vrot.slane %v7618_v16, 6  ;;  %v7327_v26 = vsel %vm794_vm5, %v7326_v51, %v7325_v31 }
 0x36d   :  { %v7073_v22 = vld [vmem:[#allocation2 + $0x9c] sm:$0x1]  ;;  %v7882_v39 = vrot.slane %v7619_v52, 5  ;;  %v7072_v37 = vld [vmem:[#allocation2 + $0x8c] sm:$0x1]  ;;  %8104 = vxpose.xlu1.b32.start [1/16] %v7877_v53, 128  ;;  %v7884_v1 = vrot.slane %v7620_v28, 4  ;;  %v7329_v34 = vsel %vm797_vm6, %v7328_v44, %v7327_v26  ;;  %v5413_v19 = vpop.trf.xlu0 }
 0x36e   :  { %v7074_v56 = vld [vmem:[#allocation2 + $0xac] sm:$0x1]  ;;  %v7075_v3 = vld [vmem:[#allocation2 + $0xbc] sm:$0x1]  ;;  %v7879_v55 = vsel %vm785_vm1, %v7878_v17, %v7616_v43  ;;  %v7886_v29 = vrot.slane %v7621_v40, 3  ;;  %v7888_v46 = vrot.slane %v7622_v27, 2  ;;  %v7331_v23 = vsel %vm800_vm7, %v7330_v25, %v7329_v34  ;;  %v5958_v51 = vpop.trf.xlu1 }
 0x36f   :  { %v7076_v38 = vld [vmem:[#allocation2 + $0xcc] sm:$0x1]  ;;  %v7077_v12 = vld [vmem:[#allocation2 + $0xdc] sm:$0x1]  ;;  %v7881_v54 = vsel %vm788_vm2, %v7880_v45, %v7879_v55  ;;  %v7890_v4 = vrot.slane %v7623_v13, 1  ;;  %v7334_v47 = vrot.slane %v7073_v22, 7  ;;  %v7333_v42 = vsel %vm803_vm8, %v7332_v35, %v7331_v23 }
 0x370   :  { %v7078_v7 = vld [vmem:[#allocation2 + $0xec] sm:$0x1]  ;;  %v7079_v63 = vld [vmem:[#allocation2 + $0xfc] sm:$0x1]  ;;  %v7883_v24 = vsel %vm791_vm4, %v7882_v39, %v7881_v54  ;;  %v7336_v50 = vrot.slane %v7074_v56, 6  ;;  %v7338_v6 = vrot.slane %v7075_v3, 5  ;;  %7560 = vxpose.xlu0.b32.start [1/16] %v7333_v42, 128 }
 0x371   :  { %v7624_v48 = vld [vmem:[#allocation2 + $0x10d] sm:$0x1]  ;;  %v7625_v33 = vld [vmem:[#allocation2 + $0x11d] sm:$0x1]  ;;  %v7885_v0 = vsel %vm794_vm5, %v7884_v1, %v7883_v24  ;;  %v7340_v18 = vrot.slane %v7076_v38, 4  ;;  %v7335_v15 = vsel %vm785_vm1, %v7334_v47, %v7072_v37  ;;  %v7342_v32 = vrot.slane %v7077_v12, 3 }
 0x372   :  { %v7626_v8 = vld [vmem:[#allocation2 + $0x12d] sm:$0x1]  ;;  %v7627_v61 = vld [vmem:[#allocation2 + $0x13d] sm:$0x1]  ;;  %v7887_v49 = vsel %vm797_vm6, %v7886_v29, %v7885_v0  ;;  %v7344_v57 = vrot.slane %v7078_v7, 2  ;;  %v7337_v43 = vsel %vm788_vm2, %v7336_v50, %v7335_v15  ;;  %v7346_v58 = vrot.slane %v7079_v63, 1  ;;  %v5414_v29 = vpop.trf.xlu0  ;;  %v5959_v38 = vpop.trf.xlu1 }
 0x373   :  { %v7628_v30 = vld [vmem:[#allocation2 + $0x14d] sm:$0x1]  ;;  %v7629_v5 = vld [vmem:[#allocation2 + $0x15d] sm:$0x1]  ;;  %v7889_v59 = vsel %vm800_vm7, %v7888_v46, %v7887_v49  ;;  %v7892_v41 = vrot.slane %v7625_v33, 7  ;;  %v7339_v28 = vsel %vm791_vm4, %v7338_v6, %v7337_v43  ;;  %v7894_v10 = vrot.slane %v7626_v8, 6 }
 0x374   :  { %v7630_v60 = vld [vmem:[#allocation2 + $0x16d] sm:$0x1]  ;;  %v7631_v16 = vld [vmem:[#allocation2 + $0x17d] sm:$0x1]  ;;  %v7081_v9 = vld [vmem:[#allocation2 + $0x11c] sm:$0x1]  ;;  %v7891_v52 = vsel %vm803_vm8, %v7890_v4, %v7889_v59  ;;  %v7341_v27 = vsel %vm794_vm5, %v7340_v18, %v7339_v28 }
 0x375   :  { %v7896_v14 = vrot.slane %v7627_v61, 5  ;;  %v7080_v44 = vld [vmem:[#allocation2 + $0x10c] sm:$0x1]  ;;  %v7083_v40 = vld [vmem:[#allocation2 + $0x13c] sm:$0x1]  ;;  %8105 = vxpose.xlu1.b32.cont [2/16] %v7891_v52, 128  ;;  %v7893_v20 = vsel %vm785_vm1, %v7892_v41, %v7624_v48  ;;  %v7898_v11 = vrot.slane %v7628_v30, 4  ;;  %v7343_v13 = vsel %vm797_vm6, %v7342_v32, %v7341_v27 }
 0x376   :  { %v7082_v25 = vld [vmem:[#allocation2 + $0x12c] sm:$0x1]  ;;  %v7900_v62 = vrot.slane %v7629_v5, 3  ;;  %v7085_v35 = vld [vmem:[#allocation2 + $0x15c] sm:$0x1]  ;;  %v7895_v17 = vsel %vm788_vm2, %v7894_v10, %v7893_v20  ;;  %v7902_v22 = vrot.slane %v7630_v60, 2  ;;  %v7345_v39 = vsel %vm800_vm7, %v7344_v57, %v7343_v13  ;;  %v5415_v57 = vpop.trf.xlu0 }
 0x377   :  { %v7084_v21 = vld [vmem:[#allocation2 + $0x14c] sm:$0x1]  ;;  %v7904_v53 = vrot.slane %v7631_v16, 1  ;;  %v7087_v45 = vld [vmem:[#allocation2 + $0x17c] sm:$0x1]  ;;  %v7897_v37 = vsel %vm791_vm4, %v7896_v14, %v7895_v17  ;;  %v7348_v56 = vrot.slane %v7081_v9, 7  ;;  %v7347_v12 = vsel %vm803_vm8, %v7346_v58, %v7345_v39 }
 0x378   :  { %v7086_v31 = vld [vmem:[#allocation2 + $0x16c] sm:$0x1]  ;;  %v7350_v3 = vrot.slane %v7082_v25, 6  ;;  %v7632_v26 = vld [vmem:[#allocation2 + $0x18d] sm:$0x1]  ;;  %v7899_v34 = vsel %vm794_vm5, %v7898_v11, %v7897_v37  ;;  %v7352_v54 = vrot.slane %v7083_v40, 5  ;;  %7561 = vxpose.xlu0.b32.cont [2/16] %v7347_v12, 128 }
 0x379   :  { %v7633_v55 = vld [vmem:[#allocation2 + $0x19d] sm:$0x1]  ;;  %v7634_v1 = vld [vmem:[#allocation2 + $0x1ad] sm:$0x1]  ;;  %v7354_v46 = vrot.slane %v7084_v21, 4  ;;  %v7901_v63 = vsel %vm797_vm6, %v7900_v62, %v7899_v34  ;;  %v7349_v36 = vsel %vm785_vm1, %v7348_v56, %v7080_v44  ;;  %v7356_v2 = vrot.slane %v7085_v35, 3 }
 0x37a   :  { %v7635_v4 = vld [vmem:[#allocation2 + $0x1bd] sm:$0x1]  ;;  %v7636_v7 = vld [vmem:[#allocation2 + $0x1cd] sm:$0x1]  ;;  %v7358_v23 = vrot.slane %v7086_v31, 2  ;;  %v7903_v50 = vsel %vm800_vm7, %v7902_v22, %v7901_v63  ;;  %v7351_v48 = vsel %vm788_vm2, %v7350_v3, %v7349_v36  ;;  %v7360_v33 = vrot.slane %v7087_v45, 1 }
 0x37b   :  { %v7637_v24 = vld [vmem:[#allocation2 + $0x1dd] sm:$0x1]  ;;  %v7638_v47 = vld [vmem:[#allocation2 + $0x1ed] sm:$0x1]  ;;  %v7906_v42 = vrot.slane %v7633_v55, 7  ;;  %v7905_v6 = vsel %vm803_vm8, %v7904_v53, %v7903_v50  ;;  %v7353_v18 = vsel %vm791_vm4, %v7352_v54, %v7351_v48  ;;  %v7908_v61 = vrot.slane %v7634_v1, 6 }
 0x37c   :  { %v7639_v8 = vld [vmem:[#allocation2 + $0x1fd] sm:$0x1]  ;;  %v7089_v0 = vld [vmem:[#allocation2 + $0x19c] sm:$0x1]  ;;  %v7910_v30 = vrot.slane %v7635_v4, 5  ;;  %8106 = vxpose.xlu1.b32.cont [3/16] %v7905_v6, 128  ;;  %v7355_v5 = vsel %vm794_vm5, %v7354_v46, %v7353_v18  ;;  %v7912_v59 = vrot.slane %v7636_v7, 4 }
 0x37d   :  { %v7088_v49 = vld [vmem:[#allocation2 + $0x18c] sm:$0x1]  ;;  %v7091_v32 = vld [vmem:[#allocation2 + $0x1bc] sm:$0x1]  ;;  %v7907_v60 = vsel %vm785_vm1, %v7906_v42, %v7632_v26  ;;  %v7914_v43 = vrot.slane %v7637_v24, 3  ;;  %v7357_v41 = vsel %vm797_vm6, %v7356_v2, %v7355_v5  ;;  %v7916_v19 = vrot.slane %v7638_v47, 2 }
 0x37e   :  { %v7090_v15 = vld [vmem:[#allocation2 + $0x1ac] sm:$0x1]  ;;  %v7093_v16 = vld [vmem:[#allocation2 + $0x1dc] sm:$0x1]  ;;  %v7909_v9 = vsel %vm788_vm2, %v7908_v61, %v7907_v60  ;;  %v7918_v51 = vrot.slane %v7639_v8, 1  ;;  %v7359_v10 = vsel %vm800_vm7, %v7358_v23, %v7357_v41  ;;  %v7362_v44 = vrot.slane %v7089_v0, 7 }
 0x37f   :  { %v7092_v58 = vld [vmem:[#allocation2 + $0x1cc] sm:$0x1]  ;;  %v7095_v28 = vld [vmem:[#allocation2 + $0x1fc] sm:$0x1]  ;;  %v7911_v14 = vsel %vm791_vm4, %v7910_v30, %v7909_v9  ;;  %v7364_v25 = vrot.slane %v7090_v15, 6  ;;  %v7361_v11 = vsel %vm803_vm8, %v7360_v33, %v7359_v10  ;;  %v7366_v21 = vrot.slane %v7091_v32, 5 }
 0x380   :  { %v7094_v52 = vld [vmem:[#allocation2 + $0x1ec] sm:$0x1]  ;;  %v7640_v40 = vld [vmem:[#allocation2 + $0x20d] sm:$0x1]  ;;  %v7641_v27 = vld [vmem:[#allocation2 + $0x21d] sm:$0x1]  ;;  %v7913_v62 = vsel %vm794_vm5, %v7912_v59, %v7911_v14  ;;  %7562 = vxpose.xlu0.b32.cont [3/16] %v7361_v11, 128  ;;  %v7363_v53 = vsel %vm785_vm1, %v7362_v44, %v7088_v49 }
 0x381   :  { %v7642_v20 = vld [vmem:[#allocation2 + $0x22d] sm:$0x1]  ;;  %v7368_v35 = vrot.slane %v7092_v58, 4  ;;  %v7643_v13 = vld [vmem:[#allocation2 + $0x23d] sm:$0x1]  ;;  %v7915_v22 = vsel %vm797_vm6, %v7914_v43, %v7913_v62  ;;  %v7370_v31 = vrot.slane %v7093_v16, 3  ;;  %v7365_v3 = vsel %vm788_vm2, %v7364_v25, %v7363_v53 }
 0x382   :  { %v7644_v17 = vld [vmem:[#allocation2 + $0x24d] sm:$0x1]  ;;  %v7372_v45 = vrot.slane %v7094_v52, 2  ;;  %v7645_v39 = vld [vmem:[#allocation2 + $0x25d] sm:$0x1]  ;;  %v7917_v56 = vsel %vm800_vm7, %v7916_v19, %v7915_v22  ;;  %v7374_v26 = vrot.slane %v7095_v28, 1  ;;  %v7367_v12 = vsel %vm791_vm4, %v7366_v21, %v7365_v3 }
 0x383   :  { %v7646_v37 = vld [vmem:[#allocation2 + $0x26d] sm:$0x1]  ;;  %v7647_v55 = vld [vmem:[#allocation2 + $0x27d] sm:$0x1]  ;;  %v7920_v1 = vrot.slane %v7641_v27, 7  ;;  %v7919_v38 = vsel %vm803_vm8, %v7918_v51, %v7917_v56  ;;  %v7922_v34 = vrot.slane %v7642_v20, 6  ;;  %v7369_v63 = vsel %vm794_vm5, %v7368_v35, %v7367_v12 }
 0x384   :  { %v7097_v29 = vld [vmem:[#allocation2 + $0x21c] sm:$0x1]  ;;  %v7924_v54 = vrot.slane %v7643_v13, 5  ;;  %v7096_v46 = vld [vmem:[#allocation2 + $0x20c] sm:$0x1]  ;;  %8107 = vxpose.xlu1.b32.cont [4/16] %v7919_v38, 128  ;;  %v7926_v2 = vrot.slane %v7644_v17, 4  ;;  %v7371_v50 = vsel %vm797_vm6, %v7370_v31, %v7369_v63 }
 0x385   :  { %v7098_v4 = vld [vmem:[#allocation2 + $0x22c] sm:$0x1]  ;;  %v7099_v7 = vld [vmem:[#allocation2 + $0x23c] sm:$0x1]  ;;  %v7921_v36 = vsel %vm785_vm1, %v7920_v1, %v7640_v40  ;;  %v7928_v23 = vrot.slane %v7645_v39, 3  ;;  %v7930_v33 = vrot.slane %v7646_v37, 2  ;;  %v7373_v6 = vsel %vm800_vm7, %v7372_v45, %v7371_v50 }
 0x386   :  { %v7100_v24 = vld [vmem:[#allocation2 + $0x24c] sm:$0x1]  ;;  %v7101_v47 = vld [vmem:[#allocation2 + $0x25c] sm:$0x1]  ;;  %v7923_v48 = vsel %vm788_vm2, %v7922_v34, %v7921_v36  ;;  %v7932_v8 = vrot.slane %v7647_v55, 1  ;;  %v7376_v61 = vrot.slane %v7097_v29, 7  ;;  %v7375_v57 = vsel %vm803_vm8, %v7374_v26, %v7373_v6 }
 0x387   :  { %v7102_v42 = vld [vmem:[#allocation2 + $0x26c] sm:$0x1]  ;;  %v7103_v0 = vld [vmem:[#allocation2 + $0x27c] sm:$0x1]  ;;  %v7925_v18 = vsel %vm791_vm4, %v7924_v54, %v7923_v48  ;;  %v7378_v30 = vrot.slane %v7098_v4, 6  ;;  %v7380_v60 = vrot.slane %v7099_v7, 5  ;;  %7563 = vxpose.xlu0.b32.cont [4/16] %v7375_v57, 128 }
 0x388   :  { %v7648_v49 = vld [vmem:[#allocation2 + $0x28d] sm:$0x1]  ;;  %v7649_v15 = vld [vmem:[#allocation2 + $0x29d] sm:$0x1]  ;;  %v7927_v5 = vsel %vm794_vm5, %v7926_v2, %v7925_v18  ;;  %v7382_v59 = vrot.slane %v7100_v24, 4  ;;  %v7377_v41 = vsel %vm785_vm1, %v7376_v61, %v7096_v46  ;;  %v7384_v9 = vrot.slane %v7101_v47, 3 }
 0x389   :  { %v7650_v32 = vld [vmem:[#allocation2 + $0x2ad] sm:$0x1]  ;;  %v7651_v43 = vld [vmem:[#allocation2 + $0x2bd] sm:$0x1]  ;;  %v7929_v16 = vsel %vm797_vm6, %v7928_v23, %v7927_v5  ;;  %v7386_v19 = vrot.slane %v7102_v42, 2  ;;  %v7379_v10 = vsel %vm788_vm2, %v7378_v30, %v7377_v41  ;;  %v7388_v14 = vrot.slane %v7103_v0, 1 }
 0x38a   :  { %v7652_v58 = vld [vmem:[#allocation2 + $0x2cd] sm:$0x1]  ;;  %v7653_v51 = vld [vmem:[#allocation2 + $0x2dd] sm:$0x1]  ;;  %v7931_v28 = vsel %vm800_vm7, %v7930_v33, %v7929_v16  ;;  %v7934_v25 = vrot.slane %v7649_v15, 7  ;;  %v7381_v20 = vsel %vm791_vm4, %v7380_v60, %v7379_v10  ;;  %v7936_v11 = vrot.slane %v7650_v32, 6 }
 0x38b   :  { %v7654_v52 = vld [vmem:[#allocation2 + $0x2ed] sm:$0x1]  ;;  %v7655_v44 = vld [vmem:[#allocation2 + $0x2fd] sm:$0x1]  ;;  %v7105_v40 = vld [vmem:[#allocation2 + $0x29c] sm:$0x1]  ;;  %v7933_v27 = vsel %vm803_vm8, %v7932_v8, %v7931_v28  ;;  %v7383_v17 = vsel %vm794_vm5, %v7382_v59, %v7381_v20 }
 0x38c   :  { %v7938_v62 = vrot.slane %v7651_v43, 5  ;;  %v7104_v21 = vld [vmem:[#allocation2 + $0x28c] sm:$0x1]  ;;  %v7107_v13 = vld [vmem:[#allocation2 + $0x2bc] sm:$0x1]  ;;  %8108 = vxpose.xlu1.b32.cont [5/16] %v7933_v27, 128  ;;  %v7935_v22 = vsel %vm785_vm1, %v7934_v25, %v7648_v49  ;;  %v7940_v53 = vrot.slane %v7652_v58, 4  ;;  %v7385_v37 = vsel %vm797_vm6, %v7384_v9, %v7383_v17 }
 0x38d   :  { %v7106_v35 = vld [vmem:[#allocation2 + $0x2ac] sm:$0x1]  ;;  %v7942_v31 = vrot.slane %v7653_v51, 3  ;;  %v7109_v39 = vld [vmem:[#allocation2 + $0x2dc] sm:$0x1]  ;;  %v7937_v56 = vsel %vm788_vm2, %v7936_v11, %v7935_v22  ;;  %v7944_v3 = vrot.slane %v7654_v52, 2  ;;  %v7387_v29 = vsel %vm800_vm7, %v7386_v19, %v7385_v37 }
 0x38e   :  { %v7108_v45 = vld [vmem:[#allocation2 + $0x2cc] sm:$0x1]  ;;  %v7946_v26 = vrot.slane %v7655_v44, 1  ;;  %v7111_v1 = vld [vmem:[#allocation2 + $0x2fc] sm:$0x1]  ;;  %v7939_v38 = vsel %vm791_vm4, %v7938_v62, %v7937_v56  ;;  %v7390_v12 = vrot.slane %v7105_v40, 7  ;;  %v7389_v7 = vsel %vm803_vm8, %v7388_v14, %v7387_v29 }
 0x38f   :  { %v7110_v55 = vld [vmem:[#allocation2 + $0x2ec] sm:$0x1]  ;;  %v7392_v34 = vrot.slane %v7106_v35, 6  ;;  %v7656_v54 = vld [vmem:[#allocation2 + $0x30d] sm:$0x1]  ;;  %v7941_v63 = vsel %vm794_vm5, %v7940_v53, %v7939_v38  ;;  %v7394_v36 = vrot.slane %v7107_v13, 5  ;;  %7564 = vxpose.xlu0.b32.cont [5/16] %v7389_v7, 128 }
 0x390   :  { %v7657_v46 = vld [vmem:[#allocation2 + $0x31d] sm:$0x1]  ;;  %v7658_v4 = vld [vmem:[#allocation2 + $0x32d] sm:$0x1]  ;;  %v7396_v2 = vrot.slane %v7108_v45, 4  ;;  %v7943_v47 = vsel %vm797_vm6, %v7942_v31, %v7941_v63  ;;  %v7391_v50 = vsel %vm785_vm1, %v7390_v12, %v7104_v21  ;;  %v7398_v48 = vrot.slane %v7109_v39, 3 }
 0x391   :  { %v7659_v23 = vld [vmem:[#allocation2 + $0x33d] sm:$0x1]  ;;  %v7660_v24 = vld [vmem:[#allocation2 + $0x34d] sm:$0x1]  ;;  %v7400_v33 = vrot.slane %v7110_v55, 2  ;;  %v7945_v0 = vsel %vm800_vm7, %v7944_v3, %v7943_v47  ;;  %v7393_v6 = vsel %vm788_vm2, %v7392_v34, %v7391_v50  ;;  %v7402_v18 = vrot.slane %v7111_v1, 1 }
 0x392   :  { %v7661_v8 = vld [vmem:[#allocation2 + $0x35d] sm:$0x1]  ;;  %v7662_v42 = vld [vmem:[#allocation2 + $0x36d] sm:$0x1]  ;;  %v7948_v30 = vrot.slane %v7657_v46, 7  ;;  %v7947_v15 = vsel %vm803_vm8, %v7946_v26, %v7945_v0  ;;  %v7395_v32 = vsel %vm791_vm4, %v7394_v36, %v7393_v6  ;;  %v7950_v57 = vrot.slane %v7658_v4, 6 }
 0x393   :  { %v7663_v61 = vld [vmem:[#allocation2 + $0x37d] sm:$0x1]  ;;  %v7113_v49 = vld [vmem:[#allocation2 + $0x31c] sm:$0x1]  ;;  %v7952_v5 = vrot.slane %v7659_v23, 5  ;;  %8109 = vxpose.xlu1.b32.cont [6/16] %v7947_v15, 128  ;;  %v7397_v58 = vsel %vm794_vm5, %v7396_v2, %v7395_v32  ;;  %v7954_v41 = vrot.slane %v7660_v24, 4 }
 0x394   :  { %v7112_v60 = vld [vmem:[#allocation2 + $0x30c] sm:$0x1]  ;;  %v7115_v43 = vld [vmem:[#allocation2 + $0x33c] sm:$0x1]  ;;  %v7949_v16 = vsel %vm785_vm1, %v7948_v30, %v7656_v54  ;;  %v7956_v9 = vrot.slane %v7661_v8, 3  ;;  %v7399_v52 = vsel %vm797_vm6, %v7398_v48, %v7397_v58  ;;  %v7958_v10 = vrot.slane %v7662_v42, 2 }
 0x395   :  { %v7114_v59 = vld [vmem:[#allocation2 + $0x32c] sm:$0x1]  ;;  %v7117_v51 = vld [vmem:[#allocation2 + $0x35c] sm:$0x1]  ;;  %v7951_v28 = vsel %vm788_vm2, %v7950_v57, %v7949_v16  ;;  %v7960_v14 = vrot.slane %v7663_v61, 1  ;;  %v7401_v40 = vsel %vm800_vm7, %v7400_v33, %v7399_v52  ;;  %v7404_v20 = vrot.slane %v7113_v49, 7 }
 0x396   :  { %v7116_v19 = vld [vmem:[#allocation2 + $0x34c] sm:$0x1]  ;;  %v7119_v25 = vld [vmem:[#allocation2 + $0x37c] sm:$0x1]  ;;  %v7953_v27 = vsel %vm791_vm4, %v7952_v5, %v7951_v28  ;;  %v7406_v11 = vrot.slane %v7114_v59, 6  ;;  %v7403_v35 = vsel %vm803_vm8, %v7402_v18, %v7401_v40  ;;  %v7408_v17 = vrot.slane %v7115_v43, 5 }
 0x397   :  { %v7118_v44 = vld [vmem:[#allocation2 + $0x36c] sm:$0x1]  ;;  %v7664_v62 = vld [vmem:[#allocation2 + $0x38d] sm:$0x1]  ;;  %v7665_v21 = vld [vmem:[#allocation2 + $0x39d] sm:$0x1]  ;;  %v7955_v13 = vsel %vm794_vm5, %v7954_v41, %v7953_v27  ;;  %7565 = vxpose.xlu0.b32.cont [6/16] %v7403_v35, 128  ;;  %v7405_v39 = vsel %vm785_vm1, %v7404_v20, %v7112_v60 }
 0x398   :  { %v7410_v22 = vrot.slane %v7116_v19, 4  ;;  %v7666_v53 = vld [vmem:[#allocation2 + $0x3ad] sm:$0x1]  ;;  %v7667_v31 = vld [vmem:[#allocation2 + $0x3bd] sm:$0x1]  ;;  %v7957_v45 = vsel %vm797_vm6, %v7956_v9, %v7955_v13  ;;  %v7412_v37 = vrot.slane %v7117_v51, 3  ;;  %v7407_v1 = vsel %vm788_vm2, %v7406_v11, %v7405_v39 }
 0x399   :  { %v7414_v56 = vrot.slane %v7118_v44, 2  ;;  %v7668_v3 = vld [vmem:[#allocation2 + $0x3cd] sm:$0x1]  ;;  %v7669_v26 = vld [vmem:[#allocation2 + $0x3dd] sm:$0x1]  ;;  %v7959_v55 = vsel %vm800_vm7, %v7958_v10, %v7957_v45  ;;  %v7416_v29 = vrot.slane %v7119_v25, 1  ;;  %v7409_v46 = vsel %vm791_vm4, %v7408_v17, %v7407_v1 }
 0x39a   :  { %v7670_v38 = vld [vmem:[#allocation2 + $0x3ed] sm:$0x1]  ;;  %v7671_v12 = vld [vmem:[#allocation2 + $0x3fd] sm:$0x1]  ;;  %v7962_v34 = vrot.slane %v7665_v21, 7  ;;  %v7961_v54 = vsel %vm803_vm8, %v7960_v14, %v7959_v55  ;;  %v7964_v4 = vrot.slane %v7666_v53, 6  ;;  %v7411_v23 = vsel %vm794_vm5, %v7410_v22, %v7409_v46 }
 0x39b   :  { %v7966_v7 = vrot.slane %v7667_v31, 5  ;;  %v7120_v63 = vld [vmem:[#allocation2 + $0x38c] sm:$0x1]  ;;  %v7121_v36 = vld [vmem:[#allocation2 + $0x39c] sm:$0x1]  ;;  %8110 = vxpose.xlu1.b32.cont [7/16] %v7961_v54, 128  ;;  %v7968_v47 = vrot.slane %v7668_v3, 4  ;;  %v7413_v8 = vsel %vm797_vm6, %v7412_v37, %v7411_v23 }
 0x39c   :  { %v7122_v2 = vld [vmem:[#allocation2 + $0x3ac] sm:$0x1]  ;;  %v7963_v24 = vsel %vm785_vm1, %v7962_v34, %v7664_v62  ;;  %v7970_v50 = vrot.slane %v7669_v26, 3  ;;  %v7123_v48 = vld [vmem:[#allocation2 + $0x3bc] sm:$0x1]  ;;  %v7972_v0 = vrot.slane %v7670_v38, 2  ;;  %v7415_v30 = vsel %vm800_vm7, %v7414_v56, %v7413_v8 }
 0x39d   :  { %v7124_v33 = vld [vmem:[#allocation2 + $0x3cc] sm:$0x1]  ;;  %v7965_v42 = vsel %vm788_vm2, %v7964_v4, %v7963_v24  ;;  %v7974_v6 = vrot.slane %v7671_v12, 1  ;;  %v7125_v18 = vld [vmem:[#allocation2 + $0x3dc] sm:$0x1]  ;;  %v7418_v32 = vrot.slane %v7121_v36, 7  ;;  %v7417_v60 = vsel %vm803_vm8, %v7416_v29, %v7415_v30 }
 0x39e   :  { %v7126_v61 = vld [vmem:[#allocation2 + $0x3ec] sm:$0x1]  ;;  %v7967_v49 = vsel %vm791_vm4, %v7966_v7, %v7965_v42  ;;  %v7127_v15 = vld [vmem:[#allocation2 + $0x3fc] sm:$0x1]  ;;  %v7420_v57 = vrot.slane %v7122_v2, 6  ;;  %v7422_v43 = vrot.slane %v7123_v48, 5  ;;  %7566 = vxpose.xlu0.b32.cont [7/16] %v7417_v60, 128 }
 0x39f   :  { %v7672_v5 = vld [vmem:[#allocation2 + $0x40d] sm:$0x1]  ;;  %v7969_v59 = vsel %vm794_vm5, %v7968_v47, %v7967_v49  ;;  %v7424_v58 = vrot.slane %v7124_v33, 4  ;;  %v7673_v16 = vld [vmem:[#allocation2 + $0x41d] sm:$0x1]  ;;  %v7419_v19 = vsel %vm785_vm1, %v7418_v32, %v7120_v63  ;;  %v7426_v51 = vrot.slane %v7125_v18, 3 }
 0x3a0   :  { %v7674_v41 = vld [vmem:[#allocation2 + $0x42d] sm:$0x1]  ;;  %v7971_v9 = vsel %vm797_vm6, %v7970_v50, %v7969_v59  ;;  %v7428_v52 = vrot.slane %v7126_v61, 2  ;;  %v7675_v28 = vld [vmem:[#allocation2 + $0x43d] sm:$0x1]  ;;  %v7421_v44 = vsel %vm788_vm2, %v7420_v57, %v7419_v19  ;;  %v7430_v25 = vrot.slane %v7127_v15, 1 }
 0x3a1   :  { %v7676_v10 = vld [vmem:[#allocation2 + $0x44d] sm:$0x1]  ;;  %v7973_v14 = vsel %vm800_vm7, %v7972_v0, %v7971_v9  ;;  %v7677_v40 = vld [vmem:[#allocation2 + $0x45d] sm:$0x1]  ;;  %v7976_v20 = vrot.slane %v7673_v16, 7  ;;  %v7423_v62 = vsel %vm791_vm4, %v7422_v43, %v7421_v44  ;;  %v7978_v35 = vrot.slane %v7674_v41, 6 }
 0x3a2   :  { %v7678_v27 = vld [vmem:[#allocation2 + $0x46d] sm:$0x1]  ;;  %v7975_v11 = vsel %vm803_vm8, %v7974_v6, %v7973_v14  ;;  %v7679_v21 = vld [vmem:[#allocation2 + $0x47d] sm:$0x1]  ;;  %v7980_v13 = vrot.slane %v7675_v28, 5  ;;  %v7425_v17 = vsel %vm794_vm5, %v7424_v58, %v7423_v62  ;;  %v7982_v53 = vrot.slane %v7676_v10, 4 }
 0x3a3   :  { %8111 = vxpose.xlu1.b32.cont [8/16] %v7975_v11, 128  ;;  %v7977_v22 = vsel %vm785_vm1, %v7976_v20, %v7672_v5  ;;  %v7984_v31 = vrot.slane %v7677_v40, 3  ;;  %v7128_v45 = vld [vmem:[#allocation2 + $0x40c] sm:$0x1]  ;;  %v7129_v39 = vld [vmem:[#allocation2 + $0x41c] sm:$0x1]  ;;  %v7427_v56 = vsel %vm797_vm6, %v7426_v51, %v7425_v17  ;;  %v7986_v26 = vrot.slane %v7678_v27, 2 }
 0x3a4   :  { %v7130_v37 = vld [vmem:[#allocation2 + $0x42c] sm:$0x1]  ;;  %v7979_v3 = vsel %vm788_vm2, %v7978_v35, %v7977_v22  ;;  %v7988_v55 = vrot.slane %v7679_v21, 1  ;;  %v7131_v1 = vld [vmem:[#allocation2 + $0x43c] sm:$0x1]  ;;  %v7429_v38 = vsel %vm800_vm7, %v7428_v52, %v7427_v56  ;;  %v7432_v63 = vrot.slane %v7129_v39, 7 }
 0x3a5   :  { %v7132_v29 = vld [vmem:[#allocation2 + $0x44c] sm:$0x1]  ;;  %v7981_v12 = vsel %vm791_vm4, %v7980_v13, %v7979_v3  ;;  %v7133_v34 = vld [vmem:[#allocation2 + $0x45c] sm:$0x1]  ;;  %v7431_v4 = vsel %vm803_vm8, %v7430_v25, %v7429_v38  ;;  %v7434_v36 = vrot.slane %v7130_v37, 6  ;;  %v7436_v24 = vrot.slane %v7131_v1, 5 }
 0x3a6   :  { %v7134_v54 = vld [vmem:[#allocation2 + $0x46c] sm:$0x1]  ;;  %v7135_v46 = vld [vmem:[#allocation2 + $0x47c] sm:$0x1]  ;;  %v7983_v7 = vsel %vm794_vm5, %v7982_v53, %v7981_v12  ;;  %v7681_v2 = vld [vmem:[#allocation2 + $0x49d] sm:$0x1]  ;;  %7567 = vxpose.xlu0.b32.cont [8/16] %v7431_v4, 128  ;;  %v7433_v42 = vsel %vm785_vm1, %v7432_v63, %v7128_v45 }
 0x3a7   :  { %v7985_v23 = vsel %vm797_vm6, %v7984_v31, %v7983_v7  ;;  %v7438_v47 = vrot.slane %v7132_v29, 4  ;;  %v7440_v50 = vrot.slane %v7133_v34, 3  ;;  %v7680_v48 = vld [vmem:[#allocation2 + $0x48d] sm:$0x1]  ;;  %v7442_v0 = vrot.slane %v7134_v54, 2 }
 0x3a8   :  { %v7682_v33 = vld [vmem:[#allocation2 + $0x4ad] sm:$0x1]  ;;  %v7987_v8 = vsel %vm800_vm7, %v7986_v26, %v7985_v23  ;;  %v7444_v6 = vrot.slane %v7135_v46, 1  ;;  %v7683_v18 = vld [vmem:[#allocation2 + $0x4bd] sm:$0x1]  ;;  %v7435_v49 = vsel %vm788_vm2, %v7434_v36, %v7433_v42  ;;  %v7990_v60 = vrot.slane %v7681_v2, 7 }
 0x3a9   :  { %v7684_v61 = vld [vmem:[#allocation2 + $0x4cd] sm:$0x1]  ;;  %v7989_v30 = vsel %vm803_vm8, %v7988_v55, %v7987_v8  ;;  %v7685_v15 = vld [vmem:[#allocation2 + $0x4dd] sm:$0x1]  ;;  %v7437_v5 = vsel %vm791_vm4, %v7436_v24, %v7435_v49  ;;  %v7992_v59 = vrot.slane %v7682_v33, 6  ;;  %v7994_v43 = vrot.slane %v7683_v18, 5  ;;  %v7032_v3 = vpop.trf.xlu1 }
 0x3aa   :  { %v7686_v32 = vld [vmem:[#allocation2 + $0x4ed] sm:$0x1]  ;;  %v7687_v57 = vld [vmem:[#allocation2 + $0x4fd] sm:$0x1]  ;;  %8112 = vxpose.xlu1.b32.cont [9/16] %v7989_v30, 128  ;;  %v7136_v58 = vld [vmem:[#allocation2 + $0x48c] sm:$0x1]  ;;  %v7439_v16 = vsel %vm794_vm5, %v7438_v47, %v7437_v5  ;;  %v7991_v28 = vsel %vm785_vm1, %v7990_v60, %v7680_v48 }
 0x3ab   :  { %v7996_v41 = vrot.slane %v7684_v61, 4  ;;  %v7998_v9 = vrot.slane %v7685_v15, 3  ;;  %v8000_v19 = vrot.slane %v7686_v32, 2  ;;  %v7137_v51 = vld [vmem:[#allocation2 + $0x49c] sm:$0x1]  ;;  %v7441_v52 = vsel %vm797_vm6, %v7440_v50, %v7439_v16 }
 0x3ac   :  { %v8002_v10 = vrot.slane %v7687_v57, 1  ;;  %v7138_v14 = vld [vmem:[#allocation2 + $0x4ac] sm:$0x1]  ;;  %v7139_v44 = vld [vmem:[#allocation2 + $0x4bc] sm:$0x1]  ;;  %v7446_v25 = vrot.slane %v7137_v51, 7  ;;  %v7443_v40 = vsel %vm800_vm7, %v7442_v0, %v7441_v52  ;;  %v7993_v27 = vsel %vm788_vm2, %v7992_v59, %v7991_v28 }
 0x3ad   :  { %v7140_v20 = vld [vmem:[#allocation2 + $0x4cc] sm:$0x1]  ;;  %v7141_v11 = vld [vmem:[#allocation2 + $0x4dc] sm:$0x1]  ;;  %v7445_v21 = vsel %vm803_vm8, %v7444_v6, %v7443_v40  ;;  %v7995_v35 = vsel %vm791_vm4, %v7994_v43, %v7993_v27  ;;  %v7448_v22 = vrot.slane %v7138_v14, 6  ;;  %v7450_v31 = vrot.slane %v7139_v44, 5  ;;  %v6488_v0 = vpop.trf.xlu0  ;;  %v7033_v6 = vpop.trf.xlu1 }
 0x3ae   :  { %v7142_v62 = vld [vmem:[#allocation2 + $0x4ec] sm:$0x1]  ;;  %v7143_v13 = vld [vmem:[#allocation2 + $0x4fc] sm:$0x1]  ;;  %v7447_v17 = vsel %vm785_vm1, %v7446_v25, %v7136_v58  ;;  %7568 = vxpose.xlu0.b32.cont [9/16] %v7445_v21, 128  ;;  %v7997_v53 = vsel %vm794_vm5, %v7996_v41, %v7995_v35  ;;  %v7452_v45 = vrot.slane %v7140_v20, 4  ;;  %v7454_v39 = vrot.slane %v7141_v11, 3 }
 0x3af   :  { %v7688_v37 = vld [vmem:[#allocation2 + $0x50d] sm:$0x1]  ;;  %v7689_v56 = vld [vmem:[#allocation2 + $0x51d] sm:$0x1]  ;;  %v7999_v26 = vsel %vm797_vm6, %v7998_v9, %v7997_v53  ;;  %v7449_v55 = vsel %vm788_vm2, %v7448_v22, %v7447_v17  ;;  %v7456_v1 = vrot.slane %v7142_v62, 2  ;;  %v7458_v29 = vrot.slane %v7143_v13, 1 }
 0x3b0   :  { %v7690_v38 = vld [vmem:[#allocation2 + $0x52d] sm:$0x1]  ;;  %v7691_v12 = vld [vmem:[#allocation2 + $0x53d] sm:$0x1]  ;;  %v8001_v34 = vsel %vm800_vm7, %v8000_v19, %v7999_v26  ;;  %v7451_v54 = vsel %vm791_vm4, %v7450_v31, %v7449_v55  ;;  %v8004_v23 = vrot.slane %v7689_v56, 7 }
 0x3b1   :  { %v7692_v46 = vld [vmem:[#allocation2 + $0x54d] sm:$0x1]  ;;  %v7693_v4 = vld [vmem:[#allocation2 + $0x55d] sm:$0x1]  ;;  %v8003_v63 = vsel %vm803_vm8, %v8002_v10, %v8001_v34  ;;  %v7453_v36 = vsel %vm794_vm5, %v7452_v45, %v7451_v54  ;;  %v8006_v24 = vrot.slane %v7690_v38, 6  ;;  %v8008_v50 = vrot.slane %v7691_v12, 5  ;;  %v6489_v14 = vpop.trf.xlu0  ;;  %v7034_v44 = vpop.trf.xlu1 }
 0x3b2   :  { %v7694_v7 = vld [vmem:[#allocation2 + $0x56d] sm:$0x1]  ;;  %v7695_v2 = vld [vmem:[#allocation2 + $0x57d] sm:$0x1]  ;;  %8113 = vxpose.xlu1.b32.cont [10/16] %v8003_v63, 128  ;;  %v7455_v47 = vsel %vm797_vm6, %v7454_v39, %v7453_v36  ;;  %v8010_v48 = vrot.slane %v7692_v46, 4  ;;  %v8012_v33 = vrot.slane %v7693_v4, 3  ;;  %v8005_v61 = vsel %vm785_vm1, %v8004_v23, %v7688_v37 }
 0x3b3   :  { %v7144_v8 = vld [vmem:[#allocation2 + $0x50c] sm:$0x1]  ;;  %v7145_v42 = vld [vmem:[#allocation2 + $0x51c] sm:$0x1]  ;;  %v7457_v18 = vsel %vm800_vm7, %v7456_v1, %v7455_v47  ;;  %v8014_v30 = vrot.slane %v7694_v7, 2  ;;  %v8016_v49 = vrot.slane %v7695_v2, 1  ;;  %v8007_v5 = vsel %vm788_vm2, %v8006_v24, %v8005_v61 }
 0x3b4   :  { %v7146_v15 = vld [vmem:[#allocation2 + $0x52c] sm:$0x1]  ;;  %v7147_v32 = vld [vmem:[#allocation2 + $0x53c] sm:$0x1]  ;;  %v7459_v57 = vsel %vm803_vm8, %v7458_v29, %v7457_v18  ;;  %v8009_v58 = vsel %vm791_vm4, %v8008_v50, %v8007_v5  ;;  %v7460_v41 = vrot.slane %v7145_v42, 7 }
 0x3b5   :  { %v7148_v60 = vld [vmem:[#allocation2 + $0x54c] sm:$0x1]  ;;  %v7149_v59 = vld [vmem:[#allocation2 + $0x55c] sm:$0x1]  ;;  %7569 = vxpose.xlu0.b32.cont [10/16] %v7459_v57, 128  ;;  %v7462_v9 = vrot.slane %v7146_v15, 6  ;;  %v7464_v19 = vrot.slane %v7147_v32, 5  ;;  %v8011_v51 = vsel %vm794_vm5, %v8010_v48, %v8009_v58  ;;  %v6490_v38 = vpop.trf.xlu0  ;;  %v7035_v12 = vpop.trf.xlu1 }
 0x3b6   :  { %v7150_v43 = vld [vmem:[#allocation2 + $0x56c] sm:$0x1]  ;;  %v7151_v16 = vld [vmem:[#allocation2 + $0x57c] sm:$0x1]  ;;  %v7466_v52 = vrot.slane %v7148_v60, 4  ;;  %v7468_v28 = vrot.slane %v7149_v59, 3  ;;  %v8013_v25 = vsel %vm797_vm6, %v8012_v33, %v8011_v51  ;;  %v7461_v40 = vsel %vm785_vm1, %v7460_v41, %v7144_v8 }
 0x3b7   :  { %v7696_v10 = vld [vmem:[#allocation2 + $0x58d] sm:$0x1]  ;;  %v7470_v27 = vrot.slane %v7150_v43, 2  ;;  %v7472_v20 = vrot.slane %v7151_v16, 1  ;;  %v7697_v11 = vld [vmem:[#allocation2 + $0x59d] sm:$0x1]  ;;  %v8015_v21 = vsel %vm800_vm7, %v8014_v30, %v8013_v25  ;;  %v7463_v35 = vsel %vm788_vm2, %v7462_v9, %v7461_v40 }
 0x3b8   :  { %v7698_v62 = vld [vmem:[#allocation2 + $0x5ad] sm:$0x1]  ;;  %v7699_v13 = vld [vmem:[#allocation2 + $0x5bd] sm:$0x1]  ;;  %v8017_v53 = vsel %vm803_vm8, %v8016_v49, %v8015_v21  ;;  %v7465_v31 = vsel %vm791_vm4, %v7464_v19, %v7463_v35  ;;  %v8018_v37 = vrot.slane %v7697_v11, 7 }
 0x3b9   :  { %v7700_v17 = vld [vmem:[#allocation2 + $0x5cd] sm:$0x1]  ;;  %v7701_v22 = vld [vmem:[#allocation2 + $0x5dd] sm:$0x1]  ;;  %v8020_v56 = vrot.slane %v7698_v62, 6  ;;  %8114 = vxpose.xlu1.b32.cont [11/16] %v8017_v53, 128  ;;  %v7467_v3 = vsel %vm794_vm5, %v7466_v52, %v7465_v31  ;;  %v8022_v26 = vrot.slane %v7699_v13, 5  ;;  %v6491_v15 = vpop.trf.xlu0  ;;  %v7036_v32 = vpop.trf.xlu1 }
 0x3ba   :  { %v7702_v45 = vld [vmem:[#allocation2 + $0x5ed] sm:$0x1]  ;;  %v7703_v39 = vld [vmem:[#allocation2 + $0x5fd] sm:$0x1]  ;;  %v8024_v55 = vrot.slane %v7700_v17, 4  ;;  %v8026_v1 = vrot.slane %v7701_v22, 3  ;;  %v7469_v34 = vsel %vm797_vm6, %v7468_v28, %v7467_v3  ;;  %v8019_v54 = vsel %vm785_vm1, %v8018_v37, %v7696_v10 }
 0x3bb   :  { %v7152_v29 = vld [vmem:[#allocation2 + $0x58c] sm:$0x1]  ;;  %v8028_v46 = vrot.slane %v7702_v45, 2  ;;  %v8030_v4 = vrot.slane %v7703_v39, 1  ;;  %v7153_v7 = vld [vmem:[#allocation2 + $0x59c] sm:$0x1]  ;;  %v7471_v36 = vsel %vm800_vm7, %v7470_v27, %v7469_v34  ;;  %v8021_v2 = vsel %vm788_vm2, %v8020_v56, %v8019_v54 }
 0x3bc   :  { %v7154_v63 = vld [vmem:[#allocation2 + $0x5ac] sm:$0x1]  ;;  %v7155_v23 = vld [vmem:[#allocation2 + $0x5bc] sm:$0x1]  ;;  %v7473_v50 = vsel %vm803_vm8, %v7472_v20, %v7471_v36  ;;  %v8023_v48 = vsel %vm791_vm4, %v8022_v26, %v8021_v2  ;;  %v7474_v42 = vrot.slane %v7153_v7, 7 }
 0x3bd   :  { %v7156_v24 = vld [vmem:[#allocation2 + $0x5cc] sm:$0x1]  ;;  %v7157_v47 = vld [vmem:[#allocation2 + $0x5dc] sm:$0x1]  ;;  %v7476_v0 = vrot.slane %v7154_v63, 6  ;;  %7570 = vxpose.xlu0.b32.cont [11/16] %v7473_v50, 128  ;;  %v8025_v6 = vsel %vm794_vm5, %v8024_v55, %v8023_v48  ;;  %v7478_v18 = vrot.slane %v7155_v23, 5  ;;  %v6492_v21 = vpop.trf.xlu0  ;;  %v7037_v35 = vpop.trf.xlu1 }
 0x3be   :  { %v7158_v33 = vld [vmem:[#allocation2 + $0x5ec] sm:$0x1]  ;;  %v7159_v8 = vld [vmem:[#allocation2 + $0x5fc] sm:$0x1]  ;;  %v7480_v61 = vrot.slane %v7156_v24, 4  ;;  %v7482_v30 = vrot.slane %v7157_v47, 3  ;;  %v8027_v57 = vsel %vm797_vm6, %v8026_v1, %v8025_v6  ;;  %v7475_v5 = vsel %vm785_vm1, %v7474_v42, %v7152_v29 }
 0x3bf   :  { %v7704_v49 = vld [vmem:[#allocation2 + $0x60d] sm:$0x1]  ;;  %v7484_v60 = vrot.slane %v7158_v33, 2  ;;  %v7486_v59 = vrot.slane %v7159_v8, 1  ;;  %v7705_v43 = vld [vmem:[#allocation2 + $0x61d] sm:$0x1]  ;;  %v8029_v16 = vsel %vm800_vm7, %v8028_v46, %v8027_v57  ;;  %v7477_v41 = vsel %vm788_vm2, %v7476_v0, %v7475_v5 }
 0x3c0   :  { %v7706_v58 = vld [vmem:[#allocation2 + $0x62d] sm:$0x1]  ;;  %v7707_v9 = vld [vmem:[#allocation2 + $0x63d] sm:$0x1]  ;;  %v8031_v52 = vsel %vm803_vm8, %v8030_v4, %v8029_v16  ;;  %v7479_v28 = vsel %vm791_vm4, %v7478_v18, %v7477_v41  ;;  %v8032_v44 = vrot.slane %v7705_v43, 7 }
 0x3c1   :  { %v7708_v19 = vld [vmem:[#allocation2 + $0x64d] sm:$0x1]  ;;  %v7709_v51 = vld [vmem:[#allocation2 + $0x65d] sm:$0x1]  ;;  %v8034_v25 = vrot.slane %v7706_v58, 6  ;;  %8115 = vxpose.xlu1.b32.cont [12/16] %v8031_v52, 128  ;;  %v7481_v40 = vsel %vm794_vm5, %v7480_v61, %v7479_v28  ;;  %v8036_v27 = vrot.slane %v7707_v9, 5  ;;  %v6493_v36 = vpop.trf.xlu0  ;;  %v7038_v2 = vpop.trf.xlu1 }
 0x3c2   :  { %v7710_v10 = vld [vmem:[#allocation2 + $0x66d] sm:$0x1]  ;;  %v7711_v14 = vld [vmem:[#allocation2 + $0x67d] sm:$0x1]  ;;  %v8038_v20 = vrot.slane %v7708_v19, 4  ;;  %v8040_v11 = vrot.slane %v7709_v51, 3  ;;  %v7483_v13 = vsel %vm797_vm6, %v7482_v30, %v7481_v40  ;;  %v8033_v17 = vsel %vm785_vm1, %v8032_v44, %v7704_v49 }
 0x3c3   :  { %v7160_v62 = vld [vmem:[#allocation2 + $0x60c] sm:$0x1]  ;;  %v8042_v22 = vrot.slane %v7710_v10, 2  ;;  %v8044_v53 = vrot.slane %v7711_v14, 1  ;;  %v7161_v31 = vld [vmem:[#allocation2 + $0x61c] sm:$0x1]  ;;  %v7485_v39 = vsel %vm800_vm7, %v7484_v60, %v7483_v13  ;;  %v8035_v37 = vsel %vm788_vm2, %v8034_v25, %v8033_v17 }
 0x3c4   :  { %v7162_v45 = vld [vmem:[#allocation2 + $0x62c] sm:$0x1]  ;;  %v7163_v56 = vld [vmem:[#allocation2 + $0x63c] sm:$0x1]  ;;  %v7487_v55 = vsel %vm803_vm8, %v7486_v59, %v7485_v39  ;;  %v8037_v1 = vsel %vm791_vm4, %v8036_v27, %v8035_v37  ;;  %v7488_v12 = vrot.slane %v7161_v31, 7 }
 0x3c5   :  { %v7164_v3 = vld [vmem:[#allocation2 + $0x64c] sm:$0x1]  ;;  %v7165_v26 = vld [vmem:[#allocation2 + $0x65c] sm:$0x1]  ;;  %v7490_v34 = vrot.slane %v7162_v45, 6  ;;  %7571 = vxpose.xlu0.b32.cont [12/16] %v7487_v55, 128  ;;  %v8039_v54 = vsel %vm794_vm5, %v8038_v20, %v8037_v1  ;;  %v7492_v46 = vrot.slane %v7163_v56, 5  ;;  %v6494_v16 = vpop.trf.xlu0  ;;  %v7039_v41 = vpop.trf.xlu1 }
 0x3c6   :  { %v7166_v29 = vld [vmem:[#allocation2 + $0x66c] sm:$0x1]  ;;  %v7167_v38 = vld [vmem:[#allocation2 + $0x67c] sm:$0x1]  ;;  %v7494_v4 = vrot.slane %v7164_v3, 4  ;;  %v7496_v7 = vrot.slane %v7165_v26, 3  ;;  %v8041_v23 = vsel %vm797_vm6, %v8040_v11, %v8039_v54  ;;  %v7489_v24 = vsel %vm785_vm1, %v7488_v12, %v7160_v62 }
 0x3c7   :  { %v7712_v63 = vld [vmem:[#allocation2 + $0x68d] sm:$0x1]  ;;  %v7498_v47 = vrot.slane %v7166_v29, 2  ;;  %v7500_v50 = vrot.slane %v7167_v38, 1  ;;  %v7713_v48 = vld [vmem:[#allocation2 + $0x69d] sm:$0x1]  ;;  %v8043_v8 = vsel %vm800_vm7, %v8042_v22, %v8041_v23  ;;  %v7491_v42 = vsel %vm788_vm2, %v7490_v34, %v7489_v24 }
 0x3c8   :  { %v7714_v33 = vld [vmem:[#allocation2 + $0x6ad] sm:$0x1]  ;;  %v7715_v0 = vld [vmem:[#allocation2 + $0x6bd] sm:$0x1]  ;;  %v8045_v61 = vsel %vm803_vm8, %v8044_v53, %v8043_v8  ;;  %v7493_v30 = vsel %vm791_vm4, %v7492_v46, %v7491_v42  ;;  %v8046_v32 = vrot.slane %v7713_v48, 7 }
 0x3c9   :  { %v7716_v6 = vld [vmem:[#allocation2 + $0x6cd] sm:$0x1]  ;;  %v7717_v18 = vld [vmem:[#allocation2 + $0x6dd] sm:$0x1]  ;;  %v8048_v57 = vrot.slane %v7714_v33, 6  ;;  %8116 = vxpose.xlu1.b32.cont [13/16] %v8045_v61, 128  ;;  %v7495_v5 = vsel %vm794_vm5, %v7494_v4, %v7493_v30  ;;  %v8050_v60 = vrot.slane %v7715_v0, 5  ;;  %v6495_v39 = vpop.trf.xlu0  ;;  %v7040_v37 = vpop.trf.xlu1 }
 0x3ca   :  { %v7718_v49 = vld [vmem:[#allocation2 + $0x6ed] sm:$0x1]  ;;  %v7719_v15 = vld [vmem:[#allocation2 + $0x6fd] sm:$0x1]  ;;  %v8052_v59 = vrot.slane %v7716_v6, 4  ;;  %v8054_v43 = vrot.slane %v7717_v18, 3  ;;  %v7497_v9 = vsel %vm797_vm6, %v7496_v7, %v7495_v5  ;;  %v8047_v19 = vsel %vm785_vm1, %v8046_v32, %v7712_v63 }
 0x3cb   :  { %v7168_v58 = vld [vmem:[#allocation2 + $0x68c] sm:$0x1]  ;;  %v8056_v51 = vrot.slane %v7718_v49, 2  ;;  %v8058_v52 = vrot.slane %v7719_v15, 1  ;;  %v7169_v28 = vld [vmem:[#allocation2 + $0x69c] sm:$0x1]  ;;  %v7499_v14 = vsel %vm800_vm7, %v7498_v47, %v7497_v9  ;;  %v8049_v44 = vsel %vm788_vm2, %v8048_v57, %v8047_v19 }
 0x3cc   :  { %v7170_v10 = vld [vmem:[#allocation2 + $0x6ac] sm:$0x1]  ;;  %v7171_v25 = vld [vmem:[#allocation2 + $0x6bc] sm:$0x1]  ;;  %v7501_v20 = vsel %vm803_vm8, %v7500_v50, %v7499_v14  ;;  %v8051_v11 = vsel %vm791_vm4, %v8050_v60, %v8049_v44  ;;  %v7502_v35 = vrot.slane %v7169_v28, 7 }
 0x3cd   :  { %v7172_v40 = vld [vmem:[#allocation2 + $0x6cc] sm:$0x1]  ;;  %v7173_v27 = vld [vmem:[#allocation2 + $0x6dc] sm:$0x1]  ;;  %v7504_v13 = vrot.slane %v7170_v10, 6  ;;  %7572 = vxpose.xlu0.b32.cont [13/16] %v7501_v20, 128  ;;  %v8053_v17 = vsel %vm794_vm5, %v8052_v59, %v8051_v11  ;;  %v7506_v22 = vrot.slane %v7171_v25, 5  ;;  %v6496_v8 = vpop.trf.xlu0  ;;  %v7041_v42 = vpop.trf.xlu1 }
 0x3ce   :  { %v7174_v62 = vld [vmem:[#allocation2 + $0x6ec] sm:$0x1]  ;;  %v7175_v21 = vld [vmem:[#allocation2 + $0x6fc] sm:$0x1]  ;;  %v7508_v53 = vrot.slane %v7172_v40, 4  ;;  %v7510_v31 = vrot.slane %v7173_v27, 3  ;;  %v8055_v56 = vsel %vm797_vm6, %v8054_v43, %v8053_v17  ;;  %v7503_v3 = vsel %vm785_vm1, %v7502_v35, %v7168_v58 }
 0x3cf   :  { %v7720_v45 = vld [vmem:[#allocation2 + $0x70d] sm:$0x1]  ;;  %v7512_v26 = vrot.slane %v7174_v62, 2  ;;  %v7514_v55 = vrot.slane %v7175_v21, 1  ;;  %v7721_v1 = vld [vmem:[#allocation2 + $0x71d] sm:$0x1]  ;;  %v8057_v38 = vsel %vm800_vm7, %v8056_v51, %v8055_v56  ;;  %v7505_v12 = vsel %vm788_vm2, %v7504_v13, %v7503_v3 }
 0x3d0   :  { %v7722_v29 = vld [vmem:[#allocation2 + $0x72d] sm:$0x1]  ;;  %v7723_v34 = vld [vmem:[#allocation2 + $0x73d] sm:$0x1]  ;;  %v8059_v4 = vsel %vm803_vm8, %v8058_v52, %v8057_v38  ;;  %v7507_v7 = vsel %vm791_vm4, %v7506_v22, %v7505_v12  ;;  %v8060_v2 = vrot.slane %v7721_v1, 7 }
 0x3d1   :  { %v7724_v54 = vld [vmem:[#allocation2 + $0x74d] sm:$0x1]  ;;  %v7725_v46 = vld [vmem:[#allocation2 + $0x75d] sm:$0x1]  ;;  %v8062_v23 = vrot.slane %v7722_v29, 6  ;;  %8117 = vxpose.xlu1.b32.cont [14/16] %v8059_v4, 128  ;;  %v7509_v24 = vsel %vm794_vm5, %v7508_v53, %v7507_v7  ;;  %v8064_v47 = vrot.slane %v7723_v34, 5  ;;  %v6497_v14 = vpop.trf.xlu0  ;;  %v7042_v44 = vpop.trf.xlu1 }
 0x3d2   :  { %v7726_v63 = vld [vmem:[#allocation2 + $0x76d] sm:$0x1]  ;;  %v7727_v36 = vld [vmem:[#allocation2 + $0x77d] sm:$0x1]  ;;  %v8066_v50 = vrot.slane %v7724_v54, 4  ;;  %v8068_v48 = vrot.slane %v7725_v46, 3  ;;  %v7511_v0 = vsel %vm797_vm6, %v7510_v31, %v7509_v24  ;;  %v8061_v6 = vsel %vm785_vm1, %v8060_v2, %v7720_v45 }
 0x3d3   :  { %v7176_v33 = vld [vmem:[#allocation2 + $0x70c] sm:$0x1]  ;;  %v8070_v18 = vrot.slane %v7726_v63, 2  ;;  %v8072_v61 = vrot.slane %v7727_v36, 1  ;;  %v7177_v30 = vld [vmem:[#allocation2 + $0x71c] sm:$0x1]  ;;  %v7513_v15 = vsel %vm800_vm7, %v7512_v26, %v7511_v0  ;;  %v8063_v32 = vsel %vm788_vm2, %v8062_v23, %v8061_v6 }
 0x3d4   :  { %v7178_v49 = vld [vmem:[#allocation2 + $0x72c] sm:$0x1]  ;;  %v7179_v57 = vld [vmem:[#allocation2 + $0x73c] sm:$0x1]  ;;  %v7515_v59 = vsel %vm803_vm8, %v7514_v55, %v7513_v15  ;;  %v8065_v43 = vsel %vm791_vm4, %v8064_v47, %v8063_v32  ;;  %v7516_v41 = vrot.slane %v7177_v30, 7 }
 0x3d5   :  { %v7180_v5 = vld [vmem:[#allocation2 + $0x74c] sm:$0x1]  ;;  %v7181_v60 = vld [vmem:[#allocation2 + $0x75c] sm:$0x1]  ;;  %v7518_v9 = vrot.slane %v7178_v49, 6  ;;  %7573 = vxpose.xlu0.b32.cont [14/16] %v7515_v59, 128  ;;  %v8067_v19 = vsel %vm794_vm5, %v8066_v50, %v8065_v43  ;;  %v7520_v51 = vrot.slane %v7179_v57, 5  ;;  %v6498_v38 = vpop.trf.xlu0  ;;  %v7043_v12 = vpop.trf.xlu1 }
 0x3d6   :  { %v7182_v58 = vld [vmem:[#allocation2 + $0x76c] sm:$0x1]  ;;  %v7183_v16 = vld [vmem:[#allocation2 + $0x77c] sm:$0x1]  ;;  %v7522_v52 = vrot.slane %v7180_v5, 4  ;;  %v7524_v28 = vrot.slane %v7181_v60, 3  ;;  %v8069_v25 = vsel %vm797_vm6, %v8068_v48, %v8067_v19  ;;  %v7517_v40 = vsel %vm785_vm1, %v7516_v41, %v7176_v33 }
 0x3d7   :  { %v7728_v10 = vld [vmem:[#allocation2 + $0x78d] sm:$0x1]  ;;  %v7526_v27 = vrot.slane %v7182_v58, 2  ;;  %v7528_v20 = vrot.slane %v7183_v16, 1  ;;  %v7729_v11 = vld [vmem:[#allocation2 + $0x79d] sm:$0x1]  ;;  %v8071_v21 = vsel %vm800_vm7, %v8070_v18, %v8069_v25  ;;  %v7519_v35 = vsel %vm788_vm2, %v7518_v9, %v7517_v40 }
 0x3d8   :  { %v7730_v62 = vld [vmem:[#allocation2 + $0x7ad] sm:$0x1]  ;;  %v7731_v13 = vld [vmem:[#allocation2 + $0x7bd] sm:$0x1]  ;;  %v8073_v53 = vsel %vm803_vm8, %v8072_v61, %v8071_v21  ;;  %v7521_v31 = vsel %vm791_vm4, %v7520_v51, %v7519_v35  ;;  %v8074_v37 = vrot.slane %v7729_v11, 7 }
 0x3d9   :  { %v7732_v17 = vld [vmem:[#allocation2 + $0x7cd] sm:$0x1]  ;;  %v7733_v22 = vld [vmem:[#allocation2 + $0x7dd] sm:$0x1]  ;;  %v8076_v56 = vrot.slane %v7730_v62, 6  ;;  %8118 = vxpose.xlu1.b32.cont [15/16] %v8073_v53, 128  ;;  %v7523_v3 = vsel %vm794_vm5, %v7522_v52, %v7521_v31  ;;  %v8078_v26 = vrot.slane %v7731_v13, 5  ;;  %v6499_v15 = vpop.trf.xlu0  ;;  %v7044_v32 = vpop.trf.xlu1 }
 0x3da   :  { %v7734_v45 = vld [vmem:[#allocation2 + $0x7ed] sm:$0x1]  ;;  %v7735_v39 = vld [vmem:[#allocation2 + $0x7fd] sm:$0x1]  ;;  %v8080_v55 = vrot.slane %v7732_v17, 4  ;;  %v8082_v1 = vrot.slane %v7733_v22, 3  ;;  %v7525_v34 = vsel %vm797_vm6, %v7524_v28, %v7523_v3  ;;  %v8075_v54 = vsel %vm785_vm1, %v8074_v37, %v7728_v10 }
 0x3db   :  { %v7184_v29 = vld [vmem:[#allocation2 + $0x78c] sm:$0x1]  ;;  %v8084_v46 = vrot.slane %v7734_v45, 2  ;;  %v8086_v4 = vrot.slane %v7735_v39, 1  ;;  %v7185_v7 = vld [vmem:[#allocation2 + $0x79c] sm:$0x1]  ;;  %v7527_v36 = vsel %vm800_vm7, %v7526_v27, %v7525_v34  ;;  %v8077_v2 = vsel %vm788_vm2, %v8076_v56, %v8075_v54 }
 0x3dc   :  { %v7186_v63 = vld [vmem:[#allocation2 + $0x7ac] sm:$0x1]  ;;  %v7187_v23 = vld [vmem:[#allocation2 + $0x7bc] sm:$0x1]  ;;  %v7529_v50 = vsel %vm803_vm8, %v7528_v20, %v7527_v36  ;;  %v8079_v48 = vsel %vm791_vm4, %v8078_v26, %v8077_v2  ;;  %v7530_v42 = vrot.slane %v7185_v7, 7 }
 0x3dd   :  { %v7188_v24 = vld [vmem:[#allocation2 + $0x7cc] sm:$0x1]  ;;  %v7189_v47 = vld [vmem:[#allocation2 + $0x7dc] sm:$0x1]  ;;  %v7532_v0 = vrot.slane %v7186_v63, 6  ;;  %7574 = vxpose.xlu0.b32.cont [15/16] %v7529_v50, 128  ;;  %v8081_v6 = vsel %vm794_vm5, %v8080_v55, %v8079_v48  ;;  %v7534_v18 = vrot.slane %v7187_v23, 5  ;;  %v6500_v21 = vpop.trf.xlu0  ;;  %v7045_v35 = vpop.trf.xlu1 }
 0x3de   :  { %v7190_v33 = vld [vmem:[#allocation2 + $0x7ec] sm:$0x1]  ;;  %v7191_v8 = vld [vmem:[#allocation2 + $0x7fc] sm:$0x1]  ;;  %v7536_v61 = vrot.slane %v7188_v24, 4  ;;  %v7538_v30 = vrot.slane %v7189_v47, 3  ;;  %v8083_v57 = vsel %vm797_vm6, %v8082_v1, %v8081_v6  ;;  %v7531_v5 = vsel %vm785_vm1, %v7530_v42, %v7184_v29 }
 0x3df   :  { %v8696_v49 = vld [vmem:[#allocation2 + $0xf] sm:$0x1]  ;;  %v7540_v60 = vrot.slane %v7190_v33, 2  ;;  %v7542_v59 = vrot.slane %v7191_v8, 1  ;;  %v8697_v43 = vld [vmem:[#allocation2 + $0x1f] sm:$0x1]  ;;  %v8085_v16 = vsel %vm800_vm7, %v8084_v46, %v8083_v57  ;;  %v7533_v41 = vsel %vm788_vm2, %v7532_v0, %v7531_v5 }
 0x3e0   :  { %v8698_v58 = vld [vmem:[#allocation2 + $0x2f] sm:$0x1]  ;;  %v8699_v9 = vld [vmem:[#allocation2 + $0x3f] sm:$0x1]  ;;  %v8087_v52 = vsel %vm803_vm8, %v8086_v4, %v8085_v16  ;;  %v7535_v28 = vsel %vm791_vm4, %v7534_v18, %v7533_v41  ;;  %v8952_v44 = vrot.slane %v8697_v43, 7 }
 0x3e1   :  { %v8700_v19 = vld [vmem:[#allocation2 + $0x4f] sm:$0x1]  ;;  %v8701_v51 = vld [vmem:[#allocation2 + $0x5f] sm:$0x1]  ;;  %v8954_v25 = vrot.slane %v8698_v58, 6  ;;  %8119 = vxpose.xlu1.b32.end [16/16] %v8087_v52, 128  ;;  %v7537_v40 = vsel %vm794_vm5, %v7536_v61, %v7535_v28  ;;  %v8956_v27 = vrot.slane %v8699_v9, 5  ;;  %v6501_v36 = vpop.trf.xlu0  ;;  %v7046_v2 = vpop.trf.xlu1 }
 0x3e2   :  { %v8702_v10 = vld [vmem:[#allocation2 + $0x6f] sm:$0x1]  ;;  %v8703_v14 = vld [vmem:[#allocation2 + $0x7f] sm:$0x1]  ;;  %v8958_v20 = vrot.slane %v8700_v19, 4  ;;  %v8960_v11 = vrot.slane %v8701_v51, 3  ;;  %v7539_v13 = vsel %vm797_vm6, %v7538_v30, %v7537_v40  ;;  %v8953_v17 = vsel %vm785_vm1, %v8952_v44, %v8696_v49 }
 0x3e3   :  { %v8152_v62 = vld [vmem:[#allocation2 + $0xe] sm:$0x1]  ;;  %v8962_v22 = vrot.slane %v8702_v10, 2  ;;  %v8964_v53 = vrot.slane %v8703_v14, 1  ;;  %v8153_v31 = vld [vmem:[#allocation2 + $0x1e] sm:$0x1]  ;;  %v7541_v39 = vsel %vm800_vm7, %v7540_v60, %v7539_v13  ;;  %v8955_v37 = vsel %vm788_vm2, %v8954_v25, %v8953_v17 }
 0x3e4   :  { %v8154_v45 = vld [vmem:[#allocation2 + $0x2e] sm:$0x1]  ;;  %v8155_v56 = vld [vmem:[#allocation2 + $0x3e] sm:$0x1]  ;;  %v7543_v55 = vsel %vm803_vm8, %v7542_v59, %v7541_v39  ;;  %v8957_v1 = vsel %vm791_vm4, %v8956_v27, %v8955_v37  ;;  %v8408_v12 = vrot.slane %v8153_v31, 7 }
 0x3e5   :  { %v8156_v3 = vld [vmem:[#allocation2 + $0x4e] sm:$0x1]  ;;  %v8157_v26 = vld [vmem:[#allocation2 + $0x5e] sm:$0x1]  ;;  %v8410_v34 = vrot.slane %v8154_v45, 6  ;;  %7575 = vxpose.xlu0.b32.end [16/16] %v7543_v55, 128  ;;  %v8959_v54 = vsel %vm794_vm5, %v8958_v20, %v8957_v1  ;;  %v8412_v46 = vrot.slane %v8155_v56, 5  ;;  %v6502_v16 = vpop.trf.xlu0  ;;  %v7047_v41 = vpop.trf.xlu1 }
 0x3e6   :  { %v8158_v29 = vld [vmem:[#allocation2 + $0x6e] sm:$0x1]  ;;  %v8159_v38 = vld [vmem:[#allocation2 + $0x7e] sm:$0x1]  ;;  %v8414_v4 = vrot.slane %v8156_v3, 4  ;;  %v8416_v7 = vrot.slane %v8157_v26, 3  ;;  %v8961_v23 = vsel %vm797_vm6, %v8960_v11, %v8959_v54  ;;  %v8409_v24 = vsel %vm785_vm1, %v8408_v12, %v8152_v62 }
 0x3e7   :  { %v8704_v63 = vld [vmem:[#allocation2 + $0x8f] sm:$0x1]  ;;  %v8418_v47 = vrot.slane %v8158_v29, 2  ;;  %v8420_v50 = vrot.slane %v8159_v38, 1  ;;  %v8705_v48 = vld [vmem:[#allocation2 + $0x9f] sm:$0x1]  ;;  %v8963_v8 = vsel %vm800_vm7, %v8962_v22, %v8961_v23  ;;  %v8411_v42 = vsel %vm788_vm2, %v8410_v34, %v8409_v24 }
 0x3e8   :  { %v8706_v33 = vld [vmem:[#allocation2 + $0xaf] sm:$0x1]  ;;  %v8707_v0 = vld [vmem:[#allocation2 + $0xbf] sm:$0x1]  ;;  %v8965_v61 = vsel %vm803_vm8, %v8964_v53, %v8963_v8  ;;  %v8413_v30 = vsel %vm791_vm4, %v8412_v46, %v8411_v42  ;;  %v8966_v32 = vrot.slane %v8705_v48, 7 }
 0x3e9   :  { %v8708_v6 = vld [vmem:[#allocation2 + $0xcf] sm:$0x1]  ;;  %v8709_v18 = vld [vmem:[#allocation2 + $0xdf] sm:$0x1]  ;;  %v8968_v57 = vrot.slane %v8706_v33, 6  ;;  %9192 = vxpose.xlu1.b32.start [1/16] %v8965_v61, 128  ;;  %v8415_v5 = vsel %vm794_vm5, %v8414_v4, %v8413_v30  ;;  %v8970_v60 = vrot.slane %v8707_v0, 5  ;;  %v6503_v39 = vpop.trf.xlu0 }
 0x3ea   :  { %v8710_v49 = vld [vmem:[#allocation2 + $0xef] sm:$0x1]  ;;  %v8711_v15 = vld [vmem:[#allocation2 + $0xff] sm:$0x1]  ;;  %v8972_v59 = vrot.slane %v8708_v6, 4  ;;  %v8974_v43 = vrot.slane %v8709_v18, 3  ;;  %v8417_v9 = vsel %vm797_vm6, %v8416_v7, %v8415_v5  ;;  %v8967_v19 = vsel %vm785_vm1, %v8966_v32, %v8704_v63 }
 0x3eb   :  { %v8160_v58 = vld [vmem:[#allocation2 + $0x8e] sm:$0x1]  ;;  %v8976_v51 = vrot.slane %v8710_v49, 2  ;;  %v8978_v52 = vrot.slane %v8711_v15, 1  ;;  %v8161_v28 = vld [vmem:[#allocation2 + $0x9e] sm:$0x1]  ;;  %v8419_v14 = vsel %vm800_vm7, %v8418_v47, %v8417_v9  ;;  %v8969_v44 = vsel %vm788_vm2, %v8968_v57, %v8967_v19 }
 0x3ec   :  { %v8162_v10 = vld [vmem:[#allocation2 + $0xae] sm:$0x1]  ;;  %v8163_v25 = vld [vmem:[#allocation2 + $0xbe] sm:$0x1]  ;;  %v8421_v20 = vsel %vm803_vm8, %v8420_v50, %v8419_v14  ;;  %v8971_v11 = vsel %vm791_vm4, %v8970_v60, %v8969_v44  ;;  %v8422_v35 = vrot.slane %v8161_v28, 7 }
 0x3ed   :  { %v8164_v40 = vld [vmem:[#allocation2 + $0xce] sm:$0x1]  ;;  %v8165_v27 = vld [vmem:[#allocation2 + $0xde] sm:$0x1]  ;;  %v8424_v13 = vrot.slane %v8162_v10, 6  ;;  %8648 = vxpose.xlu0.b32.start [1/16] %v8421_v20, 128  ;;  %v8973_v17 = vsel %vm794_vm5, %v8972_v59, %v8971_v11  ;;  %v8426_v22 = vrot.slane %v8163_v25, 5 }
 0x3ee   :  { %v8166_v62 = vld [vmem:[#allocation2 + $0xee] sm:$0x1]  ;;  %v8167_v21 = vld [vmem:[#allocation2 + $0xfe] sm:$0x1]  ;;  %v8428_v53 = vrot.slane %v8164_v40, 4  ;;  %v8430_v31 = vrot.slane %v8165_v27, 3  ;;  %v8975_v37 = vsel %vm797_vm6, %v8974_v43, %v8973_v17  ;;  %v8423_v56 = vsel %vm785_vm1, %v8422_v35, %v8160_v58 }
 0x3ef   :  { %v8712_v45 = vld [vmem:[#allocation2 + $0x10f] sm:$0x1]  ;;  %v8432_v3 = vrot.slane %v8166_v62, 2  ;;  %v8434_v26 = vrot.slane %v8167_v21, 1  ;;  %v8713_v55 = vld [vmem:[#allocation2 + $0x11f] sm:$0x1]  ;;  %v8977_v29 = vsel %vm800_vm7, %v8976_v51, %v8975_v37  ;;  %v8425_v38 = vsel %vm788_vm2, %v8424_v13, %v8423_v56 }
 0x3f0   :  { %v8714_v1 = vld [vmem:[#allocation2 + $0x12f] sm:$0x1]  ;;  %v8715_v12 = vld [vmem:[#allocation2 + $0x13f] sm:$0x1]  ;;  %v8979_v46 = vsel %vm803_vm8, %v8978_v52, %v8977_v29  ;;  %v8427_v4 = vsel %vm791_vm4, %v8426_v22, %v8425_v38  ;;  %v8980_v36 = vrot.slane %v8713_v55, 7 }
 0x3f1   :  { %v8716_v34 = vld [vmem:[#allocation2 + $0x14f] sm:$0x1]  ;;  %v8717_v54 = vld [vmem:[#allocation2 + $0x15f] sm:$0x1]  ;;  %v8982_v2 = vrot.slane %v8714_v1, 6  ;;  %9193 = vxpose.xlu1.b32.cont [2/16] %v8979_v46, 128  ;;  %v8429_v23 = vsel %vm794_vm5, %v8428_v53, %v8427_v4  ;;  %v8984_v24 = vrot.slane %v8715_v12, 5 }
 0x3f2   :  { %v8718_v7 = vld [vmem:[#allocation2 + $0x16f] sm:$0x1]  ;;  %v8719_v63 = vld [vmem:[#allocation2 + $0x17f] sm:$0x1]  ;;  %v8986_v47 = vrot.slane %v8716_v34, 4  ;;  %v8988_v50 = vrot.slane %v8717_v54, 3  ;;  %v8431_v33 = vsel %vm797_vm6, %v8430_v31, %v8429_v23  ;;  %v8981_v8 = vsel %vm785_vm1, %v8980_v36, %v8712_v45 }
 0x3f3   :  { %v8168_v48 = vld [vmem:[#allocation2 + $0x10e] sm:$0x1]  ;;  %v8990_v42 = vrot.slane %v8718_v7, 2  ;;  %v8992_v0 = vrot.slane %v8719_v63, 1  ;;  %v8169_v6 = vld [vmem:[#allocation2 + $0x11e] sm:$0x1]  ;;  %v8433_v61 = vsel %vm800_vm7, %v8432_v3, %v8431_v33  ;;  %v8983_v30 = vsel %vm788_vm2, %v8982_v2, %v8981_v8 }
 0x3f4   :  { %v8170_v18 = vld [vmem:[#allocation2 + $0x12e] sm:$0x1]  ;;  %v8171_v49 = vld [vmem:[#allocation2 + $0x13e] sm:$0x1]  ;;  %v8435_v57 = vsel %vm803_vm8, %v8434_v26, %v8433_v61  ;;  %v8985_v5 = vsel %vm791_vm4, %v8984_v24, %v8983_v30  ;;  %v8436_v43 = vrot.slane %v8169_v6, 7 }
 0x3f5   :  { %v8172_v15 = vld [vmem:[#allocation2 + $0x14e] sm:$0x1]  ;;  %v8173_v32 = vld [vmem:[#allocation2 + $0x15e] sm:$0x1]  ;;  %v8438_v58 = vrot.slane %v8170_v18, 6  ;;  %8649 = vxpose.xlu0.b32.cont [2/16] %v8435_v57, 128  ;;  %v8987_v16 = vsel %vm794_vm5, %v8986_v47, %v8985_v5  ;;  %v8440_v41 = vrot.slane %v8171_v49, 5 }
 0x3f6   :  { %v8174_v60 = vld [vmem:[#allocation2 + $0x16e] sm:$0x1]  ;;  %v8175_v59 = vld [vmem:[#allocation2 + $0x17e] sm:$0x1]  ;;  %v8442_v9 = vrot.slane %v8172_v15, 4  ;;  %v8444_v19 = vrot.slane %v8173_v32, 3  ;;  %v8989_v52 = vsel %vm797_vm6, %v8988_v50, %v8987_v16  ;;  %v8437_v28 = vsel %vm785_vm1, %v8436_v43, %v8168_v48 }
 0x3f7   :  { %v8720_v51 = vld [vmem:[#allocation2 + $0x18f] sm:$0x1]  ;;  %v8446_v10 = vrot.slane %v8174_v60, 2  ;;  %v8448_v14 = vrot.slane %v8175_v59, 1  ;;  %v8721_v44 = vld [vmem:[#allocation2 + $0x19f] sm:$0x1]  ;;  %v8991_v40 = vsel %vm800_vm7, %v8990_v42, %v8989_v52  ;;  %v8439_v27 = vsel %vm788_vm2, %v8438_v58, %v8437_v28 }
 0x3f8   :  { %v8722_v25 = vld [vmem:[#allocation2 + $0x1af] sm:$0x1]  ;;  %v8723_v20 = vld [vmem:[#allocation2 + $0x1bf] sm:$0x1]  ;;  %v8993_v21 = vsel %vm803_vm8, %v8992_v0, %v8991_v40  ;;  %v8441_v35 = vsel %vm791_vm4, %v8440_v41, %v8439_v27  ;;  %v8994_v22 = vrot.slane %v8721_v44, 7 }
 0x3f9   :  { %v8724_v11 = vld [vmem:[#allocation2 + $0x1cf] sm:$0x1]  ;;  %v8725_v62 = vld [vmem:[#allocation2 + $0x1df] sm:$0x1]  ;;  %v8996_v53 = vrot.slane %v8722_v25, 6  ;;  %9194 = vxpose.xlu1.b32.cont [3/16] %v8993_v21, 128  ;;  %v8443_v31 = vsel %vm794_vm5, %v8442_v9, %v8441_v35  ;;  %v8998_v45 = vrot.slane %v8723_v20, 5 }
 0x3fa   :  { %v8726_v13 = vld [vmem:[#allocation2 + $0x1ef] sm:$0x1]  ;;  %v8727_v17 = vld [vmem:[#allocation2 + $0x1ff] sm:$0x1]  ;;  %v9000_v39 = vrot.slane %v8724_v11, 4  ;;  %v9002_v37 = vrot.slane %v8725_v62, 3  ;;  %v8445_v3 = vsel %vm797_vm6, %v8444_v19, %v8443_v31  ;;  %v8995_v26 = vsel %vm785_vm1, %v8994_v22, %v8720_v51 }
 0x3fb   :  { %v8176_v56 = vld [vmem:[#allocation2 + $0x18e] sm:$0x1]  ;;  %v9004_v55 = vrot.slane %v8726_v13, 2  ;;  %v9006_v1 = vrot.slane %v8727_v17, 1  ;;  %v8177_v29 = vld [vmem:[#allocation2 + $0x19e] sm:$0x1]  ;;  %v8447_v12 = vsel %vm800_vm7, %v8446_v10, %v8445_v3  ;;  %v8997_v34 = vsel %vm788_vm2, %v8996_v53, %v8995_v26 }
 0x3fc   :  { %v8178_v38 = vld [vmem:[#allocation2 + $0x1ae] sm:$0x1]  ;;  %v8179_v54 = vld [vmem:[#allocation2 + $0x1be] sm:$0x1]  ;;  %v8449_v7 = vsel %vm803_vm8, %v8448_v14, %v8447_v12  ;;  %v8999_v63 = vsel %vm791_vm4, %v8998_v45, %v8997_v34  ;;  %v8450_v23 = vrot.slane %v8177_v29, 7 }
 0x3fd   :  { %v8180_v46 = vld [vmem:[#allocation2 + $0x1ce] sm:$0x1]  ;;  %v8181_v4 = vld [vmem:[#allocation2 + $0x1de] sm:$0x1]  ;;  %v8452_v24 = vrot.slane %v8178_v38, 6  ;;  %8650 = vxpose.xlu0.b32.cont [3/16] %v8449_v7, 128  ;;  %v9001_v47 = vsel %vm794_vm5, %v9000_v39, %v8999_v63  ;;  %v8454_v50 = vrot.slane %v8179_v54, 5 }
 0x3fe   :  { %v8182_v36 = vld [vmem:[#allocation2 + $0x1ee] sm:$0x1]  ;;  %v8183_v2 = vld [vmem:[#allocation2 + $0x1fe] sm:$0x1]  ;;  %v8456_v48 = vrot.slane %v8180_v46, 4  ;;  %v8458_v33 = vrot.slane %v8181_v4, 3  ;;  %v9003_v42 = vsel %vm797_vm6, %v9002_v37, %v9001_v47  ;;  %v8451_v0 = vsel %vm785_vm1, %v8450_v23, %v8176_v56 }
 0x3ff   :  { %v8728_v8 = vld [vmem:[#allocation2 + $0x20f] sm:$0x1]  ;;  %v8460_v6 = vrot.slane %v8182_v36, 2  ;;  %v8462_v18 = vrot.slane %v8183_v2, 1  ;;  %v8729_v61 = vld [vmem:[#allocation2 + $0x21f] sm:$0x1]  ;;  %v9005_v49 = vsel %vm800_vm7, %v9004_v55, %v9003_v42  ;;  %v8453_v15 = vsel %vm788_vm2, %v8452_v24, %v8451_v0 }
 0x400   :  { %v8730_v30 = vld [vmem:[#allocation2 + $0x22f] sm:$0x1]  ;;  %v8731_v32 = vld [vmem:[#allocation2 + $0x23f] sm:$0x1]  ;;  %v9007_v60 = vsel %vm803_vm8, %v9006_v1, %v9005_v49  ;;  %v8455_v59 = vsel %vm791_vm4, %v8454_v50, %v8453_v15  ;;  %v9008_v16 = vrot.slane %v8729_v61, 7 }
 0x401   :  { %v8732_v57 = vld [vmem:[#allocation2 + $0x24f] sm:$0x1]  ;;  %v8733_v5 = vld [vmem:[#allocation2 + $0x25f] sm:$0x1]  ;;  %v9010_v41 = vrot.slane %v8730_v30, 6  ;;  %9195 = vxpose.xlu1.b32.cont [4/16] %v9007_v60, 128  ;;  %v8457_v9 = vsel %vm794_vm5, %v8456_v48, %v8455_v59  ;;  %v9012_v19 = vrot.slane %v8731_v32, 5 }
 0x402   :  { %v8734_v43 = vld [vmem:[#allocation2 + $0x26f] sm:$0x1]  ;;  %v8735_v58 = vld [vmem:[#allocation2 + $0x27f] sm:$0x1]  ;;  %v9014_v51 = vrot.slane %v8732_v57, 4  ;;  %v9016_v52 = vrot.slane %v8733_v5, 3  ;;  %v8459_v10 = vsel %vm797_vm6, %v8458_v33, %v8457_v9  ;;  %v9009_v14 = vsel %vm785_vm1, %v9008_v16, %v8728_v8 }
 0x403   :  { %v8184_v28 = vld [vmem:[#allocation2 + $0x20e] sm:$0x1]  ;;  %v9018_v44 = vrot.slane %v8734_v43, 2  ;;  %v9020_v25 = vrot.slane %v8735_v58, 1  ;;  %v8185_v40 = vld [vmem:[#allocation2 + $0x21e] sm:$0x1]  ;;  %v8461_v20 = vsel %vm800_vm7, %v8460_v6, %v8459_v10  ;;  %v9011_v11 = vsel %vm788_vm2, %v9010_v41, %v9009_v14 }
 0x404   :  { %v8186_v27 = vld [vmem:[#allocation2 + $0x22e] sm:$0x1]  ;;  %v8187_v62 = vld [vmem:[#allocation2 + $0x23e] sm:$0x1]  ;;  %v8463_v13 = vsel %vm803_vm8, %v8462_v18, %v8461_v20  ;;  %v9013_v17 = vsel %vm791_vm4, %v9012_v19, %v9011_v11  ;;  %v8464_v31 = vrot.slane %v8185_v40, 7 }
 0x405   :  { %v8188_v21 = vld [vmem:[#allocation2 + $0x24e] sm:$0x1]  ;;  %v8189_v35 = vld [vmem:[#allocation2 + $0x25e] sm:$0x1]  ;;  %v8466_v45 = vrot.slane %v8186_v27, 6  ;;  %8651 = vxpose.xlu0.b32.cont [4/16] %v8463_v13, 128  ;;  %v9015_v39 = vsel %vm794_vm5, %v9014_v51, %v9013_v17  ;;  %v8468_v37 = vrot.slane %v8187_v62, 5 }
 0x406   :  { %v8190_v22 = vld [vmem:[#allocation2 + $0x26e] sm:$0x1]  ;;  %v8191_v53 = vld [vmem:[#allocation2 + $0x27e] sm:$0x1]  ;;  %v8470_v56 = vrot.slane %v8188_v21, 4  ;;  %v8472_v3 = vrot.slane %v8189_v35, 3  ;;  %v9017_v55 = vsel %vm797_vm6, %v9016_v52, %v9015_v39  ;;  %v8465_v1 = vsel %vm785_vm1, %v8464_v31, %v8184_v28 }
 0x407   :  { %v8736_v26 = vld [vmem:[#allocation2 + $0x28f] sm:$0x1]  ;;  %v8474_v29 = vrot.slane %v8190_v22, 2  ;;  %v8476_v38 = vrot.slane %v8191_v53, 1  ;;  %v8737_v12 = vld [vmem:[#allocation2 + $0x29f] sm:$0x1]  ;;  %v9019_v54 = vsel %vm800_vm7, %v9018_v44, %v9017_v55  ;;  %v8467_v46 = vsel %vm788_vm2, %v8466_v45, %v8465_v1 }
 0x408   :  { %v8738_v34 = vld [vmem:[#allocation2 + $0x2af] sm:$0x1]  ;;  %v8739_v4 = vld [vmem:[#allocation2 + $0x2bf] sm:$0x1]  ;;  %v9021_v36 = vsel %vm803_vm8, %v9020_v25, %v9019_v54  ;;  %v8469_v2 = vsel %vm791_vm4, %v8468_v37, %v8467_v46  ;;  %v9022_v47 = vrot.slane %v8737_v12, 7 }
 0x409   :  { %v8740_v7 = vld [vmem:[#allocation2 + $0x2cf] sm:$0x1]  ;;  %v8741_v63 = vld [vmem:[#allocation2 + $0x2df] sm:$0x1]  ;;  %v9024_v50 = vrot.slane %v8738_v34, 6  ;;  %9196 = vxpose.xlu1.b32.cont [5/16] %v9021_v36, 128  ;;  %v8471_v48 = vsel %vm794_vm5, %v8470_v56, %v8469_v2  ;;  %v9026_v33 = vrot.slane %v8739_v4, 5 }
 0x40a   :  { %v8742_v23 = vld [vmem:[#allocation2 + $0x2ef] sm:$0x1]  ;;  %v8743_v24 = vld [vmem:[#allocation2 + $0x2ff] sm:$0x1]  ;;  %v9028_v8 = vrot.slane %v8740_v7, 4  ;;  %v9030_v42 = vrot.slane %v8741_v63, 3  ;;  %v8473_v6 = vsel %vm797_vm6, %v8472_v3, %v8471_v48  ;;  %v9023_v18 = vsel %vm785_vm1, %v9022_v47, %v8736_v26 }
 0x40b   :  { %v8192_v0 = vld [vmem:[#allocation2 + $0x28e] sm:$0x1]  ;;  %v9032_v61 = vrot.slane %v8742_v23, 2  ;;  %v9034_v30 = vrot.slane %v8743_v24, 1  ;;  %v8193_v49 = vld [vmem:[#allocation2 + $0x29e] sm:$0x1]  ;;  %v8475_v32 = vsel %vm800_vm7, %v8474_v29, %v8473_v6  ;;  %v9025_v57 = vsel %vm788_vm2, %v9024_v50, %v9023_v18 }
 0x40c   :  { %v8194_v15 = vld [vmem:[#allocation2 + $0x2ae] sm:$0x1]  ;;  %v8195_v5 = vld [vmem:[#allocation2 + $0x2be] sm:$0x1]  ;;  %v8477_v43 = vsel %vm803_vm8, %v8476_v38, %v8475_v32  ;;  %v9027_v58 = vsel %vm791_vm4, %v9026_v33, %v9025_v57  ;;  %v8478_v9 = vrot.slane %v8193_v49, 7 }
 0x40d   :  { %v8196_v60 = vld [vmem:[#allocation2 + $0x2ce] sm:$0x1]  ;;  %v8197_v59 = vld [vmem:[#allocation2 + $0x2de] sm:$0x1]  ;;  %v8480_v19 = vrot.slane %v8194_v15, 6  ;;  %8652 = vxpose.xlu0.b32.cont [5/16] %v8477_v43, 128  ;;  %v9029_v51 = vsel %vm794_vm5, %v9028_v8, %v9027_v58  ;;  %v8482_v52 = vrot.slane %v8195_v5, 5 }
 0x40e   :  { %v8198_v16 = vld [vmem:[#allocation2 + $0x2ee] sm:$0x1]  ;;  %v8199_v41 = vld [vmem:[#allocation2 + $0x2fe] sm:$0x1]  ;;  %v8484_v28 = vrot.slane %v8196_v60, 4  ;;  %v8486_v10 = vrot.slane %v8197_v59, 3  ;;  %v9031_v44 = vsel %vm797_vm6, %v9030_v42, %v9029_v51  ;;  %v8479_v25 = vsel %vm785_vm1, %v8478_v9, %v8192_v0 }
 0x40f   :  { %v8744_v14 = vld [vmem:[#allocation2 + $0x30f] sm:$0x1]  ;;  %v8488_v40 = vrot.slane %v8198_v16, 2  ;;  %v8490_v27 = vrot.slane %v8199_v41, 1  ;;  %v8745_v20 = vld [vmem:[#allocation2 + $0x31f] sm:$0x1]  ;;  %v9033_v62 = vsel %vm800_vm7, %v9032_v61, %v9031_v44  ;;  %v8481_v21 = vsel %vm788_vm2, %v8480_v19, %v8479_v25 }
 0x410   :  { %v8746_v11 = vld [vmem:[#allocation2 + $0x32f] sm:$0x1]  ;;  %v8747_v35 = vld [vmem:[#allocation2 + $0x33f] sm:$0x1]  ;;  %v9035_v22 = vsel %vm803_vm8, %v9034_v30, %v9033_v62  ;;  %v8483_v53 = vsel %vm791_vm4, %v8482_v52, %v8481_v21  ;;  %v9036_v39 = vrot.slane %v8745_v20, 7 }
 0x411   :  { %v8748_v13 = vld [vmem:[#allocation2 + $0x34f] sm:$0x1]  ;;  %v8749_v17 = vld [vmem:[#allocation2 + $0x35f] sm:$0x1]  ;;  %v9038_v37 = vrot.slane %v8746_v11, 6  ;;  %9197 = vxpose.xlu1.b32.cont [6/16] %v9035_v22, 128  ;;  %v8485_v56 = vsel %vm794_vm5, %v8484_v28, %v8483_v53  ;;  %v9040_v3 = vrot.slane %v8747_v35, 5 }
 0x412   :  { %v8750_v31 = vld [vmem:[#allocation2 + $0x36f] sm:$0x1]  ;;  %v8751_v45 = vld [vmem:[#allocation2 + $0x37f] sm:$0x1]  ;;  %v9042_v26 = vrot.slane %v8748_v13, 4  ;;  %v9044_v55 = vrot.slane %v8749_v17, 3  ;;  %v8487_v29 = vsel %vm797_vm6, %v8486_v10, %v8485_v56  ;;  %v9037_v38 = vsel %vm785_vm1, %v9036_v39, %v8744_v14 }
 0x413   :  { %v8200_v1 = vld [vmem:[#allocation2 + $0x30e] sm:$0x1]  ;;  %v9046_v12 = vrot.slane %v8750_v31, 2  ;;  %v9048_v34 = vrot.slane %v8751_v45, 1  ;;  %v8201_v54 = vld [vmem:[#allocation2 + $0x31e] sm:$0x1]  ;;  %v8489_v4 = vsel %vm800_vm7, %v8488_v40, %v8487_v29  ;;  %v9039_v7 = vsel %vm788_vm2, %v9038_v37, %v9037_v38 }
 0x414   :  { %v8202_v46 = vld [vmem:[#allocation2 + $0x32e] sm:$0x1]  ;;  %v8203_v63 = vld [vmem:[#allocation2 + $0x33e] sm:$0x1]  ;;  %v8491_v23 = vsel %vm803_vm8, %v8490_v27, %v8489_v4  ;;  %v9041_v24 = vsel %vm791_vm4, %v9040_v3, %v9039_v7  ;;  %v8492_v48 = vrot.slane %v8201_v54, 7 }
 0x415   :  { %v8204_v36 = vld [vmem:[#allocation2 + $0x34e] sm:$0x1]  ;;  %v8205_v2 = vld [vmem:[#allocation2 + $0x35e] sm:$0x1]  ;;  %v8494_v33 = vrot.slane %v8202_v46, 6  ;;  %8653 = vxpose.xlu0.b32.cont [6/16] %v8491_v23, 128  ;;  %v9043_v8 = vsel %vm794_vm5, %v9042_v26, %v9041_v24  ;;  %v8496_v42 = vrot.slane %v8203_v63, 5 }
 0x416   :  { %v8206_v47 = vld [vmem:[#allocation2 + $0x36e] sm:$0x1]  ;;  %v8207_v50 = vld [vmem:[#allocation2 + $0x37e] sm:$0x1]  ;;  %v8498_v0 = vrot.slane %v8204_v36, 4  ;;  %v8500_v6 = vrot.slane %v8205_v2, 3  ;;  %v9045_v61 = vsel %vm797_vm6, %v9044_v55, %v9043_v8  ;;  %v8493_v30 = vsel %vm785_vm1, %v8492_v48, %v8200_v1 }
 0x417   :  { %v8752_v18 = vld [vmem:[#allocation2 + $0x38f] sm:$0x1]  ;;  %v8502_v49 = vrot.slane %v8206_v47, 2  ;;  %v8504_v15 = vrot.slane %v8207_v50, 1  ;;  %v8753_v32 = vld [vmem:[#allocation2 + $0x39f] sm:$0x1]  ;;  %v9047_v5 = vsel %vm800_vm7, %v9046_v12, %v9045_v61  ;;  %v8495_v60 = vsel %vm788_vm2, %v8494_v33, %v8493_v30 }
 0x418   :  { %v8754_v57 = vld [vmem:[#allocation2 + $0x3af] sm:$0x1]  ;;  %v8755_v59 = vld [vmem:[#allocation2 + $0x3bf] sm:$0x1]  ;;  %v9049_v16 = vsel %vm803_vm8, %v9048_v34, %v9047_v5  ;;  %v8497_v41 = vsel %vm791_vm4, %v8496_v42, %v8495_v60  ;;  %v9050_v51 = vrot.slane %v8753_v32, 7 }
 0x419   :  { %v8756_v43 = vld [vmem:[#allocation2 + $0x3cf] sm:$0x1]  ;;  %v8757_v58 = vld [vmem:[#allocation2 + $0x3df] sm:$0x1]  ;;  %v9052_v52 = vrot.slane %v8754_v57, 6  ;;  %9198 = vxpose.xlu1.b32.cont [7/16] %v9049_v16, 128  ;;  %v8499_v28 = vsel %vm794_vm5, %v8498_v0, %v8497_v41  ;;  %v9054_v10 = vrot.slane %v8755_v59, 5 }
 0x41a   :  { %v8758_v9 = vld [vmem:[#allocation2 + $0x3ef] sm:$0x1]  ;;  %v8759_v19 = vld [vmem:[#allocation2 + $0x3ff] sm:$0x1]  ;;  %v9056_v14 = vrot.slane %v8756_v43, 4  ;;  %v9058_v44 = vrot.slane %v8757_v58, 3  ;;  %v8501_v40 = vsel %vm797_vm6, %v8500_v6, %v8499_v28  ;;  %v9051_v27 = vsel %vm785_vm1, %v9050_v51, %v8752_v18 }
 0x41b   :  { %v8208_v25 = vld [vmem:[#allocation2 + $0x38e] sm:$0x1]  ;;  %v9060_v20 = vrot.slane %v8758_v9, 2  ;;  %v9062_v11 = vrot.slane %v8759_v19, 1  ;;  %v8209_v62 = vld [vmem:[#allocation2 + $0x39e] sm:$0x1]  ;;  %v8503_v35 = vsel %vm800_vm7, %v8502_v49, %v8501_v40  ;;  %v9053_v13 = vsel %vm788_vm2, %v9052_v52, %v9051_v27 }
 0x41c   :  { %v8210_v21 = vld [vmem:[#allocation2 + $0x3ae] sm:$0x1]  ;;  %v8211_v17 = vld [vmem:[#allocation2 + $0x3be] sm:$0x1]  ;;  %v8505_v31 = vsel %vm803_vm8, %v8504_v15, %v8503_v35  ;;  %v9055_v45 = vsel %vm791_vm4, %v9054_v10, %v9053_v13  ;;  %v8506_v56 = vrot.slane %v8209_v62, 7 }
 0x41d   :  { %v8212_v22 = vld [vmem:[#allocation2 + $0x3ce] sm:$0x1]  ;;  %v8213_v53 = vld [vmem:[#allocation2 + $0x3de] sm:$0x1]  ;;  %v8508_v3 = vrot.slane %v8210_v21, 6  ;;  %8654 = vxpose.xlu0.b32.cont [7/16] %v8505_v31, 128  ;;  %v9057_v26 = vsel %vm794_vm5, %v9056_v14, %v9055_v45  ;;  %v8510_v55 = vrot.slane %v8211_v17, 5 }
 0x41e   :  { %v8214_v39 = vld [vmem:[#allocation2 + $0x3ee] sm:$0x1]  ;;  %v8215_v37 = vld [vmem:[#allocation2 + $0x3fe] sm:$0x1]  ;;  %v8512_v1 = vrot.slane %v8212_v22, 4  ;;  %v8514_v29 = vrot.slane %v8213_v53, 3  ;;  %v9059_v12 = vsel %vm797_vm6, %v9058_v44, %v9057_v26  ;;  %v8507_v34 = vsel %vm785_vm1, %v8506_v56, %v8208_v25 }
 0x41f   :  { %v8760_v38 = vld [vmem:[#allocation2 + $0x40f] sm:$0x1]  ;;  %v8516_v54 = vrot.slane %v8214_v39, 2  ;;  %v8518_v46 = vrot.slane %v8215_v37, 1  ;;  %v8761_v4 = vld [vmem:[#allocation2 + $0x41f] sm:$0x1]  ;;  %v9061_v63 = vsel %vm800_vm7, %v9060_v20, %v9059_v12  ;;  %v8509_v36 = vsel %vm788_vm2, %v8508_v3, %v8507_v34 }
 0x420   :  { %v8762_v7 = vld [vmem:[#allocation2 + $0x42f] sm:$0x1]  ;;  %v8763_v2 = vld [vmem:[#allocation2 + $0x43f] sm:$0x1]  ;;  %v9063_v47 = vsel %vm803_vm8, %v9062_v11, %v9061_v63  ;;  %v8511_v50 = vsel %vm791_vm4, %v8510_v55, %v8509_v36  ;;  %v9064_v8 = vrot.slane %v8761_v4, 7 }
 0x421   :  { %v8764_v23 = vld [vmem:[#allocation2 + $0x44f] sm:$0x1]  ;;  %v8765_v24 = vld [vmem:[#allocation2 + $0x45f] sm:$0x1]  ;;  %v9066_v42 = vrot.slane %v8762_v7, 6  ;;  %9199 = vxpose.xlu1.b32.cont [8/16] %v9063_v47, 128  ;;  %v8513_v0 = vsel %vm794_vm5, %v8512_v1, %v8511_v50  ;;  %v9068_v6 = vrot.slane %v8763_v2, 5 }
 0x422   :  { %v8766_v48 = vld [vmem:[#allocation2 + $0x46f] sm:$0x1]  ;;  %v8767_v33 = vld [vmem:[#allocation2 + $0x47f] sm:$0x1]  ;;  %v9070_v18 = vrot.slane %v8764_v23, 4  ;;  %v9072_v61 = vrot.slane %v8765_v24, 3  ;;  %v8515_v49 = vsel %vm797_vm6, %v8514_v29, %v8513_v0  ;;  %v9065_v15 = vsel %vm785_vm1, %v9064_v8, %v8760_v38 }
 0x423   :  { %v8216_v30 = vld [vmem:[#allocation2 + $0x40e] sm:$0x1]  ;;  %v9074_v32 = vrot.slane %v8766_v48, 2  ;;  %v9076_v57 = vrot.slane %v8767_v33, 1  ;;  %v8217_v5 = vld [vmem:[#allocation2 + $0x41e] sm:$0x1]  ;;  %v8517_v59 = vsel %vm800_vm7, %v8516_v54, %v8515_v49  ;;  %v9067_v43 = vsel %vm788_vm2, %v9066_v42, %v9065_v15 }
 0x424   :  { %v8218_v60 = vld [vmem:[#allocation2 + $0x42e] sm:$0x1]  ;;  %v8219_v58 = vld [vmem:[#allocation2 + $0x43e] sm:$0x1]  ;;  %v8519_v9 = vsel %vm803_vm8, %v8518_v46, %v8517_v59  ;;  %v9069_v19 = vsel %vm791_vm4, %v9068_v6, %v9067_v43  ;;  %v8520_v28 = vrot.slane %v8217_v5, 7 }
 0x425   :  { %v8220_v16 = vld [vmem:[#allocation2 + $0x44e] sm:$0x1]  ;;  %v8221_v41 = vld [vmem:[#allocation2 + $0x45e] sm:$0x1]  ;;  %v8522_v10 = vrot.slane %v8218_v60, 6  ;;  %8655 = vxpose.xlu0.b32.cont [8/16] %v8519_v9, 128  ;;  %v9071_v14 = vsel %vm794_vm5, %v9070_v18, %v9069_v19  ;;  %v8524_v44 = vrot.slane %v8219_v58, 5  ;;  %v8120_v20 = vpop.trf.xlu1 }
 0x426   :  { %v8222_v51 = vld [vmem:[#allocation2 + $0x46e] sm:$0x1]  ;;  %v8223_v52 = vld [vmem:[#allocation2 + $0x47e] sm:$0x1]  ;;  %v8526_v25 = vrot.slane %v8220_v16, 4  ;;  %v8528_v40 = vrot.slane %v8221_v41, 3  ;;  %v9073_v11 = vsel %vm797_vm6, %v9072_v61, %v9071_v14  ;;  %v8521_v62 = vsel %vm785_vm1, %v8520_v28, %v8216_v30 }
 0x427   :  { %v8768_v27 = vld [vmem:[#allocation2 + $0x48f] sm:$0x1]  ;;  %v8530_v21 = vrot.slane %v8222_v51, 2  ;;  %v8532_v35 = vrot.slane %v8223_v52, 1  ;;  %v8769_v13 = vld [vmem:[#allocation2 + $0x49f] sm:$0x1]  ;;  %v9075_v22 = vsel %vm800_vm7, %v9074_v32, %v9073_v11  ;;  %v8523_v53 = vsel %vm788_vm2, %v8522_v10, %v8521_v62 }
 0x428   :  { %v8770_v17 = vld [vmem:[#allocation2 + $0x4af] sm:$0x1]  ;;  %v8771_v31 = vld [vmem:[#allocation2 + $0x4bf] sm:$0x1]  ;;  %v9077_v37 = vsel %vm803_vm8, %v9076_v57, %v9075_v22  ;;  %v8525_v56 = vsel %vm791_vm4, %v8524_v44, %v8523_v53  ;;  %v9078_v55 = vrot.slane %v8769_v13, 7 }
 0x429   :  { %v8772_v45 = vld [vmem:[#allocation2 + $0x4cf] sm:$0x1]  ;;  %v8773_v39 = vld [vmem:[#allocation2 + $0x4df] sm:$0x1]  ;;  %v9080_v1 = vrot.slane %v8770_v17, 6  ;;  %9200 = vxpose.xlu1.b32.cont [9/16] %v9077_v37, 128  ;;  %v8527_v29 = vsel %vm794_vm5, %v8526_v25, %v8525_v56  ;;  %v9082_v38 = vrot.slane %v8771_v31, 5  ;;  %v7576_v46 = vpop.trf.xlu0  ;;  %v8121_v4 = vpop.trf.xlu1 }
 0x42a   :  { %v8774_v3 = vld [vmem:[#allocation2 + $0x4ef] sm:$0x1]  ;;  %v8775_v26 = vld [vmem:[#allocation2 + $0x4ff] sm:$0x1]  ;;  %v9084_v12 = vrot.slane %v8772_v45, 4  ;;  %v9086_v34 = vrot.slane %v8773_v39, 3  ;;  %v8529_v7 = vsel %vm797_vm6, %v8528_v40, %v8527_v29  ;;  %v9079_v63 = vsel %vm785_vm1, %v9078_v55, %v8768_v27 }
 0x42b   :  { %v8224_v54 = vld [vmem:[#allocation2 + $0x48e] sm:$0x1]  ;;  %v9088_v36 = vrot.slane %v8774_v3, 2  ;;  %v9090_v2 = vrot.slane %v8775_v26, 1  ;;  %v8225_v23 = vld [vmem:[#allocation2 + $0x49e] sm:$0x1]  ;;  %v8531_v47 = vsel %vm800_vm7, %v8530_v21, %v8529_v7  ;;  %v9081_v50 = vsel %vm788_vm2, %v9080_v1, %v9079_v63 }
 0x42c   :  { %v8226_v24 = vld [vmem:[#allocation2 + $0x4ae] sm:$0x1]  ;;  %v8227_v48 = vld [vmem:[#allocation2 + $0x4be] sm:$0x1]  ;;  %v8533_v42 = vsel %vm803_vm8, %v8532_v35, %v8531_v47  ;;  %v9083_v0 = vsel %vm791_vm4, %v9082_v38, %v9081_v50  ;;  %v8534_v61 = vrot.slane %v8225_v23, 7 }
 0x42d   :  { %v8228_v33 = vld [vmem:[#allocation2 + $0x4ce] sm:$0x1]  ;;  %v8229_v8 = vld [vmem:[#allocation2 + $0x4de] sm:$0x1]  ;;  %v8536_v30 = vrot.slane %v8226_v24, 6  ;;  %8656 = vxpose.xlu0.b32.cont [9/16] %v8533_v42, 128  ;;  %v9085_v49 = vsel %vm794_vm5, %v9084_v12, %v9083_v0  ;;  %v8538_v15 = vrot.slane %v8227_v48, 5  ;;  %v7577_v60 = vpop.trf.xlu0  ;;  %v8122_v59 = vpop.trf.xlu1 }
 0x42e   :  { %v8230_v6 = vld [vmem:[#allocation2 + $0x4ee] sm:$0x1]  ;;  %v8231_v18 = vld [vmem:[#allocation2 + $0x4fe] sm:$0x1]  ;;  %v8540_v32 = vrot.slane %v8228_v33, 4  ;;  %v8542_v57 = vrot.slane %v8229_v8, 3  ;;  %v9087_v43 = vsel %vm797_vm6, %v9086_v34, %v9085_v49  ;;  %v8535_v58 = vsel %vm785_vm1, %v8534_v61, %v8224_v54 }
 0x42f   :  { %v8776_v5 = vld [vmem:[#allocation2 + $0x50f] sm:$0x1]  ;;  %v8544_v16 = vrot.slane %v8230_v6, 2  ;;  %v8546_v41 = vrot.slane %v8231_v18, 1  ;;  %v8777_v9 = vld [vmem:[#allocation2 + $0x51f] sm:$0x1]  ;;  %v9089_v51 = vsel %vm800_vm7, %v9088_v36, %v9087_v43  ;;  %v8537_v52 = vsel %vm788_vm2, %v8536_v30, %v8535_v58 }
 0x430   :  { %v8778_v19 = vld [vmem:[#allocation2 + $0x52f] sm:$0x1]  ;;  %v8779_v28 = vld [vmem:[#allocation2 + $0x53f] sm:$0x1]  ;;  %v9091_v44 = vsel %vm803_vm8, %v9090_v2, %v9089_v51  ;;  %v8539_v25 = vsel %vm791_vm4, %v8538_v15, %v8537_v52  ;;  %v9092_v20 = vrot.slane %v8777_v9, 7 }
 0x431   :  { %v8780_v10 = vld [vmem:[#allocation2 + $0x54f] sm:$0x1]  ;;  %v8781_v14 = vld [vmem:[#allocation2 + $0x55f] sm:$0x1]  ;;  %v9094_v11 = vrot.slane %v8778_v19, 6  ;;  %9201 = vxpose.xlu1.b32.cont [10/16] %v9091_v44, 128  ;;  %v8541_v62 = vsel %vm794_vm5, %v8540_v32, %v8539_v25  ;;  %v9096_v21 = vrot.slane %v8779_v28, 5  ;;  %v7578_v22 = vpop.trf.xlu0  ;;  %v8123_v53 = vpop.trf.xlu1 }
 0x432   :  { %v8782_v40 = vld [vmem:[#allocation2 + $0x56f] sm:$0x1]  ;;  %v8783_v27 = vld [vmem:[#allocation2 + $0x57f] sm:$0x1]  ;;  %v9098_v35 = vrot.slane %v8780_v10, 4  ;;  %v9100_v13 = vrot.slane %v8781_v14, 3  ;;  %v8543_v31 = vsel %vm797_vm6, %v8542_v57, %v8541_v62  ;;  %v9093_v45 = vsel %vm785_vm1, %v9092_v20, %v8776_v5 }
 0x433   :  { %v8232_v17 = vld [vmem:[#allocation2 + $0x50e] sm:$0x1]  ;;  %v9102_v39 = vrot.slane %v8782_v40, 2  ;;  %v9104_v37 = vrot.slane %v8783_v27, 1  ;;  %v8233_v56 = vld [vmem:[#allocation2 + $0x51e] sm:$0x1]  ;;  %v8545_v26 = vsel %vm800_vm7, %v8544_v16, %v8543_v31  ;;  %v9095_v55 = vsel %vm788_vm2, %v9094_v11, %v9093_v45 }
 0x434   :  { %v8234_v3 = vld [vmem:[#allocation2 + $0x52e] sm:$0x1]  ;;  %v8235_v1 = vld [vmem:[#allocation2 + $0x53e] sm:$0x1]  ;;  %v8547_v12 = vsel %vm803_vm8, %v8546_v41, %v8545_v26  ;;  %v9097_v34 = vsel %vm791_vm4, %v9096_v21, %v9095_v55  ;;  %v8548_v4 = vrot.slane %v8233_v56, 7 }
 0x435   :  { %v8236_v29 = vld [vmem:[#allocation2 + $0x54e] sm:$0x1]  ;;  %v8237_v38 = vld [vmem:[#allocation2 + $0x55e] sm:$0x1]  ;;  %v8550_v7 = vrot.slane %v8234_v3, 6  ;;  %8657 = vxpose.xlu0.b32.cont [10/16] %v8547_v12, 128  ;;  %v9099_v63 = vsel %vm794_vm5, %v9098_v35, %v9097_v34  ;;  %v8552_v36 = vrot.slane %v8235_v1, 5  ;;  %v7579_v47 = vpop.trf.xlu0  ;;  %v8124_v50 = vpop.trf.xlu1 }
 0x436   :  { %v8238_v54 = vld [vmem:[#allocation2 + $0x56e] sm:$0x1]  ;;  %v8239_v46 = vld [vmem:[#allocation2 + $0x57e] sm:$0x1]  ;;  %v8554_v2 = vrot.slane %v8236_v29, 4  ;;  %v8556_v23 = vrot.slane %v8237_v38, 3  ;;  %v9101_v48 = vsel %vm797_vm6, %v9100_v13, %v9099_v63  ;;  %v8549_v33 = vsel %vm785_vm1, %v8548_v4, %v8232_v17 }
 0x437   :  { %v8784_v24 = vld [vmem:[#allocation2 + $0x58f] sm:$0x1]  ;;  %v8558_v8 = vrot.slane %v8238_v54, 2  ;;  %v8560_v42 = vrot.slane %v8239_v46, 1  ;;  %v8785_v0 = vld [vmem:[#allocation2 + $0x59f] sm:$0x1]  ;;  %v9103_v18 = vsel %vm800_vm7, %v9102_v39, %v9101_v48  ;;  %v8551_v61 = vsel %vm788_vm2, %v8550_v7, %v8549_v33 }
 0x438   :  { %v8786_v6 = vld [vmem:[#allocation2 + $0x5af] sm:$0x1]  ;;  %v8787_v30 = vld [vmem:[#allocation2 + $0x5bf] sm:$0x1]  ;;  %v9105_v32 = vsel %vm803_vm8, %v9104_v37, %v9103_v18  ;;  %v8553_v57 = vsel %vm791_vm4, %v8552_v36, %v8551_v61  ;;  %v9106_v59 = vrot.slane %v8785_v0, 7 }
 0x439   :  { %v8788_v49 = vld [vmem:[#allocation2 + $0x5cf] sm:$0x1]  ;;  %v8789_v15 = vld [vmem:[#allocation2 + $0x5df] sm:$0x1]  ;;  %v9108_v43 = vrot.slane %v8786_v6, 6  ;;  %9202 = vxpose.xlu1.b32.cont [11/16] %v9105_v32, 128  ;;  %v8555_v58 = vsel %vm794_vm5, %v8554_v2, %v8553_v57  ;;  %v9110_v16 = vrot.slane %v8787_v30, 5  ;;  %v7580_v51 = vpop.trf.xlu0  ;;  %v8125_v52 = vpop.trf.xlu1 }
 0x43a   :  { %v8790_v5 = vld [vmem:[#allocation2 + $0x5ef] sm:$0x1]  ;;  %v8791_v60 = vld [vmem:[#allocation2 + $0x5ff] sm:$0x1]  ;;  %v9112_v41 = vrot.slane %v8788_v49, 4  ;;  %v9114_v9 = vrot.slane %v8789_v15, 3  ;;  %v8557_v28 = vsel %vm797_vm6, %v8556_v23, %v8555_v58  ;;  %v9107_v10 = vsel %vm785_vm1, %v9106_v59, %v8784_v24 }
 0x43b   :  { %v8240_v19 = vld [vmem:[#allocation2 + $0x58e] sm:$0x1]  ;;  %v9116_v14 = vrot.slane %v8790_v5, 2  ;;  %v9118_v44 = vrot.slane %v8791_v60, 1  ;;  %v8241_v25 = vld [vmem:[#allocation2 + $0x59e] sm:$0x1]  ;;  %v8559_v27 = vsel %vm800_vm7, %v8558_v8, %v8557_v28  ;;  %v9109_v20 = vsel %vm788_vm2, %v9108_v43, %v9107_v10 }
 0x43c   :  { %v8242_v40 = vld [vmem:[#allocation2 + $0x5ae] sm:$0x1]  ;;  %v8243_v11 = vld [vmem:[#allocation2 + $0x5be] sm:$0x1]  ;;  %v8561_v35 = vsel %vm803_vm8, %v8560_v42, %v8559_v27  ;;  %v9111_v13 = vsel %vm791_vm4, %v9110_v16, %v9109_v20  ;;  %v8562_v53 = vrot.slane %v8241_v25, 7 }
 0x43d   :  { %v8244_v62 = vld [vmem:[#allocation2 + $0x5ce] sm:$0x1]  ;;  %v8245_v21 = vld [vmem:[#allocation2 + $0x5de] sm:$0x1]  ;;  %v8564_v31 = vrot.slane %v8242_v40, 6  ;;  %8658 = vxpose.xlu0.b32.cont [11/16] %v8561_v35, 128  ;;  %v9113_v45 = vsel %vm794_vm5, %v9112_v41, %v9111_v13  ;;  %v8566_v39 = vrot.slane %v8243_v11, 5  ;;  %v7581_v26 = vpop.trf.xlu0  ;;  %v8126_v55 = vpop.trf.xlu1 }
 0x43e   :  { %v8246_v17 = vld [vmem:[#allocation2 + $0x5ee] sm:$0x1]  ;;  %v8247_v22 = vld [vmem:[#allocation2 + $0x5fe] sm:$0x1]  ;;  %v8568_v37 = vrot.slane %v8244_v62, 4  ;;  %v8570_v56 = vrot.slane %v8245_v21, 3  ;;  %v9115_v1 = vsel %vm797_vm6, %v9114_v9, %v9113_v45  ;;  %v8563_v29 = vsel %vm785_vm1, %v8562_v53, %v8240_v19 }
 0x43f   :  { %v8792_v3 = vld [vmem:[#allocation2 + $0x60f] sm:$0x1]  ;;  %v8572_v38 = vrot.slane %v8246_v17, 2  ;;  %v8574_v12 = vrot.slane %v8247_v22, 1  ;;  %v8793_v34 = vld [vmem:[#allocation2 + $0x61f] sm:$0x1]  ;;  %v9117_v46 = vsel %vm800_vm7, %v9116_v14, %v9115_v1  ;;  %v8565_v4 = vsel %vm788_vm2, %v8564_v31, %v8563_v29 }
 0x440   :  { %v8794_v54 = vld [vmem:[#allocation2 + $0x62f] sm:$0x1]  ;;  %v8795_v7 = vld [vmem:[#allocation2 + $0x63f] sm:$0x1]  ;;  %v9119_v2 = vsel %vm803_vm8, %v9118_v44, %v9117_v46  ;;  %v8567_v23 = vsel %vm791_vm4, %v8566_v39, %v8565_v4  ;;  %v9120_v50 = vrot.slane %v8793_v34, 7 }
 0x441   :  { %v8796_v63 = vld [vmem:[#allocation2 + $0x64f] sm:$0x1]  ;;  %v8797_v36 = vld [vmem:[#allocation2 + $0x65f] sm:$0x1]  ;;  %v9122_v48 = vrot.slane %v8794_v54, 6  ;;  %9203 = vxpose.xlu1.b32.cont [12/16] %v9119_v2, 128  ;;  %v8569_v33 = vsel %vm794_vm5, %v8568_v37, %v8567_v23  ;;  %v9124_v8 = vrot.slane %v8795_v7, 5  ;;  %v7582_v18 = vpop.trf.xlu0  ;;  %v8127_v61 = vpop.trf.xlu1 }
 0x442   :  { %v8798_v24 = vld [vmem:[#allocation2 + $0x66f] sm:$0x1]  ;;  %v8799_v47 = vld [vmem:[#allocation2 + $0x67f] sm:$0x1]  ;;  %v9126_v42 = vrot.slane %v8796_v63, 4  ;;  %v9128_v0 = vrot.slane %v8797_v36, 3  ;;  %v8571_v30 = vsel %vm797_vm6, %v8570_v56, %v8569_v33  ;;  %v9121_v49 = vsel %vm785_vm1, %v9120_v50, %v8792_v3 }
 0x443   :  { %v8248_v6 = vld [vmem:[#allocation2 + $0x60e] sm:$0x1]  ;;  %v9130_v15 = vrot.slane %v8798_v24, 2  ;;  %v9132_v32 = vrot.slane %v8799_v47, 1  ;;  %v8249_v57 = vld [vmem:[#allocation2 + $0x61e] sm:$0x1]  ;;  %v8573_v60 = vsel %vm800_vm7, %v8572_v38, %v8571_v30  ;;  %v9123_v59 = vsel %vm788_vm2, %v9122_v48, %v9121_v49 }
 0x444   :  { %v8250_v5 = vld [vmem:[#allocation2 + $0x62e] sm:$0x1]  ;;  %v8251_v43 = vld [vmem:[#allocation2 + $0x63e] sm:$0x1]  ;;  %v8575_v41 = vsel %vm803_vm8, %v8574_v12, %v8573_v60  ;;  %v9125_v9 = vsel %vm791_vm4, %v9124_v8, %v9123_v59  ;;  %v8576_v52 = vrot.slane %v8249_v57, 7 }
 0x445   :  { %v8252_v58 = vld [vmem:[#allocation2 + $0x64e] sm:$0x1]  ;;  %v8253_v16 = vld [vmem:[#allocation2 + $0x65e] sm:$0x1]  ;;  %v8578_v28 = vrot.slane %v8250_v5, 6  ;;  %8659 = vxpose.xlu0.b32.cont [12/16] %v8575_v41, 128  ;;  %v9127_v10 = vsel %vm794_vm5, %v9126_v42, %v9125_v9  ;;  %v8580_v14 = vrot.slane %v8251_v43, 5  ;;  %v7583_v27 = vpop.trf.xlu0  ;;  %v8128_v20 = vpop.trf.xlu1 }
 0x446   :  { %v8254_v19 = vld [vmem:[#allocation2 + $0x66e] sm:$0x1]  ;;  %v8255_v51 = vld [vmem:[#allocation2 + $0x67e] sm:$0x1]  ;;  %v8582_v44 = vrot.slane %v8252_v58, 4  ;;  %v8584_v25 = vrot.slane %v8253_v16, 3  ;;  %v9129_v11 = vsel %vm797_vm6, %v9128_v0, %v9127_v10  ;;  %v8577_v62 = vsel %vm785_vm1, %v8576_v52, %v8248_v6 }
 0x447   :  { %v8800_v40 = vld [vmem:[#allocation2 + $0x68f] sm:$0x1]  ;;  %v8586_v21 = vrot.slane %v8254_v19, 2  ;;  %v8588_v35 = vrot.slane %v8255_v51, 1  ;;  %v8801_v13 = vld [vmem:[#allocation2 + $0x69f] sm:$0x1]  ;;  %v9131_v22 = vsel %vm800_vm7, %v9130_v15, %v9129_v11  ;;  %v8579_v53 = vsel %vm788_vm2, %v8578_v28, %v8577_v62 }
 0x448   :  { %v8802_v17 = vld [vmem:[#allocation2 + $0x6af] sm:$0x1]  ;;  %v8803_v31 = vld [vmem:[#allocation2 + $0x6bf] sm:$0x1]  ;;  %v9133_v37 = vsel %vm803_vm8, %v9132_v32, %v9131_v22  ;;  %v8581_v56 = vsel %vm791_vm4, %v8580_v14, %v8579_v53  ;;  %v9134_v55 = vrot.slane %v8801_v13, 7 }
 0x449   :  { %v8804_v45 = vld [vmem:[#allocation2 + $0x6cf] sm:$0x1]  ;;  %v8805_v39 = vld [vmem:[#allocation2 + $0x6df] sm:$0x1]  ;;  %v9136_v1 = vrot.slane %v8802_v17, 6  ;;  %9204 = vxpose.xlu1.b32.cont [13/16] %v9133_v37, 128  ;;  %v8583_v29 = vsel %vm794_vm5, %v8582_v44, %v8581_v56  ;;  %v9138_v38 = vrot.slane %v8803_v31, 5  ;;  %v7584_v46 = vpop.trf.xlu0  ;;  %v8129_v4 = vpop.trf.xlu1 }
 0x44a   :  { %v8806_v3 = vld [vmem:[#allocation2 + $0x6ef] sm:$0x1]  ;;  %v8807_v26 = vld [vmem:[#allocation2 + $0x6ff] sm:$0x1]  ;;  %v9140_v12 = vrot.slane %v8804_v45, 4  ;;  %v9142_v34 = vrot.slane %v8805_v39, 3  ;;  %v8585_v7 = vsel %vm797_vm6, %v8584_v25, %v8583_v29  ;;  %v9135_v63 = vsel %vm785_vm1, %v9134_v55, %v8800_v40 }
 0x44b   :  { %v8256_v54 = vld [vmem:[#allocation2 + $0x68e] sm:$0x1]  ;;  %v9144_v36 = vrot.slane %v8806_v3, 2  ;;  %v9146_v2 = vrot.slane %v8807_v26, 1  ;;  %v8257_v23 = vld [vmem:[#allocation2 + $0x69e] sm:$0x1]  ;;  %v8587_v47 = vsel %vm800_vm7, %v8586_v21, %v8585_v7  ;;  %v9137_v50 = vsel %vm788_vm2, %v9136_v1, %v9135_v63 }
 0x44c   :  { %v8258_v24 = vld [vmem:[#allocation2 + $0x6ae] sm:$0x1]  ;;  %v8259_v48 = vld [vmem:[#allocation2 + $0x6be] sm:$0x1]  ;;  %v8589_v42 = vsel %vm803_vm8, %v8588_v35, %v8587_v47  ;;  %v9139_v0 = vsel %vm791_vm4, %v9138_v38, %v9137_v50  ;;  %v8590_v61 = vrot.slane %v8257_v23, 7 }
 0x44d   :  { %v8260_v33 = vld [vmem:[#allocation2 + $0x6ce] sm:$0x1]  ;;  %v8261_v8 = vld [vmem:[#allocation2 + $0x6de] sm:$0x1]  ;;  %v8592_v30 = vrot.slane %v8258_v24, 6  ;;  %8660 = vxpose.xlu0.b32.cont [13/16] %v8589_v42, 128  ;;  %v9141_v49 = vsel %vm794_vm5, %v9140_v12, %v9139_v0  ;;  %v8594_v15 = vrot.slane %v8259_v48, 5  ;;  %v7585_v60 = vpop.trf.xlu0  ;;  %v8130_v59 = vpop.trf.xlu1 }
 0x44e   :  { %v8262_v6 = vld [vmem:[#allocation2 + $0x6ee] sm:$0x1]  ;;  %v8263_v18 = vld [vmem:[#allocation2 + $0x6fe] sm:$0x1]  ;;  %v8596_v32 = vrot.slane %v8260_v33, 4  ;;  %v8598_v57 = vrot.slane %v8261_v8, 3  ;;  %v9143_v43 = vsel %vm797_vm6, %v9142_v34, %v9141_v49  ;;  %v8591_v58 = vsel %vm785_vm1, %v8590_v61, %v8256_v54 }
 0x44f   :  { %v8808_v5 = vld [vmem:[#allocation2 + $0x70f] sm:$0x1]  ;;  %v8600_v16 = vrot.slane %v8262_v6, 2  ;;  %v8602_v41 = vrot.slane %v8263_v18, 1  ;;  %v8809_v9 = vld [vmem:[#allocation2 + $0x71f] sm:$0x1]  ;;  %v9145_v51 = vsel %vm800_vm7, %v9144_v36, %v9143_v43  ;;  %v8593_v52 = vsel %vm788_vm2, %v8592_v30, %v8591_v58 }
 0x450   :  { %v8810_v19 = vld [vmem:[#allocation2 + $0x72f] sm:$0x1]  ;;  %v8811_v28 = vld [vmem:[#allocation2 + $0x73f] sm:$0x1]  ;;  %v9147_v44 = vsel %vm803_vm8, %v9146_v2, %v9145_v51  ;;  %v8595_v25 = vsel %vm791_vm4, %v8594_v15, %v8593_v52  ;;  %v9148_v20 = vrot.slane %v8809_v9, 7 }
 0x451   :  { %v8812_v10 = vld [vmem:[#allocation2 + $0x74f] sm:$0x1]  ;;  %v8813_v14 = vld [vmem:[#allocation2 + $0x75f] sm:$0x1]  ;;  %v9150_v11 = vrot.slane %v8810_v19, 6  ;;  %9205 = vxpose.xlu1.b32.cont [14/16] %v9147_v44, 128  ;;  %v8597_v62 = vsel %vm794_vm5, %v8596_v32, %v8595_v25  ;;  %v9152_v21 = vrot.slane %v8811_v28, 5  ;;  %v7586_v22 = vpop.trf.xlu0  ;;  %v8131_v53 = vpop.trf.xlu1 }
 0x452   :  { %v8814_v40 = vld [vmem:[#allocation2 + $0x76f] sm:$0x1]  ;;  %v8815_v27 = vld [vmem:[#allocation2 + $0x77f] sm:$0x1]  ;;  %v9154_v35 = vrot.slane %v8812_v10, 4  ;;  %v9156_v13 = vrot.slane %v8813_v14, 3  ;;  %v8599_v31 = vsel %vm797_vm6, %v8598_v57, %v8597_v62  ;;  %v9149_v45 = vsel %vm785_vm1, %v9148_v20, %v8808_v5 }
 0x453   :  { %v8264_v17 = vld [vmem:[#allocation2 + $0x70e] sm:$0x1]  ;;  %v9158_v39 = vrot.slane %v8814_v40, 2  ;;  %v9160_v37 = vrot.slane %v8815_v27, 1  ;;  %v8265_v56 = vld [vmem:[#allocation2 + $0x71e] sm:$0x1]  ;;  %v8601_v26 = vsel %vm800_vm7, %v8600_v16, %v8599_v31  ;;  %v9151_v55 = vsel %vm788_vm2, %v9150_v11, %v9149_v45 }
 0x454   :  { %v8266_v3 = vld [vmem:[#allocation2 + $0x72e] sm:$0x1]  ;;  %v8267_v1 = vld [vmem:[#allocation2 + $0x73e] sm:$0x1]  ;;  %v8603_v12 = vsel %vm803_vm8, %v8602_v41, %v8601_v26  ;;  %v9153_v34 = vsel %vm791_vm4, %v9152_v21, %v9151_v55  ;;  %v8604_v4 = vrot.slane %v8265_v56, 7 }
 0x455   :  { %v8268_v29 = vld [vmem:[#allocation2 + $0x74e] sm:$0x1]  ;;  %v8269_v38 = vld [vmem:[#allocation2 + $0x75e] sm:$0x1]  ;;  %v8606_v7 = vrot.slane %v8266_v3, 6  ;;  %8661 = vxpose.xlu0.b32.cont [14/16] %v8603_v12, 128  ;;  %v9155_v63 = vsel %vm794_vm5, %v9154_v35, %v9153_v34  ;;  %v8608_v36 = vrot.slane %v8267_v1, 5  ;;  %v7587_v47 = vpop.trf.xlu0  ;;  %v8132_v50 = vpop.trf.xlu1 }
 0x456   :  { %v8270_v54 = vld [vmem:[#allocation2 + $0x76e] sm:$0x1]  ;;  %v8271_v46 = vld [vmem:[#allocation2 + $0x77e] sm:$0x1]  ;;  %v8610_v2 = vrot.slane %v8268_v29, 4  ;;  %v8612_v23 = vrot.slane %v8269_v38, 3  ;;  %v9157_v48 = vsel %vm797_vm6, %v9156_v13, %v9155_v63  ;;  %v8605_v33 = vsel %vm785_vm1, %v8604_v4, %v8264_v17 }
 0x457   :  { %v8816_v24 = vld [vmem:[#allocation2 + $0x78f] sm:$0x1]  ;;  %v8614_v8 = vrot.slane %v8270_v54, 2  ;;  %v8616_v42 = vrot.slane %v8271_v46, 1  ;;  %v8817_v0 = vld [vmem:[#allocation2 + $0x79f] sm:$0x1]  ;;  %v9159_v18 = vsel %vm800_vm7, %v9158_v39, %v9157_v48  ;;  %v8607_v61 = vsel %vm788_vm2, %v8606_v7, %v8605_v33 }
 0x458   :  { %v8818_v6 = vld [vmem:[#allocation2 + $0x7af] sm:$0x1]  ;;  %v8819_v30 = vld [vmem:[#allocation2 + $0x7bf] sm:$0x1]  ;;  %v9161_v32 = vsel %vm803_vm8, %v9160_v37, %v9159_v18  ;;  %v8609_v57 = vsel %vm791_vm4, %v8608_v36, %v8607_v61  ;;  %v9162_v59 = vrot.slane %v8817_v0, 7 }
 0x459   :  { %v8820_v49 = vld [vmem:[#allocation2 + $0x7cf] sm:$0x1]  ;;  %v8821_v15 = vld [vmem:[#allocation2 + $0x7df] sm:$0x1]  ;;  %v9164_v43 = vrot.slane %v8818_v6, 6  ;;  %9206 = vxpose.xlu1.b32.cont [15/16] %v9161_v32, 128  ;;  %v8611_v58 = vsel %vm794_vm5, %v8610_v2, %v8609_v57  ;;  %v9166_v16 = vrot.slane %v8819_v30, 5  ;;  %v7588_v51 = vpop.trf.xlu0  ;;  %v8133_v52 = vpop.trf.xlu1 }
 0x45a   :  { %v8822_v5 = vld [vmem:[#allocation2 + $0x7ef] sm:$0x1]  ;;  %v8823_v60 = vld [vmem:[#allocation2 + $0x7ff] sm:$0x1]  ;;  %v9168_v41 = vrot.slane %v8820_v49, 4  ;;  %v9170_v9 = vrot.slane %v8821_v15, 3  ;;  %v8613_v28 = vsel %vm797_vm6, %v8612_v23, %v8611_v58  ;;  %v9163_v10 = vsel %vm785_vm1, %v9162_v59, %v8816_v24 }
 0x45b   :  { %v8272_v19 = vld [vmem:[#allocation2 + $0x78e] sm:$0x1]  ;;  %v9172_v14 = vrot.slane %v8822_v5, 2  ;;  %v9174_v44 = vrot.slane %v8823_v60, 1  ;;  %v8273_v25 = vld [vmem:[#allocation2 + $0x79e] sm:$0x1]  ;;  %v8615_v27 = vsel %vm800_vm7, %v8614_v8, %v8613_v28  ;;  %v9165_v20 = vsel %vm788_vm2, %v9164_v43, %v9163_v10 }
 0x45c   :  { %v8274_v40 = vld [vmem:[#allocation2 + $0x7ae] sm:$0x1]  ;;  %v8275_v11 = vld [vmem:[#allocation2 + $0x7be] sm:$0x1]  ;;  %v8617_v35 = vsel %vm803_vm8, %v8616_v42, %v8615_v27  ;;  %v9167_v13 = vsel %vm791_vm4, %v9166_v16, %v9165_v20  ;;  %v8618_v22 = vrot.slane %v8273_v25, 7 }
 0x45d   :  { %v8276_v62 = vld [vmem:[#allocation2 + $0x7ce] sm:$0x1]  ;;  %v8277_v21 = vld [vmem:[#allocation2 + $0x7de] sm:$0x1]  ;;  %v8620_v53 = vrot.slane %v8274_v40, 6  ;;  %8662 = vxpose.xlu0.b32.cont [15/16] %v8617_v35, 128  ;;  %v9169_v31 = vsel %vm794_vm5, %v9168_v41, %v9167_v13  ;;  %v8622_v39 = vrot.slane %v8275_v11, 5  ;;  %v7589_v56 = vpop.trf.xlu0  ;;  %v8134_v3 = vpop.trf.xlu1 }
 0x45e   :  { %v8278_v17 = vld [vmem:[#allocation2 + $0x7ee] sm:$0x1]  ;;  %v8279_v45 = vld [vmem:[#allocation2 + $0x7fe] sm:$0x1]  ;;  %v8624_v37 = vrot.slane %v8276_v62, 4  ;;  %v9171_v26 = vsel %vm797_vm6, %v9170_v9, %v9169_v31  ;;  %v8619_v55 = vsel %vm785_vm1, %v8618_v22, %v8272_v19  ;;  %v8626_v1 = vrot.slane %v8277_v21, 3 }
 0x45f   :  { %v9173_v29 = vsel %vm800_vm7, %v9172_v14, %v9171_v26  ;;  %v8621_v38 = vsel %vm788_vm2, %v8620_v53, %v8619_v55  ;;  %v8628_v12 = vrot.slane %v8278_v17, 2  ;;  %v8630_v46 = vrot.slane %v8279_v45, 1 }
 0x460   :  { %v9175_v34 = vsel %vm803_vm8, %v9174_v44, %v9173_v29  ;;  %v8623_v54 = vsel %vm791_vm4, %v8622_v39, %v8621_v38 }
 0x461   :  { %9207 = vxpose.xlu1.b32.end [16/16] %v9175_v34, 128  ;;  %v8625_v4 = vsel %vm794_vm5, %v8624_v37, %v8623_v54  ;;  %v7590_v7 = vpop.trf.xlu0  ;;  %v8135_v63 = vpop.trf.xlu1 }
 0x462   :  { %v8627_v36 = vsel %vm797_vm6, %v8626_v1, %v8625_v4 }
 0x463   :  { %v8629_v2 = vsel %vm800_vm7, %v8628_v12, %v8627_v36 }
 0x464   :  { %v8631_v23 = vsel %vm803_vm8, %v8630_v46, %v8629_v2 }
 0x465   :  { %8663 = vxpose.xlu0.b32.end [16/16] %v8631_v23, 128  ;;  %v7591_v24 = vpop.trf.xlu0 }
 0x4a5   :  { %v9208_v47 = vpop.trf.xlu1 }
 0x4a9   :  { %v8664_v50 = vpop.trf.xlu0  ;;  %v9209_v48 = vpop.trf.xlu1 }
 0x4ad   :  { %v8665_v33 = vpop.trf.xlu0  ;;  %v9210_v8 = vpop.trf.xlu1 }
 0x4b1   :  { %v8666_v42 = vpop.trf.xlu0  ;;  %v9211_v0 = vpop.trf.xlu1 }
 0x4b5   :  { %v8667_v6 = vpop.trf.xlu0  ;;  %v9212_v18 = vpop.trf.xlu1 }
 0x4b9   :  { %v8668_v61 = vpop.trf.xlu0  ;;  %v9213_v30 = vpop.trf.xlu1 }
 0x4bd   :  { %v8669_v49 = vpop.trf.xlu0  ;;  %v9214_v15 = vpop.trf.xlu1 }
 0x4c1   :  { %v8670_v32 = vpop.trf.xlu0  ;;  %v9215_v57 = vpop.trf.xlu1 }
 0x4c5   :  { %v8671_v5 = vpop.trf.xlu0  ;;  %v9216_v60 = vpop.trf.xlu1 }
 0x4c9   :  { %v8672_v59 = vpop.trf.xlu0  ;;  %v9217_v43 = vpop.trf.xlu1 }
 0x4cd   :  { %v8673_v58 = vpop.trf.xlu0  ;;  %v9218_v16 = vpop.trf.xlu1 }
 0x4d1   :  { %v8674_v41 = vpop.trf.xlu0  ;;  %v9219_v9 = vpop.trf.xlu1 }
 0x4d5   :  { %v8675_v19 = vpop.trf.xlu0  ;;  %v9220_v51 = vpop.trf.xlu1 }
 0x4d9   :  { %v8676_v52 = vpop.trf.xlu0  ;;  %v9221_v28 = vpop.trf.xlu1 }
 0x4dd   :  { %v8677_v10 = vpop.trf.xlu0  ;;  %v9222_v14 = vpop.trf.xlu1 }
 0x4e1   :  { %v8678_v44 = vpop.trf.xlu0  ;;  %v9223_v25 = vpop.trf.xlu1 }
 0x4e5   :  { %v8679_v40 = vpop.trf.xlu0 }
 0x4e6   :  { %9304 = vsyncpa [#allocation4], 1 }

</bundles_post_ra>
